<compile_context>
chip_gen: v7x
topology: tpu7x:2x2x1
jax: 0.10.0
libtpu: 0.0.40
codegen_flags: <defaults>
</compile_context>

<pallas_src>
import numpy as np
import jax
import jax.numpy as jnp
from jax import lax
from jax.experimental import pallas as pl
from jax.experimental.pallas import tpu as pltpu


# ----------------------------------------------------------------------------
# Static configuration helpers
# ----------------------------------------------------------------------------
def _cfg_from_params(params, H, W):
    """Derive static per-stage config (spatial sizes, channels, row-block size for
    the flattened conv) from the parameter pytree."""
    enc = params[:-1]
    dec_convs, _ = params[-1]
    depth = len(enc[0][0])
    stages = []
    h, w = H, W
    for convs, p in enc:
        w0 = convs[0][0]
        k, _, cin, cout = w0.shape
        assert k == 3, "fused kernel assumes 3x3 encoder convs"
        assert h % p == 0 and w % p == 0, "spatial must be divisible by pool size"
        wp = w + 2
        tb = 1
        for cand in range(h, 0, -1):
            # largest row block whose flattened slab stays register friendly
            if h % cand == 0 and (cand - 1) * wp + w <= 128:
                tb = cand
                break
        stages.append(dict(H=h, W=w, Hp=h + 2, Wp=wp, Cin=cin, Cout=cout,
                           pool=p, TB=tb, M=(tb - 1) * wp + w))
        h, w = h // p, w // p
    wd = dec_convs[0][0]
    assert wd.shape[0] == 1, "decoder must be a 1x1 conv"
    dec = dict(H=h, W=w, Cin=wd.shape[2], Cout=wd.shape[3])
    return dict(stages=stages, dec=dec, depth=depth)


def _halo_mask(M, Wp):
    """1.0 at valid conv-output positions of a flattened row-block slab, 0.0 at the
    wrap-around / halo columns.  Periodic in Wp, so one block-sized mask serves
    every row block of a stage."""
    idx = np.arange(M)
    col = (idx + 1) % Wp
    ok = (col != 0) & (col != Wp - 1)
    return jnp.asarray(ok.astype(np.float32)[:, None])


# ----------------------------------------------------------------------------
# Fused Pallas kernel (whole network, one batch element per grid step)
# ----------------------------------------------------------------------------
def _make_fused_kernel(cfg):
    stages = cfg["stages"]
    depth = cfg["depth"]
    n_stage = len(stages)
    n_conv = n_stage * depth + 1   # encoder convs + 1x1 decoder conv

    # ---- 3x3 conv (stride 1, zero halo) on a flattened (Hp*Wp, C) VMEM buffer ----
    def conv3x3(src, w_ref, sc_ref, sh_ref, mask_ref, dst, st):
        Hs, Wp, TB, M = st["H"], st["Wp"], st["TB"], st["M"]

        def block(row0):
            out_start = (row0 + 1) * Wp + 1
            acc = None
            for dy in range(3):
                for dx in range(3):
                    off = (dy - 1) * Wp + (dx - 1)
                    slab = src[pl.ds(out_start + off, M), :].astype(jnp.bfloat16)
                    part = jnp.dot(slab, w_ref[dy * 3 + dx],
                                   preferred_element_type=jnp.float32)
                    acc = part if acc is None else acc + part
            y = jnp.maximum(acc * sc_ref[...] + sh_ref[...], 0.0)
            y = y * mask_ref[...]                  # keep the zero halo intact
            dst[pl.ds(out_start, M), :] = y

        nblk = Hs // TB
        if nblk == 1:
            block(0)
        else:
            @pl.loop(0, nblk)
            def _(b):
                block(b * TB)

    # ---- non-overlapping p x p max pool on a flattened (Hp*Wp, C) VMEM buffer ----
    def maxpool(src, dst, rowbuf, st, dst_halo, dst_Wp):
        Hs, Ws, Wp, p = st["H"], st["W"], st["Wp"], st["pool"]
        Ho, Wo = Hs // p, Ws // p

        def one_row(ho):
            r0 = (ho * p + 1) * Wp + 1
            rmax = src[pl.ds(r0, Ws), :]
            for r in range(1, p):
                rmax = jnp.maximum(rmax, src[pl.ds(r0 + r * Wp, Ws), :])
            rowbuf[...] = rmax
            cmax = rowbuf[pl.ds(0, Wo, stride=p), :]
            for k in range(1, p):
                cmax = jnp.maximum(cmax, rowbuf[pl.ds(k, Wo, stride=p), :])
            if dst_halo:
                dst[pl.ds((ho + 1) * dst_Wp + 1, Wo), :] = cmax
            else:
                dst[pl.ds(ho * Wo, Wo), :] = cmax

        if Ho <= 2:
            for ho in range(Ho):
                one_row(ho)
        else:
            @pl.loop(0, Ho)
            def _(ho):
                one_row(ho)

    # ---- the fused kernel body -------------------------------------------------
    def kernel(*refs):
        i = 0
        x_ref = refs[i]; i += 1
        conv_p = []
        for _ in range(n_conv):
            conv_p.append((refs[i], refs[i + 1], refs[i + 2]))
            i += 3
        masks = list(refs[i:i + n_stage]); i += n_stage
        o_ref = refs[i]; i += 1
        scr = list(refs[i:])

        # unpack scratch (same order as scratch_shapes in the wrapper)
        j = 0
        stage_scr = []
        for s in range(n_stage):
            in_buf = None
            if s > 0:
                in_buf = scr[j]; j += 1
            nbuf = min(depth, 2)
            bufs = [scr[j + k] for k in range(nbuf)]; j += nbuf
            rowbuf = scr[j]; j += 1
            stage_scr.append((in_buf, bufs, rowbuf))
        dec_in = scr[j]

        # zero all activation buffers once per grid step so halos are clean
        for in_buf, bufs, _ in stage_scr:
            if in_buf is not None:
                in_buf[...] = jnp.zeros(in_buf.shape, in_buf.dtype)
            for b in bufs:
                b[...] = jnp.zeros(b.shape, b.dtype)

        # encoder stages
        ci = 0
        for s, st in enumerate(stages):
            in_buf, bufs, rowbuf = stage_scr[s]
            src = x_ref if s == 0 else in_buf
            for d in range(depth):
                w_ref, sc_ref, sh_ref = conv_p[ci]; ci += 1
                dst = bufs[d % len(bufs)]
                conv3x3(src, w_ref, sc_ref, sh_ref, masks[s], dst, st)
                src = dst
            if s + 1 < n_stage:
                maxpool(src, stage_scr[s + 1][0], rowbuf, st, True,
                        stages[s + 1]["Wp"])
            else:
                maxpool(src, dec_in, rowbuf, st, False, 0)

        # decoder: 1x1 conv + ReLU
        w_ref, sc_ref, sh_ref = conv_p[ci]
        xd = dec_in[...].astype(jnp.bfloat16)
        y = jnp.dot(xd, w_ref[0], preferred_element_type=jnp.float32)
        y = jnp.maximum(y * sc_ref[...] + sh_ref[...], 0.0)
        o_ref[...] = y.astype(o_ref.dtype)

    return kernel


# ----------------------------------------------------------------------------
# Wrapper: single pallas_call for the whole forward pass
# ----------------------------------------------------------------------------
def segmentation_cnn_forward(params, x_nchw):
    N, cin0, H, W = x_nchw.shape
    cfg = _cfg_from_params(params, H, W)
    stages, dec, depth = cfg["stages"], cfg["dec"], cfg["depth"]
    n_stage = len(stages)

    # network input: NCHW -> NHWC, one-time zero halo pad, flatten spatial
    x = jnp.transpose(x_nchw, (0, 2, 3, 1)).astype(jnp.float32)
    xp = jnp.pad(x, ((0, 0), (1, 1), (1, 1), (0, 0)))
    Hp0, Wp0 = H + 2, W + 2
    x_flat = xp.reshape(N, Hp0 * Wp0, cin0)

    def const_map(ndim):
        return lambda n: (0,) * ndim

    inputs = [x_flat]
    in_specs = [pl.BlockSpec((None, Hp0 * Wp0, cin0), lambda n: (n, 0, 0))]

    # conv weights (bf16, (k*k, Cin, Cout)) + folded BN scale/shift (f32)
    all_convs = [c for convs, _ in params for c in convs]
    for wgt, scale, shift in all_convs:
        k, _, cin, cout = wgt.shape
        wk = jnp.asarray(wgt).reshape(k * k, cin, cout).astype(jnp.bfloat16)
        inputs += [wk,
                   jnp.asarray(scale, jnp.float32),
                   jnp.asarray(shift, jnp.float32)]
        in_specs += [pl.BlockSpec((k * k, cin, cout), const_map(3)),
                     pl.BlockSpec((1, cout), const_map(2)),
                     pl.BlockSpec((1, cout), const_map(2))]

    # periodic halo masks, one per encoder stage
    for st in stages:
        m = _halo_mask(st["M"], st["Wp"])
        inputs.append(m)
        in_specs.append(pl.BlockSpec(m.shape, const_map(2)))

    # output: flattened final spatial, reshaped back to NCHW in glue
    HWf = dec["H"] * dec["W"]
    out_shape = jax.ShapeDtypeStruct((N, HWf, dec["Cout"]), jnp.float32)
    out_specs = pl.BlockSpec((None, HWf, dec["Cout"]), lambda n: (n, 0, 0))

    # VMEM scratch: flattened activations (with halo) + pooling row buffers
    scratch = []
    for s, st in enumerate(stages):
        flat = st["Hp"] * st["Wp"]
        if s > 0:
            scratch.append(pltpu.VMEM((flat, st["Cin"]), jnp.float32))
        for _ in range(min(depth, 2)):
            scratch.append(pltpu.VMEM((flat, st["Cout"]), jnp.float32))
        scratch.append(pltpu.VMEM((st["W"], st["Cout"]), jnp.float32))
    scratch.append(pltpu.VMEM((HWf, dec["Cin"]), jnp.float32))

    # advisory cost estimate
    flops = 0
    for st in stages:
        hw = st["H"] * st["W"]
        flops += 2 * 9 * hw * st["Cin"] * st["Cout"]
        flops += (depth - 1) * 2 * 9 * hw * st["Cout"] * st["Cout"]
    flops += 2 * HWf * dec["Cin"] * dec["Cout"]
    flops *= N
    bytes_accessed = int(sum(int(np.prod(a.shape)) * a.dtype.itemsize for a in inputs))
    bytes_accessed += int(N * HWf * dec["Cout"] * 4)

    kernel = _make_fused_kernel(cfg)
    y = pl.pallas_call(
        kernel,
        out_shape=out_shape,
        grid=(N,),
        in_specs=in_specs,
        out_specs=out_specs,
        scratch_shapes=scratch,
        compiler_params=pltpu.CompilerParams(
            dimension_semantics=("parallel",)),   # megacore split on v7x
        cost_estimate=pl.CostEstimate(flops=int(flops), transcendentals=0,
                                      bytes_accessed=bytes_accessed),
    )(*inputs)

    return y.reshape(N, dec["H"], dec["W"], dec["Cout"]).transpose(0, 3, 1, 2)


# ----------------------------------------------------------------------------
# Deterministic synthetic parameters (matches module shapes, eval-mode BN folded)
# ----------------------------------------------------------------------------
def _conv_init(key, kh, kw, cin, cout):
    k1, k2 = jax.random.split(key)
    fan_in = kh * kw * cin
    w = jax.random.normal(k1, (kh, kw, cin, cout), jnp.float32) * (2.0 / fan_in) ** 0.5
    b = 0.01 * jax.random.normal(k2, (cout,), jnp.float32)
    return w, b


def init_params(key, in_channels, out_channels, embedding_size, pool_sizes,
                depth, kernel_size):
    cfg = [(in_channels, embedding_size, kernel_size, pool_sizes[0])]
    c = embedding_size
    for i in range(1, len(pool_sizes)):
        cfg.append((c, c * 2, kernel_size, pool_sizes[i]))
        c *= 2
    cfg.append((embedding_size * 2 ** (len(pool_sizes) - 1), out_channels, 1, 1))

    stages = []
    eps = 1e-5
    for cin, cout, k, p in cfg:
        convs = []
        key, sub = jax.random.split(key)
        w, b = _conv_init(sub, k, k, cin, cout)
        convs.append((w, jnp.ones((1, cout), jnp.float32), b.reshape(1, cout)))
        if not (k == 1 and p == 1):   # encoder stages: extra conv+BN+ReLU layers
            for _ in range(depth - 1):
                key, s1, s2, s3, s4 = jax.random.split(key, 5)
                w2, b2 = _conv_init(s1, k, k, cout, cout)
                gamma = 1.0 + 0.1 * jax.random.normal(s2, (cout,), jnp.float32)
                beta = 0.1 * jax.random.normal(s3, (cout,), jnp.float32)
                r_mean = 0.1 * jax.random.normal(s4, (cout,), jnp.float32)
                r_var = jnp.ones((cout,), jnp.float32)
                s = gamma / jnp.sqrt(r_var + eps)          # fold BN (eval mode)
                shift = (b2 - r_mean) * s + beta
                convs.append((w2, s.reshape(1, cout), shift.reshape(1, cout)))
        stages.append((convs, p))
    return stages


# ----------------------------------------------------------------------------
# Pure-JAX (XLA) reference with identical semantics, for verification
# ----------------------------------------------------------------------------
def reference_forward(params, x_nchw, *, bf16_matmul=True):
    x = jnp.transpose(x_nchw, (0, 2, 3, 1)).astype(jnp.float32)
    for convs, pool in params:
        for w, scale, shift in convs:
            pad = w.shape[0] // 2
            lhs = x.astype(jnp.bfloat16) if bf16_matmul else x
            rhs = w.astype(jnp.bfloat16) if bf16_matmul else w
            y = lax.conv_general_dilated(
                lhs, rhs, window_strides=(1, 1),
                padding=[(pad, pad), (pad, pad)],
                dimension_numbers=("NHWC", "HWIO", "NHWC"),
                preferred_element_type=jnp.float32)
            x = jnp.maximum(y * scale + shift, 0.0)
        if pool > 1:
            x = lax.reduce_window(x, -jnp.inf, lax.max,
                                  (1, pool, pool, 1), (1, pool, pool, 1), "VALID")
    return jnp.transpose(x, (0, 3, 1, 2))


# ----------------------------------------------------------------------------
if __name__ == "__main__":
    key = jax.random.PRNGKey(0)
    in_channels, out_channels = 4, 3
    embedding_size = 16
    pool_sizes = [5, 5, 2]          # fixed inside SegmentationCNN.__init__
    depth = 2
    kernel_size = 3
    B, H, W = 2, 50, 50             # spatial divisible by prod(pool_sizes) = 50

    k_x, k_p = jax.random.split(key)
    x = jax.random.normal(k_x, (B, in_channels, H, W), jnp.float32)
    params = init_params(k_p, in_channels, out_channels, embedding_size,
                         pool_sizes, depth, kernel_size)

    y = jax.block_until_ready(segmentation_cnn_forward(params, x))
    prod_pool = int(np.prod(pool_sizes))
    assert y.shape == (B, out_channels, H // prod_pool, W // prod_pool), y.shape

    # tight check against a reference using the same bf16-operand / f32-accumulate math
    y_ref = jax.block_until_ready(reference_forward(params, x, bf16_matmul=True))
    np.testing.assert_allclose(np.asarray(y), np.asarray(y_ref), rtol=1e-2, atol=1e-2)

    # loose sanity check against the pure-f32 reference
    y_ref32 = jax.block_until_ready(reference_forward(params, x, bf16_matmul=False))
    np.testing.assert_allclose(np.asarray(y), np.asarray(y_ref32), rtol=1e-1, atol=1e-1)

    print("KERNEL_OK")
</pallas_src>

<mosaic_0001>
module attributes {stable_mosaic.version = 11 : i64} {
  func.func @kernel(%arg0: i32, %arg1: memref<1x2704x4xf32, #tpu.memory_space<vmem>>, %arg2: memref<9x4x16xbf16, #tpu.memory_space<vmem>>, %arg3: memref<1x16xf32, #tpu.memory_space<vmem>>, %arg4: memref<1x16xf32, #tpu.memory_space<vmem>>, %arg5: memref<9x16x16xbf16, #tpu.memory_space<vmem>>, %arg6: memref<1x16xf32, #tpu.memory_space<vmem>>, %arg7: memref<1x16xf32, #tpu.memory_space<vmem>>, %arg8: memref<9x16x32xbf16, #tpu.memory_space<vmem>>, %arg9: memref<1x32xf32, #tpu.memory_space<vmem>>, %arg10: memref<1x32xf32, #tpu.memory_space<vmem>>, %arg11: memref<9x32x32xbf16, #tpu.memory_space<vmem>>, %arg12: memref<1x32xf32, #tpu.memory_space<vmem>>, %arg13: memref<1x32xf32, #tpu.memory_space<vmem>>, %arg14: memref<9x32x64xbf16, #tpu.memory_space<vmem>>, %arg15: memref<1x64xf32, #tpu.memory_space<vmem>>, %arg16: memref<1x64xf32, #tpu.memory_space<vmem>>, %arg17: memref<9x64x64xbf16, #tpu.memory_space<vmem>>, %arg18: memref<1x64xf32, #tpu.memory_space<vmem>>, %arg19: memref<1x64xf32, #tpu.memory_space<vmem>>, %arg20: memref<1x64x3xbf16, #tpu.memory_space<vmem>>, %arg21: memref<1x3xf32, #tpu.memory_space<vmem>>, %arg22: memref<1x3xf32, #tpu.memory_space<vmem>>, %arg23: memref<102x1xf32, #tpu.memory_space<vmem>>, %arg24: memref<118x1xf32, #tpu.memory_space<vmem>>, %arg25: memref<6x1xf32, #tpu.memory_space<vmem>>, %arg26: memref<1x1x3xf32, #tpu.memory_space<vmem>>, %arg27: memref<2704x16xf32, #tpu.memory_space<vmem>>, %arg28: memref<2704x16xf32, #tpu.memory_space<vmem>>, %arg29: memref<50x16xf32, #tpu.memory_space<vmem>>, %arg30: memref<144x16xf32, #tpu.memory_space<vmem>>, %arg31: memref<144x32xf32, #tpu.memory_space<vmem>>, %arg32: memref<144x32xf32, #tpu.memory_space<vmem>>, %arg33: memref<10x32xf32, #tpu.memory_space<vmem>>, %arg34: memref<16x32xf32, #tpu.memory_space<vmem>>, %arg35: memref<16x64xf32, #tpu.memory_space<vmem>>, %arg36: memref<16x64xf32, #tpu.memory_space<vmem>>, %arg37: memref<2x64xf32, #tpu.memory_space<vmem>>, %arg38: memref<1x64xf32, #tpu.memory_space<vmem>>) attributes {dimension_semantics = [#tpu.dimension_semantics<parallel>], iteration_bounds = array<i64: 2>, scalar_prefetch = 0 : i64, scratch_operands = 12 : i64, tpu.core_type = #tpu.core_type<tc>, window_params = [{transform_indices = @transform_0, window_bounds = array<i64: 1, 2704, 4>}, {pipeline_mode = #tpu.pipeline_mode<synchronous>, transform_indices = @transform_1, window_bounds = array<i64: 9, 4, 16>}, {pipeline_mode = #tpu.pipeline_mode<synchronous>, transform_indices = @transform_2, window_bounds = array<i64: 1, 16>}, {pipeline_mode = #tpu.pipeline_mode<synchronous>, transform_indices = @transform_3, window_bounds = array<i64: 1, 16>}, {pipeline_mode = #tpu.pipeline_mode<synchronous>, transform_indices = @transform_4, window_bounds = array<i64: 9, 16, 16>}, {pipeline_mode = #tpu.pipeline_mode<synchronous>, transform_indices = @transform_5, window_bounds = array<i64: 1, 16>}, {pipeline_mode = #tpu.pipeline_mode<synchronous>, transform_indices = @transform_6, window_bounds = array<i64: 1, 16>}, {pipeline_mode = #tpu.pipeline_mode<synchronous>, transform_indices = @transform_7, window_bounds = array<i64: 9, 16, 32>}, {pipeline_mode = #tpu.pipeline_mode<synchronous>, transform_indices = @transform_8, window_bounds = array<i64: 1, 32>}, {pipeline_mode = #tpu.pipeline_mode<synchronous>, transform_indices = @transform_9, window_bounds = array<i64: 1, 32>}, {pipeline_mode = #tpu.pipeline_mode<synchronous>, transform_indices = @transform_10, window_bounds = array<i64: 9, 32, 32>}, {pipeline_mode = #tpu.pipeline_mode<synchronous>, transform_indices = @transform_11, window_bounds = array<i64: 1, 32>}, {pipeline_mode = #tpu.pipeline_mode<synchronous>, transform_indices = @transform_12, window_bounds = array<i64: 1, 32>}, {pipeline_mode = #tpu.pipeline_mode<synchronous>, transform_indices = @transform_13, window_bounds = array<i64: 9, 32, 64>}, {pipeline_mode = #tpu.pipeline_mode<synchronous>, transform_indices = @transform_14, window_bounds = array<i64: 1, 64>}, {pipeline_mode = #tpu.pipeline_mode<synchronous>, transform_indices = @transform_15, window_bounds = array<i64: 1, 64>}, {pipeline_mode = #tpu.pipeline_mode<synchronous>, transform_indices = @transform_16, window_bounds = array<i64: 9, 64, 64>}, {pipeline_mode = #tpu.pipeline_mode<synchronous>, transform_indices = @transform_17, window_bounds = array<i64: 1, 64>}, {pipeline_mode = #tpu.pipeline_mode<synchronous>, transform_indices = @transform_18, window_bounds = array<i64: 1, 64>}, {pipeline_mode = #tpu.pipeline_mode<synchronous>, transform_indices = @transform_19, window_bounds = array<i64: 1, 64, 3>}, {pipeline_mode = #tpu.pipeline_mode<synchronous>, transform_indices = @transform_20, window_bounds = array<i64: 1, 3>}, {pipeline_mode = #tpu.pipeline_mode<synchronous>, transform_indices = @transform_21, window_bounds = array<i64: 1, 3>}, {pipeline_mode = #tpu.pipeline_mode<synchronous>, transform_indices = @transform_22, window_bounds = array<i64: 102, 1>}, {pipeline_mode = #tpu.pipeline_mode<synchronous>, transform_indices = @transform_23, window_bounds = array<i64: 118, 1>}, {pipeline_mode = #tpu.pipeline_mode<synchronous>, transform_indices = @transform_24, window_bounds = array<i64: 6, 1>}, {transform_indices = @transform_25, window_bounds = array<i64: 1, 1, 3>}]} {
    %cst = arith.constant 0.000000e+00 : f32
    %0 = vector.broadcast %cst : f32 to vector<2704x16xf32>
    %c0 = arith.constant 0 : index
    %c0_0 = arith.constant 0 : index
    %1 = vector.load %arg27[%c0, %c0_0] : memref<2704x16xf32, #tpu.memory_space<vmem>>, vector<2704x16xf32>
    tpu.vector_store %arg27[%c0, %c0_0], %0 {strides = array<i32>} : memref<2704x16xf32, #tpu.memory_space<vmem>>, vector<2704x16xf32>,
    %cst_1 = arith.constant 0.000000e+00 : f32
    %2 = vector.broadcast %cst_1 : f32 to vector<2704x16xf32>
    %c0_2 = arith.constant 0 : index
    %c0_3 = arith.constant 0 : index
    %3 = vector.load %arg28[%c0_2, %c0_3] : memref<2704x16xf32, #tpu.memory_space<vmem>>, vector<2704x16xf32>
    tpu.vector_store %arg28[%c0_2, %c0_3], %2 {strides = array<i32>} : memref<2704x16xf32, #tpu.memory_space<vmem>>, vector<2704x16xf32>,
    %cst_4 = arith.constant 0.000000e+00 : f32
    %4 = vector.broadcast %cst_4 : f32 to vector<144x16xf32>
    %c0_5 = arith.constant 0 : index
    %c0_6 = arith.constant 0 : index
    %5 = vector.load %arg30[%c0_5, %c0_6] : memref<144x16xf32, #tpu.memory_space<vmem>>, vector<144x16xf32>
    tpu.vector_store %arg30[%c0_5, %c0_6], %4 {strides = array<i32>} : memref<144x16xf32, #tpu.memory_space<vmem>>, vector<144x16xf32>,
    %cst_7 = arith.constant 0.000000e+00 : f32
    %6 = vector.broadcast %cst_7 : f32 to vector<144x32xf32>
    %c0_8 = arith.constant 0 : index
    %c0_9 = arith.constant 0 : index
    %7 = vector.load %arg31[%c0_8, %c0_9] : memref<144x32xf32, #tpu.memory_space<vmem>>, vector<144x32xf32>
    tpu.vector_store %arg31[%c0_8, %c0_9], %6 {strides = array<i32>} : memref<144x32xf32, #tpu.memory_space<vmem>>, vector<144x32xf32>,
    %cst_10 = arith.constant 0.000000e+00 : f32
    %8 = vector.broadcast %cst_10 : f32 to vector<144x32xf32>
    %c0_11 = arith.constant 0 : index
    %c0_12 = arith.constant 0 : index
    %9 = vector.load %arg32[%c0_11, %c0_12] : memref<144x32xf32, #tpu.memory_space<vmem>>, vector<144x32xf32>
    tpu.vector_store %arg32[%c0_11, %c0_12], %8 {strides = array<i32>} : memref<144x32xf32, #tpu.memory_space<vmem>>, vector<144x32xf32>,
    %cst_13 = arith.constant 0.000000e+00 : f32
    %10 = vector.broadcast %cst_13 : f32 to vector<16x32xf32>
    %c0_14 = arith.constant 0 : index
    %c0_15 = arith.constant 0 : index
    %11 = vector.load %arg34[%c0_14, %c0_15] : memref<16x32xf32, #tpu.memory_space<vmem>>, vector<16x32xf32>
    tpu.vector_store %arg34[%c0_14, %c0_15], %10 {strides = array<i32>} : memref<16x32xf32, #tpu.memory_space<vmem>>, vector<16x32xf32>,
    %cst_16 = arith.constant 0.000000e+00 : f32
    %12 = vector.broadcast %cst_16 : f32 to vector<16x64xf32>
    %c0_17 = arith.constant 0 : index
    %c0_18 = arith.constant 0 : index
    %13 = vector.load %arg35[%c0_17, %c0_18] : memref<16x64xf32, #tpu.memory_space<vmem>>, vector<16x64xf32>
    tpu.vector_store %arg35[%c0_17, %c0_18], %12 {strides = array<i32>} : memref<16x64xf32, #tpu.memory_space<vmem>>, vector<16x64xf32>,
    %cst_19 = arith.constant 0.000000e+00 : f32
    %14 = vector.broadcast %cst_19 : f32 to vector<16x64xf32>
    %c0_20 = arith.constant 0 : index
    %c0_21 = arith.constant 0 : index
    %15 = vector.load %arg36[%c0_20, %c0_21] : memref<16x64xf32, #tpu.memory_space<vmem>>, vector<16x64xf32>
    tpu.vector_store %arg36[%c0_20, %c0_21], %14 {strides = array<i32>} : memref<16x64xf32, #tpu.memory_space<vmem>>, vector<16x64xf32>,
    %c0_i32 = arith.constant 0 : i32
    %c25_i32 = arith.constant 25 : i32
    %16 = arith.addi %c0_i32, %c25_i32 : i32
    %c1_i32 = arith.constant 1 : i32
    scf.for %arg39 = %c0_i32 to %16 step %c1_i32  : i32 {
      %c1_i32_332 = arith.constant 1 : i32
      %341 = arith.muli %arg39, %c1_i32_332 : i32
      %c0_i32_333 = arith.constant 0 : i32
      %342 = arith.addi %c0_i32_333, %341 : i32
      %c2_i32 = arith.constant 2 : i32
      %343 = arith.muli %342, %c2_i32 : i32
      %c1_i32_334 = arith.constant 1 : i32
      %344 = arith.addi %343, %c1_i32_334 : i32
      %c52_i32 = arith.constant 52 : i32
      %345 = arith.muli %344, %c52_i32 : i32
      %c1_i32_335 = arith.constant 1 : i32
      %346 = arith.addi %345, %c1_i32_335 : i32
      %c-53_i32 = arith.constant -53 : i32
      %347 = arith.addi %346, %c-53_i32 : i32
      %c0_336 = arith.constant 0 : index
      %348 = arith.index_cast %347 : i32 to index
      %c0_337 = arith.constant 0 : index
      %349 = vector.load %arg1[%c0_336, %348, %c0_337] : memref<1x2704x4xf32, #tpu.memory_space<vmem>>, vector<1x102x4xf32>
      %350 = vector.shape_cast %349 : vector<1x102x4xf32> to vector<102x4xf32>
      %351 = arith.truncf %350 : vector<102x4xf32> to vector<102x4xbf16>
      %c0_338 = arith.constant 0 : index
      %c0_339 = arith.constant 0 : index
      %c0_340 = arith.constant 0 : index
      %352 = vector.load %arg2[%c0_338, %c0_339, %c0_340] : memref<9x4x16xbf16, #tpu.memory_space<vmem>>, vector<1x4x16xbf16>
      %353 = vector.shape_cast %352 : vector<1x4x16xbf16> to vector<4x16xbf16>
      %cst_341 = arith.constant dense<0.000000e+00> : vector<102x16xf32>
      %354 = tpu.matmul %351, %353, %cst_341 {dimension_numbers = #tpu.dot_dimension_numbers<[1], [0], [0], [1], [0, 0, 1, 1], [], []>} : vector<102x4xbf16>, vector<4x16xbf16>, vector<102x16xf32> -> vector<102x16xf32>
      %c-52_i32 = arith.constant -52 : i32
      %355 = arith.addi %346, %c-52_i32 : i32
      %c0_342 = arith.constant 0 : index
      %356 = arith.index_cast %355 : i32 to index
      %c0_343 = arith.constant 0 : index
      %357 = vector.load %arg1[%c0_342, %356, %c0_343] : memref<1x2704x4xf32, #tpu.memory_space<vmem>>, vector<1x102x4xf32>
      %358 = vector.shape_cast %357 : vector<1x102x4xf32> to vector<102x4xf32>
      %359 = arith.truncf %358 : vector<102x4xf32> to vector<102x4xbf16>
      %c1_344 = arith.constant 1 : index
      %c0_345 = arith.constant 0 : index
      %c0_346 = arith.constant 0 : index
      %360 = vector.load %arg2[%c1_344, %c0_345, %c0_346] : memref<9x4x16xbf16, #tpu.memory_space<vmem>>, vector<1x4x16xbf16>
      %361 = vector.shape_cast %360 : vector<1x4x16xbf16> to vector<4x16xbf16>
      %cst_347 = arith.constant dense<0.000000e+00> : vector<102x16xf32>
      %362 = tpu.matmul %359, %361, %cst_347 {dimension_numbers = #tpu.dot_dimension_numbers<[1], [0], [0], [1], [0, 0, 1, 1], [], []>} : vector<102x4xbf16>, vector<4x16xbf16>, vector<102x16xf32> -> vector<102x16xf32>
      %363 = arith.addf %354, %362 : vector<102x16xf32>
      %c-51_i32 = arith.constant -51 : i32
      %364 = arith.addi %346, %c-51_i32 : i32
      %c0_348 = arith.constant 0 : index
      %365 = arith.index_cast %364 : i32 to index
      %c0_349 = arith.constant 0 : index
      %366 = vector.load %arg1[%c0_348, %365, %c0_349] : memref<1x2704x4xf32, #tpu.memory_space<vmem>>, vector<1x102x4xf32>
      %367 = vector.shape_cast %366 : vector<1x102x4xf32> to vector<102x4xf32>
      %368 = arith.truncf %367 : vector<102x4xf32> to vector<102x4xbf16>
      %c2_350 = arith.constant 2 : index
      %c0_351 = arith.constant 0 : index
      %c0_352 = arith.constant 0 : index
      %369 = vector.load %arg2[%c2_350, %c0_351, %c0_352] : memref<9x4x16xbf16, #tpu.memory_space<vmem>>, vector<1x4x16xbf16>
      %370 = vector.shape_cast %369 : vector<1x4x16xbf16> to vector<4x16xbf16>
      %cst_353 = arith.constant dense<0.000000e+00> : vector<102x16xf32>
      %371 = tpu.matmul %368, %370, %cst_353 {dimension_numbers = #tpu.dot_dimension_numbers<[1], [0], [0], [1], [0, 0, 1, 1], [], []>} : vector<102x4xbf16>, vector<4x16xbf16>, vector<102x16xf32> -> vector<102x16xf32>
      %372 = arith.addf %363, %371 : vector<102x16xf32>
      %c-1_i32 = arith.constant -1 : i32
      %373 = arith.addi %346, %c-1_i32 : i32
      %c0_354 = arith.constant 0 : index
      %374 = arith.index_cast %373 : i32 to index
      %c0_355 = arith.constant 0 : index
      %375 = vector.load %arg1[%c0_354, %374, %c0_355] : memref<1x2704x4xf32, #tpu.memory_space<vmem>>, vector<1x102x4xf32>
      %376 = vector.shape_cast %375 : vector<1x102x4xf32> to vector<102x4xf32>
      %377 = arith.truncf %376 : vector<102x4xf32> to vector<102x4xbf16>
      %c3_356 = arith.constant 3 : index
      %c0_357 = arith.constant 0 : index
      %c0_358 = arith.constant 0 : index
      %378 = vector.load %arg2[%c3_356, %c0_357, %c0_358] : memref<9x4x16xbf16, #tpu.memory_space<vmem>>, vector<1x4x16xbf16>
      %379 = vector.shape_cast %378 : vector<1x4x16xbf16> to vector<4x16xbf16>
      %cst_359 = arith.constant dense<0.000000e+00> : vector<102x16xf32>
      %380 = tpu.matmul %377, %379, %cst_359 {dimension_numbers = #tpu.dot_dimension_numbers<[1], [0], [0], [1], [0, 0, 1, 1], [], []>} : vector<102x4xbf16>, vector<4x16xbf16>, vector<102x16xf32> -> vector<102x16xf32>
      %381 = arith.addf %372, %380 : vector<102x16xf32>
      %c0_i32_360 = arith.constant 0 : i32
      %382 = arith.addi %346, %c0_i32_360 : i32
      %c0_361 = arith.constant 0 : index
      %383 = arith.index_cast %382 : i32 to index
      %c0_362 = arith.constant 0 : index
      %384 = vector.load %arg1[%c0_361, %383, %c0_362] : memref<1x2704x4xf32, #tpu.memory_space<vmem>>, vector<1x102x4xf32>
      %385 = vector.shape_cast %384 : vector<1x102x4xf32> to vector<102x4xf32>
      %386 = arith.truncf %385 : vector<102x4xf32> to vector<102x4xbf16>
      %c4_363 = arith.constant 4 : index
      %c0_364 = arith.constant 0 : index
      %c0_365 = arith.constant 0 : index
      %387 = vector.load %arg2[%c4_363, %c0_364, %c0_365] : memref<9x4x16xbf16, #tpu.memory_space<vmem>>, vector<1x4x16xbf16>
      %388 = vector.shape_cast %387 : vector<1x4x16xbf16> to vector<4x16xbf16>
      %cst_366 = arith.constant dense<0.000000e+00> : vector<102x16xf32>
      %389 = tpu.matmul %386, %388, %cst_366 {dimension_numbers = #tpu.dot_dimension_numbers<[1], [0], [0], [1], [0, 0, 1, 1], [], []>} : vector<102x4xbf16>, vector<4x16xbf16>, vector<102x16xf32> -> vector<102x16xf32>
      %390 = arith.addf %381, %389 : vector<102x16xf32>
      %c1_i32_367 = arith.constant 1 : i32
      %391 = arith.addi %346, %c1_i32_367 : i32
      %c0_368 = arith.constant 0 : index
      %392 = arith.index_cast %391 : i32 to index
      %c0_369 = arith.constant 0 : index
      %393 = vector.load %arg1[%c0_368, %392, %c0_369] : memref<1x2704x4xf32, #tpu.memory_space<vmem>>, vector<1x102x4xf32>
      %394 = vector.shape_cast %393 : vector<1x102x4xf32> to vector<102x4xf32>
      %395 = arith.truncf %394 : vector<102x4xf32> to vector<102x4xbf16>
      %c5_370 = arith.constant 5 : index
      %c0_371 = arith.constant 0 : index
      %c0_372 = arith.constant 0 : index
      %396 = vector.load %arg2[%c5_370, %c0_371, %c0_372] : memref<9x4x16xbf16, #tpu.memory_space<vmem>>, vector<1x4x16xbf16>
      %397 = vector.shape_cast %396 : vector<1x4x16xbf16> to vector<4x16xbf16>
      %cst_373 = arith.constant dense<0.000000e+00> : vector<102x16xf32>
      %398 = tpu.matmul %395, %397, %cst_373 {dimension_numbers = #tpu.dot_dimension_numbers<[1], [0], [0], [1], [0, 0, 1, 1], [], []>} : vector<102x4xbf16>, vector<4x16xbf16>, vector<102x16xf32> -> vector<102x16xf32>
      %399 = arith.addf %390, %398 : vector<102x16xf32>
      %c51_i32 = arith.constant 51 : i32
      %400 = arith.addi %346, %c51_i32 : i32
      %c0_374 = arith.constant 0 : index
      %401 = arith.index_cast %400 : i32 to index
      %c0_375 = arith.constant 0 : index
      %402 = vector.load %arg1[%c0_374, %401, %c0_375] : memref<1x2704x4xf32, #tpu.memory_space<vmem>>, vector<1x102x4xf32>
      %403 = vector.shape_cast %402 : vector<1x102x4xf32> to vector<102x4xf32>
      %404 = arith.truncf %403 : vector<102x4xf32> to vector<102x4xbf16>
      %c6_376 = arith.constant 6 : index
      %c0_377 = arith.constant 0 : index
      %c0_378 = arith.constant 0 : index
      %405 = vector.load %arg2[%c6_376, %c0_377, %c0_378] : memref<9x4x16xbf16, #tpu.memory_space<vmem>>, vector<1x4x16xbf16>
      %406 = vector.shape_cast %405 : vector<1x4x16xbf16> to vector<4x16xbf16>
      %cst_379 = arith.constant dense<0.000000e+00> : vector<102x16xf32>
      %407 = tpu.matmul %404, %406, %cst_379 {dimension_numbers = #tpu.dot_dimension_numbers<[1], [0], [0], [1], [0, 0, 1, 1], [], []>} : vector<102x4xbf16>, vector<4x16xbf16>, vector<102x16xf32> -> vector<102x16xf32>
      %408 = arith.addf %399, %407 : vector<102x16xf32>
      %c52_i32_380 = arith.constant 52 : i32
      %409 = arith.addi %346, %c52_i32_380 : i32
      %c0_381 = arith.constant 0 : index
      %410 = arith.index_cast %409 : i32 to index
      %c0_382 = arith.constant 0 : index
      %411 = vector.load %arg1[%c0_381, %410, %c0_382] : memref<1x2704x4xf32, #tpu.memory_space<vmem>>, vector<1x102x4xf32>
      %412 = vector.shape_cast %411 : vector<1x102x4xf32> to vector<102x4xf32>
      %413 = arith.truncf %412 : vector<102x4xf32> to vector<102x4xbf16>
      %c7_383 = arith.constant 7 : index
      %c0_384 = arith.constant 0 : index
      %c0_385 = arith.constant 0 : index
      %414 = vector.load %arg2[%c7_383, %c0_384, %c0_385] : memref<9x4x16xbf16, #tpu.memory_space<vmem>>, vector<1x4x16xbf16>
      %415 = vector.shape_cast %414 : vector<1x4x16xbf16> to vector<4x16xbf16>
      %cst_386 = arith.constant dense<0.000000e+00> : vector<102x16xf32>
      %416 = tpu.matmul %413, %415, %cst_386 {dimension_numbers = #tpu.dot_dimension_numbers<[1], [0], [0], [1], [0, 0, 1, 1], [], []>} : vector<102x4xbf16>, vector<4x16xbf16>, vector<102x16xf32> -> vector<102x16xf32>
      %417 = arith.addf %408, %416 : vector<102x16xf32>
      %c53_i32 = arith.constant 53 : i32
      %418 = arith.addi %346, %c53_i32 : i32
      %c0_387 = arith.constant 0 : index
      %419 = arith.index_cast %418 : i32 to index
      %c0_388 = arith.constant 0 : index
      %420 = vector.load %arg1[%c0_387, %419, %c0_388] : memref<1x2704x4xf32, #tpu.memory_space<vmem>>, vector<1x102x4xf32>
      %421 = vector.shape_cast %420 : vector<1x102x4xf32> to vector<102x4xf32>
      %422 = arith.truncf %421 : vector<102x4xf32> to vector<102x4xbf16>
      %c8_389 = arith.constant 8 : index
      %c0_390 = arith.constant 0 : index
      %c0_391 = arith.constant 0 : index
      %423 = vector.load %arg2[%c8_389, %c0_390, %c0_391] : memref<9x4x16xbf16, #tpu.memory_space<vmem>>, vector<1x4x16xbf16>
      %424 = vector.shape_cast %423 : vector<1x4x16xbf16> to vector<4x16xbf16>
      %cst_392 = arith.constant dense<0.000000e+00> : vector<102x16xf32>
      %425 = tpu.matmul %422, %424, %cst_392 {dimension_numbers = #tpu.dot_dimension_numbers<[1], [0], [0], [1], [0, 0, 1, 1], [], []>} : vector<102x4xbf16>, vector<4x16xbf16>, vector<102x16xf32> -> vector<102x16xf32>
      %426 = arith.addf %417, %425 : vector<102x16xf32>
      %c0_393 = arith.constant 0 : index
      %c0_394 = arith.constant 0 : index
      %427 = vector.load %arg3[%c0_393, %c0_394] : memref<1x16xf32, #tpu.memory_space<vmem>>, vector<1x16xf32>
      %428 = vector.broadcast %427 : vector<1x16xf32> to vector<102x16xf32>
      %429 = arith.mulf %426, %428 : vector<102x16xf32>
      %c0_395 = arith.constant 0 : index
      %c0_396 = arith.constant 0 : index
      %430 = vector.load %arg4[%c0_395, %c0_396] : memref<1x16xf32, #tpu.memory_space<vmem>>, vector<1x16xf32>
      %431 = vector.broadcast %430 : vector<1x16xf32> to vector<102x16xf32>
      %432 = arith.addf %429, %431 : vector<102x16xf32>
      %cst_397 = arith.constant 0.000000e+00 : f32
      %433 = vector.broadcast %cst_397 : f32 to vector<102x16xf32>
      %434 = arith.maximumf %432, %433 : vector<102x16xf32>
      %c0_398 = arith.constant 0 : index
      %c0_399 = arith.constant 0 : index
      %435 = vector.load %arg23[%c0_398, %c0_399] : memref<102x1xf32, #tpu.memory_space<vmem>>, vector<102x1xf32>
      %436 = vector.broadcast %435 : vector<102x1xf32> to vector<102x16xf32>
      %437 = arith.mulf %434, %436 : vector<102x16xf32>
      %438 = arith.index_cast %346 : i32 to index
      %c0_400 = arith.constant 0 : index
      %439 = vector.load %arg27[%438, %c0_400] : memref<2704x16xf32, #tpu.memory_space<vmem>>, vector<102x16xf32>
      tpu.vector_store %arg27[%438, %c0_400], %437 {strides = array<i32>} : memref<2704x16xf32, #tpu.memory_space<vmem>>, vector<102x16xf32>,
    }
    %c25_i32_22 = arith.constant 25 : i32
    %c0_i32_23 = arith.constant 0 : i32
    %c25_i32_24 = arith.constant 25 : i32
    %17 = arith.addi %c0_i32_23, %c25_i32_24 : i32
    %c1_i32_25 = arith.constant 1 : i32
    scf.for %arg39 = %c0_i32_23 to %17 step %c1_i32_25  : i32 {
      %c1_i32_332 = arith.constant 1 : i32
      %341 = arith.muli %arg39, %c1_i32_332 : i32
      %c0_i32_333 = arith.constant 0 : i32
      %342 = arith.addi %c0_i32_333, %341 : i32
      %c2_i32 = arith.constant 2 : i32
      %343 = arith.muli %342, %c2_i32 : i32
      %c1_i32_334 = arith.constant 1 : i32
      %344 = arith.addi %343, %c1_i32_334 : i32
      %c52_i32 = arith.constant 52 : i32
      %345 = arith.muli %344, %c52_i32 : i32
      %c1_i32_335 = arith.constant 1 : i32
      %346 = arith.addi %345, %c1_i32_335 : i32
      %c-53_i32 = arith.constant -53 : i32
      %347 = arith.addi %346, %c-53_i32 : i32
      %348 = arith.index_cast %347 : i32 to index
      %c0_336 = arith.constant 0 : index
      %349 = vector.load %arg27[%348, %c0_336] : memref<2704x16xf32, #tpu.memory_space<vmem>>, vector<102x16xf32>
      %350 = arith.truncf %349 : vector<102x16xf32> to vector<102x16xbf16>
      %c0_337 = arith.constant 0 : index
      %c0_338 = arith.constant 0 : index
      %c0_339 = arith.constant 0 : index
      %351 = vector.load %arg5[%c0_337, %c0_338, %c0_339] : memref<9x16x16xbf16, #tpu.memory_space<vmem>>, vector<1x16x16xbf16>
      %352 = vector.shape_cast %351 : vector<1x16x16xbf16> to vector<16x16xbf16>
      %cst_340 = arith.constant dense<0.000000e+00> : vector<102x16xf32>
      %353 = tpu.matmul %350, %352, %cst_340 {dimension_numbers = #tpu.dot_dimension_numbers<[1], [0], [0], [1], [0, 0, 1, 1], [], []>} : vector<102x16xbf16>, vector<16x16xbf16>, vector<102x16xf32> -> vector<102x16xf32>
      %c-52_i32 = arith.constant -52 : i32
      %354 = arith.addi %346, %c-52_i32 : i32
      %355 = arith.index_cast %354 : i32 to index
      %c0_341 = arith.constant 0 : index
      %356 = vector.load %arg27[%355, %c0_341] : memref<2704x16xf32, #tpu.memory_space<vmem>>, vector<102x16xf32>
      %357 = arith.truncf %356 : vector<102x16xf32> to vector<102x16xbf16>
      %c1_342 = arith.constant 1 : index
      %c0_343 = arith.constant 0 : index
      %c0_344 = arith.constant 0 : index
      %358 = vector.load %arg5[%c1_342, %c0_343, %c0_344] : memref<9x16x16xbf16, #tpu.memory_space<vmem>>, vector<1x16x16xbf16>
      %359 = vector.shape_cast %358 : vector<1x16x16xbf16> to vector<16x16xbf16>
      %cst_345 = arith.constant dense<0.000000e+00> : vector<102x16xf32>
      %360 = tpu.matmul %357, %359, %cst_345 {dimension_numbers = #tpu.dot_dimension_numbers<[1], [0], [0], [1], [0, 0, 1, 1], [], []>} : vector<102x16xbf16>, vector<16x16xbf16>, vector<102x16xf32> -> vector<102x16xf32>
      %361 = arith.addf %353, %360 : vector<102x16xf32>
      %c-51_i32 = arith.constant -51 : i32
      %362 = arith.addi %346, %c-51_i32 : i32
      %363 = arith.index_cast %362 : i32 to index
      %c0_346 = arith.constant 0 : index
      %364 = vector.load %arg27[%363, %c0_346] : memref<2704x16xf32, #tpu.memory_space<vmem>>, vector<102x16xf32>
      %365 = arith.truncf %364 : vector<102x16xf32> to vector<102x16xbf16>
      %c2_347 = arith.constant 2 : index
      %c0_348 = arith.constant 0 : index
      %c0_349 = arith.constant 0 : index
      %366 = vector.load %arg5[%c2_347, %c0_348, %c0_349] : memref<9x16x16xbf16, #tpu.memory_space<vmem>>, vector<1x16x16xbf16>
      %367 = vector.shape_cast %366 : vector<1x16x16xbf16> to vector<16x16xbf16>
      %cst_350 = arith.constant dense<0.000000e+00> : vector<102x16xf32>
      %368 = tpu.matmul %365, %367, %cst_350 {dimension_numbers = #tpu.dot_dimension_numbers<[1], [0], [0], [1], [0, 0, 1, 1], [], []>} : vector<102x16xbf16>, vector<16x16xbf16>, vector<102x16xf32> -> vector<102x16xf32>
      %369 = arith.addf %361, %368 : vector<102x16xf32>
      %c-1_i32 = arith.constant -1 : i32
      %370 = arith.addi %346, %c-1_i32 : i32
      %371 = arith.index_cast %370 : i32 to index
      %c0_351 = arith.constant 0 : index
      %372 = vector.load %arg27[%371, %c0_351] : memref<2704x16xf32, #tpu.memory_space<vmem>>, vector<102x16xf32>
      %373 = arith.truncf %372 : vector<102x16xf32> to vector<102x16xbf16>
      %c3_352 = arith.constant 3 : index
      %c0_353 = arith.constant 0 : index
      %c0_354 = arith.constant 0 : index
      %374 = vector.load %arg5[%c3_352, %c0_353, %c0_354] : memref<9x16x16xbf16, #tpu.memory_space<vmem>>, vector<1x16x16xbf16>
      %375 = vector.shape_cast %374 : vector<1x16x16xbf16> to vector<16x16xbf16>
      %cst_355 = arith.constant dense<0.000000e+00> : vector<102x16xf32>
      %376 = tpu.matmul %373, %375, %cst_355 {dimension_numbers = #tpu.dot_dimension_numbers<[1], [0], [0], [1], [0, 0, 1, 1], [], []>} : vector<102x16xbf16>, vector<16x16xbf16>, vector<102x16xf32> -> vector<102x16xf32>
      %377 = arith.addf %369, %376 : vector<102x16xf32>
      %c0_i32_356 = arith.constant 0 : i32
      %378 = arith.addi %346, %c0_i32_356 : i32
      %379 = arith.index_cast %378 : i32 to index
      %c0_357 = arith.constant 0 : index
      %380 = vector.load %arg27[%379, %c0_357] : memref<2704x16xf32, #tpu.memory_space<vmem>>, vector<102x16xf32>
      %381 = arith.truncf %380 : vector<102x16xf32> to vector<102x16xbf16>
      %c4_358 = arith.constant 4 : index
      %c0_359 = arith.constant 0 : index
      %c0_360 = arith.constant 0 : index
      %382 = vector.load %arg5[%c4_358, %c0_359, %c0_360] : memref<9x16x16xbf16, #tpu.memory_space<vmem>>, vector<1x16x16xbf16>
      %383 = vector.shape_cast %382 : vector<1x16x16xbf16> to vector<16x16xbf16>
      %cst_361 = arith.constant dense<0.000000e+00> : vector<102x16xf32>
      %384 = tpu.matmul %381, %383, %cst_361 {dimension_numbers = #tpu.dot_dimension_numbers<[1], [0], [0], [1], [0, 0, 1, 1], [], []>} : vector<102x16xbf16>, vector<16x16xbf16>, vector<102x16xf32> -> vector<102x16xf32>
      %385 = arith.addf %377, %384 : vector<102x16xf32>
      %c1_i32_362 = arith.constant 1 : i32
      %386 = arith.addi %346, %c1_i32_362 : i32
      %387 = arith.index_cast %386 : i32 to index
      %c0_363 = arith.constant 0 : index
      %388 = vector.load %arg27[%387, %c0_363] : memref<2704x16xf32, #tpu.memory_space<vmem>>, vector<102x16xf32>
      %389 = arith.truncf %388 : vector<102x16xf32> to vector<102x16xbf16>
      %c5_364 = arith.constant 5 : index
      %c0_365 = arith.constant 0 : index
      %c0_366 = arith.constant 0 : index
      %390 = vector.load %arg5[%c5_364, %c0_365, %c0_366] : memref<9x16x16xbf16, #tpu.memory_space<vmem>>, vector<1x16x16xbf16>
      %391 = vector.shape_cast %390 : vector<1x16x16xbf16> to vector<16x16xbf16>
      %cst_367 = arith.constant dense<0.000000e+00> : vector<102x16xf32>
      %392 = tpu.matmul %389, %391, %cst_367 {dimension_numbers = #tpu.dot_dimension_numbers<[1], [0], [0], [1], [0, 0, 1, 1], [], []>} : vector<102x16xbf16>, vector<16x16xbf16>, vector<102x16xf32> -> vector<102x16xf32>
      %393 = arith.addf %385, %392 : vector<102x16xf32>
      %c51_i32 = arith.constant 51 : i32
      %394 = arith.addi %346, %c51_i32 : i32
      %395 = arith.index_cast %394 : i32 to index
      %c0_368 = arith.constant 0 : index
      %396 = vector.load %arg27[%395, %c0_368] : memref<2704x16xf32, #tpu.memory_space<vmem>>, vector<102x16xf32>
      %397 = arith.truncf %396 : vector<102x16xf32> to vector<102x16xbf16>
      %c6_369 = arith.constant 6 : index
      %c0_370 = arith.constant 0 : index
      %c0_371 = arith.constant 0 : index
      %398 = vector.load %arg5[%c6_369, %c0_370, %c0_371] : memref<9x16x16xbf16, #tpu.memory_space<vmem>>, vector<1x16x16xbf16>
      %399 = vector.shape_cast %398 : vector<1x16x16xbf16> to vector<16x16xbf16>
      %cst_372 = arith.constant dense<0.000000e+00> : vector<102x16xf32>
      %400 = tpu.matmul %397, %399, %cst_372 {dimension_numbers = #tpu.dot_dimension_numbers<[1], [0], [0], [1], [0, 0, 1, 1], [], []>} : vector<102x16xbf16>, vector<16x16xbf16>, vector<102x16xf32> -> vector<102x16xf32>
      %401 = arith.addf %393, %400 : vector<102x16xf32>
      %c52_i32_373 = arith.constant 52 : i32
      %402 = arith.addi %346, %c52_i32_373 : i32
      %403 = arith.index_cast %402 : i32 to index
      %c0_374 = arith.constant 0 : index
      %404 = vector.load %arg27[%403, %c0_374] : memref<2704x16xf32, #tpu.memory_space<vmem>>, vector<102x16xf32>
      %405 = arith.truncf %404 : vector<102x16xf32> to vector<102x16xbf16>
      %c7_375 = arith.constant 7 : index
      %c0_376 = arith.constant 0 : index
      %c0_377 = arith.constant 0 : index
      %406 = vector.load %arg5[%c7_375, %c0_376, %c0_377] : memref<9x16x16xbf16, #tpu.memory_space<vmem>>, vector<1x16x16xbf16>
      %407 = vector.shape_cast %406 : vector<1x16x16xbf16> to vector<16x16xbf16>
      %cst_378 = arith.constant dense<0.000000e+00> : vector<102x16xf32>
      %408 = tpu.matmul %405, %407, %cst_378 {dimension_numbers = #tpu.dot_dimension_numbers<[1], [0], [0], [1], [0, 0, 1, 1], [], []>} : vector<102x16xbf16>, vector<16x16xbf16>, vector<102x16xf32> -> vector<102x16xf32>
      %409 = arith.addf %401, %408 : vector<102x16xf32>
      %c53_i32 = arith.constant 53 : i32
      %410 = arith.addi %346, %c53_i32 : i32
      %411 = arith.index_cast %410 : i32 to index
      %c0_379 = arith.constant 0 : index
      %412 = vector.load %arg27[%411, %c0_379] : memref<2704x16xf32, #tpu.memory_space<vmem>>, vector<102x16xf32>
      %413 = arith.truncf %412 : vector<102x16xf32> to vector<102x16xbf16>
      %c8_380 = arith.constant 8 : index
      %c0_381 = arith.constant 0 : index
      %c0_382 = arith.constant 0 : index
      %414 = vector.load %arg5[%c8_380, %c0_381, %c0_382] : memref<9x16x16xbf16, #tpu.memory_space<vmem>>, vector<1x16x16xbf16>
      %415 = vector.shape_cast %414 : vector<1x16x16xbf16> to vector<16x16xbf16>
      %cst_383 = arith.constant dense<0.000000e+00> : vector<102x16xf32>
      %416 = tpu.matmul %413, %415, %cst_383 {dimension_numbers = #tpu.dot_dimension_numbers<[1], [0], [0], [1], [0, 0, 1, 1], [], []>} : vector<102x16xbf16>, vector<16x16xbf16>, vector<102x16xf32> -> vector<102x16xf32>
      %417 = arith.addf %409, %416 : vector<102x16xf32>
      %c0_384 = arith.constant 0 : index
      %c0_385 = arith.constant 0 : index
      %418 = vector.load %arg6[%c0_384, %c0_385] : memref<1x16xf32, #tpu.memory_space<vmem>>, vector<1x16xf32>
      %419 = vector.broadcast %418 : vector<1x16xf32> to vector<102x16xf32>
      %420 = arith.mulf %417, %419 : vector<102x16xf32>
      %c0_386 = arith.constant 0 : index
      %c0_387 = arith.constant 0 : index
      %421 = vector.load %arg7[%c0_386, %c0_387] : memref<1x16xf32, #tpu.memory_space<vmem>>, vector<1x16xf32>
      %422 = vector.broadcast %421 : vector<1x16xf32> to vector<102x16xf32>
      %423 = arith.addf %420, %422 : vector<102x16xf32>
      %cst_388 = arith.constant 0.000000e+00 : f32
      %424 = vector.broadcast %cst_388 : f32 to vector<102x16xf32>
      %425 = arith.maximumf %423, %424 : vector<102x16xf32>
      %c0_389 = arith.constant 0 : index
      %c0_390 = arith.constant 0 : index
      %426 = vector.load %arg23[%c0_389, %c0_390] : memref<102x1xf32, #tpu.memory_space<vmem>>, vector<102x1xf32>
      %427 = vector.broadcast %426 : vector<102x1xf32> to vector<102x16xf32>
      %428 = arith.mulf %425, %427 : vector<102x16xf32>
      %429 = arith.index_cast %346 : i32 to index
      %c0_391 = arith.constant 0 : index
      %430 = vector.load %arg28[%429, %c0_391] : memref<2704x16xf32, #tpu.memory_space<vmem>>, vector<102x16xf32>
      tpu.vector_store %arg28[%429, %c0_391], %428 {strides = array<i32>} : memref<2704x16xf32, #tpu.memory_space<vmem>>, vector<102x16xf32>,
    }
    %c25_i32_26 = arith.constant 25 : i32
    %c0_i32_27 = arith.constant 0 : i32
    %c10_i32 = arith.constant 10 : i32
    %18 = arith.addi %c0_i32_27, %c10_i32 : i32
    %c1_i32_28 = arith.constant 1 : i32
    scf.for %arg39 = %c0_i32_27 to %18 step %c1_i32_28  : i32 {
      %c1_i32_332 = arith.constant 1 : i32
      %341 = arith.muli %arg39, %c1_i32_332 : i32
      %c0_i32_333 = arith.constant 0 : i32
      %342 = arith.addi %c0_i32_333, %341 : i32
      %c5_i32 = arith.constant 5 : i32
      %343 = arith.muli %342, %c5_i32 : i32
      %c1_i32_334 = arith.constant 1 : i32
      %344 = arith.addi %343, %c1_i32_334 : i32
      %c52_i32 = arith.constant 52 : i32
      %345 = arith.muli %344, %c52_i32 : i32
      %c1_i32_335 = arith.constant 1 : i32
      %346 = arith.addi %345, %c1_i32_335 : i32
      %347 = arith.index_cast %346 : i32 to index
      %c0_336 = arith.constant 0 : index
      %348 = vector.load %arg28[%347, %c0_336] : memref<2704x16xf32, #tpu.memory_space<vmem>>, vector<50x16xf32>
      %c52_i32_337 = arith.constant 52 : i32
      %349 = arith.addi %346, %c52_i32_337 : i32
      %350 = arith.index_cast %349 : i32 to index
      %c0_338 = arith.constant 0 : index
      %351 = vector.load %arg28[%350, %c0_338] : memref<2704x16xf32, #tpu.memory_space<vmem>>, vector<50x16xf32>
      %352 = arith.maximumf %348, %351 : vector<50x16xf32>
      %c104_i32 = arith.constant 104 : i32
      %353 = arith.addi %346, %c104_i32 : i32
      %354 = arith.index_cast %353 : i32 to index
      %c0_339 = arith.constant 0 : index
      %355 = vector.load %arg28[%354, %c0_339] : memref<2704x16xf32, #tpu.memory_space<vmem>>, vector<50x16xf32>
      %356 = arith.maximumf %352, %355 : vector<50x16xf32>
      %c156_i32 = arith.constant 156 : i32
      %357 = arith.addi %346, %c156_i32 : i32
      %358 = arith.index_cast %357 : i32 to index
      %c0_340 = arith.constant 0 : index
      %359 = vector.load %arg28[%358, %c0_340] : memref<2704x16xf32, #tpu.memory_space<vmem>>, vector<50x16xf32>
      %360 = arith.maximumf %356, %359 : vector<50x16xf32>
      %c208_i32 = arith.constant 208 : i32
      %361 = arith.addi %346, %c208_i32 : i32
      %362 = arith.index_cast %361 : i32 to index
      %c0_341 = arith.constant 0 : index
      %363 = vector.load %arg28[%362, %c0_341] : memref<2704x16xf32, #tpu.memory_space<vmem>>, vector<50x16xf32>
      %364 = arith.maximumf %360, %363 : vector<50x16xf32>
      %c0_342 = arith.constant 0 : index
      %c0_343 = arith.constant 0 : index
      %365 = vector.load %arg29[%c0_342, %c0_343] : memref<50x16xf32, #tpu.memory_space<vmem>>, vector<50x16xf32>
      tpu.vector_store %arg29[%c0_342, %c0_343], %364 {strides = array<i32>} : memref<50x16xf32, #tpu.memory_space<vmem>>, vector<50x16xf32>,
      %c0_344 = arith.constant 0 : index
      %c0_345 = arith.constant 0 : index
      %366 = tpu.strided_load %arg29[%c0_344, %c0_345] {strides = array<i32: 5, 1>} : memref<50x16xf32, #tpu.memory_space<vmem>>, vector<10x16xf32>
      %c1_346 = arith.constant 1 : index
      %c0_347 = arith.constant 0 : index
      %367 = tpu.strided_load %arg29[%c1_346, %c0_347] {strides = array<i32: 5, 1>} : memref<50x16xf32, #tpu.memory_space<vmem>>, vector<10x16xf32>
      %368 = arith.maximumf %366, %367 : vector<10x16xf32>
      %c2_348 = arith.constant 2 : index
      %c0_349 = arith.constant 0 : index
      %369 = tpu.strided_load %arg29[%c2_348, %c0_349] {strides = array<i32: 5, 1>} : memref<50x16xf32, #tpu.memory_space<vmem>>, vector<10x16xf32>
      %370 = arith.maximumf %368, %369 : vector<10x16xf32>
      %c3_350 = arith.constant 3 : index
      %c0_351 = arith.constant 0 : index
      %371 = tpu.strided_load %arg29[%c3_350, %c0_351] {strides = array<i32: 5, 1>} : memref<50x16xf32, #tpu.memory_space<vmem>>, vector<10x16xf32>
      %372 = arith.maximumf %370, %371 : vector<10x16xf32>
      %c4_352 = arith.constant 4 : index
      %c0_353 = arith.constant 0 : index
      %373 = tpu.strided_load %arg29[%c4_352, %c0_353] {strides = array<i32: 5, 1>} : memref<50x16xf32, #tpu.memory_space<vmem>>, vector<10x16xf32>
      %374 = arith.maximumf %372, %373 : vector<10x16xf32>
      %c1_i32_354 = arith.constant 1 : i32
      %375 = arith.addi %342, %c1_i32_354 : i32
      %c12_i32 = arith.constant 12 : i32
      %376 = arith.muli %375, %c12_i32 : i32
      %c1_i32_355 = arith.constant 1 : i32
      %377 = arith.addi %376, %c1_i32_355 : i32
      %378 = arith.index_cast %377 : i32 to index
      %c0_356 = arith.constant 0 : index
      %379 = vector.load %arg30[%378, %c0_356] : memref<144x16xf32, #tpu.memory_space<vmem>>, vector<10x16xf32>
      tpu.vector_store %arg30[%378, %c0_356], %374 {strides = array<i32>} : memref<144x16xf32, #tpu.memory_space<vmem>>, vector<10x16xf32>,
    }
    %c10_i32_29 = arith.constant 10 : i32
    %c0_30 = arith.constant 0 : index
    %c0_31 = arith.constant 0 : index
    %19 = vector.load %arg30[%c0_30, %c0_31] : memref<144x16xf32, #tpu.memory_space<vmem>>, vector<118x16xf32>
    %20 = arith.truncf %19 : vector<118x16xf32> to vector<118x16xbf16>
    %c0_32 = arith.constant 0 : index
    %c0_33 = arith.constant 0 : index
    %c0_34 = arith.constant 0 : index
    %21 = vector.load %arg8[%c0_32, %c0_33, %c0_34] : memref<9x16x32xbf16, #tpu.memory_space<vmem>>, vector<1x16x32xbf16>
    %22 = vector.shape_cast %21 : vector<1x16x32xbf16> to vector<16x32xbf16>
    %cst_35 = arith.constant dense<0.000000e+00> : vector<118x32xf32>
    %23 = tpu.matmul %20, %22, %cst_35 {dimension_numbers = #tpu.dot_dimension_numbers<[1], [0], [0], [1], [0, 0, 1, 1], [], []>} : vector<118x16xbf16>, vector<16x32xbf16>, vector<118x32xf32> -> vector<118x32xf32>
    %c1 = arith.constant 1 : index
    %c0_36 = arith.constant 0 : index
    %24 = vector.load %arg30[%c1, %c0_36] : memref<144x16xf32, #tpu.memory_space<vmem>>, vector<118x16xf32>
    %25 = arith.truncf %24 : vector<118x16xf32> to vector<118x16xbf16>
    %c1_37 = arith.constant 1 : index
    %c0_38 = arith.constant 0 : index
    %c0_39 = arith.constant 0 : index
    %26 = vector.load %arg8[%c1_37, %c0_38, %c0_39] : memref<9x16x32xbf16, #tpu.memory_space<vmem>>, vector<1x16x32xbf16>
    %27 = vector.shape_cast %26 : vector<1x16x32xbf16> to vector<16x32xbf16>
    %cst_40 = arith.constant dense<0.000000e+00> : vector<118x32xf32>
    %28 = tpu.matmul %25, %27, %cst_40 {dimension_numbers = #tpu.dot_dimension_numbers<[1], [0], [0], [1], [0, 0, 1, 1], [], []>} : vector<118x16xbf16>, vector<16x32xbf16>, vector<118x32xf32> -> vector<118x32xf32>
    %29 = arith.addf %23, %28 : vector<118x32xf32>
    %c2 = arith.constant 2 : index
    %c0_41 = arith.constant 0 : index
    %30 = vector.load %arg30[%c2, %c0_41] : memref<144x16xf32, #tpu.memory_space<vmem>>, vector<118x16xf32>
    %31 = arith.truncf %30 : vector<118x16xf32> to vector<118x16xbf16>
    %c2_42 = arith.constant 2 : index
    %c0_43 = arith.constant 0 : index
    %c0_44 = arith.constant 0 : index
    %32 = vector.load %arg8[%c2_42, %c0_43, %c0_44] : memref<9x16x32xbf16, #tpu.memory_space<vmem>>, vector<1x16x32xbf16>
    %33 = vector.shape_cast %32 : vector<1x16x32xbf16> to vector<16x32xbf16>
    %cst_45 = arith.constant dense<0.000000e+00> : vector<118x32xf32>
    %34 = tpu.matmul %31, %33, %cst_45 {dimension_numbers = #tpu.dot_dimension_numbers<[1], [0], [0], [1], [0, 0, 1, 1], [], []>} : vector<118x16xbf16>, vector<16x32xbf16>, vector<118x32xf32> -> vector<118x32xf32>
    %35 = arith.addf %29, %34 : vector<118x32xf32>
    %c12 = arith.constant 12 : index
    %c0_46 = arith.constant 0 : index
    %36 = vector.load %arg30[%c12, %c0_46] : memref<144x16xf32, #tpu.memory_space<vmem>>, vector<118x16xf32>
    %37 = arith.truncf %36 : vector<118x16xf32> to vector<118x16xbf16>
    %c3 = arith.constant 3 : index
    %c0_47 = arith.constant 0 : index
    %c0_48 = arith.constant 0 : index
    %38 = vector.load %arg8[%c3, %c0_47, %c0_48] : memref<9x16x32xbf16, #tpu.memory_space<vmem>>, vector<1x16x32xbf16>
    %39 = vector.shape_cast %38 : vector<1x16x32xbf16> to vector<16x32xbf16>
    %cst_49 = arith.constant dense<0.000000e+00> : vector<118x32xf32>
    %40 = tpu.matmul %37, %39, %cst_49 {dimension_numbers = #tpu.dot_dimension_numbers<[1], [0], [0], [1], [0, 0, 1, 1], [], []>} : vector<118x16xbf16>, vector<16x32xbf16>, vector<118x32xf32> -> vector<118x32xf32>
    %41 = arith.addf %35, %40 : vector<118x32xf32>
    %c13 = arith.constant 13 : index
    %c0_50 = arith.constant 0 : index
    %42 = vector.load %arg30[%c13, %c0_50] : memref<144x16xf32, #tpu.memory_space<vmem>>, vector<118x16xf32>
    %43 = arith.truncf %42 : vector<118x16xf32> to vector<118x16xbf16>
    %c4 = arith.constant 4 : index
    %c0_51 = arith.constant 0 : index
    %c0_52 = arith.constant 0 : index
    %44 = vector.load %arg8[%c4, %c0_51, %c0_52] : memref<9x16x32xbf16, #tpu.memory_space<vmem>>, vector<1x16x32xbf16>
    %45 = vector.shape_cast %44 : vector<1x16x32xbf16> to vector<16x32xbf16>
    %cst_53 = arith.constant dense<0.000000e+00> : vector<118x32xf32>
    %46 = tpu.matmul %43, %45, %cst_53 {dimension_numbers = #tpu.dot_dimension_numbers<[1], [0], [0], [1], [0, 0, 1, 1], [], []>} : vector<118x16xbf16>, vector<16x32xbf16>, vector<118x32xf32> -> vector<118x32xf32>
    %47 = arith.addf %41, %46 : vector<118x32xf32>
    %c14 = arith.constant 14 : index
    %c0_54 = arith.constant 0 : index
    %48 = vector.load %arg30[%c14, %c0_54] : memref<144x16xf32, #tpu.memory_space<vmem>>, vector<118x16xf32>
    %49 = arith.truncf %48 : vector<118x16xf32> to vector<118x16xbf16>
    %c5 = arith.constant 5 : index
    %c0_55 = arith.constant 0 : index
    %c0_56 = arith.constant 0 : index
    %50 = vector.load %arg8[%c5, %c0_55, %c0_56] : memref<9x16x32xbf16, #tpu.memory_space<vmem>>, vector<1x16x32xbf16>
    %51 = vector.shape_cast %50 : vector<1x16x32xbf16> to vector<16x32xbf16>
    %cst_57 = arith.constant dense<0.000000e+00> : vector<118x32xf32>
    %52 = tpu.matmul %49, %51, %cst_57 {dimension_numbers = #tpu.dot_dimension_numbers<[1], [0], [0], [1], [0, 0, 1, 1], [], []>} : vector<118x16xbf16>, vector<16x32xbf16>, vector<118x32xf32> -> vector<118x32xf32>
    %53 = arith.addf %47, %52 : vector<118x32xf32>
    %c24 = arith.constant 24 : index
    %c0_58 = arith.constant 0 : index
    %54 = vector.load %arg30[%c24, %c0_58] : memref<144x16xf32, #tpu.memory_space<vmem>>, vector<118x16xf32>
    %55 = arith.truncf %54 : vector<118x16xf32> to vector<118x16xbf16>
    %c6 = arith.constant 6 : index
    %c0_59 = arith.constant 0 : index
    %c0_60 = arith.constant 0 : index
    %56 = vector.load %arg8[%c6, %c0_59, %c0_60] : memref<9x16x32xbf16, #tpu.memory_space<vmem>>, vector<1x16x32xbf16>
    %57 = vector.shape_cast %56 : vector<1x16x32xbf16> to vector<16x32xbf16>
    %cst_61 = arith.constant dense<0.000000e+00> : vector<118x32xf32>
    %58 = tpu.matmul %55, %57, %cst_61 {dimension_numbers = #tpu.dot_dimension_numbers<[1], [0], [0], [1], [0, 0, 1, 1], [], []>} : vector<118x16xbf16>, vector<16x32xbf16>, vector<118x32xf32> -> vector<118x32xf32>
    %59 = arith.addf %53, %58 : vector<118x32xf32>
    %c25 = arith.constant 25 : index
    %c0_62 = arith.constant 0 : index
    %60 = vector.load %arg30[%c25, %c0_62] : memref<144x16xf32, #tpu.memory_space<vmem>>, vector<118x16xf32>
    %61 = arith.truncf %60 : vector<118x16xf32> to vector<118x16xbf16>
    %c7 = arith.constant 7 : index
    %c0_63 = arith.constant 0 : index
    %c0_64 = arith.constant 0 : index
    %62 = vector.load %arg8[%c7, %c0_63, %c0_64] : memref<9x16x32xbf16, #tpu.memory_space<vmem>>, vector<1x16x32xbf16>
    %63 = vector.shape_cast %62 : vector<1x16x32xbf16> to vector<16x32xbf16>
    %cst_65 = arith.constant dense<0.000000e+00> : vector<118x32xf32>
    %64 = tpu.matmul %61, %63, %cst_65 {dimension_numbers = #tpu.dot_dimension_numbers<[1], [0], [0], [1], [0, 0, 1, 1], [], []>} : vector<118x16xbf16>, vector<16x32xbf16>, vector<118x32xf32> -> vector<118x32xf32>
    %65 = arith.addf %59, %64 : vector<118x32xf32>
    %c26 = arith.constant 26 : index
    %c0_66 = arith.constant 0 : index
    %66 = vector.load %arg30[%c26, %c0_66] : memref<144x16xf32, #tpu.memory_space<vmem>>, vector<118x16xf32>
    %67 = arith.truncf %66 : vector<118x16xf32> to vector<118x16xbf16>
    %c8 = arith.constant 8 : index
    %c0_67 = arith.constant 0 : index
    %c0_68 = arith.constant 0 : index
    %68 = vector.load %arg8[%c8, %c0_67, %c0_68] : memref<9x16x32xbf16, #tpu.memory_space<vmem>>, vector<1x16x32xbf16>
    %69 = vector.shape_cast %68 : vector<1x16x32xbf16> to vector<16x32xbf16>
    %cst_69 = arith.constant dense<0.000000e+00> : vector<118x32xf32>
    %70 = tpu.matmul %67, %69, %cst_69 {dimension_numbers = #tpu.dot_dimension_numbers<[1], [0], [0], [1], [0, 0, 1, 1], [], []>} : vector<118x16xbf16>, vector<16x32xbf16>, vector<118x32xf32> -> vector<118x32xf32>
    %71 = arith.addf %65, %70 : vector<118x32xf32>
    %c0_70 = arith.constant 0 : index
    %c0_71 = arith.constant 0 : index
    %72 = vector.load %arg9[%c0_70, %c0_71] : memref<1x32xf32, #tpu.memory_space<vmem>>, vector<1x32xf32>
    %73 = vector.broadcast %72 : vector<1x32xf32> to vector<118x32xf32>
    %74 = arith.mulf %71, %73 : vector<118x32xf32>
    %c0_72 = arith.constant 0 : index
    %c0_73 = arith.constant 0 : index
    %75 = vector.load %arg10[%c0_72, %c0_73] : memref<1x32xf32, #tpu.memory_space<vmem>>, vector<1x32xf32>
    %76 = vector.broadcast %75 : vector<1x32xf32> to vector<118x32xf32>
    %77 = arith.addf %74, %76 : vector<118x32xf32>
    %cst_74 = arith.constant 0.000000e+00 : f32
    %78 = vector.broadcast %cst_74 : f32 to vector<118x32xf32>
    %79 = arith.maximumf %77, %78 : vector<118x32xf32>
    %c0_75 = arith.constant 0 : index
    %c0_76 = arith.constant 0 : index
    %80 = vector.load %arg24[%c0_75, %c0_76] : memref<118x1xf32, #tpu.memory_space<vmem>>, vector<118x1xf32>
    %81 = vector.broadcast %80 : vector<118x1xf32> to vector<118x32xf32>
    %82 = arith.mulf %79, %81 : vector<118x32xf32>
    %c13_77 = arith.constant 13 : index
    %c0_78 = arith.constant 0 : index
    %83 = vector.load %arg31[%c13_77, %c0_78] : memref<144x32xf32, #tpu.memory_space<vmem>>, vector<118x32xf32>
    tpu.vector_store %arg31[%c13_77, %c0_78], %82 {strides = array<i32>} : memref<144x32xf32, #tpu.memory_space<vmem>>, vector<118x32xf32>,
    %c0_79 = arith.constant 0 : index
    %c0_80 = arith.constant 0 : index
    %84 = vector.load %arg31[%c0_79, %c0_80] : memref<144x32xf32, #tpu.memory_space<vmem>>, vector<118x32xf32>
    %85 = arith.truncf %84 : vector<118x32xf32> to vector<118x32xbf16>
    %c0_81 = arith.constant 0 : index
    %c0_82 = arith.constant 0 : index
    %c0_83 = arith.constant 0 : index
    %86 = vector.load %arg11[%c0_81, %c0_82, %c0_83] : memref<9x32x32xbf16, #tpu.memory_space<vmem>>, vector<1x32x32xbf16>
    %87 = vector.shape_cast %86 : vector<1x32x32xbf16> to vector<32x32xbf16>
    %cst_84 = arith.constant dense<0.000000e+00> : vector<118x32xf32>
    %88 = tpu.matmul %85, %87, %cst_84 {dimension_numbers = #tpu.dot_dimension_numbers<[1], [0], [0], [1], [0, 0, 1, 1], [], []>} : vector<118x32xbf16>, vector<32x32xbf16>, vector<118x32xf32> -> vector<118x32xf32>
    %c1_85 = arith.constant 1 : index
    %c0_86 = arith.constant 0 : index
    %89 = vector.load %arg31[%c1_85, %c0_86] : memref<144x32xf32, #tpu.memory_space<vmem>>, vector<118x32xf32>
    %90 = arith.truncf %89 : vector<118x32xf32> to vector<118x32xbf16>
    %c1_87 = arith.constant 1 : index
    %c0_88 = arith.constant 0 : index
    %c0_89 = arith.constant 0 : index
    %91 = vector.load %arg11[%c1_87, %c0_88, %c0_89] : memref<9x32x32xbf16, #tpu.memory_space<vmem>>, vector<1x32x32xbf16>
    %92 = vector.shape_cast %91 : vector<1x32x32xbf16> to vector<32x32xbf16>
    %cst_90 = arith.constant dense<0.000000e+00> : vector<118x32xf32>
    %93 = tpu.matmul %90, %92, %cst_90 {dimension_numbers = #tpu.dot_dimension_numbers<[1], [0], [0], [1], [0, 0, 1, 1], [], []>} : vector<118x32xbf16>, vector<32x32xbf16>, vector<118x32xf32> -> vector<118x32xf32>
    %94 = arith.addf %88, %93 : vector<118x32xf32>
    %c2_91 = arith.constant 2 : index
    %c0_92 = arith.constant 0 : index
    %95 = vector.load %arg31[%c2_91, %c0_92] : memref<144x32xf32, #tpu.memory_space<vmem>>, vector<118x32xf32>
    %96 = arith.truncf %95 : vector<118x32xf32> to vector<118x32xbf16>
    %c2_93 = arith.constant 2 : index
    %c0_94 = arith.constant 0 : index
    %c0_95 = arith.constant 0 : index
    %97 = vector.load %arg11[%c2_93, %c0_94, %c0_95] : memref<9x32x32xbf16, #tpu.memory_space<vmem>>, vector<1x32x32xbf16>
    %98 = vector.shape_cast %97 : vector<1x32x32xbf16> to vector<32x32xbf16>
    %cst_96 = arith.constant dense<0.000000e+00> : vector<118x32xf32>
    %99 = tpu.matmul %96, %98, %cst_96 {dimension_numbers = #tpu.dot_dimension_numbers<[1], [0], [0], [1], [0, 0, 1, 1], [], []>} : vector<118x32xbf16>, vector<32x32xbf16>, vector<118x32xf32> -> vector<118x32xf32>
    %100 = arith.addf %94, %99 : vector<118x32xf32>
    %c12_97 = arith.constant 12 : index
    %c0_98 = arith.constant 0 : index
    %101 = vector.load %arg31[%c12_97, %c0_98] : memref<144x32xf32, #tpu.memory_space<vmem>>, vector<118x32xf32>
    %102 = arith.truncf %101 : vector<118x32xf32> to vector<118x32xbf16>
    %c3_99 = arith.constant 3 : index
    %c0_100 = arith.constant 0 : index
    %c0_101 = arith.constant 0 : index
    %103 = vector.load %arg11[%c3_99, %c0_100, %c0_101] : memref<9x32x32xbf16, #tpu.memory_space<vmem>>, vector<1x32x32xbf16>
    %104 = vector.shape_cast %103 : vector<1x32x32xbf16> to vector<32x32xbf16>
    %cst_102 = arith.constant dense<0.000000e+00> : vector<118x32xf32>
    %105 = tpu.matmul %102, %104, %cst_102 {dimension_numbers = #tpu.dot_dimension_numbers<[1], [0], [0], [1], [0, 0, 1, 1], [], []>} : vector<118x32xbf16>, vector<32x32xbf16>, vector<118x32xf32> -> vector<118x32xf32>
    %106 = arith.addf %100, %105 : vector<118x32xf32>
    %c13_103 = arith.constant 13 : index
    %c0_104 = arith.constant 0 : index
    %107 = vector.load %arg31[%c13_103, %c0_104] : memref<144x32xf32, #tpu.memory_space<vmem>>, vector<118x32xf32>
    %108 = arith.truncf %107 : vector<118x32xf32> to vector<118x32xbf16>
    %c4_105 = arith.constant 4 : index
    %c0_106 = arith.constant 0 : index
    %c0_107 = arith.constant 0 : index
    %109 = vector.load %arg11[%c4_105, %c0_106, %c0_107] : memref<9x32x32xbf16, #tpu.memory_space<vmem>>, vector<1x32x32xbf16>
    %110 = vector.shape_cast %109 : vector<1x32x32xbf16> to vector<32x32xbf16>
    %cst_108 = arith.constant dense<0.000000e+00> : vector<118x32xf32>
    %111 = tpu.matmul %108, %110, %cst_108 {dimension_numbers = #tpu.dot_dimension_numbers<[1], [0], [0], [1], [0, 0, 1, 1], [], []>} : vector<118x32xbf16>, vector<32x32xbf16>, vector<118x32xf32> -> vector<118x32xf32>
    %112 = arith.addf %106, %111 : vector<118x32xf32>
    %c14_109 = arith.constant 14 : index
    %c0_110 = arith.constant 0 : index
    %113 = vector.load %arg31[%c14_109, %c0_110] : memref<144x32xf32, #tpu.memory_space<vmem>>, vector<118x32xf32>
    %114 = arith.truncf %113 : vector<118x32xf32> to vector<118x32xbf16>
    %c5_111 = arith.constant 5 : index
    %c0_112 = arith.constant 0 : index
    %c0_113 = arith.constant 0 : index
    %115 = vector.load %arg11[%c5_111, %c0_112, %c0_113] : memref<9x32x32xbf16, #tpu.memory_space<vmem>>, vector<1x32x32xbf16>
    %116 = vector.shape_cast %115 : vector<1x32x32xbf16> to vector<32x32xbf16>
    %cst_114 = arith.constant dense<0.000000e+00> : vector<118x32xf32>
    %117 = tpu.matmul %114, %116, %cst_114 {dimension_numbers = #tpu.dot_dimension_numbers<[1], [0], [0], [1], [0, 0, 1, 1], [], []>} : vector<118x32xbf16>, vector<32x32xbf16>, vector<118x32xf32> -> vector<118x32xf32>
    %118 = arith.addf %112, %117 : vector<118x32xf32>
    %c24_115 = arith.constant 24 : index
    %c0_116 = arith.constant 0 : index
    %119 = vector.load %arg31[%c24_115, %c0_116] : memref<144x32xf32, #tpu.memory_space<vmem>>, vector<118x32xf32>
    %120 = arith.truncf %119 : vector<118x32xf32> to vector<118x32xbf16>
    %c6_117 = arith.constant 6 : index
    %c0_118 = arith.constant 0 : index
    %c0_119 = arith.constant 0 : index
    %121 = vector.load %arg11[%c6_117, %c0_118, %c0_119] : memref<9x32x32xbf16, #tpu.memory_space<vmem>>, vector<1x32x32xbf16>
    %122 = vector.shape_cast %121 : vector<1x32x32xbf16> to vector<32x32xbf16>
    %cst_120 = arith.constant dense<0.000000e+00> : vector<118x32xf32>
    %123 = tpu.matmul %120, %122, %cst_120 {dimension_numbers = #tpu.dot_dimension_numbers<[1], [0], [0], [1], [0, 0, 1, 1], [], []>} : vector<118x32xbf16>, vector<32x32xbf16>, vector<118x32xf32> -> vector<118x32xf32>
    %124 = arith.addf %118, %123 : vector<118x32xf32>
    %c25_121 = arith.constant 25 : index
    %c0_122 = arith.constant 0 : index
    %125 = vector.load %arg31[%c25_121, %c0_122] : memref<144x32xf32, #tpu.memory_space<vmem>>, vector<118x32xf32>
    %126 = arith.truncf %125 : vector<118x32xf32> to vector<118x32xbf16>
    %c7_123 = arith.constant 7 : index
    %c0_124 = arith.constant 0 : index
    %c0_125 = arith.constant 0 : index
    %127 = vector.load %arg11[%c7_123, %c0_124, %c0_125] : memref<9x32x32xbf16, #tpu.memory_space<vmem>>, vector<1x32x32xbf16>
    %128 = vector.shape_cast %127 : vector<1x32x32xbf16> to vector<32x32xbf16>
    %cst_126 = arith.constant dense<0.000000e+00> : vector<118x32xf32>
    %129 = tpu.matmul %126, %128, %cst_126 {dimension_numbers = #tpu.dot_dimension_numbers<[1], [0], [0], [1], [0, 0, 1, 1], [], []>} : vector<118x32xbf16>, vector<32x32xbf16>, vector<118x32xf32> -> vector<118x32xf32>
    %130 = arith.addf %124, %129 : vector<118x32xf32>
    %c26_127 = arith.constant 26 : index
    %c0_128 = arith.constant 0 : index
    %131 = vector.load %arg31[%c26_127, %c0_128] : memref<144x32xf32, #tpu.memory_space<vmem>>, vector<118x32xf32>
    %132 = arith.truncf %131 : vector<118x32xf32> to vector<118x32xbf16>
    %c8_129 = arith.constant 8 : index
    %c0_130 = arith.constant 0 : index
    %c0_131 = arith.constant 0 : index
    %133 = vector.load %arg11[%c8_129, %c0_130, %c0_131] : memref<9x32x32xbf16, #tpu.memory_space<vmem>>, vector<1x32x32xbf16>
    %134 = vector.shape_cast %133 : vector<1x32x32xbf16> to vector<32x32xbf16>
    %cst_132 = arith.constant dense<0.000000e+00> : vector<118x32xf32>
    %135 = tpu.matmul %132, %134, %cst_132 {dimension_numbers = #tpu.dot_dimension_numbers<[1], [0], [0], [1], [0, 0, 1, 1], [], []>} : vector<118x32xbf16>, vector<32x32xbf16>, vector<118x32xf32> -> vector<118x32xf32>
    %136 = arith.addf %130, %135 : vector<118x32xf32>
    %c0_133 = arith.constant 0 : index
    %c0_134 = arith.constant 0 : index
    %137 = vector.load %arg12[%c0_133, %c0_134] : memref<1x32xf32, #tpu.memory_space<vmem>>, vector<1x32xf32>
    %138 = vector.broadcast %137 : vector<1x32xf32> to vector<118x32xf32>
    %139 = arith.mulf %136, %138 : vector<118x32xf32>
    %c0_135 = arith.constant 0 : index
    %c0_136 = arith.constant 0 : index
    %140 = vector.load %arg13[%c0_135, %c0_136] : memref<1x32xf32, #tpu.memory_space<vmem>>, vector<1x32xf32>
    %141 = vector.broadcast %140 : vector<1x32xf32> to vector<118x32xf32>
    %142 = arith.addf %139, %141 : vector<118x32xf32>
    %cst_137 = arith.constant 0.000000e+00 : f32
    %143 = vector.broadcast %cst_137 : f32 to vector<118x32xf32>
    %144 = arith.maximumf %142, %143 : vector<118x32xf32>
    %c0_138 = arith.constant 0 : index
    %c0_139 = arith.constant 0 : index
    %145 = vector.load %arg24[%c0_138, %c0_139] : memref<118x1xf32, #tpu.memory_space<vmem>>, vector<118x1xf32>
    %146 = vector.broadcast %145 : vector<118x1xf32> to vector<118x32xf32>
    %147 = arith.mulf %144, %146 : vector<118x32xf32>
    %c13_140 = arith.constant 13 : index
    %c0_141 = arith.constant 0 : index
    %148 = vector.load %arg32[%c13_140, %c0_141] : memref<144x32xf32, #tpu.memory_space<vmem>>, vector<118x32xf32>
    tpu.vector_store %arg32[%c13_140, %c0_141], %147 {strides = array<i32>} : memref<144x32xf32, #tpu.memory_space<vmem>>, vector<118x32xf32>,
    %c13_142 = arith.constant 13 : index
    %c0_143 = arith.constant 0 : index
    %149 = vector.load %arg32[%c13_142, %c0_143] : memref<144x32xf32, #tpu.memory_space<vmem>>, vector<10x32xf32>
    %c25_144 = arith.constant 25 : index
    %c0_145 = arith.constant 0 : index
    %150 = vector.load %arg32[%c25_144, %c0_145] : memref<144x32xf32, #tpu.memory_space<vmem>>, vector<10x32xf32>
    %151 = arith.maximumf %149, %150 : vector<10x32xf32>
    %c37 = arith.constant 37 : index
    %c0_146 = arith.constant 0 : index
    %152 = vector.load %arg32[%c37, %c0_146] : memref<144x32xf32, #tpu.memory_space<vmem>>, vector<10x32xf32>
    %153 = arith.maximumf %151, %152 : vector<10x32xf32>
    %c49 = arith.constant 49 : index
    %c0_147 = arith.constant 0 : index
    %154 = vector.load %arg32[%c49, %c0_147] : memref<144x32xf32, #tpu.memory_space<vmem>>, vector<10x32xf32>
    %155 = arith.maximumf %153, %154 : vector<10x32xf32>
    %c61 = arith.constant 61 : index
    %c0_148 = arith.constant 0 : index
    %156 = vector.load %arg32[%c61, %c0_148] : memref<144x32xf32, #tpu.memory_space<vmem>>, vector<10x32xf32>
    %157 = arith.maximumf %155, %156 : vector<10x32xf32>
    %c0_149 = arith.constant 0 : index
    %c0_150 = arith.constant 0 : index
    %158 = vector.load %arg33[%c0_149, %c0_150] : memref<10x32xf32, #tpu.memory_space<vmem>>, vector<10x32xf32>
    tpu.vector_store %arg33[%c0_149, %c0_150], %157 {strides = array<i32>} : memref<10x32xf32, #tpu.memory_space<vmem>>, vector<10x32xf32>,
    %c0_151 = arith.constant 0 : index
    %c0_152 = arith.constant 0 : index
    %159 = tpu.strided_load %arg33[%c0_151, %c0_152] {strides = array<i32: 5, 1>} : memref<10x32xf32, #tpu.memory_space<vmem>>, vector<2x32xf32>
    %c1_153 = arith.constant 1 : index
    %c0_154 = arith.constant 0 : index
    %160 = tpu.strided_load %arg33[%c1_153, %c0_154] {strides = array<i32: 5, 1>} : memref<10x32xf32, #tpu.memory_space<vmem>>, vector<2x32xf32>
    %161 = arith.maximumf %159, %160 : vector<2x32xf32>
    %c2_155 = arith.constant 2 : index
    %c0_156 = arith.constant 0 : index
    %162 = tpu.strided_load %arg33[%c2_155, %c0_156] {strides = array<i32: 5, 1>} : memref<10x32xf32, #tpu.memory_space<vmem>>, vector<2x32xf32>
    %163 = arith.maximumf %161, %162 : vector<2x32xf32>
    %c3_157 = arith.constant 3 : index
    %c0_158 = arith.constant 0 : index
    %164 = tpu.strided_load %arg33[%c3_157, %c0_158] {strides = array<i32: 5, 1>} : memref<10x32xf32, #tpu.memory_space<vmem>>, vector<2x32xf32>
    %165 = arith.maximumf %163, %164 : vector<2x32xf32>
    %c4_159 = arith.constant 4 : index
    %c0_160 = arith.constant 0 : index
    %166 = tpu.strided_load %arg33[%c4_159, %c0_160] {strides = array<i32: 5, 1>} : memref<10x32xf32, #tpu.memory_space<vmem>>, vector<2x32xf32>
    %167 = arith.maximumf %165, %166 : vector<2x32xf32>
    %c5_161 = arith.constant 5 : index
    %c0_162 = arith.constant 0 : index
    %168 = vector.load %arg34[%c5_161, %c0_162] : memref<16x32xf32, #tpu.memory_space<vmem>>, vector<2x32xf32>
    tpu.vector_store %arg34[%c5_161, %c0_162], %167 {strides = array<i32>} : memref<16x32xf32, #tpu.memory_space<vmem>>, vector<2x32xf32>,
    %c73 = arith.constant 73 : index
    %c0_163 = arith.constant 0 : index
    %169 = vector.load %arg32[%c73, %c0_163] : memref<144x32xf32, #tpu.memory_space<vmem>>, vector<10x32xf32>
    %c85 = arith.constant 85 : index
    %c0_164 = arith.constant 0 : index
    %170 = vector.load %arg32[%c85, %c0_164] : memref<144x32xf32, #tpu.memory_space<vmem>>, vector<10x32xf32>
    %171 = arith.maximumf %169, %170 : vector<10x32xf32>
    %c97 = arith.constant 97 : index
    %c0_165 = arith.constant 0 : index
    %172 = vector.load %arg32[%c97, %c0_165] : memref<144x32xf32, #tpu.memory_space<vmem>>, vector<10x32xf32>
    %173 = arith.maximumf %171, %172 : vector<10x32xf32>
    %c109 = arith.constant 109 : index
    %c0_166 = arith.constant 0 : index
    %174 = vector.load %arg32[%c109, %c0_166] : memref<144x32xf32, #tpu.memory_space<vmem>>, vector<10x32xf32>
    %175 = arith.maximumf %173, %174 : vector<10x32xf32>
    %c121 = arith.constant 121 : index
    %c0_167 = arith.constant 0 : index
    %176 = vector.load %arg32[%c121, %c0_167] : memref<144x32xf32, #tpu.memory_space<vmem>>, vector<10x32xf32>
    %177 = arith.maximumf %175, %176 : vector<10x32xf32>
    %c0_168 = arith.constant 0 : index
    %c0_169 = arith.constant 0 : index
    %178 = vector.load %arg33[%c0_168, %c0_169] : memref<10x32xf32, #tpu.memory_space<vmem>>, vector<10x32xf32>
    tpu.vector_store %arg33[%c0_168, %c0_169], %177 {strides = array<i32>} : memref<10x32xf32, #tpu.memory_space<vmem>>, vector<10x32xf32>,
    %c0_170 = arith.constant 0 : index
    %c0_171 = arith.constant 0 : index
    %179 = tpu.strided_load %arg33[%c0_170, %c0_171] {strides = array<i32: 5, 1>} : memref<10x32xf32, #tpu.memory_space<vmem>>, vector<2x32xf32>
    %c1_172 = arith.constant 1 : index
    %c0_173 = arith.constant 0 : index
    %180 = tpu.strided_load %arg33[%c1_172, %c0_173] {strides = array<i32: 5, 1>} : memref<10x32xf32, #tpu.memory_space<vmem>>, vector<2x32xf32>
    %181 = arith.maximumf %179, %180 : vector<2x32xf32>
    %c2_174 = arith.constant 2 : index
    %c0_175 = arith.constant 0 : index
    %182 = tpu.strided_load %arg33[%c2_174, %c0_175] {strides = array<i32: 5, 1>} : memref<10x32xf32, #tpu.memory_space<vmem>>, vector<2x32xf32>
    %183 = arith.maximumf %181, %182 : vector<2x32xf32>
    %c3_176 = arith.constant 3 : index
    %c0_177 = arith.constant 0 : index
    %184 = tpu.strided_load %arg33[%c3_176, %c0_177] {strides = array<i32: 5, 1>} : memref<10x32xf32, #tpu.memory_space<vmem>>, vector<2x32xf32>
    %185 = arith.maximumf %183, %184 : vector<2x32xf32>
    %c4_178 = arith.constant 4 : index
    %c0_179 = arith.constant 0 : index
    %186 = tpu.strided_load %arg33[%c4_178, %c0_179] {strides = array<i32: 5, 1>} : memref<10x32xf32, #tpu.memory_space<vmem>>, vector<2x32xf32>
    %187 = arith.maximumf %185, %186 : vector<2x32xf32>
    %c9 = arith.constant 9 : index
    %c0_180 = arith.constant 0 : index
    %188 = vector.load %arg34[%c9, %c0_180] : memref<16x32xf32, #tpu.memory_space<vmem>>, vector<2x32xf32>
    tpu.vector_store %arg34[%c9, %c0_180], %187 {strides = array<i32>} : memref<16x32xf32, #tpu.memory_space<vmem>>, vector<2x32xf32>,
    %c0_181 = arith.constant 0 : index
    %c0_182 = arith.constant 0 : index
    %189 = vector.load %arg34[%c0_181, %c0_182] : memref<16x32xf32, #tpu.memory_space<vmem>>, vector<6x32xf32>
    %190 = arith.truncf %189 : vector<6x32xf32> to vector<6x32xbf16>
    %c0_183 = arith.constant 0 : index
    %c0_184 = arith.constant 0 : index
    %c0_185 = arith.constant 0 : index
    %191 = vector.load %arg14[%c0_183, %c0_184, %c0_185] : memref<9x32x64xbf16, #tpu.memory_space<vmem>>, vector<1x32x64xbf16>
    %192 = vector.shape_cast %191 : vector<1x32x64xbf16> to vector<32x64xbf16>
    %cst_186 = arith.constant dense<0.000000e+00> : vector<6x64xf32>
    %193 = tpu.matmul %190, %192, %cst_186 {dimension_numbers = #tpu.dot_dimension_numbers<[1], [0], [0], [1], [0, 0, 1, 1], [], []>} : vector<6x32xbf16>, vector<32x64xbf16>, vector<6x64xf32> -> vector<6x64xf32>
    %c1_187 = arith.constant 1 : index
    %c0_188 = arith.constant 0 : index
    %194 = vector.load %arg34[%c1_187, %c0_188] : memref<16x32xf32, #tpu.memory_space<vmem>>, vector<6x32xf32>
    %195 = arith.truncf %194 : vector<6x32xf32> to vector<6x32xbf16>
    %c1_189 = arith.constant 1 : index
    %c0_190 = arith.constant 0 : index
    %c0_191 = arith.constant 0 : index
    %196 = vector.load %arg14[%c1_189, %c0_190, %c0_191] : memref<9x32x64xbf16, #tpu.memory_space<vmem>>, vector<1x32x64xbf16>
    %197 = vector.shape_cast %196 : vector<1x32x64xbf16> to vector<32x64xbf16>
    %cst_192 = arith.constant dense<0.000000e+00> : vector<6x64xf32>
    %198 = tpu.matmul %195, %197, %cst_192 {dimension_numbers = #tpu.dot_dimension_numbers<[1], [0], [0], [1], [0, 0, 1, 1], [], []>} : vector<6x32xbf16>, vector<32x64xbf16>, vector<6x64xf32> -> vector<6x64xf32>
    %199 = arith.addf %193, %198 : vector<6x64xf32>
    %c2_193 = arith.constant 2 : index
    %c0_194 = arith.constant 0 : index
    %200 = vector.load %arg34[%c2_193, %c0_194] : memref<16x32xf32, #tpu.memory_space<vmem>>, vector<6x32xf32>
    %201 = arith.truncf %200 : vector<6x32xf32> to vector<6x32xbf16>
    %c2_195 = arith.constant 2 : index
    %c0_196 = arith.constant 0 : index
    %c0_197 = arith.constant 0 : index
    %202 = vector.load %arg14[%c2_195, %c0_196, %c0_197] : memref<9x32x64xbf16, #tpu.memory_space<vmem>>, vector<1x32x64xbf16>
    %203 = vector.shape_cast %202 : vector<1x32x64xbf16> to vector<32x64xbf16>
    %cst_198 = arith.constant dense<0.000000e+00> : vector<6x64xf32>
    %204 = tpu.matmul %201, %203, %cst_198 {dimension_numbers = #tpu.dot_dimension_numbers<[1], [0], [0], [1], [0, 0, 1, 1], [], []>} : vector<6x32xbf16>, vector<32x64xbf16>, vector<6x64xf32> -> vector<6x64xf32>
    %205 = arith.addf %199, %204 : vector<6x64xf32>
    %c4_199 = arith.constant 4 : index
    %c0_200 = arith.constant 0 : index
    %206 = vector.load %arg34[%c4_199, %c0_200] : memref<16x32xf32, #tpu.memory_space<vmem>>, vector<6x32xf32>
    %207 = arith.truncf %206 : vector<6x32xf32> to vector<6x32xbf16>
    %c3_201 = arith.constant 3 : index
    %c0_202 = arith.constant 0 : index
    %c0_203 = arith.constant 0 : index
    %208 = vector.load %arg14[%c3_201, %c0_202, %c0_203] : memref<9x32x64xbf16, #tpu.memory_space<vmem>>, vector<1x32x64xbf16>
    %209 = vector.shape_cast %208 : vector<1x32x64xbf16> to vector<32x64xbf16>
    %cst_204 = arith.constant dense<0.000000e+00> : vector<6x64xf32>
    %210 = tpu.matmul %207, %209, %cst_204 {dimension_numbers = #tpu.dot_dimension_numbers<[1], [0], [0], [1], [0, 0, 1, 1], [], []>} : vector<6x32xbf16>, vector<32x64xbf16>, vector<6x64xf32> -> vector<6x64xf32>
    %211 = arith.addf %205, %210 : vector<6x64xf32>
    %c5_205 = arith.constant 5 : index
    %c0_206 = arith.constant 0 : index
    %212 = vector.load %arg34[%c5_205, %c0_206] : memref<16x32xf32, #tpu.memory_space<vmem>>, vector<6x32xf32>
    %213 = arith.truncf %212 : vector<6x32xf32> to vector<6x32xbf16>
    %c4_207 = arith.constant 4 : index
    %c0_208 = arith.constant 0 : index
    %c0_209 = arith.constant 0 : index
    %214 = vector.load %arg14[%c4_207, %c0_208, %c0_209] : memref<9x32x64xbf16, #tpu.memory_space<vmem>>, vector<1x32x64xbf16>
    %215 = vector.shape_cast %214 : vector<1x32x64xbf16> to vector<32x64xbf16>
    %cst_210 = arith.constant dense<0.000000e+00> : vector<6x64xf32>
    %216 = tpu.matmul %213, %215, %cst_210 {dimension_numbers = #tpu.dot_dimension_numbers<[1], [0], [0], [1], [0, 0, 1, 1], [], []>} : vector<6x32xbf16>, vector<32x64xbf16>, vector<6x64xf32> -> vector<6x64xf32>
    %217 = arith.addf %211, %216 : vector<6x64xf32>
    %c6_211 = arith.constant 6 : index
    %c0_212 = arith.constant 0 : index
    %218 = vector.load %arg34[%c6_211, %c0_212] : memref<16x32xf32, #tpu.memory_space<vmem>>, vector<6x32xf32>
    %219 = arith.truncf %218 : vector<6x32xf32> to vector<6x32xbf16>
    %c5_213 = arith.constant 5 : index
    %c0_214 = arith.constant 0 : index
    %c0_215 = arith.constant 0 : index
    %220 = vector.load %arg14[%c5_213, %c0_214, %c0_215] : memref<9x32x64xbf16, #tpu.memory_space<vmem>>, vector<1x32x64xbf16>
    %221 = vector.shape_cast %220 : vector<1x32x64xbf16> to vector<32x64xbf16>
    %cst_216 = arith.constant dense<0.000000e+00> : vector<6x64xf32>
    %222 = tpu.matmul %219, %221, %cst_216 {dimension_numbers = #tpu.dot_dimension_numbers<[1], [0], [0], [1], [0, 0, 1, 1], [], []>} : vector<6x32xbf16>, vector<32x64xbf16>, vector<6x64xf32> -> vector<6x64xf32>
    %223 = arith.addf %217, %222 : vector<6x64xf32>
    %c8_217 = arith.constant 8 : index
    %c0_218 = arith.constant 0 : index
    %224 = vector.load %arg34[%c8_217, %c0_218] : memref<16x32xf32, #tpu.memory_space<vmem>>, vector<6x32xf32>
    %225 = arith.truncf %224 : vector<6x32xf32> to vector<6x32xbf16>
    %c6_219 = arith.constant 6 : index
    %c0_220 = arith.constant 0 : index
    %c0_221 = arith.constant 0 : index
    %226 = vector.load %arg14[%c6_219, %c0_220, %c0_221] : memref<9x32x64xbf16, #tpu.memory_space<vmem>>, vector<1x32x64xbf16>
    %227 = vector.shape_cast %226 : vector<1x32x64xbf16> to vector<32x64xbf16>
    %cst_222 = arith.constant dense<0.000000e+00> : vector<6x64xf32>
    %228 = tpu.matmul %225, %227, %cst_222 {dimension_numbers = #tpu.dot_dimension_numbers<[1], [0], [0], [1], [0, 0, 1, 1], [], []>} : vector<6x32xbf16>, vector<32x64xbf16>, vector<6x64xf32> -> vector<6x64xf32>
    %229 = arith.addf %223, %228 : vector<6x64xf32>
    %c9_223 = arith.constant 9 : index
    %c0_224 = arith.constant 0 : index
    %230 = vector.load %arg34[%c9_223, %c0_224] : memref<16x32xf32, #tpu.memory_space<vmem>>, vector<6x32xf32>
    %231 = arith.truncf %230 : vector<6x32xf32> to vector<6x32xbf16>
    %c7_225 = arith.constant 7 : index
    %c0_226 = arith.constant 0 : index
    %c0_227 = arith.constant 0 : index
    %232 = vector.load %arg14[%c7_225, %c0_226, %c0_227] : memref<9x32x64xbf16, #tpu.memory_space<vmem>>, vector<1x32x64xbf16>
    %233 = vector.shape_cast %232 : vector<1x32x64xbf16> to vector<32x64xbf16>
    %cst_228 = arith.constant dense<0.000000e+00> : vector<6x64xf32>
    %234 = tpu.matmul %231, %233, %cst_228 {dimension_numbers = #tpu.dot_dimension_numbers<[1], [0], [0], [1], [0, 0, 1, 1], [], []>} : vector<6x32xbf16>, vector<32x64xbf16>, vector<6x64xf32> -> vector<6x64xf32>
    %235 = arith.addf %229, %234 : vector<6x64xf32>
    %c10 = arith.constant 10 : index
    %c0_229 = arith.constant 0 : index
    %236 = vector.load %arg34[%c10, %c0_229] : memref<16x32xf32, #tpu.memory_space<vmem>>, vector<6x32xf32>
    %237 = arith.truncf %236 : vector<6x32xf32> to vector<6x32xbf16>
    %c8_230 = arith.constant 8 : index
    %c0_231 = arith.constant 0 : index
    %c0_232 = arith.constant 0 : index
    %238 = vector.load %arg14[%c8_230, %c0_231, %c0_232] : memref<9x32x64xbf16, #tpu.memory_space<vmem>>, vector<1x32x64xbf16>
    %239 = vector.shape_cast %238 : vector<1x32x64xbf16> to vector<32x64xbf16>
    %cst_233 = arith.constant dense<0.000000e+00> : vector<6x64xf32>
    %240 = tpu.matmul %237, %239, %cst_233 {dimension_numbers = #tpu.dot_dimension_numbers<[1], [0], [0], [1], [0, 0, 1, 1], [], []>} : vector<6x32xbf16>, vector<32x64xbf16>, vector<6x64xf32> -> vector<6x64xf32>
    %241 = arith.addf %235, %240 : vector<6x64xf32>
    %c0_234 = arith.constant 0 : index
    %c0_235 = arith.constant 0 : index
    %242 = vector.load %arg15[%c0_234, %c0_235] : memref<1x64xf32, #tpu.memory_space<vmem>>, vector<1x64xf32>
    %243 = vector.broadcast %242 : vector<1x64xf32> to vector<6x64xf32>
    %244 = arith.mulf %241, %243 : vector<6x64xf32>
    %c0_236 = arith.constant 0 : index
    %c0_237 = arith.constant 0 : index
    %245 = vector.load %arg16[%c0_236, %c0_237] : memref<1x64xf32, #tpu.memory_space<vmem>>, vector<1x64xf32>
    %246 = vector.broadcast %245 : vector<1x64xf32> to vector<6x64xf32>
    %247 = arith.addf %244, %246 : vector<6x64xf32>
    %cst_238 = arith.constant 0.000000e+00 : f32
    %248 = vector.broadcast %cst_238 : f32 to vector<6x64xf32>
    %249 = arith.maximumf %247, %248 : vector<6x64xf32>
    %c0_239 = arith.constant 0 : index
    %c0_240 = arith.constant 0 : index
    %250 = vector.load %arg25[%c0_239, %c0_240] : memref<6x1xf32, #tpu.memory_space<vmem>>, vector<6x1xf32>
    %251 = vector.broadcast %250 : vector<6x1xf32> to vector<6x64xf32>
    %252 = arith.mulf %249, %251 : vector<6x64xf32>
    %c5_241 = arith.constant 5 : index
    %c0_242 = arith.constant 0 : index
    %253 = vector.load %arg35[%c5_241, %c0_242] : memref<16x64xf32, #tpu.memory_space<vmem>>, vector<6x64xf32>
    tpu.vector_store %arg35[%c5_241, %c0_242], %252 {strides = array<i32>} : memref<16x64xf32, #tpu.memory_space<vmem>>, vector<6x64xf32>,
    %c0_243 = arith.constant 0 : index
    %c0_244 = arith.constant 0 : index
    %254 = vector.load %arg35[%c0_243, %c0_244] : memref<16x64xf32, #tpu.memory_space<vmem>>, vector<6x64xf32>
    %255 = arith.truncf %254 : vector<6x64xf32> to vector<6x64xbf16>
    %c0_245 = arith.constant 0 : index
    %c0_246 = arith.constant 0 : index
    %c0_247 = arith.constant 0 : index
    %256 = vector.load %arg17[%c0_245, %c0_246, %c0_247] : memref<9x64x64xbf16, #tpu.memory_space<vmem>>, vector<1x64x64xbf16>
    %257 = vector.shape_cast %256 : vector<1x64x64xbf16> to vector<64x64xbf16>
    %cst_248 = arith.constant dense<0.000000e+00> : vector<6x64xf32>
    %258 = tpu.matmul %255, %257, %cst_248 {dimension_numbers = #tpu.dot_dimension_numbers<[1], [0], [0], [1], [0, 0, 1, 1], [], []>} : vector<6x64xbf16>, vector<64x64xbf16>, vector<6x64xf32> -> vector<6x64xf32>
    %c1_249 = arith.constant 1 : index
    %c0_250 = arith.constant 0 : index
    %259 = vector.load %arg35[%c1_249, %c0_250] : memref<16x64xf32, #tpu.memory_space<vmem>>, vector<6x64xf32>
    %260 = arith.truncf %259 : vector<6x64xf32> to vector<6x64xbf16>
    %c1_251 = arith.constant 1 : index
    %c0_252 = arith.constant 0 : index
    %c0_253 = arith.constant 0 : index
    %261 = vector.load %arg17[%c1_251, %c0_252, %c0_253] : memref<9x64x64xbf16, #tpu.memory_space<vmem>>, vector<1x64x64xbf16>
    %262 = vector.shape_cast %261 : vector<1x64x64xbf16> to vector<64x64xbf16>
    %cst_254 = arith.constant dense<0.000000e+00> : vector<6x64xf32>
    %263 = tpu.matmul %260, %262, %cst_254 {dimension_numbers = #tpu.dot_dimension_numbers<[1], [0], [0], [1], [0, 0, 1, 1], [], []>} : vector<6x64xbf16>, vector<64x64xbf16>, vector<6x64xf32> -> vector<6x64xf32>
    %264 = arith.addf %258, %263 : vector<6x64xf32>
    %c2_255 = arith.constant 2 : index
    %c0_256 = arith.constant 0 : index
    %265 = vector.load %arg35[%c2_255, %c0_256] : memref<16x64xf32, #tpu.memory_space<vmem>>, vector<6x64xf32>
    %266 = arith.truncf %265 : vector<6x64xf32> to vector<6x64xbf16>
    %c2_257 = arith.constant 2 : index
    %c0_258 = arith.constant 0 : index
    %c0_259 = arith.constant 0 : index
    %267 = vector.load %arg17[%c2_257, %c0_258, %c0_259] : memref<9x64x64xbf16, #tpu.memory_space<vmem>>, vector<1x64x64xbf16>
    %268 = vector.shape_cast %267 : vector<1x64x64xbf16> to vector<64x64xbf16>
    %cst_260 = arith.constant dense<0.000000e+00> : vector<6x64xf32>
    %269 = tpu.matmul %266, %268, %cst_260 {dimension_numbers = #tpu.dot_dimension_numbers<[1], [0], [0], [1], [0, 0, 1, 1], [], []>} : vector<6x64xbf16>, vector<64x64xbf16>, vector<6x64xf32> -> vector<6x64xf32>
    %270 = arith.addf %264, %269 : vector<6x64xf32>
    %c4_261 = arith.constant 4 : index
    %c0_262 = arith.constant 0 : index
    %271 = vector.load %arg35[%c4_261, %c0_262] : memref<16x64xf32, #tpu.memory_space<vmem>>, vector<6x64xf32>
    %272 = arith.truncf %271 : vector<6x64xf32> to vector<6x64xbf16>
    %c3_263 = arith.constant 3 : index
    %c0_264 = arith.constant 0 : index
    %c0_265 = arith.constant 0 : index
    %273 = vector.load %arg17[%c3_263, %c0_264, %c0_265] : memref<9x64x64xbf16, #tpu.memory_space<vmem>>, vector<1x64x64xbf16>
    %274 = vector.shape_cast %273 : vector<1x64x64xbf16> to vector<64x64xbf16>
    %cst_266 = arith.constant dense<0.000000e+00> : vector<6x64xf32>
    %275 = tpu.matmul %272, %274, %cst_266 {dimension_numbers = #tpu.dot_dimension_numbers<[1], [0], [0], [1], [0, 0, 1, 1], [], []>} : vector<6x64xbf16>, vector<64x64xbf16>, vector<6x64xf32> -> vector<6x64xf32>
    %276 = arith.addf %270, %275 : vector<6x64xf32>
    %c5_267 = arith.constant 5 : index
    %c0_268 = arith.constant 0 : index
    %277 = vector.load %arg35[%c5_267, %c0_268] : memref<16x64xf32, #tpu.memory_space<vmem>>, vector<6x64xf32>
    %278 = arith.truncf %277 : vector<6x64xf32> to vector<6x64xbf16>
    %c4_269 = arith.constant 4 : index
    %c0_270 = arith.constant 0 : index
    %c0_271 = arith.constant 0 : index
    %279 = vector.load %arg17[%c4_269, %c0_270, %c0_271] : memref<9x64x64xbf16, #tpu.memory_space<vmem>>, vector<1x64x64xbf16>
    %280 = vector.shape_cast %279 : vector<1x64x64xbf16> to vector<64x64xbf16>
    %cst_272 = arith.constant dense<0.000000e+00> : vector<6x64xf32>
    %281 = tpu.matmul %278, %280, %cst_272 {dimension_numbers = #tpu.dot_dimension_numbers<[1], [0], [0], [1], [0, 0, 1, 1], [], []>} : vector<6x64xbf16>, vector<64x64xbf16>, vector<6x64xf32> -> vector<6x64xf32>
    %282 = arith.addf %276, %281 : vector<6x64xf32>
    %c6_273 = arith.constant 6 : index
    %c0_274 = arith.constant 0 : index
    %283 = vector.load %arg35[%c6_273, %c0_274] : memref<16x64xf32, #tpu.memory_space<vmem>>, vector<6x64xf32>
    %284 = arith.truncf %283 : vector<6x64xf32> to vector<6x64xbf16>
    %c5_275 = arith.constant 5 : index
    %c0_276 = arith.constant 0 : index
    %c0_277 = arith.constant 0 : index
    %285 = vector.load %arg17[%c5_275, %c0_276, %c0_277] : memref<9x64x64xbf16, #tpu.memory_space<vmem>>, vector<1x64x64xbf16>
    %286 = vector.shape_cast %285 : vector<1x64x64xbf16> to vector<64x64xbf16>
    %cst_278 = arith.constant dense<0.000000e+00> : vector<6x64xf32>
    %287 = tpu.matmul %284, %286, %cst_278 {dimension_numbers = #tpu.dot_dimension_numbers<[1], [0], [0], [1], [0, 0, 1, 1], [], []>} : vector<6x64xbf16>, vector<64x64xbf16>, vector<6x64xf32> -> vector<6x64xf32>
    %288 = arith.addf %282, %287 : vector<6x64xf32>
    %c8_279 = arith.constant 8 : index
    %c0_280 = arith.constant 0 : index
    %289 = vector.load %arg35[%c8_279, %c0_280] : memref<16x64xf32, #tpu.memory_space<vmem>>, vector<6x64xf32>
    %290 = arith.truncf %289 : vector<6x64xf32> to vector<6x64xbf16>
    %c6_281 = arith.constant 6 : index
    %c0_282 = arith.constant 0 : index
    %c0_283 = arith.constant 0 : index
    %291 = vector.load %arg17[%c6_281, %c0_282, %c0_283] : memref<9x64x64xbf16, #tpu.memory_space<vmem>>, vector<1x64x64xbf16>
    %292 = vector.shape_cast %291 : vector<1x64x64xbf16> to vector<64x64xbf16>
    %cst_284 = arith.constant dense<0.000000e+00> : vector<6x64xf32>
    %293 = tpu.matmul %290, %292, %cst_284 {dimension_numbers = #tpu.dot_dimension_numbers<[1], [0], [0], [1], [0, 0, 1, 1], [], []>} : vector<6x64xbf16>, vector<64x64xbf16>, vector<6x64xf32> -> vector<6x64xf32>
    %294 = arith.addf %288, %293 : vector<6x64xf32>
    %c9_285 = arith.constant 9 : index
    %c0_286 = arith.constant 0 : index
    %295 = vector.load %arg35[%c9_285, %c0_286] : memref<16x64xf32, #tpu.memory_space<vmem>>, vector<6x64xf32>
    %296 = arith.truncf %295 : vector<6x64xf32> to vector<6x64xbf16>
    %c7_287 = arith.constant 7 : index
    %c0_288 = arith.constant 0 : index
    %c0_289 = arith.constant 0 : index
    %297 = vector.load %arg17[%c7_287, %c0_288, %c0_289] : memref<9x64x64xbf16, #tpu.memory_space<vmem>>, vector<1x64x64xbf16>
    %298 = vector.shape_cast %297 : vector<1x64x64xbf16> to vector<64x64xbf16>
    %cst_290 = arith.constant dense<0.000000e+00> : vector<6x64xf32>
    %299 = tpu.matmul %296, %298, %cst_290 {dimension_numbers = #tpu.dot_dimension_numbers<[1], [0], [0], [1], [0, 0, 1, 1], [], []>} : vector<6x64xbf16>, vector<64x64xbf16>, vector<6x64xf32> -> vector<6x64xf32>
    %300 = arith.addf %294, %299 : vector<6x64xf32>
    %c10_291 = arith.constant 10 : index
    %c0_292 = arith.constant 0 : index
    %301 = vector.load %arg35[%c10_291, %c0_292] : memref<16x64xf32, #tpu.memory_space<vmem>>, vector<6x64xf32>
    %302 = arith.truncf %301 : vector<6x64xf32> to vector<6x64xbf16>
    %c8_293 = arith.constant 8 : index
    %c0_294 = arith.constant 0 : index
    %c0_295 = arith.constant 0 : index
    %303 = vector.load %arg17[%c8_293, %c0_294, %c0_295] : memref<9x64x64xbf16, #tpu.memory_space<vmem>>, vector<1x64x64xbf16>
    %304 = vector.shape_cast %303 : vector<1x64x64xbf16> to vector<64x64xbf16>
    %cst_296 = arith.constant dense<0.000000e+00> : vector<6x64xf32>
    %305 = tpu.matmul %302, %304, %cst_296 {dimension_numbers = #tpu.dot_dimension_numbers<[1], [0], [0], [1], [0, 0, 1, 1], [], []>} : vector<6x64xbf16>, vector<64x64xbf16>, vector<6x64xf32> -> vector<6x64xf32>
    %306 = arith.addf %300, %305 : vector<6x64xf32>
    %c0_297 = arith.constant 0 : index
    %c0_298 = arith.constant 0 : index
    %307 = vector.load %arg18[%c0_297, %c0_298] : memref<1x64xf32, #tpu.memory_space<vmem>>, vector<1x64xf32>
    %308 = vector.broadcast %307 : vector<1x64xf32> to vector<6x64xf32>
    %309 = arith.mulf %306, %308 : vector<6x64xf32>
    %c0_299 = arith.constant 0 : index
    %c0_300 = arith.constant 0 : index
    %310 = vector.load %arg19[%c0_299, %c0_300] : memref<1x64xf32, #tpu.memory_space<vmem>>, vector<1x64xf32>
    %311 = vector.broadcast %310 : vector<1x64xf32> to vector<6x64xf32>
    %312 = arith.addf %309, %311 : vector<6x64xf32>
    %cst_301 = arith.constant 0.000000e+00 : f32
    %313 = vector.broadcast %cst_301 : f32 to vector<6x64xf32>
    %314 = arith.maximumf %312, %313 : vector<6x64xf32>
    %c0_302 = arith.constant 0 : index
    %c0_303 = arith.constant 0 : index
    %315 = vector.load %arg25[%c0_302, %c0_303] : memref<6x1xf32, #tpu.memory_space<vmem>>, vector<6x1xf32>
    %316 = vector.broadcast %315 : vector<6x1xf32> to vector<6x64xf32>
    %317 = arith.mulf %314, %316 : vector<6x64xf32>
    %c5_304 = arith.constant 5 : index
    %c0_305 = arith.constant 0 : index
    %318 = vector.load %arg36[%c5_304, %c0_305] : memref<16x64xf32, #tpu.memory_space<vmem>>, vector<6x64xf32>
    tpu.vector_store %arg36[%c5_304, %c0_305], %317 {strides = array<i32>} : memref<16x64xf32, #tpu.memory_space<vmem>>, vector<6x64xf32>,
    %c5_306 = arith.constant 5 : index
    %c0_307 = arith.constant 0 : index
    %319 = vector.load %arg36[%c5_306, %c0_307] : memref<16x64xf32, #tpu.memory_space<vmem>>, vector<2x64xf32>
    %c9_308 = arith.constant 9 : index
    %c0_309 = arith.constant 0 : index
    %320 = vector.load %arg36[%c9_308, %c0_309] : memref<16x64xf32, #tpu.memory_space<vmem>>, vector<2x64xf32>
    %321 = arith.maximumf %319, %320 : vector<2x64xf32>
    %c0_310 = arith.constant 0 : index
    %c0_311 = arith.constant 0 : index
    %322 = vector.load %arg37[%c0_310, %c0_311] : memref<2x64xf32, #tpu.memory_space<vmem>>, vector<2x64xf32>
    tpu.vector_store %arg37[%c0_310, %c0_311], %321 {strides = array<i32>} : memref<2x64xf32, #tpu.memory_space<vmem>>, vector<2x64xf32>,
    %c0_312 = arith.constant 0 : index
    %c0_313 = arith.constant 0 : index
    %323 = tpu.strided_load %arg37[%c0_312, %c0_313] {strides = array<i32: 2, 1>} : memref<2x64xf32, #tpu.memory_space<vmem>>, vector<1x64xf32>
    %c1_314 = arith.constant 1 : index
    %c0_315 = arith.constant 0 : index
    %324 = tpu.strided_load %arg37[%c1_314, %c0_315] {strides = array<i32: 2, 1>} : memref<2x64xf32, #tpu.memory_space<vmem>>, vector<1x64xf32>
    %325 = arith.maximumf %323, %324 : vector<1x64xf32>
    %c0_316 = arith.constant 0 : index
    %c0_317 = arith.constant 0 : index
    %326 = vector.load %arg38[%c0_316, %c0_317] : memref<1x64xf32, #tpu.memory_space<vmem>>, vector<1x64xf32>
    tpu.vector_store %arg38[%c0_316, %c0_317], %325 {strides = array<i32>} : memref<1x64xf32, #tpu.memory_space<vmem>>, vector<1x64xf32>,
    %c0_318 = arith.constant 0 : index
    %c0_319 = arith.constant 0 : index
    %327 = vector.load %arg38[%c0_318, %c0_319] : memref<1x64xf32, #tpu.memory_space<vmem>>, vector<1x64xf32>
    %328 = arith.truncf %327 : vector<1x64xf32> to vector<1x64xbf16>
    %c0_320 = arith.constant 0 : index
    %c0_321 = arith.constant 0 : index
    %c0_322 = arith.constant 0 : index
    %329 = vector.load %arg20[%c0_320, %c0_321, %c0_322] : memref<1x64x3xbf16, #tpu.memory_space<vmem>>, vector<1x64x3xbf16>
    %330 = vector.shape_cast %329 : vector<1x64x3xbf16> to vector<64x3xbf16>
    %cst_323 = arith.constant dense<0.000000e+00> : vector<1x3xf32>
    %331 = tpu.matmul %328, %330, %cst_323 {dimension_numbers = #tpu.dot_dimension_numbers<[1], [0], [0], [1], [0, 0, 1, 1], [], []>} : vector<1x64xbf16>, vector<64x3xbf16>, vector<1x3xf32> -> vector<1x3xf32>
    %c0_324 = arith.constant 0 : index
    %c0_325 = arith.constant 0 : index
    %332 = vector.load %arg21[%c0_324, %c0_325] : memref<1x3xf32, #tpu.memory_space<vmem>>, vector<1x3xf32>
    %333 = arith.mulf %331, %332 : vector<1x3xf32>
    %c0_326 = arith.constant 0 : index
    %c0_327 = arith.constant 0 : index
    %334 = vector.load %arg22[%c0_326, %c0_327] : memref<1x3xf32, #tpu.memory_space<vmem>>, vector<1x3xf32>
    %335 = arith.addf %333, %334 : vector<1x3xf32>
    %cst_328 = arith.constant 0.000000e+00 : f32
    %336 = vector.broadcast %cst_328 : f32 to vector<1x3xf32>
    %337 = arith.maximumf %335, %336 : vector<1x3xf32>
    %c0_329 = arith.constant 0 : index
    %c0_330 = arith.constant 0 : index
    %c0_331 = arith.constant 0 : index
    %338 = vector.load %arg26[%c0_329, %c0_330, %c0_331] : memref<1x1x3xf32, #tpu.memory_space<vmem>>, vector<1x1x3xf32>
    %339 = vector.shape_cast %338 : vector<1x1x3xf32> to vector<1x3xf32>
    %340 = vector.shape_cast %337 : vector<1x3xf32> to vector<1x1x3xf32>
    tpu.vector_store %arg26[%c0_329, %c0_330, %c0_331], %340 {strides = array<i32>} : memref<1x1x3xf32, #tpu.memory_space<vmem>>, vector<1x1x3xf32>,
    return
  }
  func.func @transform_0(%arg0: i32) -> (i32, i32, i32) {
    %c0_i32 = arith.constant 0 : i32
    %c0_i32_0 = arith.constant 0 : i32
    %c0_i32_1 = arith.constant 0 : i32
    return %arg0, %c0_i32, %c0_i32_0 : i32, i32, i32
  }
  func.func @transform_1(%arg0: i32) -> (i32, i32, i32) {
    %c0_i32 = arith.constant 0 : i32
    %c0_i32_0 = arith.constant 0 : i32
    %c0_i32_1 = arith.constant 0 : i32
    %c0_i32_2 = arith.constant 0 : i32
    return %c0_i32, %c0_i32_0, %c0_i32_1 : i32, i32, i32
  }
  func.func @transform_2(%arg0: i32) -> (i32, i32) {
    %c0_i32 = arith.constant 0 : i32
    %c0_i32_0 = arith.constant 0 : i32
    %c0_i32_1 = arith.constant 0 : i32
    return %c0_i32, %c0_i32_0 : i32, i32
  }
  func.func @transform_3(%arg0: i32) -> (i32, i32) {
    %c0_i32 = arith.constant 0 : i32
    %c0_i32_0 = arith.constant 0 : i32
    %c0_i32_1 = arith.constant 0 : i32
    return %c0_i32, %c0_i32_0 : i32, i32
  }
  func.func @transform_4(%arg0: i32) -> (i32, i32, i32) {
    %c0_i32 = arith.constant 0 : i32
    %c0_i32_0 = arith.constant 0 : i32
    %c0_i32_1 = arith.constant 0 : i32
    %c0_i32_2 = arith.constant 0 : i32
    return %c0_i32, %c0_i32_0, %c0_i32_1 : i32, i32, i32
  }
  func.func @transform_5(%arg0: i32) -> (i32, i32) {
    %c0_i32 = arith.constant 0 : i32
    %c0_i32_0 = arith.constant 0 : i32
    %c0_i32_1 = arith.constant 0 : i32
    return %c0_i32, %c0_i32_0 : i32, i32
  }
  func.func @transform_6(%arg0: i32) -> (i32, i32) {
    %c0_i32 = arith.constant 0 : i32
    %c0_i32_0 = arith.constant 0 : i32
    %c0_i32_1 = arith.constant 0 : i32
    return %c0_i32, %c0_i32_0 : i32, i32
  }
  func.func @transform_7(%arg0: i32) -> (i32, i32, i32) {
    %c0_i32 = arith.constant 0 : i32
    %c0_i32_0 = arith.constant 0 : i32
    %c0_i32_1 = arith.constant 0 : i32
    %c0_i32_2 = arith.constant 0 : i32
    return %c0_i32, %c0_i32_0, %c0_i32_1 : i32, i32, i32
  }
  func.func @transform_8(%arg0: i32) -> (i32, i32) {
    %c0_i32 = arith.constant 0 : i32
    %c0_i32_0 = arith.constant 0 : i32
    %c0_i32_1 = arith.constant 0 : i32
    return %c0_i32, %c0_i32_0 : i32, i32
  }
  func.func @transform_9(%arg0: i32) -> (i32, i32) {
    %c0_i32 = arith.constant 0 : i32
    %c0_i32_0 = arith.constant 0 : i32
    %c0_i32_1 = arith.constant 0 : i32
    return %c0_i32, %c0_i32_0 : i32, i32
  }
  func.func @transform_10(%arg0: i32) -> (i32, i32, i32) {
    %c0_i32 = arith.constant 0 : i32
    %c0_i32_0 = arith.constant 0 : i32
    %c0_i32_1 = arith.constant 0 : i32
    %c0_i32_2 = arith.constant 0 : i32
    return %c0_i32, %c0_i32_0, %c0_i32_1 : i32, i32, i32
  }
  func.func @transform_11(%arg0: i32) -> (i32, i32) {
    %c0_i32 = arith.constant 0 : i32
    %c0_i32_0 = arith.constant 0 : i32
    %c0_i32_1 = arith.constant 0 : i32
    return %c0_i32, %c0_i32_0 : i32, i32
  }
  func.func @transform_12(%arg0: i32) -> (i32, i32) {
    %c0_i32 = arith.constant 0 : i32
    %c0_i32_0 = arith.constant 0 : i32
    %c0_i32_1 = arith.constant 0 : i32
    return %c0_i32, %c0_i32_0 : i32, i32
  }
  func.func @transform_13(%arg0: i32) -> (i32, i32, i32) {
    %c0_i32 = arith.constant 0 : i32
    %c0_i32_0 = arith.constant 0 : i32
    %c0_i32_1 = arith.constant 0 : i32
    %c0_i32_2 = arith.constant 0 : i32
    return %c0_i32, %c0_i32_0, %c0_i32_1 : i32, i32, i32
  }
  func.func @transform_14(%arg0: i32) -> (i32, i32) {
    %c0_i32 = arith.constant 0 : i32
    %c0_i32_0 = arith.constant 0 : i32
    %c0_i32_1 = arith.constant 0 : i32
    return %c0_i32, %c0_i32_0 : i32, i32
  }
  func.func @transform_15(%arg0: i32) -> (i32, i32) {
    %c0_i32 = arith.constant 0 : i32
    %c0_i32_0 = arith.constant 0 : i32
    %c0_i32_1 = arith.constant 0 : i32
    return %c0_i32, %c0_i32_0 : i32, i32
  }
  func.func @transform_16(%arg0: i32) -> (i32, i32, i32) {
    %c0_i32 = arith.constant 0 : i32
    %c0_i32_0 = arith.constant 0 : i32
    %c0_i32_1 = arith.constant 0 : i32
    %c0_i32_2 = arith.constant 0 : i32
    return %c0_i32, %c0_i32_0, %c0_i32_1 : i32, i32, i32
  }
  func.func @transform_17(%arg0: i32) -> (i32, i32) {
    %c0_i32 = arith.constant 0 : i32
    %c0_i32_0 = arith.constant 0 : i32
    %c0_i32_1 = arith.constant 0 : i32
    return %c0_i32, %c0_i32_0 : i32, i32
  }
  func.func @transform_18(%arg0: i32) -> (i32, i32) {
    %c0_i32 = arith.constant 0 : i32
    %c0_i32_0 = arith.constant 0 : i32
    %c0_i32_1 = arith.constant 0 : i32
    return %c0_i32, %c0_i32_0 : i32, i32
  }
  func.func @transform_19(%arg0: i32) -> (i32, i32, i32) {
    %c0_i32 = arith.constant 0 : i32
    %c0_i32_0 = arith.constant 0 : i32
    %c0_i32_1 = arith.constant 0 : i32
    %c0_i32_2 = arith.constant 0 : i32
    return %c0_i32, %c0_i32_0, %c0_i32_1 : i32, i32, i32
  }
  func.func @transform_20(%arg0: i32) -> (i32, i32) {
    %c0_i32 = arith.constant 0 : i32
    %c0_i32_0 = arith.constant 0 : i32
    %c0_i32_1 = arith.constant 0 : i32
    return %c0_i32, %c0_i32_0 : i32, i32
  }
  func.func @transform_21(%arg0: i32) -> (i32, i32) {
    %c0_i32 = arith.constant 0 : i32
    %c0_i32_0 = arith.constant 0 : i32
    %c0_i32_1 = arith.constant 0 : i32
    return %c0_i32, %c0_i32_0 : i32, i32
  }
  func.func @transform_22(%arg0: i32) -> (i32, i32) {
    %c0_i32 = arith.constant 0 : i32
    %c0_i32_0 = arith.constant 0 : i32
    %c0_i32_1 = arith.constant 0 : i32
    return %c0_i32, %c0_i32_0 : i32, i32
  }
  func.func @transform_23(%arg0: i32) -> (i32, i32) {
    %c0_i32 = arith.constant 0 : i32
    %c0_i32_0 = arith.constant 0 : i32
    %c0_i32_1 = arith.constant 0 : i32
    return %c0_i32, %c0_i32_0 : i32, i32
  }
  func.func @transform_24(%arg0: i32) -> (i32, i32) {
    %c0_i32 = arith.constant 0 : i32
    %c0_i32_0 = arith.constant 0 : i32
    %c0_i32_1 = arith.constant 0 : i32
    return %c0_i32, %c0_i32_0 : i32, i32
  }
  func.func @transform_25(%arg0: i32) -> (i32, i32, i32) {
    %c0_i32 = arith.constant 0 : i32
    %c0_i32_0 = arith.constant 0 : i32
    %c0_i32_1 = arith.constant 0 : i32
    return %arg0, %c0_i32, %c0_i32_0 : i32, i32, i32
  }
}

</mosaic_0001>

<bundles_post_ra>
// kernel: tpu_custom_call.1
= control target key start
LH: loop header
LB: loop body
LE: loop exit
PB: predicated region body
PF: predicated region fallthrough
CT: control target
= control target key end

     0   :  { %s16863_s0 = inlined_call_operand.vmem [shape: f32[2,2704,4], index: 0, kind: input, shape index: {}]   ;;  %s16864_s1 = inlined_call_operand.vmem [shape: bf16[9,4,16], index: 1, kind: input, shape index: {}]   ;;  %s16865_s2 = inlined_call_operand.vmem [shape: f32[1,16], index: 2, kind: input, shape index: {}]   ;;  %s16866_s3 = inlined_call_operand.vmem [shape: f32[1,16], index: 3, kind: input, shape index: {}]   ;;  %s16867_s4 = inlined_call_operand.vmem [shape: bf16[9,16,16], index: 4, kind: input, shape index: {}]   ;;  %s16868_s5 = inlined_call_operand.vmem [shape: f32[1,16], index: 5, kind: input, shape index: {}]   ;;  %s16869_s6 = inlined_call_operand.vmem [shape: f32[1,16], index: 6, kind: input, shape index: {}]   ;;  %s16870_s7 = inlined_call_operand.vmem [shape: bf16[9,16,32], index: 7, kind: input, shape index: {}]   ;;  %s16871_s8 = inlined_call_operand.vmem [shape: f32[1,32], index: 8, kind: input, shape index: {}]   ;;  %s16872_s9 = inlined_call_operand.vmem [shape: f32[1,32], index: 9, kind: input, shape index: {}]   ;;  %s16873_s10 = inlined_call_operand.vmem [shape: bf16[9,32,32], index: 10, kind: input, shape index: {}]   ;;  %s16874_s11 = inlined_call_operand.vmem [shape: f32[1,32], index: 11, kind: input, shape index: {}]   ;;  %s16875_s12 = inlined_call_operand.vmem [shape: f32[1,32], index: 12, kind: input, shape index: {}]   ;;  %s16876_s13 = inlined_call_operand.vmem [shape: bf16[9,32,64], index: 13, kind: input, shape index: {}]   ;;  %s16877_s14 = inlined_call_operand.vmem [shape: f32[1,64], index: 14, kind: input, shape index: {}]   ;;  %s16878_s15 = inlined_call_operand.vmem [shape: f32[1,64], index: 15, kind: input, shape index: {}]   ;;  %s16879_s16 = inlined_call_operand.vmem [shape: bf16[9,64,64], index: 16, kind: input, shape index: {}]   ;;  %s16880_s17 = inlined_call_operand.vmem [shape: f32[1,64], index: 17, kind: input, shape index: {}]   ;;  %s16881_s18 = inlined_call_operand.vmem [shape: f32[1,64], index: 18, kind: input, shape index: {}]   ;;  %s16882_s19 = inlined_call_operand.vmem [shape: bf16[1,64,3], index: 19, kind: input, shape index: {}]   ;;  %s16883_s20 = inlined_call_operand.vmem [shape: f32[1,3], index: 20, kind: input, shape index: {}]   ;;  %s16884_s21 = inlined_call_operand.vmem [shape: f32[1,3], index: 21, kind: input, shape index: {}]   ;;  %s16885_s22 = inlined_call_operand.vmem [shape: f32[102,1], index: 22, kind: input, shape index: {}]   ;;  %s16886_s23 = inlined_call_operand.vmem [shape: f32[118,1], index: 23, kind: input, shape index: {}]   ;;  %s16887_s24 = inlined_call_operand.vmem [shape: f32[6,1], index: 24, kind: input, shape index: {}]   ;;  %s16888_s25 = inlined_call_operand.hbm [shape: f32[2,1,3], index: 25, kind: output, shape index: {}]  }
   0x1   :  { %16903 = sst [smem:[#allocation22_spill]] %s16863_s0 }
   0x2   :  { %16904 = sst [smem:[#allocation23_spill]] %s16864_s1 }
   0x3   :  { %16905 = sst [smem:[#allocation24_spill]] %s16865_s2 }
   0x4   :  { %16906 = sst [smem:[#allocation25_spill]] %s16866_s3 }
   0x5   :  { %16907 = sst [smem:[#allocation26_spill]] %s16867_s4 }
   0x6   :  { %16908 = sst [smem:[#allocation27_spill]] %s16868_s5 }
   0x7   :  { %16909 = sst [smem:[#allocation28_spill]] %s16869_s6 }
   0x8   :  { %16910 = sst [smem:[#allocation29_spill]] %s16870_s7 }
   0x9   :  { %16911 = sst [smem:[#allocation30_spill]] %s16871_s8 }
   0xa   :  { %16912 = sst [smem:[#allocation31_spill]] %s16872_s9 }
   0xb   :  { %16913 = sst [smem:[#allocation32_spill]] %s16888_s25 }
   0xc   :  { %30 = vsyncpa [#allocation15], 0 }
   0xd   :  { %32 = vsyncpa [#allocation15 + $0x1], 0  ;;  %s13181_s29 = smov 0   ;;  %s13183_s2 = smov 0  }
   0xe   :  { %s13185_s6 = smov 0   ;;  %s13187_s30 = smov 0  }
   0xf LB: > { %16914 = sst [smem:[#allocation17_spill]] %s13015_s29  ;;  %s13202_s7 = sadd.s32 4294967295, %s13027_s30   ;;  %s13027_s30 = sphi %s13187_s30, %s16941_s30   ;;  %s13023_s6 = sphi %s13185_s6, %s16946_s6   ;;  %s13019_s2 = sphi %s13183_s2, %s16945_s2   ;;  %s13015_s29 = sphi %s13181_s29, %s16944_s29  }
  0x10   : > { %16915 = sst [smem:[#allocation18_spill]] %s13023_s6  ;;  %s9667_s3 = sadd.s32 4294967294, %s13027_s30  }
  0x11   : > { %s13206_s26 = sadd.s32 1, %s13027_s30   ;;  %s575_s1 = sadd.s32 1, %s13023_s6 }
  0x12   : > { %16916 = sst [smem:[#allocation19_spill]] %s13206_s26  ;;  %s572_s8 = ssub.s32 %s13027_s30, %s13206_s26 }
  0x13   : > { %p585_p0 = scmp.ne.s32.totalorder %s13023_s6, %s13019_s2  ;;  %p573_p1 = scmp.eq.s32.totalorder %s572_s8, 0 }
  0x14   : > { %p586_p2 = scmp.eq.s32.totalorder %s13202_s7, 1  ;;  %p591_p3 = scmp.ne.s32.totalorder %s13019_s2, %s13015_s29 }
  0x15   : > { %p592_p4 = scmp.eq.s32.totalorder %s9667_s3, 1  ;;  %p9670_p7 = scmp.ge.s32.totalorder %s13027_s30, 1 }
  0x16   : > { %s13217_s27 = scalar_select %p573_p1, %s13023_s6, %s575_s1  }
  0x17   : > { %p13219_p5 = por %p586_p2, %p585_p0  ;;  %p13223_p6 = por %p592_p4, %p591_p3 }
  0x18   : > { %16917 = sst [smem:[#allocation20_spill]] %s13217_s27  ;;  %p690_p8 = scmp.lt.s32.totalorder %s13027_s30, 3 }
  0x19   : > { %s16919_s28 = scalar_select %p13223_p6, 1, 0 }
  0x1a   : > { %p691_p9 = pnand %p9670_p7, %p690_p8 }
  0x1b   : > { %16920 = sst [smem:[#allocation21_spill]] %s16919_s28  ;;  %p757_p10 = scmp.lt.s32.totalorder (!%p691_p9), %s13202_s7, 1  ;;  %vm763_vm0 = vcmask (!%p691_p9), 130048   ;;  %vm1458_vm1 = vcmask (!%p691_p9), 261120   ;;  %vm1497_vm2 = vcmask (!%p691_p9), 523264   ;;  %v13041_v0 = vmov (!%p691_p9), 0.0  }
  0x1c   : > { %694 = sbr.rel (%p691_p9) target bundleno = 3365 (0xd25), region = 120  ;;  %764 = vst.msk [vmem:[#allocation2] sm:$0xff] (!%p691_p9), %vm763_vm0, %v13041_v0  ;;  %765 = vst.msk [vmem:[#allocation2 + $0x8] sm:$0xff] (!%p691_p9), %vm763_vm0, %v13041_v0  ;;  %s16921_s8 = sld [smem:[#allocation22_spill]] (!%p691_p9) }
  0x1d   : > { %766 = vst.msk [vmem:[#allocation2 + $0x10] sm:$0xff] (!%p691_p9), %vm763_vm0, %v13041_v0  ;;  %767 = vst.msk [vmem:[#allocation2 + $0x18] sm:$0xff] (!%p691_p9), %vm763_vm0, %v13041_v0  ;;  %s16922_s27 = sand.u32 (!%p691_p9), 1, %s13019_s2   ;;  %s14711_s26 = smov (!%p691_p9), 0  }
  0x1e   : > { %768 = vst.msk [vmem:[#allocation2 + $0x20] sm:$0xff] (!%p691_p9), %vm763_vm0, %v13041_v0  ;;  %769 = vst.msk [vmem:[#allocation2 + $0x28] sm:$0xff] (!%p691_p9), %vm763_vm0, %v13041_v0  ;;  %s14709_s6 = scalar_lea.vmem (!%p691_p9), [#allocation14], %s16922_s27 }
  0x1f   : > { %770 = vst.msk [vmem:[#allocation2 + $0x30] sm:$0xff] (!%p691_p9), %vm763_vm0, %v13041_v0  ;;  %771 = vst.msk [vmem:[#allocation2 + $0x38] sm:$0xff] (!%p691_p9), %vm763_vm0, %v13041_v0 }
  0x20   : > { %772 = vst.msk [vmem:[#allocation2 + $0x40] sm:$0xff] (!%p691_p9), %vm763_vm0, %v13041_v0  ;;  %773 = vst.msk [vmem:[#allocation2 + $0x48] sm:$0xff] (!%p691_p9), %vm763_vm0, %v13041_v0 }
  0x21   : > { %774 = vst.msk [vmem:[#allocation2 + $0x50] sm:$0xff] (!%p691_p9), %vm763_vm0, %v13041_v0  ;;  %775 = vst.msk [vmem:[#allocation2 + $0x58] sm:$0xff] (!%p691_p9), %vm763_vm0, %v13041_v0 }
  0x22   : > { %776 = vst.msk [vmem:[#allocation2 + $0x60] sm:$0xff] (!%p691_p9), %vm763_vm0, %v13041_v0  ;;  %777 = vst.msk [vmem:[#allocation2 + $0x68] sm:$0xff] (!%p691_p9), %vm763_vm0, %v13041_v0 }
  0x23   : > { %778 = vst.msk [vmem:[#allocation2 + $0x70] sm:$0xff] %vm763_vm0, %v13041_v0  ;;  %779 = vst.msk [vmem:[#allocation2 + $0x78] sm:$0xff] %vm763_vm0, %v13041_v0  ;;  %s758_s5 = scalar_select %p757_p10, %s13202_s7, 1 }
  0x24   : > { %780 = vst.msk [vmem:[#allocation2 + $0x80] sm:$0xff] %vm763_vm0, %v13041_v0  ;;  %781 = vst.msk [vmem:[#allocation2 + $0x88] sm:$0xff] %vm763_vm0, %v13041_v0 }
  0x25   : > { %782 = vst.msk [vmem:[#allocation2 + $0x90] sm:$0xff] %vm763_vm0, %v13041_v0  ;;  %783 = vst.msk [vmem:[#allocation2 + $0x98] sm:$0xff] %vm763_vm0, %v13041_v0  ;;  %s12780_s0 = smul.u32 2704, %s758_s5 }
  0x26   : > { %784 = vst.msk [vmem:[#allocation2 + $0xa0] sm:$0xff] %vm763_vm0, %v13041_v0  ;;  %785 = vst.msk [vmem:[#allocation2 + $0xa8] sm:$0xff] %vm763_vm0, %v13041_v0 }
  0x27   : > { %786 = vst.msk [vmem:[#allocation2 + $0xb0] sm:$0xff] %vm763_vm0, %v13041_v0  ;;  %787 = vst.msk [vmem:[#allocation2 + $0xb8] sm:$0xff] %vm763_vm0, %v13041_v0  ;;  %s14705_s9 = scalar_lea.vmem %s16921_s8, %s12780_s0 }
  0x28   : > { %788 = vst.msk [vmem:[#allocation2 + $0xc0] sm:$0xff] %vm763_vm0, %v13041_v0  ;;  %789 = vst.msk [vmem:[#allocation2 + $0xc8] sm:$0xff] %vm763_vm0, %v13041_v0 }
  0x29   : > { %790 = vst.msk [vmem:[#allocation2 + $0xd0] sm:$0xff] %vm763_vm0, %v13041_v0  ;;  %791 = vst.msk [vmem:[#allocation2 + $0xd8] sm:$0xff] %vm763_vm0, %v13041_v0 }
  0x2a   : > { %792 = vst.msk [vmem:[#allocation2 + $0xe0] sm:$0xff] %vm763_vm0, %v13041_v0  ;;  %793 = vst.msk [vmem:[#allocation2 + $0xe8] sm:$0xff] %vm763_vm0, %v13041_v0 }
  0x2b   : > { %794 = vst.msk [vmem:[#allocation2 + $0xf0] sm:$0xff] %vm763_vm0, %v13041_v0  ;;  %795 = vst.msk [vmem:[#allocation2 + $0xf8] sm:$0xff] %vm763_vm0, %v13041_v0 }
  0x2c   : > { %796 = vst.msk [vmem:[#allocation2 + $0x100] sm:$0xff] %vm763_vm0, %v13041_v0  ;;  %797 = vst.msk [vmem:[#allocation2 + $0x108] sm:$0xff] %vm763_vm0, %v13041_v0 }
  0x2d   : > { %798 = vst.msk [vmem:[#allocation2 + $0x110] sm:$0xff] %vm763_vm0, %v13041_v0  ;;  %799 = vst.msk [vmem:[#allocation2 + $0x118] sm:$0xff] %vm763_vm0, %v13041_v0 }
  0x2e   : > { %800 = vst.msk [vmem:[#allocation2 + $0x120] sm:$0xff] %vm763_vm0, %v13041_v0  ;;  %801 = vst.msk [vmem:[#allocation2 + $0x128] sm:$0xff] %vm763_vm0, %v13041_v0 }
  0x2f   : > { %802 = vst.msk [vmem:[#allocation2 + $0x130] sm:$0xff] %vm763_vm0, %v13041_v0  ;;  %803 = vst.msk [vmem:[#allocation2 + $0x138] sm:$0xff] %vm763_vm0, %v13041_v0 }
  0x30   : > { %804 = vst.msk [vmem:[#allocation2 + $0x140] sm:$0xff] %vm763_vm0, %v13041_v0  ;;  %805 = vst.msk [vmem:[#allocation2 + $0x148] sm:$0xff] %vm763_vm0, %v13041_v0 }
  0x31   : > { %806 = vst.msk [vmem:[#allocation2 + $0x150] sm:$0xff] %vm763_vm0, %v13041_v0  ;;  %807 = vst.msk [vmem:[#allocation2 + $0x158] sm:$0xff] %vm763_vm0, %v13041_v0 }
  0x32   : > { %808 = vst.msk [vmem:[#allocation2 + $0x160] sm:$0xff] %vm763_vm0, %v13041_v0  ;;  %809 = vst.msk [vmem:[#allocation2 + $0x168] sm:$0xff] %vm763_vm0, %v13041_v0 }
  0x33   : > { %810 = vst.msk [vmem:[#allocation2 + $0x170] sm:$0xff] %vm763_vm0, %v13041_v0  ;;  %811 = vst.msk [vmem:[#allocation2 + $0x178] sm:$0xff] %vm763_vm0, %v13041_v0 }
  0x34   : > { %812 = vst.msk [vmem:[#allocation2 + $0x180] sm:$0xff] %vm763_vm0, %v13041_v0  ;;  %813 = vst.msk [vmem:[#allocation2 + $0x188] sm:$0xff] %vm763_vm0, %v13041_v0 }
  0x35   : > { %814 = vst.msk [vmem:[#allocation2 + $0x190] sm:$0xff] %vm763_vm0, %v13041_v0  ;;  %815 = vst.msk [vmem:[#allocation2 + $0x198] sm:$0xff] %vm763_vm0, %v13041_v0 }
  0x36   : > { %816 = vst.msk [vmem:[#allocation2 + $0x1a0] sm:$0xff] %vm763_vm0, %v13041_v0  ;;  %817 = vst.msk [vmem:[#allocation2 + $0x1a8] sm:$0xff] %vm763_vm0, %v13041_v0 }
  0x37   : > { %818 = vst.msk [vmem:[#allocation2 + $0x1b0] sm:$0xff] %vm763_vm0, %v13041_v0  ;;  %819 = vst.msk [vmem:[#allocation2 + $0x1b8] sm:$0xff] %vm763_vm0, %v13041_v0 }
  0x38   : > { %820 = vst.msk [vmem:[#allocation2 + $0x1c0] sm:$0xff] %vm763_vm0, %v13041_v0  ;;  %821 = vst.msk [vmem:[#allocation2 + $0x1c8] sm:$0xff] %vm763_vm0, %v13041_v0 }
  0x39   : > { %822 = vst.msk [vmem:[#allocation2 + $0x1d0] sm:$0xff] %vm763_vm0, %v13041_v0  ;;  %823 = vst.msk [vmem:[#allocation2 + $0x1d8] sm:$0xff] %vm763_vm0, %v13041_v0 }
  0x3a   : > { %824 = vst.msk [vmem:[#allocation2 + $0x1e0] sm:$0xff] %vm763_vm0, %v13041_v0  ;;  %825 = vst.msk [vmem:[#allocation2 + $0x1e8] sm:$0xff] %vm763_vm0, %v13041_v0 }
  0x3b   : > { %826 = vst.msk [vmem:[#allocation2 + $0x1f0] sm:$0xff] %vm763_vm0, %v13041_v0  ;;  %827 = vst.msk [vmem:[#allocation2 + $0x1f8] sm:$0xff] %vm763_vm0, %v13041_v0 }
  0x3c   : > { %828 = vst.msk [vmem:[#allocation2 + $0x200] sm:$0xff] %vm763_vm0, %v13041_v0  ;;  %829 = vst.msk [vmem:[#allocation2 + $0x208] sm:$0xff] %vm763_vm0, %v13041_v0 }
  0x3d   : > { %830 = vst.msk [vmem:[#allocation2 + $0x210] sm:$0xff] %vm763_vm0, %v13041_v0  ;;  %831 = vst.msk [vmem:[#allocation2 + $0x218] sm:$0xff] %vm763_vm0, %v13041_v0 }
  0x3e   : > { %832 = vst.msk [vmem:[#allocation2 + $0x220] sm:$0xff] %vm763_vm0, %v13041_v0  ;;  %833 = vst.msk [vmem:[#allocation2 + $0x228] sm:$0xff] %vm763_vm0, %v13041_v0 }
  0x3f   : > { %834 = vst.msk [vmem:[#allocation2 + $0x230] sm:$0xff] %vm763_vm0, %v13041_v0  ;;  %835 = vst.msk [vmem:[#allocation2 + $0x238] sm:$0xff] %vm763_vm0, %v13041_v0 }
  0x40   : > { %836 = vst.msk [vmem:[#allocation2 + $0x240] sm:$0xff] %vm763_vm0, %v13041_v0  ;;  %837 = vst.msk [vmem:[#allocation2 + $0x248] sm:$0xff] %vm763_vm0, %v13041_v0 }
  0x41   : > { %838 = vst.msk [vmem:[#allocation2 + $0x250] sm:$0xff] %vm763_vm0, %v13041_v0  ;;  %839 = vst.msk [vmem:[#allocation2 + $0x258] sm:$0xff] %vm763_vm0, %v13041_v0 }
  0x42   : > { %840 = vst.msk [vmem:[#allocation2 + $0x260] sm:$0xff] %vm763_vm0, %v13041_v0  ;;  %841 = vst.msk [vmem:[#allocation2 + $0x268] sm:$0xff] %vm763_vm0, %v13041_v0 }
  0x43   : > { %842 = vst.msk [vmem:[#allocation2 + $0x270] sm:$0xff] %vm763_vm0, %v13041_v0  ;;  %843 = vst.msk [vmem:[#allocation2 + $0x278] sm:$0xff] %vm763_vm0, %v13041_v0 }
  0x44   : > { %844 = vst.msk [vmem:[#allocation2 + $0x280] sm:$0xff] %vm763_vm0, %v13041_v0  ;;  %845 = vst.msk [vmem:[#allocation2 + $0x288] sm:$0xff] %vm763_vm0, %v13041_v0 }
  0x45   : > { %846 = vst.msk [vmem:[#allocation2 + $0x290] sm:$0xff] %vm763_vm0, %v13041_v0  ;;  %847 = vst.msk [vmem:[#allocation2 + $0x298] sm:$0xff] %vm763_vm0, %v13041_v0 }
  0x46   : > { %848 = vst.msk [vmem:[#allocation2 + $0x2a0] sm:$0xff] %vm763_vm0, %v13041_v0  ;;  %849 = vst.msk [vmem:[#allocation2 + $0x2a8] sm:$0xff] %vm763_vm0, %v13041_v0 }
  0x47   : > { %850 = vst.msk [vmem:[#allocation2 + $0x2b0] sm:$0xff] %vm763_vm0, %v13041_v0  ;;  %851 = vst.msk [vmem:[#allocation2 + $0x2b8] sm:$0xff] %vm763_vm0, %v13041_v0 }
  0x48   : > { %852 = vst.msk [vmem:[#allocation2 + $0x2c0] sm:$0xff] %vm763_vm0, %v13041_v0  ;;  %853 = vst.msk [vmem:[#allocation2 + $0x2c8] sm:$0xff] %vm763_vm0, %v13041_v0 }
  0x49   : > { %854 = vst.msk [vmem:[#allocation2 + $0x2d0] sm:$0xff] %vm763_vm0, %v13041_v0  ;;  %855 = vst.msk [vmem:[#allocation2 + $0x2d8] sm:$0xff] %vm763_vm0, %v13041_v0 }
  0x4a   : > { %856 = vst.msk [vmem:[#allocation2 + $0x2e0] sm:$0xff] %vm763_vm0, %v13041_v0  ;;  %857 = vst.msk [vmem:[#allocation2 + $0x2e8] sm:$0xff] %vm763_vm0, %v13041_v0 }
  0x4b   : > { %858 = vst.msk [vmem:[#allocation2 + $0x2f0] sm:$0xff] %vm763_vm0, %v13041_v0  ;;  %859 = vst.msk [vmem:[#allocation2 + $0x2f8] sm:$0xff] %vm763_vm0, %v13041_v0 }
  0x4c   : > { %860 = vst.msk [vmem:[#allocation2 + $0x300] sm:$0xff] %vm763_vm0, %v13041_v0  ;;  %861 = vst.msk [vmem:[#allocation2 + $0x308] sm:$0xff] %vm763_vm0, %v13041_v0 }
  0x4d   : > { %862 = vst.msk [vmem:[#allocation2 + $0x310] sm:$0xff] %vm763_vm0, %v13041_v0  ;;  %863 = vst.msk [vmem:[#allocation2 + $0x318] sm:$0xff] %vm763_vm0, %v13041_v0 }
  0x4e   : > { %864 = vst.msk [vmem:[#allocation2 + $0x320] sm:$0xff] %vm763_vm0, %v13041_v0  ;;  %865 = vst.msk [vmem:[#allocation2 + $0x328] sm:$0xff] %vm763_vm0, %v13041_v0 }
  0x4f   : > { %866 = vst.msk [vmem:[#allocation2 + $0x330] sm:$0xff] %vm763_vm0, %v13041_v0  ;;  %867 = vst.msk [vmem:[#allocation2 + $0x338] sm:$0xff] %vm763_vm0, %v13041_v0 }
  0x50   : > { %868 = vst.msk [vmem:[#allocation2 + $0x340] sm:$0xff] %vm763_vm0, %v13041_v0  ;;  %869 = vst.msk [vmem:[#allocation2 + $0x348] sm:$0xff] %vm763_vm0, %v13041_v0 }
  0x51   : > { %870 = vst.msk [vmem:[#allocation2 + $0x350] sm:$0xff] %vm763_vm0, %v13041_v0  ;;  %871 = vst.msk [vmem:[#allocation2 + $0x358] sm:$0xff] %vm763_vm0, %v13041_v0 }
  0x52   : > { %872 = vst.msk [vmem:[#allocation2 + $0x360] sm:$0xff] %vm763_vm0, %v13041_v0  ;;  %873 = vst.msk [vmem:[#allocation2 + $0x368] sm:$0xff] %vm763_vm0, %v13041_v0 }
  0x53   : > { %874 = vst.msk [vmem:[#allocation2 + $0x370] sm:$0xff] %vm763_vm0, %v13041_v0  ;;  %875 = vst.msk [vmem:[#allocation2 + $0x378] sm:$0xff] %vm763_vm0, %v13041_v0 }
  0x54   : > { %876 = vst.msk [vmem:[#allocation2 + $0x380] sm:$0xff] %vm763_vm0, %v13041_v0  ;;  %877 = vst.msk [vmem:[#allocation2 + $0x388] sm:$0xff] %vm763_vm0, %v13041_v0 }
  0x55   : > { %878 = vst.msk [vmem:[#allocation2 + $0x390] sm:$0xff] %vm763_vm0, %v13041_v0  ;;  %879 = vst.msk [vmem:[#allocation2 + $0x398] sm:$0xff] %vm763_vm0, %v13041_v0 }
  0x56   : > { %880 = vst.msk [vmem:[#allocation2 + $0x3a0] sm:$0xff] %vm763_vm0, %v13041_v0  ;;  %881 = vst.msk [vmem:[#allocation2 + $0x3a8] sm:$0xff] %vm763_vm0, %v13041_v0 }
  0x57   : > { %882 = vst.msk [vmem:[#allocation2 + $0x3b0] sm:$0xff] %vm763_vm0, %v13041_v0  ;;  %883 = vst.msk [vmem:[#allocation2 + $0x3b8] sm:$0xff] %vm763_vm0, %v13041_v0 }
  0x58   : > { %884 = vst.msk [vmem:[#allocation2 + $0x3c0] sm:$0xff] %vm763_vm0, %v13041_v0  ;;  %885 = vst.msk [vmem:[#allocation2 + $0x3c8] sm:$0xff] %vm763_vm0, %v13041_v0 }
  0x59   : > { %886 = vst.msk [vmem:[#allocation2 + $0x3d0] sm:$0xff] %vm763_vm0, %v13041_v0  ;;  %887 = vst.msk [vmem:[#allocation2 + $0x3d8] sm:$0xff] %vm763_vm0, %v13041_v0 }
  0x5a   : > { %888 = vst.msk [vmem:[#allocation2 + $0x3e0] sm:$0xff] %vm763_vm0, %v13041_v0  ;;  %889 = vst.msk [vmem:[#allocation2 + $0x3e8] sm:$0xff] %vm763_vm0, %v13041_v0 }
  0x5b   : > { %890 = vst.msk [vmem:[#allocation2 + $0x3f0] sm:$0xff] %vm763_vm0, %v13041_v0  ;;  %891 = vst.msk [vmem:[#allocation2 + $0x3f8] sm:$0xff] %vm763_vm0, %v13041_v0 }
  0x5c   : > { %892 = vst.msk [vmem:[#allocation2 + $0x400] sm:$0xff] %vm763_vm0, %v13041_v0  ;;  %893 = vst.msk [vmem:[#allocation2 + $0x408] sm:$0xff] %vm763_vm0, %v13041_v0 }
  0x5d   : > { %894 = vst.msk [vmem:[#allocation2 + $0x410] sm:$0xff] %vm763_vm0, %v13041_v0  ;;  %895 = vst.msk [vmem:[#allocation2 + $0x418] sm:$0xff] %vm763_vm0, %v13041_v0 }
  0x5e   : > { %896 = vst.msk [vmem:[#allocation2 + $0x420] sm:$0xff] %vm763_vm0, %v13041_v0  ;;  %897 = vst.msk [vmem:[#allocation2 + $0x428] sm:$0xff] %vm763_vm0, %v13041_v0 }
  0x5f   : > { %898 = vst.msk [vmem:[#allocation2 + $0x430] sm:$0xff] %vm763_vm0, %v13041_v0  ;;  %899 = vst.msk [vmem:[#allocation2 + $0x438] sm:$0xff] %vm763_vm0, %v13041_v0 }
  0x60   : > { %900 = vst.msk [vmem:[#allocation2 + $0x440] sm:$0xff] %vm763_vm0, %v13041_v0  ;;  %901 = vst.msk [vmem:[#allocation2 + $0x448] sm:$0xff] %vm763_vm0, %v13041_v0 }
  0x61   : > { %902 = vst.msk [vmem:[#allocation2 + $0x450] sm:$0xff] %vm763_vm0, %v13041_v0  ;;  %903 = vst.msk [vmem:[#allocation2 + $0x458] sm:$0xff] %vm763_vm0, %v13041_v0 }
  0x62   : > { %904 = vst.msk [vmem:[#allocation2 + $0x460] sm:$0xff] %vm763_vm0, %v13041_v0  ;;  %905 = vst.msk [vmem:[#allocation2 + $0x468] sm:$0xff] %vm763_vm0, %v13041_v0 }
  0x63   : > { %906 = vst.msk [vmem:[#allocation2 + $0x470] sm:$0xff] %vm763_vm0, %v13041_v0  ;;  %907 = vst.msk [vmem:[#allocation2 + $0x478] sm:$0xff] %vm763_vm0, %v13041_v0 }
  0x64   : > { %908 = vst.msk [vmem:[#allocation2 + $0x480] sm:$0xff] %vm763_vm0, %v13041_v0  ;;  %909 = vst.msk [vmem:[#allocation2 + $0x488] sm:$0xff] %vm763_vm0, %v13041_v0 }
  0x65   : > { %910 = vst.msk [vmem:[#allocation2 + $0x490] sm:$0xff] %vm763_vm0, %v13041_v0  ;;  %911 = vst.msk [vmem:[#allocation2 + $0x498] sm:$0xff] %vm763_vm0, %v13041_v0 }
  0x66   : > { %912 = vst.msk [vmem:[#allocation2 + $0x4a0] sm:$0xff] %vm763_vm0, %v13041_v0  ;;  %913 = vst.msk [vmem:[#allocation2 + $0x4a8] sm:$0xff] %vm763_vm0, %v13041_v0 }
  0x67   : > { %914 = vst.msk [vmem:[#allocation2 + $0x4b0] sm:$0xff] %vm763_vm0, %v13041_v0  ;;  %915 = vst.msk [vmem:[#allocation2 + $0x4b8] sm:$0xff] %vm763_vm0, %v13041_v0 }
  0x68   : > { %916 = vst.msk [vmem:[#allocation2 + $0x4c0] sm:$0xff] %vm763_vm0, %v13041_v0  ;;  %917 = vst.msk [vmem:[#allocation2 + $0x4c8] sm:$0xff] %vm763_vm0, %v13041_v0 }
  0x69   : > { %918 = vst.msk [vmem:[#allocation2 + $0x4d0] sm:$0xff] %vm763_vm0, %v13041_v0  ;;  %919 = vst.msk [vmem:[#allocation2 + $0x4d8] sm:$0xff] %vm763_vm0, %v13041_v0 }
  0x6a   : > { %920 = vst.msk [vmem:[#allocation2 + $0x4e0] sm:$0xff] %vm763_vm0, %v13041_v0  ;;  %921 = vst.msk [vmem:[#allocation2 + $0x4e8] sm:$0xff] %vm763_vm0, %v13041_v0 }
  0x6b   : > { %922 = vst.msk [vmem:[#allocation2 + $0x4f0] sm:$0xff] %vm763_vm0, %v13041_v0  ;;  %923 = vst.msk [vmem:[#allocation2 + $0x4f8] sm:$0xff] %vm763_vm0, %v13041_v0 }
  0x6c   : > { %924 = vst.msk [vmem:[#allocation2 + $0x500] sm:$0xff] %vm763_vm0, %v13041_v0  ;;  %925 = vst.msk [vmem:[#allocation2 + $0x508] sm:$0xff] %vm763_vm0, %v13041_v0 }
  0x6d   : > { %926 = vst.msk [vmem:[#allocation2 + $0x510] sm:$0xff] %vm763_vm0, %v13041_v0  ;;  %927 = vst.msk [vmem:[#allocation2 + $0x518] sm:$0xff] %vm763_vm0, %v13041_v0 }
  0x6e   : > { %928 = vst.msk [vmem:[#allocation2 + $0x520] sm:$0xff] %vm763_vm0, %v13041_v0  ;;  %929 = vst.msk [vmem:[#allocation2 + $0x528] sm:$0xff] %vm763_vm0, %v13041_v0 }
  0x6f   : > { %930 = vst.msk [vmem:[#allocation2 + $0x530] sm:$0xff] %vm763_vm0, %v13041_v0  ;;  %931 = vst.msk [vmem:[#allocation2 + $0x538] sm:$0xff] %vm763_vm0, %v13041_v0 }
  0x70   : > { %932 = vst.msk [vmem:[#allocation2 + $0x540] sm:$0xff] %vm763_vm0, %v13041_v0  ;;  %933 = vst.msk [vmem:[#allocation2 + $0x548] sm:$0xff] %vm763_vm0, %v13041_v0 }
  0x71   : > { %934 = vst.msk [vmem:[#allocation2 + $0x550] sm:$0xff] %vm763_vm0, %v13041_v0  ;;  %935 = vst.msk [vmem:[#allocation2 + $0x558] sm:$0xff] %vm763_vm0, %v13041_v0 }
  0x72   : > { %936 = vst.msk [vmem:[#allocation2 + $0x560] sm:$0xff] %vm763_vm0, %v13041_v0  ;;  %937 = vst.msk [vmem:[#allocation2 + $0x568] sm:$0xff] %vm763_vm0, %v13041_v0 }
  0x73   : > { %938 = vst.msk [vmem:[#allocation2 + $0x570] sm:$0xff] %vm763_vm0, %v13041_v0  ;;  %939 = vst.msk [vmem:[#allocation2 + $0x578] sm:$0xff] %vm763_vm0, %v13041_v0 }
  0x74   : > { %940 = vst.msk [vmem:[#allocation2 + $0x580] sm:$0xff] %vm763_vm0, %v13041_v0  ;;  %941 = vst.msk [vmem:[#allocation2 + $0x588] sm:$0xff] %vm763_vm0, %v13041_v0 }
  0x75   : > { %942 = vst.msk [vmem:[#allocation2 + $0x590] sm:$0xff] %vm763_vm0, %v13041_v0  ;;  %943 = vst.msk [vmem:[#allocation2 + $0x598] sm:$0xff] %vm763_vm0, %v13041_v0 }
  0x76   : > { %944 = vst.msk [vmem:[#allocation2 + $0x5a0] sm:$0xff] %vm763_vm0, %v13041_v0  ;;  %945 = vst.msk [vmem:[#allocation2 + $0x5a8] sm:$0xff] %vm763_vm0, %v13041_v0 }
  0x77   : > { %946 = vst.msk [vmem:[#allocation2 + $0x5b0] sm:$0xff] %vm763_vm0, %v13041_v0  ;;  %947 = vst.msk [vmem:[#allocation2 + $0x5b8] sm:$0xff] %vm763_vm0, %v13041_v0 }
  0x78   : > { %948 = vst.msk [vmem:[#allocation2 + $0x5c0] sm:$0xff] %vm763_vm0, %v13041_v0  ;;  %949 = vst.msk [vmem:[#allocation2 + $0x5c8] sm:$0xff] %vm763_vm0, %v13041_v0 }
  0x79   : > { %950 = vst.msk [vmem:[#allocation2 + $0x5d0] sm:$0xff] %vm763_vm0, %v13041_v0  ;;  %951 = vst.msk [vmem:[#allocation2 + $0x5d8] sm:$0xff] %vm763_vm0, %v13041_v0 }
  0x7a   : > { %952 = vst.msk [vmem:[#allocation2 + $0x5e0] sm:$0xff] %vm763_vm0, %v13041_v0  ;;  %953 = vst.msk [vmem:[#allocation2 + $0x5e8] sm:$0xff] %vm763_vm0, %v13041_v0 }
  0x7b   : > { %954 = vst.msk [vmem:[#allocation2 + $0x5f0] sm:$0xff] %vm763_vm0, %v13041_v0  ;;  %955 = vst.msk [vmem:[#allocation2 + $0x5f8] sm:$0xff] %vm763_vm0, %v13041_v0 }
  0x7c   : > { %956 = vst.msk [vmem:[#allocation2 + $0x600] sm:$0xff] %vm763_vm0, %v13041_v0  ;;  %957 = vst.msk [vmem:[#allocation2 + $0x608] sm:$0xff] %vm763_vm0, %v13041_v0 }
  0x7d   : > { %958 = vst.msk [vmem:[#allocation2 + $0x610] sm:$0xff] %vm763_vm0, %v13041_v0  ;;  %959 = vst.msk [vmem:[#allocation2 + $0x618] sm:$0xff] %vm763_vm0, %v13041_v0 }
  0x7e   : > { %960 = vst.msk [vmem:[#allocation2 + $0x620] sm:$0xff] %vm763_vm0, %v13041_v0  ;;  %961 = vst.msk [vmem:[#allocation2 + $0x628] sm:$0xff] %vm763_vm0, %v13041_v0 }
  0x7f   : > { %962 = vst.msk [vmem:[#allocation2 + $0x630] sm:$0xff] %vm763_vm0, %v13041_v0  ;;  %963 = vst.msk [vmem:[#allocation2 + $0x638] sm:$0xff] %vm763_vm0, %v13041_v0 }
  0x80   : > { %964 = vst.msk [vmem:[#allocation2 + $0x640] sm:$0xff] %vm763_vm0, %v13041_v0  ;;  %965 = vst.msk [vmem:[#allocation2 + $0x648] sm:$0xff] %vm763_vm0, %v13041_v0 }
  0x81   : > { %966 = vst.msk [vmem:[#allocation2 + $0x650] sm:$0xff] %vm763_vm0, %v13041_v0  ;;  %967 = vst.msk [vmem:[#allocation2 + $0x658] sm:$0xff] %vm763_vm0, %v13041_v0 }
  0x82   : > { %968 = vst.msk [vmem:[#allocation2 + $0x660] sm:$0xff] %vm763_vm0, %v13041_v0  ;;  %969 = vst.msk [vmem:[#allocation2 + $0x668] sm:$0xff] %vm763_vm0, %v13041_v0 }
  0x83   : > { %970 = vst.msk [vmem:[#allocation2 + $0x670] sm:$0xff] %vm763_vm0, %v13041_v0  ;;  %971 = vst.msk [vmem:[#allocation2 + $0x678] sm:$0xff] %vm763_vm0, %v13041_v0 }
  0x84   : > { %972 = vst.msk [vmem:[#allocation2 + $0x680] sm:$0xff] %vm763_vm0, %v13041_v0  ;;  %973 = vst.msk [vmem:[#allocation2 + $0x688] sm:$0xff] %vm763_vm0, %v13041_v0 }
  0x85   : > { %974 = vst.msk [vmem:[#allocation2 + $0x690] sm:$0xff] %vm763_vm0, %v13041_v0  ;;  %975 = vst.msk [vmem:[#allocation2 + $0x698] sm:$0xff] %vm763_vm0, %v13041_v0 }
  0x86   : > { %976 = vst.msk [vmem:[#allocation2 + $0x6a0] sm:$0xff] %vm763_vm0, %v13041_v0  ;;  %977 = vst.msk [vmem:[#allocation2 + $0x6a8] sm:$0xff] %vm763_vm0, %v13041_v0 }
  0x87   : > { %978 = vst.msk [vmem:[#allocation2 + $0x6b0] sm:$0xff] %vm763_vm0, %v13041_v0  ;;  %979 = vst.msk [vmem:[#allocation2 + $0x6b8] sm:$0xff] %vm763_vm0, %v13041_v0 }
  0x88   : > { %980 = vst.msk [vmem:[#allocation2 + $0x6c0] sm:$0xff] %vm763_vm0, %v13041_v0  ;;  %981 = vst.msk [vmem:[#allocation2 + $0x6c8] sm:$0xff] %vm763_vm0, %v13041_v0 }
  0x89   : > { %982 = vst.msk [vmem:[#allocation2 + $0x6d0] sm:$0xff] %vm763_vm0, %v13041_v0  ;;  %983 = vst.msk [vmem:[#allocation2 + $0x6d8] sm:$0xff] %vm763_vm0, %v13041_v0 }
  0x8a   : > { %984 = vst.msk [vmem:[#allocation2 + $0x6e0] sm:$0xff] %vm763_vm0, %v13041_v0  ;;  %985 = vst.msk [vmem:[#allocation2 + $0x6e8] sm:$0xff] %vm763_vm0, %v13041_v0 }
  0x8b   : > { %986 = vst.msk [vmem:[#allocation2 + $0x6f0] sm:$0xff] %vm763_vm0, %v13041_v0  ;;  %987 = vst.msk [vmem:[#allocation2 + $0x6f8] sm:$0xff] %vm763_vm0, %v13041_v0 }
  0x8c   : > { %988 = vst.msk [vmem:[#allocation2 + $0x700] sm:$0xff] %vm763_vm0, %v13041_v0  ;;  %989 = vst.msk [vmem:[#allocation2 + $0x708] sm:$0xff] %vm763_vm0, %v13041_v0 }
  0x8d   : > { %990 = vst.msk [vmem:[#allocation2 + $0x710] sm:$0xff] %vm763_vm0, %v13041_v0  ;;  %991 = vst.msk [vmem:[#allocation2 + $0x718] sm:$0xff] %vm763_vm0, %v13041_v0 }
  0x8e   : > { %992 = vst.msk [vmem:[#allocation2 + $0x720] sm:$0xff] %vm763_vm0, %v13041_v0  ;;  %993 = vst.msk [vmem:[#allocation2 + $0x728] sm:$0xff] %vm763_vm0, %v13041_v0 }
  0x8f   : > { %994 = vst.msk [vmem:[#allocation2 + $0x730] sm:$0xff] %vm763_vm0, %v13041_v0  ;;  %995 = vst.msk [vmem:[#allocation2 + $0x738] sm:$0xff] %vm763_vm0, %v13041_v0 }
  0x90   : > { %996 = vst.msk [vmem:[#allocation2 + $0x740] sm:$0xff] %vm763_vm0, %v13041_v0  ;;  %997 = vst.msk [vmem:[#allocation2 + $0x748] sm:$0xff] %vm763_vm0, %v13041_v0 }
  0x91   : > { %998 = vst.msk [vmem:[#allocation2 + $0x750] sm:$0xff] %vm763_vm0, %v13041_v0  ;;  %999 = vst.msk [vmem:[#allocation2 + $0x758] sm:$0xff] %vm763_vm0, %v13041_v0 }
  0x92   : > { %1000 = vst.msk [vmem:[#allocation2 + $0x760] sm:$0xff] %vm763_vm0, %v13041_v0  ;;  %1001 = vst.msk [vmem:[#allocation2 + $0x768] sm:$0xff] %vm763_vm0, %v13041_v0 }
  0x93   : > { %1002 = vst.msk [vmem:[#allocation2 + $0x770] sm:$0xff] %vm763_vm0, %v13041_v0  ;;  %1003 = vst.msk [vmem:[#allocation2 + $0x778] sm:$0xff] %vm763_vm0, %v13041_v0 }
  0x94   : > { %1004 = vst.msk [vmem:[#allocation2 + $0x780] sm:$0xff] %vm763_vm0, %v13041_v0  ;;  %1005 = vst.msk [vmem:[#allocation2 + $0x788] sm:$0xff] %vm763_vm0, %v13041_v0 }
  0x95   : > { %1006 = vst.msk [vmem:[#allocation2 + $0x790] sm:$0xff] %vm763_vm0, %v13041_v0  ;;  %1007 = vst.msk [vmem:[#allocation2 + $0x798] sm:$0xff] %vm763_vm0, %v13041_v0 }
  0x96   : > { %1008 = vst.msk [vmem:[#allocation2 + $0x7a0] sm:$0xff] %vm763_vm0, %v13041_v0  ;;  %1009 = vst.msk [vmem:[#allocation2 + $0x7a8] sm:$0xff] %vm763_vm0, %v13041_v0 }
  0x97   : > { %1010 = vst.msk [vmem:[#allocation2 + $0x7b0] sm:$0xff] %vm763_vm0, %v13041_v0  ;;  %1011 = vst.msk [vmem:[#allocation2 + $0x7b8] sm:$0xff] %vm763_vm0, %v13041_v0 }
  0x98   : > { %1012 = vst.msk [vmem:[#allocation2 + $0x7c0] sm:$0xff] %vm763_vm0, %v13041_v0  ;;  %1013 = vst.msk [vmem:[#allocation2 + $0x7c8] sm:$0xff] %vm763_vm0, %v13041_v0 }
  0x99   : > { %1014 = vst.msk [vmem:[#allocation2 + $0x7d0] sm:$0xff] %vm763_vm0, %v13041_v0  ;;  %1015 = vst.msk [vmem:[#allocation2 + $0x7d8] sm:$0xff] %vm763_vm0, %v13041_v0 }
  0x9a   : > { %1016 = vst.msk [vmem:[#allocation2 + $0x7e0] sm:$0xff] %vm763_vm0, %v13041_v0  ;;  %1017 = vst.msk [vmem:[#allocation2 + $0x7e8] sm:$0xff] %vm763_vm0, %v13041_v0 }
  0x9b   : > { %1018 = vst.msk [vmem:[#allocation2 + $0x7f0] sm:$0xff] %vm763_vm0, %v13041_v0  ;;  %1019 = vst.msk [vmem:[#allocation2 + $0x7f8] sm:$0xff] %vm763_vm0, %v13041_v0 }
  0x9c   : > { %1020 = vst.msk [vmem:[#allocation2 + $0x800] sm:$0xff] %vm763_vm0, %v13041_v0  ;;  %1021 = vst.msk [vmem:[#allocation2 + $0x808] sm:$0xff] %vm763_vm0, %v13041_v0 }
  0x9d   : > { %1022 = vst.msk [vmem:[#allocation2 + $0x810] sm:$0xff] %vm763_vm0, %v13041_v0  ;;  %1023 = vst.msk [vmem:[#allocation2 + $0x818] sm:$0xff] %vm763_vm0, %v13041_v0 }
  0x9e   : > { %1024 = vst.msk [vmem:[#allocation2 + $0x820] sm:$0xff] %vm763_vm0, %v13041_v0  ;;  %1025 = vst.msk [vmem:[#allocation2 + $0x828] sm:$0xff] %vm763_vm0, %v13041_v0 }
  0x9f   : > { %1026 = vst.msk [vmem:[#allocation2 + $0x830] sm:$0xff] %vm763_vm0, %v13041_v0  ;;  %1027 = vst.msk [vmem:[#allocation2 + $0x838] sm:$0xff] %vm763_vm0, %v13041_v0 }
  0xa0   : > { %1028 = vst.msk [vmem:[#allocation2 + $0x840] sm:$0xff] %vm763_vm0, %v13041_v0  ;;  %1029 = vst.msk [vmem:[#allocation2 + $0x848] sm:$0xff] %vm763_vm0, %v13041_v0 }
  0xa1   : > { %1030 = vst.msk [vmem:[#allocation2 + $0x850] sm:$0xff] %vm763_vm0, %v13041_v0  ;;  %1031 = vst.msk [vmem:[#allocation2 + $0x858] sm:$0xff] %vm763_vm0, %v13041_v0 }
  0xa2   : > { %1032 = vst.msk [vmem:[#allocation2 + $0x860] sm:$0xff] %vm763_vm0, %v13041_v0  ;;  %1033 = vst.msk [vmem:[#allocation2 + $0x868] sm:$0xff] %vm763_vm0, %v13041_v0 }
  0xa3   : > { %1034 = vst.msk [vmem:[#allocation2 + $0x870] sm:$0xff] %vm763_vm0, %v13041_v0  ;;  %1035 = vst.msk [vmem:[#allocation2 + $0x878] sm:$0xff] %vm763_vm0, %v13041_v0 }
  0xa4   : > { %1036 = vst.msk [vmem:[#allocation2 + $0x880] sm:$0xff] %vm763_vm0, %v13041_v0  ;;  %1037 = vst.msk [vmem:[#allocation2 + $0x888] sm:$0xff] %vm763_vm0, %v13041_v0 }
  0xa5   : > { %1038 = vst.msk [vmem:[#allocation2 + $0x890] sm:$0xff] %vm763_vm0, %v13041_v0  ;;  %1039 = vst.msk [vmem:[#allocation2 + $0x898] sm:$0xff] %vm763_vm0, %v13041_v0 }
  0xa6   : > { %1040 = vst.msk [vmem:[#allocation2 + $0x8a0] sm:$0xff] %vm763_vm0, %v13041_v0  ;;  %1041 = vst.msk [vmem:[#allocation2 + $0x8a8] sm:$0xff] %vm763_vm0, %v13041_v0 }
  0xa7   : > { %1042 = vst.msk [vmem:[#allocation2 + $0x8b0] sm:$0xff] %vm763_vm0, %v13041_v0  ;;  %1043 = vst.msk [vmem:[#allocation2 + $0x8b8] sm:$0xff] %vm763_vm0, %v13041_v0 }
  0xa8   : > { %1044 = vst.msk [vmem:[#allocation2 + $0x8c0] sm:$0xff] %vm763_vm0, %v13041_v0  ;;  %1045 = vst.msk [vmem:[#allocation2 + $0x8c8] sm:$0xff] %vm763_vm0, %v13041_v0 }
  0xa9   : > { %1046 = vst.msk [vmem:[#allocation2 + $0x8d0] sm:$0xff] %vm763_vm0, %v13041_v0  ;;  %1047 = vst.msk [vmem:[#allocation2 + $0x8d8] sm:$0xff] %vm763_vm0, %v13041_v0 }
  0xaa   : > { %1048 = vst.msk [vmem:[#allocation2 + $0x8e0] sm:$0xff] %vm763_vm0, %v13041_v0  ;;  %1049 = vst.msk [vmem:[#allocation2 + $0x8e8] sm:$0xff] %vm763_vm0, %v13041_v0 }
  0xab   : > { %1050 = vst.msk [vmem:[#allocation2 + $0x8f0] sm:$0xff] %vm763_vm0, %v13041_v0  ;;  %1051 = vst.msk [vmem:[#allocation2 + $0x8f8] sm:$0xff] %vm763_vm0, %v13041_v0 }
  0xac   : > { %1052 = vst.msk [vmem:[#allocation2 + $0x900] sm:$0xff] %vm763_vm0, %v13041_v0  ;;  %1053 = vst.msk [vmem:[#allocation2 + $0x908] sm:$0xff] %vm763_vm0, %v13041_v0 }
  0xad   : > { %1054 = vst.msk [vmem:[#allocation2 + $0x910] sm:$0xff] %vm763_vm0, %v13041_v0  ;;  %1055 = vst.msk [vmem:[#allocation2 + $0x918] sm:$0xff] %vm763_vm0, %v13041_v0 }
  0xae   : > { %1056 = vst.msk [vmem:[#allocation2 + $0x920] sm:$0xff] %vm763_vm0, %v13041_v0  ;;  %1057 = vst.msk [vmem:[#allocation2 + $0x928] sm:$0xff] %vm763_vm0, %v13041_v0 }
  0xaf   : > { %1058 = vst.msk [vmem:[#allocation2 + $0x930] sm:$0xff] %vm763_vm0, %v13041_v0  ;;  %1059 = vst.msk [vmem:[#allocation2 + $0x938] sm:$0xff] %vm763_vm0, %v13041_v0 }
  0xb0   : > { %1060 = vst.msk [vmem:[#allocation2 + $0x940] sm:$0xff] %vm763_vm0, %v13041_v0  ;;  %1061 = vst.msk [vmem:[#allocation2 + $0x948] sm:$0xff] %vm763_vm0, %v13041_v0 }
  0xb1   : > { %1062 = vst.msk [vmem:[#allocation2 + $0x950] sm:$0xff] %vm763_vm0, %v13041_v0  ;;  %1063 = vst.msk [vmem:[#allocation2 + $0x958] sm:$0xff] %vm763_vm0, %v13041_v0 }
  0xb2   : > { %1064 = vst.msk [vmem:[#allocation2 + $0x960] sm:$0xff] %vm763_vm0, %v13041_v0  ;;  %1065 = vst.msk [vmem:[#allocation2 + $0x968] sm:$0xff] %vm763_vm0, %v13041_v0 }
  0xb3   : > { %1066 = vst.msk [vmem:[#allocation2 + $0x970] sm:$0xff] %vm763_vm0, %v13041_v0  ;;  %1067 = vst.msk [vmem:[#allocation2 + $0x978] sm:$0xff] %vm763_vm0, %v13041_v0 }
  0xb4   : > { %1068 = vst.msk [vmem:[#allocation2 + $0x980] sm:$0xff] %vm763_vm0, %v13041_v0  ;;  %1069 = vst.msk [vmem:[#allocation2 + $0x988] sm:$0xff] %vm763_vm0, %v13041_v0 }
  0xb5   : > { %1070 = vst.msk [vmem:[#allocation2 + $0x990] sm:$0xff] %vm763_vm0, %v13041_v0  ;;  %1071 = vst.msk [vmem:[#allocation2 + $0x998] sm:$0xff] %vm763_vm0, %v13041_v0 }
  0xb6   : > { %1072 = vst.msk [vmem:[#allocation2 + $0x9a0] sm:$0xff] %vm763_vm0, %v13041_v0  ;;  %1073 = vst.msk [vmem:[#allocation2 + $0x9a8] sm:$0xff] %vm763_vm0, %v13041_v0 }
  0xb7   : > { %1074 = vst.msk [vmem:[#allocation2 + $0x9b0] sm:$0xff] %vm763_vm0, %v13041_v0  ;;  %1075 = vst.msk [vmem:[#allocation2 + $0x9b8] sm:$0xff] %vm763_vm0, %v13041_v0 }
  0xb8   : > { %1076 = vst.msk [vmem:[#allocation2 + $0x9c0] sm:$0xff] %vm763_vm0, %v13041_v0  ;;  %1077 = vst.msk [vmem:[#allocation2 + $0x9c8] sm:$0xff] %vm763_vm0, %v13041_v0 }
  0xb9   : > { %1078 = vst.msk [vmem:[#allocation2 + $0x9d0] sm:$0xff] %vm763_vm0, %v13041_v0  ;;  %1079 = vst.msk [vmem:[#allocation2 + $0x9d8] sm:$0xff] %vm763_vm0, %v13041_v0 }
  0xba   : > { %1080 = vst.msk [vmem:[#allocation2 + $0x9e0] sm:$0xff] %vm763_vm0, %v13041_v0  ;;  %1081 = vst.msk [vmem:[#allocation2 + $0x9e8] sm:$0xff] %vm763_vm0, %v13041_v0 }
  0xbb   : > { %1082 = vst.msk [vmem:[#allocation2 + $0x9f0] sm:$0xff] %vm763_vm0, %v13041_v0  ;;  %1083 = vst.msk [vmem:[#allocation2 + $0x9f8] sm:$0xff] %vm763_vm0, %v13041_v0 }
  0xbc   : > { %1084 = vst.msk [vmem:[#allocation2 + $0xa00] sm:$0xff] %vm763_vm0, %v13041_v0  ;;  %1085 = vst.msk [vmem:[#allocation2 + $0xa08] sm:$0xff] %vm763_vm0, %v13041_v0 }
  0xbd   : > { %1086 = vst.msk [vmem:[#allocation2 + $0xa10] sm:$0xff] %vm763_vm0, %v13041_v0  ;;  %1087 = vst.msk [vmem:[#allocation2 + $0xa18] sm:$0xff] %vm763_vm0, %v13041_v0 }
  0xbe   : > { %1088 = vst.msk [vmem:[#allocation2 + $0xa20] sm:$0xff] %vm763_vm0, %v13041_v0  ;;  %1089 = vst.msk [vmem:[#allocation2 + $0xa28] sm:$0xff] %vm763_vm0, %v13041_v0 }
  0xbf   : > { %1090 = vst.msk [vmem:[#allocation2 + $0xa30] sm:$0xff] %vm763_vm0, %v13041_v0  ;;  %1091 = vst.msk [vmem:[#allocation2 + $0xa38] sm:$0xff] %vm763_vm0, %v13041_v0 }
  0xc0   : > { %1092 = vst.msk [vmem:[#allocation2 + $0xa40] sm:$0xff] %vm763_vm0, %v13041_v0  ;;  %1093 = vst.msk [vmem:[#allocation2 + $0xa48] sm:$0xff] %vm763_vm0, %v13041_v0 }
  0xc1   : > { %1094 = vst.msk [vmem:[#allocation2 + $0xa50] sm:$0xff] %vm763_vm0, %v13041_v0  ;;  %1095 = vst.msk [vmem:[#allocation2 + $0xa58] sm:$0xff] %vm763_vm0, %v13041_v0 }
  0xc2   : > { %1096 = vst.msk [vmem:[#allocation2 + $0xa60] sm:$0xff] %vm763_vm0, %v13041_v0  ;;  %1097 = vst.msk [vmem:[#allocation2 + $0xa68] sm:$0xff] %vm763_vm0, %v13041_v0 }
  0xc3   : > { %1098 = vst.msk [vmem:[#allocation2 + $0xa70] sm:$0xff] %vm763_vm0, %v13041_v0  ;;  %1099 = vst.msk [vmem:[#allocation2 + $0xa78] sm:$0xff] %vm763_vm0, %v13041_v0 }
  0xc4   : > { %1100 = vst.msk [vmem:[#allocation2 + $0xa80] sm:$0xff] %vm763_vm0, %v13041_v0  ;;  %1101 = vst.msk [vmem:[#allocation2 + $0xa88] sm:$0xff] %vm763_vm0, %v13041_v0 }
  0xc5   : > { %1102 = vst.msk [vmem:[#allocation3] sm:$0xff] %vm763_vm0, %v13041_v0  ;;  %1103 = vst.msk [vmem:[#allocation3 + $0x8] sm:$0xff] %vm763_vm0, %v13041_v0 }
  0xc6   : > { %1104 = vst.msk [vmem:[#allocation3 + $0x10] sm:$0xff] %vm763_vm0, %v13041_v0  ;;  %1105 = vst.msk [vmem:[#allocation3 + $0x18] sm:$0xff] %vm763_vm0, %v13041_v0 }
  0xc7   : > { %1106 = vst.msk [vmem:[#allocation3 + $0x20] sm:$0xff] %vm763_vm0, %v13041_v0  ;;  %1107 = vst.msk [vmem:[#allocation3 + $0x28] sm:$0xff] %vm763_vm0, %v13041_v0 }
  0xc8   : > { %1108 = vst.msk [vmem:[#allocation3 + $0x30] sm:$0xff] %vm763_vm0, %v13041_v0  ;;  %1109 = vst.msk [vmem:[#allocation3 + $0x38] sm:$0xff] %vm763_vm0, %v13041_v0 }
  0xc9   : > { %1110 = vst.msk [vmem:[#allocation3 + $0x40] sm:$0xff] %vm763_vm0, %v13041_v0  ;;  %1111 = vst.msk [vmem:[#allocation3 + $0x48] sm:$0xff] %vm763_vm0, %v13041_v0 }
  0xca   : > { %1112 = vst.msk [vmem:[#allocation3 + $0x50] sm:$0xff] %vm763_vm0, %v13041_v0  ;;  %1113 = vst.msk [vmem:[#allocation3 + $0x58] sm:$0xff] %vm763_vm0, %v13041_v0 }
  0xcb   : > { %1114 = vst.msk [vmem:[#allocation3 + $0x60] sm:$0xff] %vm763_vm0, %v13041_v0  ;;  %1115 = vst.msk [vmem:[#allocation3 + $0x68] sm:$0xff] %vm763_vm0, %v13041_v0 }
  0xcc   : > { %1116 = vst.msk [vmem:[#allocation3 + $0x70] sm:$0xff] %vm763_vm0, %v13041_v0  ;;  %1117 = vst.msk [vmem:[#allocation3 + $0x78] sm:$0xff] %vm763_vm0, %v13041_v0 }
  0xcd   : > { %1118 = vst.msk [vmem:[#allocation3 + $0x80] sm:$0xff] %vm763_vm0, %v13041_v0  ;;  %1119 = vst.msk [vmem:[#allocation3 + $0x88] sm:$0xff] %vm763_vm0, %v13041_v0 }
  0xce   : > { %1120 = vst.msk [vmem:[#allocation3 + $0x90] sm:$0xff] %vm763_vm0, %v13041_v0  ;;  %1121 = vst.msk [vmem:[#allocation3 + $0x98] sm:$0xff] %vm763_vm0, %v13041_v0 }
  0xcf   : > { %1122 = vst.msk [vmem:[#allocation3 + $0xa0] sm:$0xff] %vm763_vm0, %v13041_v0  ;;  %1123 = vst.msk [vmem:[#allocation3 + $0xa8] sm:$0xff] %vm763_vm0, %v13041_v0 }
  0xd0   : > { %1124 = vst.msk [vmem:[#allocation3 + $0xb0] sm:$0xff] %vm763_vm0, %v13041_v0  ;;  %1125 = vst.msk [vmem:[#allocation3 + $0xb8] sm:$0xff] %vm763_vm0, %v13041_v0 }
  0xd1   : > { %1126 = vst.msk [vmem:[#allocation3 + $0xc0] sm:$0xff] %vm763_vm0, %v13041_v0  ;;  %1127 = vst.msk [vmem:[#allocation3 + $0xc8] sm:$0xff] %vm763_vm0, %v13041_v0 }
  0xd2   : > { %1128 = vst.msk [vmem:[#allocation3 + $0xd0] sm:$0xff] %vm763_vm0, %v13041_v0  ;;  %1129 = vst.msk [vmem:[#allocation3 + $0xd8] sm:$0xff] %vm763_vm0, %v13041_v0 }
  0xd3   : > { %1130 = vst.msk [vmem:[#allocation3 + $0xe0] sm:$0xff] %vm763_vm0, %v13041_v0  ;;  %1131 = vst.msk [vmem:[#allocation3 + $0xe8] sm:$0xff] %vm763_vm0, %v13041_v0 }
  0xd4   : > { %1132 = vst.msk [vmem:[#allocation3 + $0xf0] sm:$0xff] %vm763_vm0, %v13041_v0  ;;  %1133 = vst.msk [vmem:[#allocation3 + $0xf8] sm:$0xff] %vm763_vm0, %v13041_v0 }
  0xd5   : > { %1134 = vst.msk [vmem:[#allocation3 + $0x100] sm:$0xff] %vm763_vm0, %v13041_v0  ;;  %1135 = vst.msk [vmem:[#allocation3 + $0x108] sm:$0xff] %vm763_vm0, %v13041_v0 }
  0xd6   : > { %1136 = vst.msk [vmem:[#allocation3 + $0x110] sm:$0xff] %vm763_vm0, %v13041_v0  ;;  %1137 = vst.msk [vmem:[#allocation3 + $0x118] sm:$0xff] %vm763_vm0, %v13041_v0 }
  0xd7   : > { %1138 = vst.msk [vmem:[#allocation3 + $0x120] sm:$0xff] %vm763_vm0, %v13041_v0  ;;  %1139 = vst.msk [vmem:[#allocation3 + $0x128] sm:$0xff] %vm763_vm0, %v13041_v0 }
  0xd8   : > { %1140 = vst.msk [vmem:[#allocation3 + $0x130] sm:$0xff] %vm763_vm0, %v13041_v0  ;;  %1141 = vst.msk [vmem:[#allocation3 + $0x138] sm:$0xff] %vm763_vm0, %v13041_v0 }
  0xd9   : > { %1142 = vst.msk [vmem:[#allocation3 + $0x140] sm:$0xff] %vm763_vm0, %v13041_v0  ;;  %1143 = vst.msk [vmem:[#allocation3 + $0x148] sm:$0xff] %vm763_vm0, %v13041_v0 }
  0xda   : > { %1144 = vst.msk [vmem:[#allocation3 + $0x150] sm:$0xff] %vm763_vm0, %v13041_v0  ;;  %1145 = vst.msk [vmem:[#allocation3 + $0x158] sm:$0xff] %vm763_vm0, %v13041_v0 }
  0xdb   : > { %1146 = vst.msk [vmem:[#allocation3 + $0x160] sm:$0xff] %vm763_vm0, %v13041_v0  ;;  %1147 = vst.msk [vmem:[#allocation3 + $0x168] sm:$0xff] %vm763_vm0, %v13041_v0 }
  0xdc   : > { %1148 = vst.msk [vmem:[#allocation3 + $0x170] sm:$0xff] %vm763_vm0, %v13041_v0  ;;  %1149 = vst.msk [vmem:[#allocation3 + $0x178] sm:$0xff] %vm763_vm0, %v13041_v0 }
  0xdd   : > { %1150 = vst.msk [vmem:[#allocation3 + $0x180] sm:$0xff] %vm763_vm0, %v13041_v0  ;;  %1151 = vst.msk [vmem:[#allocation3 + $0x188] sm:$0xff] %vm763_vm0, %v13041_v0 }
  0xde   : > { %1152 = vst.msk [vmem:[#allocation3 + $0x190] sm:$0xff] %vm763_vm0, %v13041_v0  ;;  %1153 = vst.msk [vmem:[#allocation3 + $0x198] sm:$0xff] %vm763_vm0, %v13041_v0 }
  0xdf   : > { %1154 = vst.msk [vmem:[#allocation3 + $0x1a0] sm:$0xff] %vm763_vm0, %v13041_v0  ;;  %1155 = vst.msk [vmem:[#allocation3 + $0x1a8] sm:$0xff] %vm763_vm0, %v13041_v0 }
  0xe0   : > { %1156 = vst.msk [vmem:[#allocation3 + $0x1b0] sm:$0xff] %vm763_vm0, %v13041_v0  ;;  %1157 = vst.msk [vmem:[#allocation3 + $0x1b8] sm:$0xff] %vm763_vm0, %v13041_v0 }
  0xe1   : > { %1158 = vst.msk [vmem:[#allocation3 + $0x1c0] sm:$0xff] %vm763_vm0, %v13041_v0  ;;  %1159 = vst.msk [vmem:[#allocation3 + $0x1c8] sm:$0xff] %vm763_vm0, %v13041_v0 }
  0xe2   : > { %1160 = vst.msk [vmem:[#allocation3 + $0x1d0] sm:$0xff] %vm763_vm0, %v13041_v0  ;;  %1161 = vst.msk [vmem:[#allocation3 + $0x1d8] sm:$0xff] %vm763_vm0, %v13041_v0 }
  0xe3   : > { %1162 = vst.msk [vmem:[#allocation3 + $0x1e0] sm:$0xff] %vm763_vm0, %v13041_v0  ;;  %1163 = vst.msk [vmem:[#allocation3 + $0x1e8] sm:$0xff] %vm763_vm0, %v13041_v0 }
  0xe4   : > { %1164 = vst.msk [vmem:[#allocation3 + $0x1f0] sm:$0xff] %vm763_vm0, %v13041_v0  ;;  %1165 = vst.msk [vmem:[#allocation3 + $0x1f8] sm:$0xff] %vm763_vm0, %v13041_v0 }
  0xe5   : > { %1166 = vst.msk [vmem:[#allocation3 + $0x200] sm:$0xff] %vm763_vm0, %v13041_v0  ;;  %1167 = vst.msk [vmem:[#allocation3 + $0x208] sm:$0xff] %vm763_vm0, %v13041_v0 }
  0xe6   : > { %1168 = vst.msk [vmem:[#allocation3 + $0x210] sm:$0xff] %vm763_vm0, %v13041_v0  ;;  %1169 = vst.msk [vmem:[#allocation3 + $0x218] sm:$0xff] %vm763_vm0, %v13041_v0 }
  0xe7   : > { %1170 = vst.msk [vmem:[#allocation3 + $0x220] sm:$0xff] %vm763_vm0, %v13041_v0  ;;  %1171 = vst.msk [vmem:[#allocation3 + $0x228] sm:$0xff] %vm763_vm0, %v13041_v0 }
  0xe8   : > { %1172 = vst.msk [vmem:[#allocation3 + $0x230] sm:$0xff] %vm763_vm0, %v13041_v0  ;;  %1173 = vst.msk [vmem:[#allocation3 + $0x238] sm:$0xff] %vm763_vm0, %v13041_v0 }
  0xe9   : > { %1174 = vst.msk [vmem:[#allocation3 + $0x240] sm:$0xff] %vm763_vm0, %v13041_v0  ;;  %1175 = vst.msk [vmem:[#allocation3 + $0x248] sm:$0xff] %vm763_vm0, %v13041_v0 }
  0xea   : > { %1176 = vst.msk [vmem:[#allocation3 + $0x250] sm:$0xff] %vm763_vm0, %v13041_v0  ;;  %1177 = vst.msk [vmem:[#allocation3 + $0x258] sm:$0xff] %vm763_vm0, %v13041_v0 }
  0xeb   : > { %1178 = vst.msk [vmem:[#allocation3 + $0x260] sm:$0xff] %vm763_vm0, %v13041_v0  ;;  %1179 = vst.msk [vmem:[#allocation3 + $0x268] sm:$0xff] %vm763_vm0, %v13041_v0 }
  0xec   : > { %1180 = vst.msk [vmem:[#allocation3 + $0x270] sm:$0xff] %vm763_vm0, %v13041_v0  ;;  %1181 = vst.msk [vmem:[#allocation3 + $0x278] sm:$0xff] %vm763_vm0, %v13041_v0 }
  0xed   : > { %1182 = vst.msk [vmem:[#allocation3 + $0x280] sm:$0xff] %vm763_vm0, %v13041_v0  ;;  %1183 = vst.msk [vmem:[#allocation3 + $0x288] sm:$0xff] %vm763_vm0, %v13041_v0 }
  0xee   : > { %1184 = vst.msk [vmem:[#allocation3 + $0x290] sm:$0xff] %vm763_vm0, %v13041_v0  ;;  %1185 = vst.msk [vmem:[#allocation3 + $0x298] sm:$0xff] %vm763_vm0, %v13041_v0 }
  0xef   : > { %1186 = vst.msk [vmem:[#allocation3 + $0x2a0] sm:$0xff] %vm763_vm0, %v13041_v0  ;;  %1187 = vst.msk [vmem:[#allocation3 + $0x2a8] sm:$0xff] %vm763_vm0, %v13041_v0 }
  0xf0   : > { %1188 = vst.msk [vmem:[#allocation3 + $0x2b0] sm:$0xff] %vm763_vm0, %v13041_v0  ;;  %1189 = vst.msk [vmem:[#allocation3 + $0x2b8] sm:$0xff] %vm763_vm0, %v13041_v0 }
  0xf1   : > { %1190 = vst.msk [vmem:[#allocation3 + $0x2c0] sm:$0xff] %vm763_vm0, %v13041_v0  ;;  %1191 = vst.msk [vmem:[#allocation3 + $0x2c8] sm:$0xff] %vm763_vm0, %v13041_v0 }
  0xf2   : > { %1192 = vst.msk [vmem:[#allocation3 + $0x2d0] sm:$0xff] %vm763_vm0, %v13041_v0  ;;  %1193 = vst.msk [vmem:[#allocation3 + $0x2d8] sm:$0xff] %vm763_vm0, %v13041_v0 }
  0xf3   : > { %1194 = vst.msk [vmem:[#allocation3 + $0x2e0] sm:$0xff] %vm763_vm0, %v13041_v0  ;;  %1195 = vst.msk [vmem:[#allocation3 + $0x2e8] sm:$0xff] %vm763_vm0, %v13041_v0 }
  0xf4   : > { %1196 = vst.msk [vmem:[#allocation3 + $0x2f0] sm:$0xff] %vm763_vm0, %v13041_v0  ;;  %1197 = vst.msk [vmem:[#allocation3 + $0x2f8] sm:$0xff] %vm763_vm0, %v13041_v0 }
  0xf5   : > { %1198 = vst.msk [vmem:[#allocation3 + $0x300] sm:$0xff] %vm763_vm0, %v13041_v0  ;;  %1199 = vst.msk [vmem:[#allocation3 + $0x308] sm:$0xff] %vm763_vm0, %v13041_v0 }
  0xf6   : > { %1200 = vst.msk [vmem:[#allocation3 + $0x310] sm:$0xff] %vm763_vm0, %v13041_v0  ;;  %1201 = vst.msk [vmem:[#allocation3 + $0x318] sm:$0xff] %vm763_vm0, %v13041_v0 }
  0xf7   : > { %1202 = vst.msk [vmem:[#allocation3 + $0x320] sm:$0xff] %vm763_vm0, %v13041_v0  ;;  %1203 = vst.msk [vmem:[#allocation3 + $0x328] sm:$0xff] %vm763_vm0, %v13041_v0 }
  0xf8   : > { %1204 = vst.msk [vmem:[#allocation3 + $0x330] sm:$0xff] %vm763_vm0, %v13041_v0  ;;  %1205 = vst.msk [vmem:[#allocation3 + $0x338] sm:$0xff] %vm763_vm0, %v13041_v0 }
  0xf9   : > { %1206 = vst.msk [vmem:[#allocation3 + $0x340] sm:$0xff] %vm763_vm0, %v13041_v0  ;;  %1207 = vst.msk [vmem:[#allocation3 + $0x348] sm:$0xff] %vm763_vm0, %v13041_v0 }
  0xfa   : > { %1208 = vst.msk [vmem:[#allocation3 + $0x350] sm:$0xff] %vm763_vm0, %v13041_v0  ;;  %1209 = vst.msk [vmem:[#allocation3 + $0x358] sm:$0xff] %vm763_vm0, %v13041_v0 }
  0xfb   : > { %1210 = vst.msk [vmem:[#allocation3 + $0x360] sm:$0xff] %vm763_vm0, %v13041_v0  ;;  %1211 = vst.msk [vmem:[#allocation3 + $0x368] sm:$0xff] %vm763_vm0, %v13041_v0 }
  0xfc   : > { %1212 = vst.msk [vmem:[#allocation3 + $0x370] sm:$0xff] %vm763_vm0, %v13041_v0  ;;  %1213 = vst.msk [vmem:[#allocation3 + $0x378] sm:$0xff] %vm763_vm0, %v13041_v0 }
  0xfd   : > { %1214 = vst.msk [vmem:[#allocation3 + $0x380] sm:$0xff] %vm763_vm0, %v13041_v0  ;;  %1215 = vst.msk [vmem:[#allocation3 + $0x388] sm:$0xff] %vm763_vm0, %v13041_v0 }
  0xfe   : > { %1216 = vst.msk [vmem:[#allocation3 + $0x390] sm:$0xff] %vm763_vm0, %v13041_v0  ;;  %1217 = vst.msk [vmem:[#allocation3 + $0x398] sm:$0xff] %vm763_vm0, %v13041_v0 }
  0xff   : > { %1218 = vst.msk [vmem:[#allocation3 + $0x3a0] sm:$0xff] %vm763_vm0, %v13041_v0  ;;  %1219 = vst.msk [vmem:[#allocation3 + $0x3a8] sm:$0xff] %vm763_vm0, %v13041_v0 }
 0x100   : > { %1220 = vst.msk [vmem:[#allocation3 + $0x3b0] sm:$0xff] %vm763_vm0, %v13041_v0  ;;  %1221 = vst.msk [vmem:[#allocation3 + $0x3b8] sm:$0xff] %vm763_vm0, %v13041_v0 }
 0x101   : > { %1222 = vst.msk [vmem:[#allocation3 + $0x3c0] sm:$0xff] %vm763_vm0, %v13041_v0  ;;  %1223 = vst.msk [vmem:[#allocation3 + $0x3c8] sm:$0xff] %vm763_vm0, %v13041_v0 }
 0x102   : > { %1224 = vst.msk [vmem:[#allocation3 + $0x3d0] sm:$0xff] %vm763_vm0, %v13041_v0  ;;  %1225 = vst.msk [vmem:[#allocation3 + $0x3d8] sm:$0xff] %vm763_vm0, %v13041_v0 }
 0x103   : > { %1226 = vst.msk [vmem:[#allocation3 + $0x3e0] sm:$0xff] %vm763_vm0, %v13041_v0  ;;  %1227 = vst.msk [vmem:[#allocation3 + $0x3e8] sm:$0xff] %vm763_vm0, %v13041_v0 }
 0x104   : > { %1228 = vst.msk [vmem:[#allocation3 + $0x3f0] sm:$0xff] %vm763_vm0, %v13041_v0  ;;  %1229 = vst.msk [vmem:[#allocation3 + $0x3f8] sm:$0xff] %vm763_vm0, %v13041_v0 }
 0x105   : > { %1230 = vst.msk [vmem:[#allocation3 + $0x400] sm:$0xff] %vm763_vm0, %v13041_v0  ;;  %1231 = vst.msk [vmem:[#allocation3 + $0x408] sm:$0xff] %vm763_vm0, %v13041_v0 }
 0x106   : > { %1232 = vst.msk [vmem:[#allocation3 + $0x410] sm:$0xff] %vm763_vm0, %v13041_v0  ;;  %1233 = vst.msk [vmem:[#allocation3 + $0x418] sm:$0xff] %vm763_vm0, %v13041_v0 }
 0x107   : > { %1234 = vst.msk [vmem:[#allocation3 + $0x420] sm:$0xff] %vm763_vm0, %v13041_v0  ;;  %1235 = vst.msk [vmem:[#allocation3 + $0x428] sm:$0xff] %vm763_vm0, %v13041_v0 }
 0x108   : > { %1236 = vst.msk [vmem:[#allocation3 + $0x430] sm:$0xff] %vm763_vm0, %v13041_v0  ;;  %1237 = vst.msk [vmem:[#allocation3 + $0x438] sm:$0xff] %vm763_vm0, %v13041_v0 }
 0x109   : > { %1238 = vst.msk [vmem:[#allocation3 + $0x440] sm:$0xff] %vm763_vm0, %v13041_v0  ;;  %1239 = vst.msk [vmem:[#allocation3 + $0x448] sm:$0xff] %vm763_vm0, %v13041_v0 }
 0x10a   : > { %1240 = vst.msk [vmem:[#allocation3 + $0x450] sm:$0xff] %vm763_vm0, %v13041_v0  ;;  %1241 = vst.msk [vmem:[#allocation3 + $0x458] sm:$0xff] %vm763_vm0, %v13041_v0 }
 0x10b   : > { %1242 = vst.msk [vmem:[#allocation3 + $0x460] sm:$0xff] %vm763_vm0, %v13041_v0  ;;  %1243 = vst.msk [vmem:[#allocation3 + $0x468] sm:$0xff] %vm763_vm0, %v13041_v0 }
 0x10c   : > { %1244 = vst.msk [vmem:[#allocation3 + $0x470] sm:$0xff] %vm763_vm0, %v13041_v0  ;;  %1245 = vst.msk [vmem:[#allocation3 + $0x478] sm:$0xff] %vm763_vm0, %v13041_v0 }
 0x10d   : > { %1246 = vst.msk [vmem:[#allocation3 + $0x480] sm:$0xff] %vm763_vm0, %v13041_v0  ;;  %1247 = vst.msk [vmem:[#allocation3 + $0x488] sm:$0xff] %vm763_vm0, %v13041_v0 }
 0x10e   : > { %1248 = vst.msk [vmem:[#allocation3 + $0x490] sm:$0xff] %vm763_vm0, %v13041_v0  ;;  %1249 = vst.msk [vmem:[#allocation3 + $0x498] sm:$0xff] %vm763_vm0, %v13041_v0 }
 0x10f   : > { %1250 = vst.msk [vmem:[#allocation3 + $0x4a0] sm:$0xff] %vm763_vm0, %v13041_v0  ;;  %1251 = vst.msk [vmem:[#allocation3 + $0x4a8] sm:$0xff] %vm763_vm0, %v13041_v0 }
 0x110   : > { %1252 = vst.msk [vmem:[#allocation3 + $0x4b0] sm:$0xff] %vm763_vm0, %v13041_v0  ;;  %1253 = vst.msk [vmem:[#allocation3 + $0x4b8] sm:$0xff] %vm763_vm0, %v13041_v0 }
 0x111   : > { %1254 = vst.msk [vmem:[#allocation3 + $0x4c0] sm:$0xff] %vm763_vm0, %v13041_v0  ;;  %1255 = vst.msk [vmem:[#allocation3 + $0x4c8] sm:$0xff] %vm763_vm0, %v13041_v0 }
 0x112   : > { %1256 = vst.msk [vmem:[#allocation3 + $0x4d0] sm:$0xff] %vm763_vm0, %v13041_v0  ;;  %1257 = vst.msk [vmem:[#allocation3 + $0x4d8] sm:$0xff] %vm763_vm0, %v13041_v0 }
 0x113   : > { %1258 = vst.msk [vmem:[#allocation3 + $0x4e0] sm:$0xff] %vm763_vm0, %v13041_v0  ;;  %1259 = vst.msk [vmem:[#allocation3 + $0x4e8] sm:$0xff] %vm763_vm0, %v13041_v0 }
 0x114   : > { %1260 = vst.msk [vmem:[#allocation3 + $0x4f0] sm:$0xff] %vm763_vm0, %v13041_v0  ;;  %1261 = vst.msk [vmem:[#allocation3 + $0x4f8] sm:$0xff] %vm763_vm0, %v13041_v0 }
 0x115   : > { %1262 = vst.msk [vmem:[#allocation3 + $0x500] sm:$0xff] %vm763_vm0, %v13041_v0  ;;  %1263 = vst.msk [vmem:[#allocation3 + $0x508] sm:$0xff] %vm763_vm0, %v13041_v0 }
 0x116   : > { %1264 = vst.msk [vmem:[#allocation3 + $0x510] sm:$0xff] %vm763_vm0, %v13041_v0  ;;  %1265 = vst.msk [vmem:[#allocation3 + $0x518] sm:$0xff] %vm763_vm0, %v13041_v0 }
 0x117   : > { %1266 = vst.msk [vmem:[#allocation3 + $0x520] sm:$0xff] %vm763_vm0, %v13041_v0  ;;  %1267 = vst.msk [vmem:[#allocation3 + $0x528] sm:$0xff] %vm763_vm0, %v13041_v0 }
 0x118   : > { %1268 = vst.msk [vmem:[#allocation3 + $0x530] sm:$0xff] %vm763_vm0, %v13041_v0  ;;  %1269 = vst.msk [vmem:[#allocation3 + $0x538] sm:$0xff] %vm763_vm0, %v13041_v0 }
 0x119   : > { %1270 = vst.msk [vmem:[#allocation3 + $0x540] sm:$0xff] %vm763_vm0, %v13041_v0  ;;  %1271 = vst.msk [vmem:[#allocation3 + $0x548] sm:$0xff] %vm763_vm0, %v13041_v0 }
 0x11a   : > { %1272 = vst.msk [vmem:[#allocation3 + $0x550] sm:$0xff] %vm763_vm0, %v13041_v0  ;;  %1273 = vst.msk [vmem:[#allocation3 + $0x558] sm:$0xff] %vm763_vm0, %v13041_v0 }
 0x11b   : > { %1274 = vst.msk [vmem:[#allocation3 + $0x560] sm:$0xff] %vm763_vm0, %v13041_v0  ;;  %1275 = vst.msk [vmem:[#allocation3 + $0x568] sm:$0xff] %vm763_vm0, %v13041_v0 }
 0x11c   : > { %1276 = vst.msk [vmem:[#allocation3 + $0x570] sm:$0xff] %vm763_vm0, %v13041_v0  ;;  %1277 = vst.msk [vmem:[#allocation3 + $0x578] sm:$0xff] %vm763_vm0, %v13041_v0 }
 0x11d   : > { %1278 = vst.msk [vmem:[#allocation3 + $0x580] sm:$0xff] %vm763_vm0, %v13041_v0  ;;  %1279 = vst.msk [vmem:[#allocation3 + $0x588] sm:$0xff] %vm763_vm0, %v13041_v0 }
 0x11e   : > { %1280 = vst.msk [vmem:[#allocation3 + $0x590] sm:$0xff] %vm763_vm0, %v13041_v0  ;;  %1281 = vst.msk [vmem:[#allocation3 + $0x598] sm:$0xff] %vm763_vm0, %v13041_v0 }
 0x11f   : > { %1282 = vst.msk [vmem:[#allocation3 + $0x5a0] sm:$0xff] %vm763_vm0, %v13041_v0  ;;  %1283 = vst.msk [vmem:[#allocation3 + $0x5a8] sm:$0xff] %vm763_vm0, %v13041_v0 }
 0x120   : > { %1284 = vst.msk [vmem:[#allocation3 + $0x5b0] sm:$0xff] %vm763_vm0, %v13041_v0  ;;  %1285 = vst.msk [vmem:[#allocation3 + $0x5b8] sm:$0xff] %vm763_vm0, %v13041_v0 }
 0x121   : > { %1286 = vst.msk [vmem:[#allocation3 + $0x5c0] sm:$0xff] %vm763_vm0, %v13041_v0  ;;  %1287 = vst.msk [vmem:[#allocation3 + $0x5c8] sm:$0xff] %vm763_vm0, %v13041_v0 }
 0x122   : > { %1288 = vst.msk [vmem:[#allocation3 + $0x5d0] sm:$0xff] %vm763_vm0, %v13041_v0  ;;  %1289 = vst.msk [vmem:[#allocation3 + $0x5d8] sm:$0xff] %vm763_vm0, %v13041_v0 }
 0x123   : > { %1290 = vst.msk [vmem:[#allocation3 + $0x5e0] sm:$0xff] %vm763_vm0, %v13041_v0  ;;  %1291 = vst.msk [vmem:[#allocation3 + $0x5e8] sm:$0xff] %vm763_vm0, %v13041_v0 }
 0x124   : > { %1292 = vst.msk [vmem:[#allocation3 + $0x5f0] sm:$0xff] %vm763_vm0, %v13041_v0  ;;  %1293 = vst.msk [vmem:[#allocation3 + $0x5f8] sm:$0xff] %vm763_vm0, %v13041_v0 }
 0x125   : > { %1294 = vst.msk [vmem:[#allocation3 + $0x600] sm:$0xff] %vm763_vm0, %v13041_v0  ;;  %1295 = vst.msk [vmem:[#allocation3 + $0x608] sm:$0xff] %vm763_vm0, %v13041_v0 }
 0x126   : > { %1296 = vst.msk [vmem:[#allocation3 + $0x610] sm:$0xff] %vm763_vm0, %v13041_v0  ;;  %1297 = vst.msk [vmem:[#allocation3 + $0x618] sm:$0xff] %vm763_vm0, %v13041_v0 }
 0x127   : > { %1298 = vst.msk [vmem:[#allocation3 + $0x620] sm:$0xff] %vm763_vm0, %v13041_v0  ;;  %1299 = vst.msk [vmem:[#allocation3 + $0x628] sm:$0xff] %vm763_vm0, %v13041_v0 }
 0x128   : > { %1300 = vst.msk [vmem:[#allocation3 + $0x630] sm:$0xff] %vm763_vm0, %v13041_v0  ;;  %1301 = vst.msk [vmem:[#allocation3 + $0x638] sm:$0xff] %vm763_vm0, %v13041_v0 }
 0x129   : > { %1302 = vst.msk [vmem:[#allocation3 + $0x640] sm:$0xff] %vm763_vm0, %v13041_v0  ;;  %1303 = vst.msk [vmem:[#allocation3 + $0x648] sm:$0xff] %vm763_vm0, %v13041_v0 }
 0x12a   : > { %1304 = vst.msk [vmem:[#allocation3 + $0x650] sm:$0xff] %vm763_vm0, %v13041_v0  ;;  %1305 = vst.msk [vmem:[#allocation3 + $0x658] sm:$0xff] %vm763_vm0, %v13041_v0 }
 0x12b   : > { %1306 = vst.msk [vmem:[#allocation3 + $0x660] sm:$0xff] %vm763_vm0, %v13041_v0  ;;  %1307 = vst.msk [vmem:[#allocation3 + $0x668] sm:$0xff] %vm763_vm0, %v13041_v0 }
 0x12c   : > { %1308 = vst.msk [vmem:[#allocation3 + $0x670] sm:$0xff] %vm763_vm0, %v13041_v0  ;;  %1309 = vst.msk [vmem:[#allocation3 + $0x678] sm:$0xff] %vm763_vm0, %v13041_v0 }
 0x12d   : > { %1310 = vst.msk [vmem:[#allocation3 + $0x680] sm:$0xff] %vm763_vm0, %v13041_v0  ;;  %1311 = vst.msk [vmem:[#allocation3 + $0x688] sm:$0xff] %vm763_vm0, %v13041_v0 }
 0x12e   : > { %1312 = vst.msk [vmem:[#allocation3 + $0x690] sm:$0xff] %vm763_vm0, %v13041_v0  ;;  %1313 = vst.msk [vmem:[#allocation3 + $0x698] sm:$0xff] %vm763_vm0, %v13041_v0 }
 0x12f   : > { %1314 = vst.msk [vmem:[#allocation3 + $0x6a0] sm:$0xff] %vm763_vm0, %v13041_v0  ;;  %1315 = vst.msk [vmem:[#allocation3 + $0x6a8] sm:$0xff] %vm763_vm0, %v13041_v0 }
 0x130   : > { %1316 = vst.msk [vmem:[#allocation3 + $0x6b0] sm:$0xff] %vm763_vm0, %v13041_v0  ;;  %1317 = vst.msk [vmem:[#allocation3 + $0x6b8] sm:$0xff] %vm763_vm0, %v13041_v0 }
 0x131   : > { %1318 = vst.msk [vmem:[#allocation3 + $0x6c0] sm:$0xff] %vm763_vm0, %v13041_v0  ;;  %1319 = vst.msk [vmem:[#allocation3 + $0x6c8] sm:$0xff] %vm763_vm0, %v13041_v0 }
 0x132   : > { %1320 = vst.msk [vmem:[#allocation3 + $0x6d0] sm:$0xff] %vm763_vm0, %v13041_v0  ;;  %1321 = vst.msk [vmem:[#allocation3 + $0x6d8] sm:$0xff] %vm763_vm0, %v13041_v0 }
 0x133   : > { %1322 = vst.msk [vmem:[#allocation3 + $0x6e0] sm:$0xff] %vm763_vm0, %v13041_v0  ;;  %1323 = vst.msk [vmem:[#allocation3 + $0x6e8] sm:$0xff] %vm763_vm0, %v13041_v0 }
 0x134   : > { %1324 = vst.msk [vmem:[#allocation3 + $0x6f0] sm:$0xff] %vm763_vm0, %v13041_v0  ;;  %1325 = vst.msk [vmem:[#allocation3 + $0x6f8] sm:$0xff] %vm763_vm0, %v13041_v0 }
 0x135   : > { %1326 = vst.msk [vmem:[#allocation3 + $0x700] sm:$0xff] %vm763_vm0, %v13041_v0  ;;  %1327 = vst.msk [vmem:[#allocation3 + $0x708] sm:$0xff] %vm763_vm0, %v13041_v0 }
 0x136   : > { %1328 = vst.msk [vmem:[#allocation3 + $0x710] sm:$0xff] %vm763_vm0, %v13041_v0  ;;  %1329 = vst.msk [vmem:[#allocation3 + $0x718] sm:$0xff] %vm763_vm0, %v13041_v0 }
 0x137   : > { %1330 = vst.msk [vmem:[#allocation3 + $0x720] sm:$0xff] %vm763_vm0, %v13041_v0  ;;  %1331 = vst.msk [vmem:[#allocation3 + $0x728] sm:$0xff] %vm763_vm0, %v13041_v0 }
 0x138   : > { %1332 = vst.msk [vmem:[#allocation3 + $0x730] sm:$0xff] %vm763_vm0, %v13041_v0  ;;  %1333 = vst.msk [vmem:[#allocation3 + $0x738] sm:$0xff] %vm763_vm0, %v13041_v0 }
 0x139   : > { %1334 = vst.msk [vmem:[#allocation3 + $0x740] sm:$0xff] %vm763_vm0, %v13041_v0  ;;  %1335 = vst.msk [vmem:[#allocation3 + $0x748] sm:$0xff] %vm763_vm0, %v13041_v0 }
 0x13a   : > { %1336 = vst.msk [vmem:[#allocation3 + $0x750] sm:$0xff] %vm763_vm0, %v13041_v0  ;;  %1337 = vst.msk [vmem:[#allocation3 + $0x758] sm:$0xff] %vm763_vm0, %v13041_v0 }
 0x13b   : > { %1338 = vst.msk [vmem:[#allocation3 + $0x760] sm:$0xff] %vm763_vm0, %v13041_v0  ;;  %1339 = vst.msk [vmem:[#allocation3 + $0x768] sm:$0xff] %vm763_vm0, %v13041_v0 }
 0x13c   : > { %1340 = vst.msk [vmem:[#allocation3 + $0x770] sm:$0xff] %vm763_vm0, %v13041_v0  ;;  %1341 = vst.msk [vmem:[#allocation3 + $0x778] sm:$0xff] %vm763_vm0, %v13041_v0 }
 0x13d   : > { %1342 = vst.msk [vmem:[#allocation3 + $0x780] sm:$0xff] %vm763_vm0, %v13041_v0  ;;  %1343 = vst.msk [vmem:[#allocation3 + $0x788] sm:$0xff] %vm763_vm0, %v13041_v0 }
 0x13e   : > { %1344 = vst.msk [vmem:[#allocation3 + $0x790] sm:$0xff] %vm763_vm0, %v13041_v0  ;;  %1345 = vst.msk [vmem:[#allocation3 + $0x798] sm:$0xff] %vm763_vm0, %v13041_v0 }
 0x13f   : > { %1346 = vst.msk [vmem:[#allocation3 + $0x7a0] sm:$0xff] %vm763_vm0, %v13041_v0  ;;  %1347 = vst.msk [vmem:[#allocation3 + $0x7a8] sm:$0xff] %vm763_vm0, %v13041_v0 }
 0x140   : > { %1348 = vst.msk [vmem:[#allocation3 + $0x7b0] sm:$0xff] %vm763_vm0, %v13041_v0  ;;  %1349 = vst.msk [vmem:[#allocation3 + $0x7b8] sm:$0xff] %vm763_vm0, %v13041_v0 }
 0x141   : > { %1350 = vst.msk [vmem:[#allocation3 + $0x7c0] sm:$0xff] %vm763_vm0, %v13041_v0  ;;  %1351 = vst.msk [vmem:[#allocation3 + $0x7c8] sm:$0xff] %vm763_vm0, %v13041_v0 }
 0x142   : > { %1352 = vst.msk [vmem:[#allocation3 + $0x7d0] sm:$0xff] %vm763_vm0, %v13041_v0  ;;  %1353 = vst.msk [vmem:[#allocation3 + $0x7d8] sm:$0xff] %vm763_vm0, %v13041_v0 }
 0x143   : > { %1354 = vst.msk [vmem:[#allocation3 + $0x7e0] sm:$0xff] %vm763_vm0, %v13041_v0  ;;  %1355 = vst.msk [vmem:[#allocation3 + $0x7e8] sm:$0xff] %vm763_vm0, %v13041_v0 }
 0x144   : > { %1356 = vst.msk [vmem:[#allocation3 + $0x7f0] sm:$0xff] %vm763_vm0, %v13041_v0  ;;  %1357 = vst.msk [vmem:[#allocation3 + $0x7f8] sm:$0xff] %vm763_vm0, %v13041_v0 }
 0x145   : > { %1358 = vst.msk [vmem:[#allocation3 + $0x800] sm:$0xff] %vm763_vm0, %v13041_v0  ;;  %1359 = vst.msk [vmem:[#allocation3 + $0x808] sm:$0xff] %vm763_vm0, %v13041_v0 }
 0x146   : > { %1360 = vst.msk [vmem:[#allocation3 + $0x810] sm:$0xff] %vm763_vm0, %v13041_v0  ;;  %1361 = vst.msk [vmem:[#allocation3 + $0x818] sm:$0xff] %vm763_vm0, %v13041_v0 }
 0x147   : > { %1362 = vst.msk [vmem:[#allocation3 + $0x820] sm:$0xff] %vm763_vm0, %v13041_v0  ;;  %1363 = vst.msk [vmem:[#allocation3 + $0x828] sm:$0xff] %vm763_vm0, %v13041_v0 }
 0x148   : > { %1364 = vst.msk [vmem:[#allocation3 + $0x830] sm:$0xff] %vm763_vm0, %v13041_v0  ;;  %1365 = vst.msk [vmem:[#allocation3 + $0x838] sm:$0xff] %vm763_vm0, %v13041_v0 }
 0x149   : > { %1366 = vst.msk [vmem:[#allocation3 + $0x840] sm:$0xff] %vm763_vm0, %v13041_v0  ;;  %1367 = vst.msk [vmem:[#allocation3 + $0x848] sm:$0xff] %vm763_vm0, %v13041_v0 }
 0x14a   : > { %1368 = vst.msk [vmem:[#allocation3 + $0x850] sm:$0xff] %vm763_vm0, %v13041_v0  ;;  %1369 = vst.msk [vmem:[#allocation3 + $0x858] sm:$0xff] %vm763_vm0, %v13041_v0 }
 0x14b   : > { %1370 = vst.msk [vmem:[#allocation3 + $0x860] sm:$0xff] %vm763_vm0, %v13041_v0  ;;  %1371 = vst.msk [vmem:[#allocation3 + $0x868] sm:$0xff] %vm763_vm0, %v13041_v0 }
 0x14c   : > { %1372 = vst.msk [vmem:[#allocation3 + $0x870] sm:$0xff] %vm763_vm0, %v13041_v0  ;;  %1373 = vst.msk [vmem:[#allocation3 + $0x878] sm:$0xff] %vm763_vm0, %v13041_v0 }
 0x14d   : > { %1374 = vst.msk [vmem:[#allocation3 + $0x880] sm:$0xff] %vm763_vm0, %v13041_v0  ;;  %1375 = vst.msk [vmem:[#allocation3 + $0x888] sm:$0xff] %vm763_vm0, %v13041_v0 }
 0x14e   : > { %1376 = vst.msk [vmem:[#allocation3 + $0x890] sm:$0xff] %vm763_vm0, %v13041_v0  ;;  %1377 = vst.msk [vmem:[#allocation3 + $0x898] sm:$0xff] %vm763_vm0, %v13041_v0 }
 0x14f   : > { %1378 = vst.msk [vmem:[#allocation3 + $0x8a0] sm:$0xff] %vm763_vm0, %v13041_v0  ;;  %1379 = vst.msk [vmem:[#allocation3 + $0x8a8] sm:$0xff] %vm763_vm0, %v13041_v0 }
 0x150   : > { %1380 = vst.msk [vmem:[#allocation3 + $0x8b0] sm:$0xff] %vm763_vm0, %v13041_v0  ;;  %1381 = vst.msk [vmem:[#allocation3 + $0x8b8] sm:$0xff] %vm763_vm0, %v13041_v0 }
 0x151   : > { %1382 = vst.msk [vmem:[#allocation3 + $0x8c0] sm:$0xff] %vm763_vm0, %v13041_v0  ;;  %1383 = vst.msk [vmem:[#allocation3 + $0x8c8] sm:$0xff] %vm763_vm0, %v13041_v0 }
 0x152   : > { %1384 = vst.msk [vmem:[#allocation3 + $0x8d0] sm:$0xff] %vm763_vm0, %v13041_v0  ;;  %1385 = vst.msk [vmem:[#allocation3 + $0x8d8] sm:$0xff] %vm763_vm0, %v13041_v0 }
 0x153   : > { %1386 = vst.msk [vmem:[#allocation3 + $0x8e0] sm:$0xff] %vm763_vm0, %v13041_v0  ;;  %1387 = vst.msk [vmem:[#allocation3 + $0x8e8] sm:$0xff] %vm763_vm0, %v13041_v0 }
 0x154   : > { %1388 = vst.msk [vmem:[#allocation3 + $0x8f0] sm:$0xff] %vm763_vm0, %v13041_v0  ;;  %1389 = vst.msk [vmem:[#allocation3 + $0x8f8] sm:$0xff] %vm763_vm0, %v13041_v0 }
 0x155   : > { %1390 = vst.msk [vmem:[#allocation3 + $0x900] sm:$0xff] %vm763_vm0, %v13041_v0  ;;  %1391 = vst.msk [vmem:[#allocation3 + $0x908] sm:$0xff] %vm763_vm0, %v13041_v0 }
 0x156   : > { %1392 = vst.msk [vmem:[#allocation3 + $0x910] sm:$0xff] %vm763_vm0, %v13041_v0  ;;  %1393 = vst.msk [vmem:[#allocation3 + $0x918] sm:$0xff] %vm763_vm0, %v13041_v0 }
 0x157   : > { %1394 = vst.msk [vmem:[#allocation3 + $0x920] sm:$0xff] %vm763_vm0, %v13041_v0  ;;  %1395 = vst.msk [vmem:[#allocation3 + $0x928] sm:$0xff] %vm763_vm0, %v13041_v0 }
 0x158   : > { %1396 = vst.msk [vmem:[#allocation3 + $0x930] sm:$0xff] %vm763_vm0, %v13041_v0  ;;  %1397 = vst.msk [vmem:[#allocation3 + $0x938] sm:$0xff] %vm763_vm0, %v13041_v0 }
 0x159   : > { %1398 = vst.msk [vmem:[#allocation3 + $0x940] sm:$0xff] %vm763_vm0, %v13041_v0  ;;  %1399 = vst.msk [vmem:[#allocation3 + $0x948] sm:$0xff] %vm763_vm0, %v13041_v0 }
 0x15a   : > { %1400 = vst.msk [vmem:[#allocation3 + $0x950] sm:$0xff] %vm763_vm0, %v13041_v0  ;;  %1401 = vst.msk [vmem:[#allocation3 + $0x958] sm:$0xff] %vm763_vm0, %v13041_v0 }
 0x15b   : > { %1402 = vst.msk [vmem:[#allocation3 + $0x960] sm:$0xff] %vm763_vm0, %v13041_v0  ;;  %1403 = vst.msk [vmem:[#allocation3 + $0x968] sm:$0xff] %vm763_vm0, %v13041_v0 }
 0x15c   : > { %1404 = vst.msk [vmem:[#allocation3 + $0x970] sm:$0xff] %vm763_vm0, %v13041_v0  ;;  %1405 = vst.msk [vmem:[#allocation3 + $0x978] sm:$0xff] %vm763_vm0, %v13041_v0 }
 0x15d   : > { %1406 = vst.msk [vmem:[#allocation3 + $0x980] sm:$0xff] %vm763_vm0, %v13041_v0  ;;  %1407 = vst.msk [vmem:[#allocation3 + $0x988] sm:$0xff] %vm763_vm0, %v13041_v0 }
 0x15e   : > { %1408 = vst.msk [vmem:[#allocation3 + $0x990] sm:$0xff] %vm763_vm0, %v13041_v0  ;;  %1409 = vst.msk [vmem:[#allocation3 + $0x998] sm:$0xff] %vm763_vm0, %v13041_v0 }
 0x15f   : > { %1410 = vst.msk [vmem:[#allocation3 + $0x9a0] sm:$0xff] %vm763_vm0, %v13041_v0  ;;  %1411 = vst.msk [vmem:[#allocation3 + $0x9a8] sm:$0xff] %vm763_vm0, %v13041_v0 }
 0x160   : > { %1412 = vst.msk [vmem:[#allocation3 + $0x9b0] sm:$0xff] %vm763_vm0, %v13041_v0  ;;  %1413 = vst.msk [vmem:[#allocation3 + $0x9b8] sm:$0xff] %vm763_vm0, %v13041_v0 }
 0x161   : > { %1414 = vst.msk [vmem:[#allocation3 + $0x9c0] sm:$0xff] %vm763_vm0, %v13041_v0  ;;  %1415 = vst.msk [vmem:[#allocation3 + $0x9c8] sm:$0xff] %vm763_vm0, %v13041_v0 }
 0x162   : > { %1416 = vst.msk [vmem:[#allocation3 + $0x9d0] sm:$0xff] %vm763_vm0, %v13041_v0  ;;  %1417 = vst.msk [vmem:[#allocation3 + $0x9d8] sm:$0xff] %vm763_vm0, %v13041_v0 }
 0x163   : > { %1418 = vst.msk [vmem:[#allocation3 + $0x9e0] sm:$0xff] %vm763_vm0, %v13041_v0  ;;  %1419 = vst.msk [vmem:[#allocation3 + $0x9e8] sm:$0xff] %vm763_vm0, %v13041_v0 }
 0x164   : > { %1420 = vst.msk [vmem:[#allocation3 + $0x9f0] sm:$0xff] %vm763_vm0, %v13041_v0  ;;  %1421 = vst.msk [vmem:[#allocation3 + $0x9f8] sm:$0xff] %vm763_vm0, %v13041_v0 }
 0x165   : > { %1422 = vst.msk [vmem:[#allocation3 + $0xa00] sm:$0xff] %vm763_vm0, %v13041_v0  ;;  %1423 = vst.msk [vmem:[#allocation3 + $0xa08] sm:$0xff] %vm763_vm0, %v13041_v0 }
 0x166   : > { %1424 = vst.msk [vmem:[#allocation3 + $0xa10] sm:$0xff] %vm763_vm0, %v13041_v0  ;;  %1425 = vst.msk [vmem:[#allocation3 + $0xa18] sm:$0xff] %vm763_vm0, %v13041_v0 }
 0x167   : > { %1426 = vst.msk [vmem:[#allocation3 + $0xa20] sm:$0xff] %vm763_vm0, %v13041_v0  ;;  %1427 = vst.msk [vmem:[#allocation3 + $0xa28] sm:$0xff] %vm763_vm0, %v13041_v0 }
 0x168   : > { %1428 = vst.msk [vmem:[#allocation3 + $0xa30] sm:$0xff] %vm763_vm0, %v13041_v0  ;;  %1429 = vst.msk [vmem:[#allocation3 + $0xa38] sm:$0xff] %vm763_vm0, %v13041_v0 }
 0x169   : > { %1430 = vst.msk [vmem:[#allocation3 + $0xa40] sm:$0xff] %vm763_vm0, %v13041_v0  ;;  %1431 = vst.msk [vmem:[#allocation3 + $0xa48] sm:$0xff] %vm763_vm0, %v13041_v0 }
 0x16a   : > { %1432 = vst.msk [vmem:[#allocation3 + $0xa50] sm:$0xff] %vm763_vm0, %v13041_v0  ;;  %1433 = vst.msk [vmem:[#allocation3 + $0xa58] sm:$0xff] %vm763_vm0, %v13041_v0 }
 0x16b   : > { %1434 = vst.msk [vmem:[#allocation3 + $0xa60] sm:$0xff] %vm763_vm0, %v13041_v0  ;;  %1435 = vst.msk [vmem:[#allocation3 + $0xa68] sm:$0xff] %vm763_vm0, %v13041_v0 }
 0x16c   : > { %1436 = vst.msk [vmem:[#allocation3 + $0xa70] sm:$0xff] %vm763_vm0, %v13041_v0  ;;  %1437 = vst.msk [vmem:[#allocation3 + $0xa78] sm:$0xff] %vm763_vm0, %v13041_v0 }
 0x16d   : > { %1438 = vst.msk [vmem:[#allocation3 + $0xa80] sm:$0xff] %vm763_vm0, %v13041_v0  ;;  %1439 = vst.msk [vmem:[#allocation3 + $0xa88] sm:$0xff] %vm763_vm0, %v13041_v0 }
 0x16e   : > { %1440 = vst.msk [vmem:[#allocation5] sm:$0xff] %vm763_vm0, %v13041_v0  ;;  %1441 = vst.msk [vmem:[#allocation5 + $0x8] sm:$0xff] %vm763_vm0, %v13041_v0 }
 0x16f   : > { %1442 = vst.msk [vmem:[#allocation5 + $0x10] sm:$0xff] %vm763_vm0, %v13041_v0  ;;  %1443 = vst.msk [vmem:[#allocation5 + $0x18] sm:$0xff] %vm763_vm0, %v13041_v0 }
 0x170   : > { %1444 = vst.msk [vmem:[#allocation5 + $0x20] sm:$0xff] %vm763_vm0, %v13041_v0  ;;  %1445 = vst.msk [vmem:[#allocation5 + $0x28] sm:$0xff] %vm763_vm0, %v13041_v0 }
 0x171   : > { %1446 = vst.msk [vmem:[#allocation5 + $0x30] sm:$0xff] %vm763_vm0, %v13041_v0  ;;  %1447 = vst.msk [vmem:[#allocation5 + $0x38] sm:$0xff] %vm763_vm0, %v13041_v0 }
 0x172   : > { %1448 = vst.msk [vmem:[#allocation5 + $0x40] sm:$0xff] %vm763_vm0, %v13041_v0  ;;  %1449 = vst.msk [vmem:[#allocation5 + $0x48] sm:$0xff] %vm763_vm0, %v13041_v0 }
 0x173   : > { %1450 = vst.msk [vmem:[#allocation5 + $0x50] sm:$0xff] %vm763_vm0, %v13041_v0  ;;  %1451 = vst.msk [vmem:[#allocation5 + $0x58] sm:$0xff] %vm763_vm0, %v13041_v0 }
 0x174   : > { %1452 = vst.msk [vmem:[#allocation5 + $0x60] sm:$0xff] %vm763_vm0, %v13041_v0  ;;  %1453 = vst.msk [vmem:[#allocation5 + $0x68] sm:$0xff] %vm763_vm0, %v13041_v0 }
 0x175   : > { %1454 = vst.msk [vmem:[#allocation5 + $0x70] sm:$0xff] %vm763_vm0, %v13041_v0  ;;  %1455 = vst.msk [vmem:[#allocation5 + $0x78] sm:$0xff] %vm763_vm0, %v13041_v0 }
 0x176   : > { %1456 = vst.msk [vmem:[#allocation5 + $0x80] sm:$0xff] %vm763_vm0, %v13041_v0  ;;  %1457 = vst.msk [vmem:[#allocation5 + $0x88] sm:$0xff] %vm763_vm0, %v13041_v0 }
 0x177   : > { %1459 = vst.msk [vmem:[#allocation6] sm:$0xff] %vm1458_vm1, %v13041_v0  ;;  %1460 = vst.msk [vmem:[#allocation6 + $0x8] sm:$0xff] %vm1458_vm1, %v13041_v0 }
 0x178   : > { %1461 = vst.msk [vmem:[#allocation6 + $0x10] sm:$0xff] %vm1458_vm1, %v13041_v0  ;;  %1462 = vst.msk [vmem:[#allocation6 + $0x18] sm:$0xff] %vm1458_vm1, %v13041_v0 }
 0x179   : > { %1463 = vst.msk [vmem:[#allocation6 + $0x20] sm:$0xff] %vm1458_vm1, %v13041_v0  ;;  %1464 = vst.msk [vmem:[#allocation6 + $0x28] sm:$0xff] %vm1458_vm1, %v13041_v0 }
 0x17a   : > { %1465 = vst.msk [vmem:[#allocation6 + $0x30] sm:$0xff] %vm1458_vm1, %v13041_v0  ;;  %1466 = vst.msk [vmem:[#allocation6 + $0x38] sm:$0xff] %vm1458_vm1, %v13041_v0 }
 0x17b   : > { %1467 = vst.msk [vmem:[#allocation6 + $0x40] sm:$0xff] %vm1458_vm1, %v13041_v0  ;;  %1468 = vst.msk [vmem:[#allocation6 + $0x48] sm:$0xff] %vm1458_vm1, %v13041_v0 }
 0x17c   : > { %1469 = vst.msk [vmem:[#allocation6 + $0x50] sm:$0xff] %vm1458_vm1, %v13041_v0  ;;  %1470 = vst.msk [vmem:[#allocation6 + $0x58] sm:$0xff] %vm1458_vm1, %v13041_v0 }
 0x17d   : > { %1471 = vst.msk [vmem:[#allocation6 + $0x60] sm:$0xff] %vm1458_vm1, %v13041_v0  ;;  %1472 = vst.msk [vmem:[#allocation6 + $0x68] sm:$0xff] %vm1458_vm1, %v13041_v0 }
 0x17e   : > { %1473 = vst.msk [vmem:[#allocation6 + $0x70] sm:$0xff] %vm1458_vm1, %v13041_v0  ;;  %1474 = vst.msk [vmem:[#allocation6 + $0x78] sm:$0xff] %vm1458_vm1, %v13041_v0 }
 0x17f   : > { %1475 = vst.msk [vmem:[#allocation6 + $0x80] sm:$0xff] %vm1458_vm1, %v13041_v0  ;;  %1476 = vst.msk [vmem:[#allocation6 + $0x88] sm:$0xff] %vm1458_vm1, %v13041_v0 }
 0x180   : > { %1478 = vst.msk [vmem:[#allocation7 + $0x8] sm:$0xff] %vm1458_vm1, %v13041_v0  ;;  %1479 = vst.msk [vmem:[#allocation7 + $0x10] sm:$0xff] %vm1458_vm1, %v13041_v0 }
 0x181   : > { %1480 = vst.msk [vmem:[#allocation7 + $0x18] sm:$0xff] %vm1458_vm1, %v13041_v0  ;;  %1481 = vst.msk [vmem:[#allocation7 + $0x20] sm:$0xff] %vm1458_vm1, %v13041_v0 }
 0x182   : > { %1482 = vst.msk [vmem:[#allocation7 + $0x28] sm:$0xff] %vm1458_vm1, %v13041_v0  ;;  %1483 = vst.msk [vmem:[#allocation7 + $0x30] sm:$0xff] %vm1458_vm1, %v13041_v0 }
 0x183   : > { %1484 = vst.msk [vmem:[#allocation7 + $0x38] sm:$0xff] %vm1458_vm1, %v13041_v0  ;;  %1485 = vst.msk [vmem:[#allocation7 + $0x40] sm:$0xff] %vm1458_vm1, %v13041_v0 }
 0x184   : > { %1486 = vst.msk [vmem:[#allocation7 + $0x48] sm:$0xff] %vm1458_vm1, %v13041_v0  ;;  %1487 = vst.msk [vmem:[#allocation7 + $0x50] sm:$0xff] %vm1458_vm1, %v13041_v0 }
 0x185   : > { %1488 = vst.msk [vmem:[#allocation7 + $0x58] sm:$0xff] %vm1458_vm1, %v13041_v0  ;;  %1489 = vst.msk [vmem:[#allocation7 + $0x60] sm:$0xff] %vm1458_vm1, %v13041_v0 }
 0x186   : > { %1490 = vst.msk [vmem:[#allocation7 + $0x68] sm:$0xff] %vm1458_vm1, %v13041_v0  ;;  %1491 = vst.msk [vmem:[#allocation7 + $0x70] sm:$0xff] %vm1458_vm1, %v13041_v0 }
 0x187   : > { %1492 = vst.msk [vmem:[#allocation7 + $0x78] sm:$0xff] %vm1458_vm1, %v13041_v0  ;;  %1493 = vst.msk [vmem:[#allocation7 + $0x80] sm:$0xff] %vm1458_vm1, %v13041_v0 }
 0x188   : > { %1495 = vst.msk [vmem:[#allocation9] sm:$0xff] %vm1458_vm1, %v13041_v0  ;;  %1496 = vst.msk [vmem:[#allocation9 + $0x8] sm:$0xff] %vm1458_vm1, %v13041_v0 }
 0x189   : > { %1498 = vst.msk [vmem:[#allocation10] sm:$0xff] %vm1497_vm2, %v13041_v0  ;;  %1499 = vst.msk [vmem:[#allocation10 + $0x8] sm:$0xff] %vm1497_vm2, %v13041_v0 }
 0x18a   : > { %1500 = vst.msk [vmem:[#allocation11] sm:$0xff] %vm1497_vm2, %v13041_v0  ;;  %1501 = vst.msk [vmem:[#allocation11 + $0x8] sm:$0xff] %vm1497_vm2, %v13041_v0 }
 0x18b LB: >> { %vm1581_vm3 = vcmask 1041408   ;;  %s16923_s29 = sld [smem:[#allocation23_spill]]  ;;  %v13042_v3 = vmov 0.0   ;;  %s16898_s27 = smul.u32 104, %s13031_s26  ;;  %vm13043_vm4 = vmmov 0   ;;  %vm1559_vm5 = vcmask 31744   ;;  %s13031_s26 = sphi %s14711_s26, %s1507_s26  }
 0x18c   : >> { %11080 = vmatprep.subr.bf16.mxu0 %v13042_v3  ;;  %10960 = vmatprep.subr.bf16.mxu1 %v13042_v3  ;;  %s9672_s28 = sshll.u32 %s13031_s26, 1  ;;  %s16926_s3 = sld [smem:[#allocation25_spill]]  ;;  %vm2983_vm6 = vcmask 128000  }
 0x18d   : >> { %10962 = vmatprep.mubr.msk.bf16.mxu1 %vm13043_vm4, %v13042_v3  ;;  %11082 = vmatprep.mubr.msk.bf16.mxu0 %vm13043_vm4, %v13042_v3  ;;  %s1509_s1 = sadd.s32 1, %s9672_s28  ;;  %s16927_s28 = smul.u32 104, %s13031_s26 }
 0x18e   : >> { %s1510_s8 = smul.u32 52, %s1509_s1  ;;  %s1507_s26 = sadd.s32 1, %s13031_s26  }
 0x18f   : >> { %s15139_s1 = scalar_lea.vmem [#allocation2], %s16927_s28  ;;  %p1504_p11 = scmp.ge.s32.totalorder %s1507_s26, 25  }
 0x190   : >> { %s1512_s5 = sadd.s32 4294967244, %s1510_s8  ;;  %s16925_s8 = sld [smem:[#allocation24_spill]] }
 0x191   : >> { %s16924_s25 = smov %s16923_s29  ;;  %v9764_v1 = vld [vmem:[%s16923_s29 + $0x8] sm:$0x3]  ;;  %s14738_s29 = scalar_lea.vmem %s14705_s9, %s16898_s27 }
 0x192   : >> { %v9688_v2 = vld [vmem:[%s16924_s25 + $0x2] sm:$0x3]  ;;  %v14725_v4 = vsel %vm1581_vm3, %v9764_v1, 0  ;;  %v9787_v6 = vld [vmem:[%s16924_s25 + $0xa] sm:$0x3]  ;;  %v9751_v10 = vld [vmem:[%s14738_s29 + $0x35] sm:$0xff]  ;;  %s14821_s0 = scalar_lea.vmem %s14705_s9, %s1512_s5 }
 0x193   : >> { %v1583_v5 = vsel %vm1581_vm3, %v9688_v2, 0  ;;  %11081 = vmatpush3.bf16.msra.mxu0 %v14725_v4  ;;  %v1534_v7 = vld [vmem:[%s16924_s25] sm:$0x3]  ;;  %v9676_v9 = vld [vmem:[%s14738_s29 + $0x9] sm:$0xff]  ;;  %v2276_v14 = vsel %vm1581_vm3, %v9787_v6, 0  ;;  %v9677_v16 = vld [vmem:[%s14738_s29 + $0x11] sm:$0xff] }
 0x194   : >> { %10961 = vmatpush3.bf16.msra.mxu1 %v1583_v5  ;;  %11110 = vmatprep.subr.bf16.mxu0 %v13042_v3  ;;  %v9675_v8 = vld [vmem:[%s14738_s29 + $0x1] sm:$0xff]  ;;  %v1695_v15 = vsel %vm1581_vm3, %v1534_v7, 0  ;;  %v9678_v17 = vld [vmem:[%s14738_s29 + $0x19] sm:$0xff]  ;;  %v9754_v19 = vld [vmem:[%s14738_s29 + $0x4d] sm:$0xff]  ;;  %s15193_s27 = smov (%p1504_p11), 0  }
 0x195   : >> { %10990 = vmatprep.subr.bf16.mxu1 %v13042_v3  ;;  %v1550_v11 = vpack.c.bf16 %v9676_v9, %v9675_v8  ;;  %v9752_v12 = vld [vmem:[%s14738_s29 + $0x3d] sm:$0xff]  ;;  %v9753_v18 = vld [vmem:[%s14738_s29 + $0x45] sm:$0xff]  ;;  %v1551_v20 = vpack.c.bf16 %v9678_v17, %v9677_v16  ;;  %v9755_v24 = vld [vmem:[%s14738_s29 + $0x55] sm:$0xff] }
 0x196   : >> { %v2096_v13 = vpack.c.bf16 %v9752_v12, %v9751_v10  ;;  %v2097_v21 = vpack.c.bf16 %v9754_v19, %v9753_v18  ;;  %v9679_v22 = vld [vmem:[%s14738_s29 + $0x21] sm:$0xff]  ;;  %v9680_v23 = vld [vmem:[%s14738_s29 + $0x29] sm:$0xff]  ;;  %v9681_v28 = vld [vmem:[%s14738_s29 + $0x31] sm:$0xff] }
 0x197   : >> { %10963 = vmatmul.mubr.msk.bf16.vlgmr.msra.gmra.mrb[0].mxu1 %vm1559_vm5, %v1550_v11  ;;  %v9756_v25 = vld [vmem:[%s14738_s29 + $0x5d] sm:$0xff]  ;;  %v1552_v26 = vpack.c.bf16 %v9680_v23, %v9679_v22  ;;  %v9757_v30 = vld [vmem:[%s14738_s29 + $0x65] sm:$0xff]  ;;  %v9758_v31 = vld [vmem:[%s14738_s29 + $0x6d] sm:$0xff] }
 0x198   : >> { %11083 = vmatmul.mubr.msk.bf16.vlgmr.msra.gmra.mrb[0].mxu0 %vm1559_vm5, %v2096_v13  ;;  %10966 = vmatprep.mubr.msk.bf16.mxu1 %vm13043_vm4, %v13042_v3  ;;  %v2098_v27 = vpack.c.bf16 %v9756_v25, %v9755_v24  ;;  %v9682_v29 = vld [vmem:[%s14738_s29 + $0x39] sm:$0xff]  ;;  %v2099_v33 = vpack.c.bf16 %v9758_v31, %v9757_v30  ;;  %v9683_v34 = vld [vmem:[%s14738_s29 + $0x41] sm:$0xff]  ;;  %v9684_v35 = vld [vmem:[%s14738_s29 + $0x49] sm:$0xff] }
 0x199   : >> { %11111 = vmatpush3.bf16.msra.mxu0 %v2276_v14  ;;  %11086 = vmatprep.mubr.msk.bf16.mxu0 %vm13043_vm4, %v13042_v3  ;;  %v1553_v32 = vpack.c.bf16 %v9682_v29, %v9681_v28  ;;  %v9774_v36 = vld [vmem:[%s14738_s29 + $0x36] sm:$0xff]  ;;  %v9775_v37 = vld [vmem:[%s14738_s29 + $0x3e] sm:$0xff]  ;;  %v1554_v38 = vpack.c.bf16 %v9684_v35, %v9683_v34  ;;  %v9810_v39 = vld [vmem:[%s16924_s25 + $0xc] sm:$0x3] }
 0x19a   : >> { %10991 = vmatpush3.bf16.msra.mxu1 %v1695_v15  ;;  %11140 = vmatprep.subr.bf16.mxu0 %v13042_v3  ;;  %v2245_v40 = vpack.c.bf16 %v9775_v37, %v9774_v36  ;;  %v2425_v41 = vsel %vm1581_vm3, %v9810_v39, 0  ;;  %v9685_v42 = vld [vmem:[%s14738_s29 + $0x51] sm:$0xff]  ;;  %v9686_v43 = vld [vmem:[%s14738_s29 + $0x59] sm:$0xff]  ;;  %v9776_v44 = vld [vmem:[%s14738_s29 + $0x46] sm:$0xff] }
 0x19b   : >> { %11020 = vmatprep.subr.bf16.mxu1 %v13042_v3  ;;  %v9777_v45 = vld [vmem:[%s14738_s29 + $0x4e] sm:$0xff]  ;;  %v1555_v46 = vpack.c.bf16 %v9686_v43, %v9685_v42  ;;  %v9687_v48 = vld [vmem:[%s14738_s29 + $0x61] sm:$0x3f]  ;;  %v9778_v49 = vld [vmem:[%s14738_s29 + $0x56] sm:$0xff] }
 0x19c   : >> { %v2246_v47 = vpack.c.bf16 %v9777_v45, %v9776_v44  ;;  %v9779_v50 = vld [vmem:[%s14738_s29 + $0x5e] sm:$0xff]  ;;  %v1556_v51 = vpack.c.bf16 %v9687_v48, %v9687_v48  ;;  %v1515_v54 = vld [vmem:[%s14821_s0 + $0x8] sm:$0xff]  ;;  %v1516_v61 = vld [vmem:[%s14821_s0 + $0x10] sm:$0xff] }
 0x19d   : >> { %v2247_v52 = vpack.c.bf16 %v9779_v50, %v9778_v49  ;;  %v1514_v53 = vld [vmem:[%s14821_s0] sm:$0xff]  ;;  %v9781_v56 = vld [vmem:[%s14738_s29 + $0x6e] sm:$0xff]  ;;  %v1517_v62 = vld [vmem:[%s14821_s0 + $0x18] sm:$0xff] }
 0x19e   : >> { %v9780_v55 = vld [vmem:[%s14738_s29 + $0x66] sm:$0xff]  ;;  %v1527_v57 = vpack.c.bf16 %v1515_v54, %v1514_v53  ;;  %v9718_v58 = vld [vmem:[%s16924_s25 + $0x4] sm:$0x3]  ;;  %v9782_v63 = vld [vmem:[%s14738_s29 + $0x76] sm:$0xff]  ;;  %v1528_v2 = vpack.c.bf16 %v1517_v62, %v1516_v61 }
 0x19f   : >> { %10967 = vmatmul.mubr.msk.bf16.gmra.mrb[4].mxu1 %vm1559_vm5, %v1551_v20  ;;  %v2248_v59 = vpack.c.bf16 %v9781_v56, %v9780_v55  ;;  %v1831_v60 = vsel %vm1581_vm3, %v9718_v58, 0  ;;  %v9783_v1 = vld [vmem:[%s14738_s29 + $0x7e] sm:$0xff]  ;;  %v1519_v7 = vld [vmem:[%s14821_s0 + $0x28] sm:$0xff]  ;;  %v1520_v12 = vld [vmem:[%s14821_s0 + $0x30] sm:$0xff]  ;;  %v13044_v56 = vmov 0  }
 0x1a0   : >> { %11087 = vmatmul.mubr.msk.bf16.gmra.mrb[4].mxu0 %vm1559_vm5, %v2097_v21  ;;  %10970 = vmatprep.mubr.msk.bf16.mxu1 %vm13043_vm4, %v13042_v3  ;;  %v2249_v5 = vpack.c.bf16 %v9783_v1, %v9782_v63  ;;  %v1518_v6 = vld [vmem:[%s14821_s0 + $0x20] sm:$0xff]  ;;  %v9785_v9 = vld [vmem:[%s14738_s29 + $0x8e] sm:$0xff]  ;;  %v1521_v13 = vld [vmem:[%s14821_s0 + $0x38] sm:$0xff] }
 0x1a1   : >> { %11090 = vmatprep.mubr.msk.bf16.mxu0 %vm13043_vm4, %v13042_v3  ;;  %v9784_v8 = vld [vmem:[%s14738_s29 + $0x86] sm:$0xff]  ;;  %v1529_v10 = vpack.c.bf16 %v1519_v7, %v1518_v6  ;;  %v9786_v14 = vld [vmem:[%s14738_s29 + $0x96] sm:$0x3f]  ;;  %v1530_v15 = vpack.c.bf16 %v1521_v13, %v1520_v12  ;;  %v9833_v22 = vld [vmem:[%s16924_s25 + $0xe] sm:$0x3]  ;;  %12853 = vset.pattern.permute.xlu0 %v13044_v56 }
 0x1a2   : >> { %v2250_v11 = vpack.c.bf16 %v9785_v9, %v9784_v8  ;;  %v2251_v16 = vpack.c.bf16 %v9786_v14, %v9786_v14  ;;  %v1522_v17 = vld [vmem:[%s14821_s0 + $0x40] sm:$0xff]  ;;  %v1523_v18 = vld [vmem:[%s14821_s0 + $0x48] sm:$0xff]  ;;  %v9798_v20 = vld [vmem:[%s14738_s29 + $0x70] sm:$0xff]  ;;  %v2574_v24 = vsel %vm1581_vm3, %v9833_v22, 0  ;;  %12854 = vset.pattern.permute.xlu1 %v13044_v56 }
 0x1a3   : >> { %v9797_v19 = vld [vmem:[%s14738_s29 + $0x68] sm:$0xff]  ;;  %v1531_v21 = vpack.c.bf16 %v1523_v18, %v1522_v17  ;;  %v1524_v25 = vld [vmem:[%s14821_s0 + $0x50] sm:$0xff]  ;;  %v9800_v28 = vld [vmem:[%s14738_s29 + $0x80] sm:$0xff] }
 0x1a4   : >> { %v2394_v23 = vpack.c.bf16 %v9798_v20, %v9797_v19  ;;  %v1526_v31 = vld [vmem:[%s14821_s0 + $0x60] sm:$0x3f]  ;;  %v9706_v37 = vld [vmem:[%s14738_s29 + $0xa] sm:$0xff]  ;;  %v9707_v44 = vld [vmem:[%s14738_s29 + $0x12] sm:$0xff] }
 0x1a5   : >> { %v1533_v34 = vpack.c.bf16 %v1526_v31, %v1526_v31  ;;  %v9705_v36 = vld [vmem:[%s14738_s29 + $0x2] sm:$0xff]  ;;  %v9708_v45 = vld [vmem:[%s14738_s29 + $0x1a] sm:$0xff]  ;;  %v2881_v53 = vld [vmem:[%s16885_s22 + $0x10] sm:$0xff] }
 0x1a6   : >> { %v9804_v39 = vld [vmem:[%s14738_s29 + $0xa0] sm:$0xff]  ;;  %v1801_v48 = vpack.c.bf16 %v9708_v45, %v9707_v44  ;;  %v9807_v54 = vld [vmem:[%s14738_s29 + $0xb8] sm:$0xff]  ;;  %v2880_v58 = vld [vmem:[%s16885_s22 + $0x8] sm:$0xff]  ;;  %2904 = vperm.xlu1 %12854, %v2881_v53  }
 0x1a7   : >> { %10971 = vmatmul.mubr.msk.bf16.gmra.mrb[8].mxu1 %vm1559_vm5, %v1552_v26  ;;  %v1525_v26 = vld [vmem:[%s14821_s0 + $0x58] sm:$0xff]  ;;  %v9709_v50 = vld [vmem:[%s14738_s29 + $0x22] sm:$0xff]  ;;  %v2885_v6 = vld [vmem:[%s16885_s22 + $0x30] sm:$0xff] }
 0x1a8   : >> { %11091 = vmatmul.mubr.msk.bf16.gmra.mrb[8].mxu0 %vm1559_vm5, %v2098_v27  ;;  %10974 = vmatprep.mubr.msk.bf16.mxu1 %vm13043_vm4, %v13042_v3  ;;  %v9799_v27 = vld [vmem:[%s14738_s29 + $0x78] sm:$0xff]  ;;  %v1532_v29 = vpack.c.bf16 %v1525_v26, %v1524_v25  ;;  %v9808_v55 = vld [vmem:[%s14738_s29 + $0xc0] sm:$0xff]  ;;  %v2884_v1 = vld [vmem:[%s16885_s22 + $0x28] sm:$0xff] }
 0x1a9   : >> { %11094 = vmatprep.mubr.msk.bf16.mxu0 %vm13043_vm4, %v13042_v3  ;;  %v2395_v30 = vpack.c.bf16 %v9800_v28, %v9799_v27  ;;  %v2883_v61 = vld [vmem:[%s16885_s22 + $0x20] sm:$0xff]  ;;  %v9711_v62 = vld [vmem:[%s14738_s29 + $0x32] sm:$0xff]  ;;  %v2888_v12 = vld [vmem:[%s16885_s22 + $0x48] sm:$0xff] }
 0x1aa   : >> { %v9712_v63 = vld [vmem:[%s14738_s29 + $0x3a] sm:$0xff]  ;;  %v9820_v13 = vld [vmem:[%s14738_s29 + $0x69] sm:$0xff]  ;;  %v9821_v14 = vld [vmem:[%s14738_s29 + $0x71] sm:$0xff] }
 0x1ab   : >> { %v2886_v8 = vld [vmem:[%s16885_s22 + $0x38] sm:$0xff]  ;;  %v2887_v9 = vld [vmem:[%s16885_s22 + $0x40] sm:$0xff]  ;;  %v2889_v17 = vld [vmem:[%s16885_s22 + $0x50] sm:$0xff]  ;;  %v2543_v18 = vpack.c.bf16 %v9821_v14, %v9820_v13 }
 0x1ac   : >> { %v2890_v19 = vld [vmem:[%s16885_s22 + $0x58] sm:$0xff]  ;;  %v9823_v25 = vld [vmem:[%s14738_s29 + $0x81] sm:$0xff] }
 0x1ad   : >> { %v9715_v22 = vld [vmem:[%s14738_s29 + $0x52] sm:$0xff]  ;;  %v9717_v28 = vld [vmem:[%s14738_s29 + $0x62] sm:$0x3f]  ;;  %v9849_v13 = vld [vmem:[%s14738_s29 + $0x9a] sm:$0xff] }
 0x1ae   : >> { %v1806_v31 = vpack.c.bf16 %v9717_v28, %v9717_v28  ;;  %v9732_v45 = vld [vmem:[%s14738_s29 + $0x54] sm:$0xff]  ;;  %v9737_v56 = vld [vmem:[%s14738_s29 + $0x7c] sm:$0xff]  ;;  %v9855_v28 = vld [vmem:[%s14738_s29 + $0xca] sm:$0x3f] }
 0x1af   : >> { %10975 = vmatmul.mubr.msk.bf16.gmra.mrb[12].mxu1 %vm1559_vm5, %v1553_v32  ;;  %v9801_v32 = vld [vmem:[%s14738_s29 + $0x88] sm:$0xff] }
 0x1b0   : >> { %11095 = vmatmul.mubr.msk.bf16.gmra.mrb[12].mxu0 %vm1559_vm5, %v2099_v33  ;;  %10978 = vmatprep.mubr.msk.bf16.mxu1 %vm13043_vm4, %v13042_v3  ;;  %v9802_v33 = vld [vmem:[%s14738_s29 + $0x90] sm:$0xff]  ;;  %v9850_v14 = vld [vmem:[%s14738_s29 + $0xa2] sm:$0xff] }
 0x1b1   : >> { %11112 = vmatprep.mubr.msk.bf16.mxu0 %vm13043_vm4, %v13042_v3  ;;  %v2396_v35 = vpack.c.bf16 %v9802_v33, %v9801_v32  ;;  %v9728_v33 = vld [vmem:[%s14738_s29 + $0x34] sm:$0xff] }
 0x1b7   : >> { %10979 = vmatmul.mubr.msk.bf16.gmra.mrb[16].mxu1 %vm1559_vm5, %v1554_v38  ;;  %v9803_v38 = vld [vmem:[%s14738_s29 + $0x98] sm:$0xff] }
 0x1b8   : >> { %11113 = vmatmul.mubr.msk.bf16.vlgmr.msra.gmra.mrb[0].mxu0 %vm1559_vm5, %v2245_v40  ;;  %10982 = vmatprep.mubr.msk.bf16.mxu1 %vm13043_vm4, %v13042_v3  ;;  %v1800_v40 = vpack.c.bf16 %v9706_v37, %v9705_v36  ;;  %v2397_v42 = vpack.c.bf16 %v9804_v39, %v9803_v38  ;;  %v9827_v36 = vld [vmem:[%s14738_s29 + $0xa1] sm:$0xff] }
 0x1b9   : >> { %11141 = vmatpush3.bf16.msra.mxu0 %v2425_v41  ;;  %11116 = vmatprep.mubr.msk.bf16.mxu0 %vm13043_vm4, %v13042_v3  ;;  %v9741_v41 = vld [vmem:[%s16924_s25 + $0x6] sm:$0x3] }
 0x1ba   : >> { %11170 = vmatprep.subr.bf16.mxu0 %v13042_v3  ;;  %v1979_v43 = vsel %vm1581_vm3, %v9741_v41, 0  ;;  %v9730_v39 = vld [vmem:[%s14738_s29 + $0x44] sm:$0xff] }
 0x1bb   : >> { %v9828_v41 = vld [vmem:[%s14738_s29 + $0xa9] sm:$0xff] }
 0x1bf   : >> { %10983 = vmatmul.mubr.msk.bf16.gmra.mrb[20].mxu1 %vm1559_vm5, %v1555_v46  ;;  %v9805_v46 = vld [vmem:[%s14738_s29 + $0xa8] sm:$0xff] }
 0x1c0   : >> { %11117 = vmatmul.mubr.msk.bf16.gmra.mrb[4].mxu0 %vm1559_vm5, %v2246_v47  ;;  %10986 = vmatprep.mubr.msk.bf16.mxu1 %vm13043_vm4, %v13042_v3  ;;  %v9806_v47 = vld [vmem:[%s14738_s29 + $0xb0] sm:$0xff] }
 0x1c1   : >> { %11120 = vmatprep.mubr.msk.bf16.mxu0 %vm13043_vm4, %v13042_v3  ;;  %v2398_v49 = vpack.c.bf16 %v9806_v47, %v9805_v46  ;;  %v9733_v46 = vld [vmem:[%s14738_s29 + $0x5c] sm:$0xff] }
 0x1c2   : >> { %v9831_v47 = vld [vmem:[%s14738_s29 + $0xc1] sm:$0xff] }
 0x1c7   : >> { %10987 = vmatmul.mubr.msk.bf16.gmra.mrb[24].mxu1 %vm1559_vm5, %v1556_v51  ;;  %v9710_v51 = vld [vmem:[%s14738_s29 + $0x2a] sm:$0xff] }
 0x1c8   : >> { %11121 = vmatmul.mubr.msk.bf16.gmra.mrb[8].mxu0 %vm1559_vm5, %v2247_v52  ;;  %10992 = vmatprep.mubr.msk.bf16.mxu1 %vm13043_vm4, %v13042_v3  ;;  %v2879_v52 = vld [vmem:[%s16885_s22] sm:$0xff] }
 0x1c9   : >> { %11124 = vmatprep.mubr.msk.bf16.mxu0 %vm13043_vm4, %v13042_v3  ;;  %2894 = vperm.xlu0 %12853, %v2879_v52   ;;  %v9832_v52 = vld [vmem:[%s14738_s29 + $0xc9] sm:$0x3f] }
 0x1cd   : >> { %2899 = vperm.xlu0 %12853, %v2880_v58   ;;  %v9844_v58 = vld [vmem:[%s14738_s29 + $0x72] sm:$0xff] }
 0x1cf   : >> { %10993 = vmatmul.mubr.msk.bf16.vlgmr.msra.gmra.mrb[0].mxu1 %vm1559_vm5, %v1527_v57  ;;  %v1802_v57 = vpack.c.bf16 %v9710_v51, %v9709_v50  ;;  %v9734_v50 = vld [vmem:[%s14738_s29 + $0x64] sm:$0xff]  ;;  %v9735_v51 = vld [vmem:[%s14738_s29 + $0x6c] sm:$0xff] }
 0x1d0   : >> { %11125 = vmatmul.mubr.msk.bf16.gmra.mrb[12].mxu0 %vm1559_vm5, %v2248_v59  ;;  %10996 = vmatprep.mubr.msk.bf16.mxu1 %vm13043_vm4, %v13042_v3  ;;  %v2399_v59 = vpack.c.bf16 %v9808_v55, %v9807_v54  ;;  %v1951_v53 = vpack.c.bf16 %v9735_v51, %v9734_v50  ;;  %v2549_v54 = vpack.c.bf16 %v9832_v52, %v9832_v52  ;;  %v9736_v55 = vld [vmem:[%s14738_s29 + $0x74] sm:$0xff]  ;;  %v15131_v50 = vld [vmem:[%s16926_s3] ss:$0 sm:$0xff] }
 0x1d1   : >> { %11128 = vmatprep.mubr.msk.bf16.mxu0 %vm13043_vm4, %v13042_v3  ;;  %11021 = vmatpush3.bf16.msra.mxu1 %v1831_v60  ;;  %v2882_v60 = vld [vmem:[%s16885_s22 + $0x18] sm:$0xff] }
 0x1d2   : >> { %11050 = vmatprep.subr.bf16.mxu1 %v13042_v3  ;;  %2909 = vperm.xlu1 %12854, %v2882_v60  }
 0x1d3   : >> { %2914 = vperm.xlu0 %12853, %v2883_v61   ;;  %v9738_v61 = vld [vmem:[%s14738_s29 + $0x84] sm:$0xff] }
 0x1d6   : >> { %2919 = vperm.xlu1 %12854, %v2884_v1   ;;  %v9846_v1 = vld [vmem:[%s14738_s29 + $0x82] sm:$0xff] }
 0x1d7   : >> { %10997 = vmatmul.mubr.msk.bf16.gmra.mrb[4].mxu1 %vm1559_vm5, %v1528_v2  ;;  %v9809_v2 = vld [vmem:[%s14738_s29 + $0xc8] sm:$0x3f]  ;;  %2924 = vperm.xlu0 %12853, %v2885_v6   ;;  %v9740_v6 = vld [vmem:[%s14738_s29 + $0x94] sm:$0x3f] }
 0x1d8   : >> { %11129 = vmatmul.mubr.msk.bf16.gmra.mrb[16].mxu0 %vm1559_vm5, %v2249_v5  ;;  %11000 = vmatprep.mubr.msk.bf16.mxu1 %vm13043_vm4, %v13042_v3  ;;  %v1803_v5 = vpack.c.bf16 %v9712_v63, %v9711_v62  ;;  %v2400_v7 = vpack.c.bf16 %v9809_v2, %v9809_v2  ;;  %v9739_v62 = vld [vmem:[%s14738_s29 + $0x8c] sm:$0xff]  ;;  %v9845_v63 = vld [vmem:[%s14738_s29 + $0x7a] sm:$0xff] }
 0x1d9   : >> { %11132 = vmatprep.mubr.msk.bf16.mxu0 %vm13043_vm4, %v13042_v3  ;;  %v1953_v2 = vpack.c.bf16 %v9739_v62, %v9738_v61 }
 0x1da   : >> { %2929 = vperm.xlu1 %12854, %v2886_v8   ;;  %v9848_v8 = vld [vmem:[%s14738_s29 + $0x92] sm:$0xff] }
 0x1db   : >> { %2934 = vperm.xlu0 %12853, %v2887_v9   ;;  %v1954_v9 = vpack.c.bf16 %v9740_v6, %v9740_v6 }
 0x1de   : >> { %2939 = vperm.xlu1 %12854, %v2888_v12   ;;  %v9760_v12 = vld [vmem:[%s14738_s29 + $0x7d] sm:$0xff] }
 0x1df   : >> { %11001 = vmatmul.mubr.msk.bf16.gmra.mrb[8].mxu1 %vm1559_vm5, %v1529_v10  ;;  %v9713_v10 = vld [vmem:[%s14738_s29 + $0x42] sm:$0xff]  ;;  %2944 = vperm.xlu0 %12853, %v2889_v17  }
 0x1e0   : >> { %11133 = vmatmul.mubr.msk.bf16.gmra.mrb[20].mxu0 %vm1559_vm5, %v2250_v11  ;;  %11004 = vmatprep.mubr.msk.bf16.mxu1 %vm13043_vm4, %v13042_v3  ;;  %v9714_v11 = vld [vmem:[%s14738_s29 + $0x4a] sm:$0xff] }
 0x1e1   : >> { %11136 = vmatprep.mubr.msk.bf16.mxu0 %vm13043_vm4, %v13042_v3  ;;  %v9761_v17 = vld [vmem:[%s14738_s29 + $0x85] sm:$0xff] }
 0x1e2   : >> { %2949 = vperm.xlu1 %12854, %v2890_v19   ;;  %v9851_v19 = vld [vmem:[%s14738_s29 + $0xaa] sm:$0xff] }
 0x1e7   : >> { %11005 = vmatmul.mubr.msk.bf16.gmra.mrb[12].mxu1 %vm1559_vm5, %v1530_v15  ;;  %v1804_v15 = vpack.c.bf16 %v9714_v11, %v9713_v10  ;;  %v9759_v11 = vld [vmem:[%s14738_s29 + $0x75] sm:$0xff] }
 0x1e8   : >> { %11137 = vmatmul.mubr.msk.bf16.gmra.mrb[24].mxu0 %vm1559_vm5, %v2251_v16  ;;  %11008 = vmatprep.mubr.msk.bf16.mxu1 %vm13043_vm4, %v13042_v3  ;;  %v9856_v16 = vld [vmem:[%s16924_s25 + $0x10] sm:$0x3] }
 0x1e9   : >> { %11142 = vmatprep.mubr.msk.bf16.mxu0 %vm13043_vm4, %v13042_v3  ;;  %v2723_v20 = vsel %vm1581_vm3, %v9856_v16, 0  ;;  %v2695_v16 = vpack.c.bf16 %v9850_v14, %v9849_v13 }
 0x1ef   : >> { %11009 = vmatmul.mubr.msk.bf16.gmra.mrb[16].mxu1 %vm1559_vm5, %v1531_v21  ;;  %v2891_v21 = vld [vmem:[%s16885_s22 + $0x60] sm:$0x3f] }
 0x1f0   : >> { %11143 = vmatmul.mubr.msk.bf16.vlgmr.msra.gmra.mrb[0].mxu0 %vm1559_vm5, %v2394_v23  ;;  %11012 = vmatprep.mubr.msk.bf16.mxu1 %vm13043_vm4, %v13042_v3  ;;  %v9716_v23 = vld [vmem:[%s14738_s29 + $0x5a] sm:$0xff] }
 0x1f1   : >> { %11171 = vmatpush3.bf16.msra.mxu0 %v2574_v24  ;;  %11146 = vmatprep.mubr.msk.bf16.mxu0 %vm13043_vm4, %v13042_v3  ;;  %v9822_v24 = vld [vmem:[%s14738_s29 + $0x79] sm:$0xff]  ;;  %v1805_v26 = vpack.c.bf16 %v9716_v23, %v9715_v22 }
 0x1f2   : >> { %11200 = vmatprep.subr.bf16.mxu0 %v13042_v3  ;;  %2954 = vperm.xlu0 %12853, %v2891_v21   ;;  %v2544_v27 = vpack.c.bf16 %v9823_v25, %v9822_v24  ;;  %v9763_v23 = vld [vmem:[%s14738_s29 + $0x95] sm:$0x3f]  ;;  %v9854_v25 = vld [vmem:[%s14738_s29 + $0xc2] sm:$0xff] }
 0x1f3   : >> { %v9853_v24 = vld [vmem:[%s14738_s29 + $0xba] sm:$0xff] }
 0x1f7   : >> { %11013 = vmatmul.mubr.msk.bf16.gmra.mrb[20].mxu1 %vm1559_vm5, %v1532_v29  ;;  %v9824_v29 = vld [vmem:[%s14738_s29 + $0x89] sm:$0xff] }
 0x1f8   : >> { %11147 = vmatmul.mubr.msk.bf16.gmra.mrb[4].mxu0 %vm1559_vm5, %v2395_v30  ;;  %11016 = vmatprep.mubr.msk.bf16.mxu1 %vm13043_vm4, %v13042_v3  ;;  %v9825_v30 = vld [vmem:[%s14738_s29 + $0x91] sm:$0xff] }
 0x1f9   : >> { %11150 = vmatprep.mubr.msk.bf16.mxu0 %vm13043_vm4, %v13042_v3  ;;  %v2545_v32 = vpack.c.bf16 %v9825_v30, %v9824_v29  ;;  %v2698_v29 = vpack.c.bf16 %v9855_v28, %v9855_v28 }
 0x1ff   : >> { %11017 = vmatmul.mubr.msk.bf16.gmra.mrb[24].mxu1 %vm1559_vm5, %v1533_v34  ;;  %v9729_v34 = vld [vmem:[%s14738_s29 + $0x3c] sm:$0xff] }
 0x200   : >> { %11151 = vmatmul.mubr.msk.bf16.gmra.mrb[8].mxu0 %vm1559_vm5, %v2396_v35  ;;  %11022 = vmatprep.mubr.msk.bf16.mxu1 %vm13043_vm4, %v13042_v3  ;;  %v9826_v35 = vld [vmem:[%s14738_s29 + $0x99] sm:$0xff]  ;;  %v1948_v37 = vpack.c.bf16 %v9729_v34, %v9728_v33 }
 0x201   : >> { %11154 = vmatprep.mubr.msk.bf16.mxu0 %vm13043_vm4, %v13042_v3  ;;  %v2546_v38 = vpack.c.bf16 %v9827_v36, %v9826_v35 }
 0x207   : >> { %11023 = vmatmul.mubr.msk.bf16.vlgmr.msra.gmra.mrb[0].mxu1 %vm1559_vm5, %v1800_v40  ;;  %v9731_v40 = vld [vmem:[%s14738_s29 + $0x4c] sm:$0xff] }
 0x208   : >> { %11155 = vmatmul.mubr.msk.bf16.gmra.mrb[12].mxu0 %vm1559_vm5, %v2397_v42  ;;  %11026 = vmatprep.mubr.msk.bf16.mxu1 %vm13043_vm4, %v13042_v3  ;;  %v9829_v42 = vld [vmem:[%s14738_s29 + $0xb1] sm:$0xff] }
 0x209   : >> { %11158 = vmatprep.mubr.msk.bf16.mxu0 %vm13043_vm4, %v13042_v3  ;;  %11051 = vmatpush3.bf16.msra.mxu1 %v1979_v43  ;;  %v1949_v43 = vpack.c.bf16 %v9731_v40, %v9730_v39  ;;  %v2547_v44 = vpack.c.bf16 %v9829_v42, %v9828_v41 }
 0x20a   : >> { %12034 = vmatprep.subr.bf16.mxu1 %v13042_v3 }
 0x20f   : >> { %11027 = vmatmul.mubr.msk.bf16.gmra.mrb[4].mxu1 %vm1559_vm5, %v1801_v48  ;;  %v1950_v48 = vpack.c.bf16 %v9733_v46, %v9732_v45  ;;  %v15126_v46 = vld [vmem:[%s16925_s8] ss:$0 sm:$0xff] }
 0x210   : >> { %11159 = vmatmul.mubr.msk.bf16.gmra.mrb[16].mxu0 %vm1559_vm5, %v2398_v49  ;;  %11030 = vmatprep.mubr.msk.bf16.mxu1 %vm13043_vm4, %v13042_v3 }
 0x211   : >> { %11162 = vmatprep.mubr.msk.bf16.mxu0 %vm13043_vm4, %v13042_v3 }
 0x217   : >> { %11031 = vmatmul.mubr.msk.bf16.gmra.mrb[8].mxu1 %vm1559_vm5, %v1802_v57  ;;  %v9843_v57 = vld [vmem:[%s14738_s29 + $0x6a] sm:$0xff] }
 0x218   : >> { %11163 = vmatmul.mubr.msk.bf16.gmra.mrb[20].mxu0 %vm1559_vm5, %v2399_v59  ;;  %11034 = vmatprep.mubr.msk.bf16.mxu1 %vm13043_vm4, %v13042_v3  ;;  %v1952_v59 = vpack.c.bf16 %v9737_v56, %v9736_v55  ;;  %v2692_v60 = vpack.c.bf16 %v9844_v58, %v9843_v57 }
 0x219   : >> { %11166 = vmatprep.mubr.msk.bf16.mxu0 %vm13043_vm4, %v13042_v3 }
 0x21f   : >> { %11035 = vmatmul.mubr.msk.bf16.gmra.mrb[12].mxu1 %vm1559_vm5, %v1803_v5  ;;  %v2693_v5 = vpack.c.bf16 %v9846_v1, %v9845_v63 }
 0x220   : >> { %11167 = vmatmul.mubr.msk.bf16.gmra.mrb[24].mxu0 %vm1559_vm5, %v2400_v7  ;;  %11038 = vmatprep.mubr.msk.bf16.mxu1 %vm13043_vm4, %v13042_v3  ;;  %v9847_v7 = vld [vmem:[%s14738_s29 + $0x8a] sm:$0xff] }
 0x221   : >> { %11172 = vmatprep.mubr.msk.bf16.mxu0 %vm13043_vm4, %v13042_v3  ;;  %v2694_v10 = vpack.c.bf16 %v9848_v8, %v9847_v7 }
 0x227   : >> { %11039 = vmatmul.mubr.msk.bf16.gmra.mrb[16].mxu1 %vm1559_vm5, %v1804_v15  ;;  %v2100_v15 = vpack.c.bf16 %v9760_v12, %v9759_v11 }
 0x228   : >> { %11173 = vmatmul.mubr.msk.bf16.vlgmr.msra.gmra.mrb[0].mxu0 %vm1559_vm5, %v2543_v18  ;;  %11042 = vmatprep.mubr.msk.bf16.mxu1 %vm13043_vm4, %v13042_v3  ;;  %v9762_v18 = vld [vmem:[%s14738_s29 + $0x8d] sm:$0xff] }
 0x229   : >> { %11201 = vmatpush3.bf16.msra.mxu0 %v2723_v20  ;;  %11176 = vmatprep.mubr.msk.bf16.mxu0 %vm13043_vm4, %v13042_v3  ;;  %v9852_v20 = vld [vmem:[%s14738_s29 + $0xb2] sm:$0xff]  ;;  %v2101_v21 = vpack.c.bf16 %v9762_v18, %v9761_v17 }
 0x22a   : >> { %v2696_v22 = vpack.c.bf16 %v9852_v20, %v9851_v19 }
 0x22f   : >> { %11043 = vmatmul.mubr.msk.bf16.gmra.mrb[20].mxu1 %vm1559_vm5, %v1805_v26  ;;  %v2102_v26 = vpack.c.bf16 %v9763_v23, %v9763_v23 }
 0x230   : >> { %11177 = vmatmul.mubr.msk.bf16.gmra.mrb[4].mxu0 %vm1559_vm5, %v2544_v27  ;;  %11046 = vmatprep.mubr.msk.bf16.mxu1 %vm13043_vm4, %v13042_v3  ;;  %v2697_v27 = vpack.c.bf16 %v9854_v25, %v9853_v24 }
 0x231   : >> { %11180 = vmatprep.mubr.msk.bf16.mxu0 %vm13043_vm4, %v13042_v3 }
 0x237   : >> { %11047 = vmatmul.mubr.msk.bf16.gmra.mrb[24].mxu1 %vm1559_vm5, %v1806_v31 }
 0x238   : >> { %11181 = vmatmul.mubr.msk.bf16.gmra.mrb[8].mxu0 %vm1559_vm5, %v2545_v32  ;;  %11052 = vmatprep.mubr.msk.bf16.mxu1 %vm13043_vm4, %v13042_v3 }
 0x239   : >> { %11184 = vmatprep.mubr.msk.bf16.mxu0 %vm13043_vm4, %v13042_v3 }
 0x23f   : >> { %11053 = vmatmul.mubr.msk.bf16.vlgmr.msra.gmra.mrb[0].mxu1 %vm1559_vm5, %v1948_v37 }
 0x240   : >> { %11185 = vmatmul.mubr.msk.bf16.gmra.mrb[12].mxu0 %vm1559_vm5, %v2546_v38  ;;  %11056 = vmatprep.mubr.msk.bf16.mxu1 %vm13043_vm4, %v13042_v3 }
 0x241   : >> { %11188 = vmatprep.mubr.msk.bf16.mxu0 %vm13043_vm4, %v13042_v3  ;;  %12035 = vmatpush3.bf16.msra.mxu1 %v14725_v4  ;;  %v9830_v4 = vld [vmem:[%s14738_s29 + $0xb9] sm:$0xff] }
 0x242   : >> { %v2548_v49 = vpack.c.bf16 %v9831_v47, %v9830_v4 }
 0x247   : >> { %11057 = vmatmul.mubr.msk.bf16.gmra.mrb[4].mxu1 %vm1559_vm5, %v1949_v43 }
 0x248   : >> { %11189 = vmatmul.mubr.msk.bf16.gmra.mrb[16].mxu0 %vm1559_vm5, %v2547_v44  ;;  %11060 = vmatprep.mubr.msk.bf16.mxu1 %vm13043_vm4, %v13042_v3 }
 0x249   : >> { %11192 = vmatprep.mubr.msk.bf16.mxu0 %vm13043_vm4, %v13042_v3 }
 0x24f   : >> { %11061 = vmatmul.mubr.msk.bf16.gmra.mrb[8].mxu1 %vm1559_vm5, %v1950_v48 }
 0x250   : >> { %11193 = vmatmul.mubr.msk.bf16.gmra.mrb[20].mxu0 %vm1559_vm5, %v2548_v49  ;;  %11064 = vmatprep.mubr.msk.bf16.mxu1 %vm13043_vm4, %v13042_v3  ;;  %v2895_v49 = vpop.permute.xlu0 %2894 }
 0x251   : >> { %11196 = vmatprep.mubr.msk.bf16.mxu0 %vm13043_vm4, %v13042_v3 }
 0x257   : >> { %11065 = vmatmul.mubr.msk.bf16.gmra.mrb[12].mxu1 %vm1559_vm5, %v1951_v53 }
 0x258   : >> { %11197 = vmatmul.mubr.msk.bf16.gmra.mrb[24].mxu0 %vm1559_vm5, %v2549_v54  ;;  %11068 = vmatprep.mubr.msk.bf16.mxu1 %vm13043_vm4, %v13042_v3 }
 0x259   : >> { %11202 = vmatprep.mubr.msk.bf16.mxu0 %vm13043_vm4, %v13042_v3 }
 0x25f   : >> { %11069 = vmatmul.mubr.msk.bf16.gmra.mrb[16].mxu1 %vm1559_vm5, %v1952_v59  ;;  %v2900_v59 = vpop.permute.xlu0 %2899 }
 0x260   : >> { %11203 = vmatmul.mubr.msk.bf16.vlgmr.msra.gmra.mrb[0].mxu0 %vm1559_vm5, %v2692_v60  ;;  %11072 = vmatprep.mubr.msk.bf16.mxu1 %vm13043_vm4, %v13042_v3 }
 0x261   : >> { %11206 = vmatprep.mubr.msk.bf16.mxu0 %vm13043_vm4, %v13042_v3 }
 0x267   : >> { %11073 = vmatmul.mubr.msk.bf16.gmra.mrb[20].mxu1 %vm1559_vm5, %v1953_v2  ;;  %v2905_v2 = vpop.permute.xlu1 %2904 }
 0x268   : >> { %11207 = vmatmul.mubr.msk.bf16.gmra.mrb[4].mxu0 %vm1559_vm5, %v2693_v5  ;;  %11076 = vmatprep.mubr.msk.bf16.mxu1 %vm13043_vm4, %v13042_v3 }
 0x269   : >> { %11210 = vmatprep.mubr.msk.bf16.mxu0 %vm13043_vm4, %v13042_v3 }
 0x26b   : >> { %v2910_v14 = vpop.permute.xlu1 %2909 }
 0x26f   : >> { %11077 = vmatmul.mubr.msk.bf16.gmra.mrb[24].mxu1 %vm1559_vm5, %v1954_v9  ;;  %v2920_v28 = vpop.permute.xlu1 %2919 }
 0x270   : >> { %11211 = vmatmul.mubr.msk.bf16.gmra.mrb[8].mxu0 %vm1559_vm5, %v2694_v10  ;;  %11098 = vmatprep.mubr.msk.bf16.mxu1 %vm13043_vm4, %v13042_v3 }
 0x271   : >> { %11214 = vmatprep.mubr.msk.bf16.mxu0 %vm13043_vm4, %v13042_v3 }
 0x277   : >> { %11099 = vmatmul.mubr.msk.bf16.vlgmr.msra.gmra.mrb[16].mxu1 %vm1559_vm5, %v2100_v15 }
 0x278   : >> { %11215 = vmatmul.mubr.msk.bf16.gmra.mrb[12].mxu0 %vm1559_vm5, %v2695_v16  ;;  %11102 = vmatprep.mubr.msk.bf16.mxu1 %vm13043_vm4, %v13042_v3 }
 0x279   : >> { %11218 = vmatprep.mubr.msk.bf16.mxu0 %vm13043_vm4, %v13042_v3 }
 0x27f   : >> { %11103 = vmatmul.mubr.msk.bf16.gmra.mrb[20].mxu1 %vm1559_vm5, %v2101_v21 }
 0x280   : >> { %11219 = vmatmul.mubr.msk.bf16.gmra.mrb[16].mxu0 %vm1559_vm5, %v2696_v22  ;;  %11106 = vmatprep.mubr.msk.bf16.mxu1 %vm13043_vm4, %v13042_v3 }
 0x281   : >> { %11222 = vmatprep.mubr.msk.bf16.mxu0 %vm13043_vm4, %v13042_v3 }
 0x287   : >> { %11107 = vmatmul.mubr.msk.bf16.gmra.mrb[24].mxu1 %vm1559_vm5, %v2102_v26  ;;  %v2915_v26 = vpop.permute.xlu0 %2914 }
 0x288   : >> { %11223 = vmatmul.mubr.msk.bf16.gmra.mrb[20].mxu0 %vm1559_vm5, %v2697_v27 }
 0x289   : >> { %11226 = vmatprep.mubr.msk.bf16.mxu0 %vm13043_vm4, %v13042_v3 }
 0x290   : >> { %11227 = vmatmul.mubr.msk.bf16.gmra.mrb[24].mxu0 %vm1559_vm5, %v2698_v29 }
 0x312   : >> { %v2015_v30 = vpop.f32.mrb[0].mxu1 }
 0x313   : >> { %v11054_v31 = vpop.f32.mrb[1].mxu1 }
 0x314   : >> { %v2018_v32 = vpop.f32.mrb[2].mxu1 }
 0x315   : >> { %v11055_v33 = vpop.f32.mrb[3].mxu1 }
 0x31a   : >> { %v2023_v34 = vpop.f32.mrb[4].mxu1 }
 0x31b   : >> { %v11058_v35 = vpop.f32.mrb[5].mxu1 }
 0x31c   : >> { %v2026_v36 = vpop.f32.mrb[6].mxu1 }
 0x31d   : >> { %v11059_v37 = vpop.f32.mrb[7].mxu1 }
 0x322   : >> { %v2031_v38 = vpop.f32.mrb[8].mxu1 }
 0x323   : >> { %v11062_v39 = vpop.f32.mrb[9].mxu1 }
 0x324   : >> { %v2034_v40 = vpop.f32.mrb[10].mxu1 }
 0x325   : >> { %v11063_v41 = vpop.f32.mrb[11].mxu1 }
 0x32a   : >> { %v2039_v42 = vpop.f32.mrb[12].mxu1 }
 0x32b   : >> { %v11066_v43 = vpop.f32.mrb[13].mxu1 }
 0x32c   : >> { %v15121_v44 = vpop.f32.mrb[14].mxu1 }
 0x32d   : >> { %v11067_v3 = vpop.f32.mrb[15].mxu1 }
 0x333   : >> { %v2759_v45 = vpop.f32.mrb[0].mxu0 }
 0x334   : >> { %v12036_v4 = vadd.f32 %v2759_v45, %v2015_v30  ;;  %v11204_v47 = vpop.f32.mrb[1].mxu0 }
 0x335   : >> { %v2762_v48 = vpop.f32.mrb[2].mxu0 }
 0x336   : >> { %v2833_v51 = vmul.f32 %v12036_v4, %v15126_v46  ;;  %v12037_v52 = vadd.f32 %v2762_v48, %v2018_v32  ;;  %v11205_v53 = vpop.f32.mrb[3].mxu0  ;;  %v2930_v48 = vpop.permute.xlu1 %2929 }
 0x338   : >> { %v2834_v54 = vmul.f32 %v12037_v52, %v15126_v46  ;;  %v2853_v55 = vadd.f32 %v15131_v50, %v2833_v51 }
 0x33a   : >> { %v2866_v56 = vmax.f32 %v2853_v55, 0.0  ;;  %v2854_v57 = vadd.f32 %v15131_v50, %v2834_v54 }
 0x33b   : >> { %v2767_v58 = vpop.f32.mrb[4].mxu0 }
 0x33c   : >> { %v2957_v60 = vmul.f32 %v2895_v49, %v2866_v56  ;;  %v12038_v61 = vadd.f32 %v2767_v58, %v2023_v34  ;;  %v11208_v62 = vpop.f32.mrb[5].mxu0  ;;  %v2867_v63 = vmax.f32 %v2854_v57, 0.0 }
 0x33d   : >> { %v2770_v1 = vpop.f32.mrb[6].mxu0 }
 0x33e   : >> { %9868 = vst.msk [vmem:[%s15139_s1 + $0x35] sm:$0xff] %vm763_vm0, %v2957_v60  ;;  %v2835_v5 = vmul.f32 %v12038_v61, %v15126_v46  ;;  %v2958_v6 = vmul.f32 %v2900_v59, %v2867_v63  ;;  %v12039_v7 = vadd.f32 %v2770_v1, %v2026_v36  ;;  %v11209_v8 = vpop.f32.mrb[7].mxu0 }
 0x340   : >> { %9869 = vst.msk [vmem:[%s15139_s1 + $0x3d] sm:$0xff] %vm763_vm0, %v2958_v6  ;;  %v2836_v9 = vmul.f32 %v12039_v7, %v15126_v46  ;;  %v2855_v10 = vadd.f32 %v15131_v50, %v2835_v5  ;;  %v2940_v6 = vpop.permute.xlu1 %2939 }
 0x342   : >> { %v2868_v11 = vmax.f32 %v2855_v10, 0.0  ;;  %v2856_v12 = vadd.f32 %v15131_v50, %v2836_v9 }
 0x343   : >> { %v2775_v13 = vpop.f32.mrb[8].mxu0 }
 0x344   : >> { %v2959_v15 = vmul.f32 %v2905_v2, %v2868_v11  ;;  %v12040_v16 = vadd.f32 %v2775_v13, %v2031_v38  ;;  %v11212_v17 = vpop.f32.mrb[9].mxu0  ;;  %v2869_v18 = vmax.f32 %v2856_v12, 0.0 }
 0x345   : >> { %v2778_v19 = vpop.f32.mrb[10].mxu0 }
 0x346   : >> { %9870 = vst.msk [vmem:[%s15139_s1 + $0x45] sm:$0xff] %vm763_vm0, %v2959_v15  ;;  %v2837_v20 = vmul.f32 %v12040_v16, %v15126_v46  ;;  %v2960_v21 = vmul.f32 %v2910_v14, %v2869_v18  ;;  %v12041_v22 = vadd.f32 %v2778_v19, %v2034_v40  ;;  %v11213_v23 = vpop.f32.mrb[11].mxu0 }
 0x348   : >> { %v2857_v24 = vadd.f32 %v15131_v50, %v2837_v20  ;;  %9871 = vst.msk [vmem:[%s15139_s1 + $0x4d] sm:$0xff] %vm763_vm0, %v2960_v21  ;;  %v2838_v25 = vmul.f32 %v12041_v22, %v15126_v46 }
 0x34a   : >> { %v2870_v27 = vmax.f32 %v2857_v24, 0.0  ;;  %v2858_v29 = vadd.f32 %v15131_v50, %v2838_v25  ;;  %v2195_v30 = vpop.f32.mrb[16].mxu1 }
 0x34b   : >> { %v2783_v31 = vpop.f32.mrb[12].mxu0  ;;  %v11100_v32 = vpop.f32.mrb[17].mxu1 }
 0x34c   : >> { %v2961_v33 = vmul.f32 %v2915_v26, %v2870_v27  ;;  %v2871_v34 = vmax.f32 %v2858_v29, 0.0  ;;  %v12042_v35 = vadd.f32 %v2783_v31, %v2039_v42  ;;  %v11216_v36 = vpop.f32.mrb[13].mxu0  ;;  %v2198_v37 = vpop.f32.mrb[18].mxu1 }
 0x34d   : >> { %v2786_v38 = vpop.f32.mrb[14].mxu0  ;;  %v11101_v39 = vpop.f32.mrb[19].mxu1 }
 0x34e   : >> { %9872 = vst.msk [vmem:[%s15139_s1 + $0x55] sm:$0xff] %vm763_vm0, %v2961_v33  ;;  %v2962_v40 = vmul.f32 %v2920_v28, %v2871_v34  ;;  %v2839_v41 = vmul.f32 %v12042_v35, %v15126_v46  ;;  %v12043_v43 = vadd.f32 %v2786_v38, %v15121_v44  ;;  %v11217_v3 = vpop.f32.mrb[15].mxu0  ;;  %v2925_v42 = vpop.permute.xlu0 %2924 }
 0x34f   : >> { %v2950_v33 = vpop.permute.xlu1 %2949 }
 0x350   : >> { %9873 = vst.msk [vmem:[%s15139_s1 + $0x5d] sm:$0xff] %vm763_vm0, %v2962_v40  ;;  %v2859_v45 = vadd.f32 %v15131_v50, %v2839_v41  ;;  %v2840_v4 = vmul.f32 %v12043_v43, %v15126_v46 }
 0x352   : >> { %v2872_v47 = vmax.f32 %v2859_v45, 0.0  ;;  %v2860_v49 = vadd.f32 %v15131_v50, %v2840_v4  ;;  %v2203_v51 = vpop.f32.mrb[20].mxu1  ;;  %v2935_v5 = vpop.permute.xlu0 %2934 }
 0x353   : >> { %v2791_v52 = vpop.f32.mrb[16].mxu0  ;;  %v11104_v53 = vpop.f32.mrb[21].mxu1 }
 0x354   : >> { %v2963_v54 = vmul.f32 %v2925_v42, %v2872_v47  ;;  %v2873_v55 = vmax.f32 %v2860_v49, 0.0  ;;  %v12044_v44 = vadd.f32 %v2791_v52, %v2195_v30  ;;  %v11220_v56 = vpop.f32.mrb[17].mxu0  ;;  %v2206_v57 = vpop.f32.mrb[22].mxu1 }
 0x355   : >> { %v2794_v58 = vpop.f32.mrb[18].mxu0  ;;  %v11105_v59 = vpop.f32.mrb[23].mxu1 }
 0x356   : >> { %9874 = vst.msk [vmem:[%s15139_s1 + $0x65] sm:$0xff] %vm763_vm0, %v2963_v54  ;;  %v2964_v60 = vmul.f32 %v2930_v48, %v2873_v55  ;;  %v2841_v61 = vmul.f32 %v12044_v44, %v15126_v46  ;;  %v12045_v62 = vadd.f32 %v2794_v58, %v2198_v37  ;;  %v11221_v63 = vpop.f32.mrb[19].mxu0  ;;  %v2945_v27 = vpop.permute.xlu0 %2944 }
 0x358   : >> { %9875 = vst.msk [vmem:[%s15139_s1 + $0x6d] sm:$0xff] %vm763_vm0, %v2964_v60  ;;  %v2861_v1 = vadd.f32 %v15131_v50, %v2841_v61  ;;  %v2842_v2 = vmul.f32 %v12045_v62, %v15126_v46 }
 0x35a   : >> { %v2874_v7 = vmax.f32 %v2861_v1, 0.0  ;;  %v2862_v8 = vadd.f32 %v15131_v50, %v2842_v2  ;;  %v2211_v9 = vpop.f32.mrb[24].mxu1  ;;  %v2955_v40 = vpop.permute.xlu0 %2954 }
 0x35b   : >> { %v2799_v10 = vpop.f32.mrb[20].mxu0  ;;  %v11108_v11 = vpop.f32.mrb[25].mxu1 }
 0x35c   : >> { %v2965_v12 = vmul.f32 %v2935_v5, %v2874_v7  ;;  %v2875_v13 = vmax.f32 %v2862_v8, 0.0  ;;  %v12046_v14 = vadd.f32 %v2799_v10, %v2203_v51  ;;  %v11224_v15 = vpop.f32.mrb[21].mxu0  ;;  %v2214_v16 = vpop.f32.mrb[26].mxu1 }
 0x35d   : >> { %v2802_v17 = vpop.f32.mrb[22].mxu0  ;;  %v11109_v18 = vpop.f32.mrb[27].mxu1 }
 0x35e   : >> { %9876 = vst.msk [vmem:[%s15139_s1 + $0x75] sm:$0xff] %vm763_vm0, %v2965_v12  ;;  %v2966_v19 = vmul.f32 %v2940_v6, %v2875_v13  ;;  %v2843_v20 = vmul.f32 %v12046_v14, %v15126_v46  ;;  %v12047_v21 = vadd.f32 %v2802_v17, %v2206_v57  ;;  %v11225_v22 = vpop.f32.mrb[23].mxu0 }
 0x360   : >> { %9877 = vst.msk [vmem:[%s15139_s1 + $0x7d] sm:$0xff] %vm763_vm0, %v2966_v19  ;;  %v2863_v23 = vadd.f32 %v15131_v50, %v2843_v20  ;;  %v2844_v24 = vmul.f32 %v12047_v21, %v15126_v46 }
 0x362   : >> { %v2876_v25 = vmax.f32 %v2863_v23, 0.0  ;;  %v2864_v26 = vadd.f32 %v15131_v50, %v2844_v24 }
 0x363   : >> { %v2807_v28 = vpop.f32.mrb[24].mxu0 }
 0x364   : >> { %v2967_v29 = vmul.f32 %v2945_v27, %v2876_v25  ;;  %v2877_v30 = vmax.f32 %v2864_v26, 0.0  ;;  %v12048_v31 = vadd.f32 %v2807_v28, %v2211_v9  ;;  %v11228_v32 = vpop.f32.mrb[25].mxu0 }
 0x365   : >> { %v2810_v34 = vpop.f32.mrb[26].mxu0 }
 0x366   : >> { %9878 = vst.msk [vmem:[%s15139_s1 + $0x85] sm:$0xff] %vm763_vm0, %v2967_v29  ;;  %v2968_v35 = vmul.f32 %v2950_v33, %v2877_v30  ;;  %v2845_v36 = vmul.f32 %v12048_v31, %v15126_v46  ;;  %v11229_v37 = vpop.f32.mrb[27].mxu0 }
 0x368   : >> { %9879 = vst.msk [vmem:[%s15139_s1 + $0x8d] sm:$0xff] %vm763_vm0, %v2968_v35  ;;  %v2865_v38 = vadd.f32 %v15131_v50, %v2845_v36  ;;  %1506 = sbr.rel (!%p1504_p11) target bundleno = 395 (0x18b), region = 264 }
 0x36a   : >> { %v2878_v39 = vmax.f32 %v2865_v38, 0.0 }
 0x36c   : >> { %v2969_v41 = vmul.f32 %v2955_v40, %v2878_v39 }
 0x36e   : >> { %9880 = vst.msk [vmem:[%s15139_s1 + $0x95] sm:$0x3f] %vm2983_vm6, %v2969_v41 }
 0x36f LB: >> { %s16928_s5 = sld [smem:[#allocation26_spill]]  ;;  %v13045_v50 = vmov 0.0   ;;  %vm13046_vm7 = vmmov 0   ;;  %s16899_s0 = smul.u32 104, %s13035_s27  ;;  %s13035_s27 = sphi %s15193_s27, %s2990_s27  }
 0x370   : >> { %11350 = vmatprep.subr.bf16.mxu0 %v13045_v50  ;;  %11230 = vmatprep.subr.bf16.mxu1 %v13045_v50  ;;  %s9881_s28 = sshll.u32 %s13035_s27, 1 }
 0x371   : >> { %11232 = vmatprep.mubr.msk.bf16.mxu1 %vm13046_vm7, %v13045_v50  ;;  %11352 = vmatprep.mubr.msk.bf16.mxu0 %vm13046_vm7, %v13045_v50  ;;  %s15218_s3 = scalar_lea.vmem [#allocation2], %s16899_s0  ;;  %s2992_s1 = sadd.s32 1, %s9881_s28 }
 0x372   : >> { %s2993_s29 = smul.u32 52, %s2992_s1 }
 0x374   : >> { %s15300_s8 = scalar_lea.vmem [#allocation2], %s2993_s29  ;;  %s16930_s29 = sld [smem:[#allocation28_spill]] }
 0x375   : >> { %v15201_v46 = vld [vmem:[%s16928_s5 + $0x20] sm:$0xff]   ;;  %v12858_v43 = vld [vmem:[%s16928_s5 + $0x8] sm:$0xff]   ;;  %v9968_v4 = vld [vmem:[%s15218_s3 + $0x35] sm:$0xff] }
 0x376   : >> { %11351 = vmatpush3.bf16.msra.mxu0 %v15201_v46  ;;  %11231 = vmatpush3.bf16.msra.mxu1 %v12858_v43  ;;  %v9885_v3 = vld [vmem:[%s15218_s3 + $0x1] sm:$0xff]  ;;  %v9886_v45 = vld [vmem:[%s15218_s3 + $0x9] sm:$0xff]  ;;  %v9887_v52 = vld [vmem:[%s15218_s3 + $0x11] sm:$0xff] }
 0x377   : >> { %11380 = vmatprep.subr.bf16.mxu0 %v13045_v50  ;;  %11260 = vmatprep.subr.bf16.mxu1 %v13045_v50  ;;  %v3034_v42 = vpack.c.bf16 %v9886_v45, %v9885_v3  ;;  %v9969_v47 = vld [vmem:[%s15218_s3 + $0x3d] sm:$0xff]  ;;  %v12859_v48 = vld [vmem:[%s16928_s5 + $0x28] sm:$0xff]   ;;  %v9972_v59 = vld [vmem:[%s15218_s3 + $0x55] sm:$0xff] }
 0x378   : >> { %v3593_v49 = vpack.c.bf16 %v9969_v47, %v9968_v4  ;;  %v12860_v51 = vld [vmem:[%s16928_s5] sm:$0xff]   ;;  %v9971_v55 = vld [vmem:[%s15218_s3 + $0x4d] sm:$0xff]  ;;  %v9993_v10 = vld [vmem:[%s15218_s3 + $0x36] sm:$0xff] }
 0x379   : >> { %11233 = vmatmul.mubr.msk.bf16.vlgmr.msra.gmra.mrb[0].mxu1 %vm763_vm0, %v3034_v42  ;;  %v9888_v53 = vld [vmem:[%s15218_s3 + $0x19] sm:$0xff]  ;;  %v9970_v54 = vld [vmem:[%s15218_s3 + $0x45] sm:$0xff]  ;;  %v9891_v63 = vld [vmem:[%s15218_s3 + $0x31] sm:$0xff] }
 0x37a   : >> { %11353 = vmatmul.mubr.msk.bf16.vlgmr.msra.gmra.mrb[0].mxu0 %vm763_vm0, %v3593_v49  ;;  %11236 = vmatprep.mubr.msk.bf16.mxu1 %vm13046_vm7, %v13045_v50  ;;  %v3035_v44 = vpack.c.bf16 %v9888_v53, %v9887_v52  ;;  %v3594_v56 = vpack.c.bf16 %v9971_v55, %v9970_v54  ;;  %v9889_v57 = vld [vmem:[%s15218_s3 + $0x21] sm:$0xff]  ;;  %v9890_v58 = vld [vmem:[%s15218_s3 + $0x29] sm:$0xff]  ;;  %v9892_v1 = vld [vmem:[%s15218_s3 + $0x39] sm:$0xff] }
 0x37b   : >> { %11381 = vmatpush3.bf16.msra.mxu0 %v12859_v48  ;;  %11356 = vmatprep.mubr.msk.bf16.mxu0 %vm13046_vm7, %v13045_v50  ;;  %v9973_v60 = vld [vmem:[%s15218_s3 + $0x5d] sm:$0xff]  ;;  %v3036_v61 = vpack.c.bf16 %v9890_v58, %v9889_v57  ;;  %v9974_v2 = vld [vmem:[%s15218_s3 + $0x65] sm:$0xff]  ;;  %v9975_v5 = vld [vmem:[%s15218_s3 + $0x6d] sm:$0xff]  ;;  %v3037_v6 = vpack.c.bf16 %v9892_v1, %v9891_v63 }
 0x37c   : >> { %11261 = vmatpush3.bf16.msra.mxu1 %v12860_v51  ;;  %11410 = vmatprep.subr.bf16.mxu0 %v13045_v50  ;;  %v3595_v62 = vpack.c.bf16 %v9973_v60, %v9972_v59  ;;  %v3596_v7 = vpack.c.bf16 %v9975_v5, %v9974_v2  ;;  %v9893_v8 = vld [vmem:[%s15218_s3 + $0x41] sm:$0xff]  ;;  %v9894_v9 = vld [vmem:[%s15218_s3 + $0x49] sm:$0xff]  ;;  %v9895_v15 = vld [vmem:[%s15218_s3 + $0x51] sm:$0xff] }
 0x37d   : >> { %11290 = vmatprep.subr.bf16.mxu1 %v13045_v50  ;;  %v9994_v11 = vld [vmem:[%s15218_s3 + $0x3e] sm:$0xff]  ;;  %v3038_v12 = vpack.c.bf16 %v9894_v9, %v9893_v8  ;;  %v12861_v14 = vld [vmem:[%s16928_s5 + $0x30] sm:$0xff]   ;;  %v9995_v17 = vld [vmem:[%s15218_s3 + $0x46] sm:$0xff] }
 0x37e   : >> { %v3746_v13 = vpack.c.bf16 %v9994_v11, %v9993_v10  ;;  %v9896_v16 = vld [vmem:[%s15218_s3 + $0x59] sm:$0xff]  ;;  %v9996_v18 = vld [vmem:[%s15218_s3 + $0x4e] sm:$0xff]  ;;  %v9897_v21 = vld [vmem:[%s15218_s3 + $0x61] sm:$0x3f] }
 0x37f   : >> { %v3039_v19 = vpack.c.bf16 %v9896_v16, %v9895_v15  ;;  %v3747_v20 = vpack.c.bf16 %v9996_v18, %v9995_v17  ;;  %v9997_v22 = vld [vmem:[%s15218_s3 + $0x56] sm:$0xff]  ;;  %v9998_v23 = vld [vmem:[%s15218_s3 + $0x5e] sm:$0xff]  ;;  %v3040_v24 = vpack.c.bf16 %v9897_v21, %v9897_v21  ;;  %v10555_v26 = vld [vmem:[%s15300_s8 - $0x34] sm:$0xff] }
 0x380   : >> { %v3748_v25 = vpack.c.bf16 %v9998_v23, %v9997_v22  ;;  %v10556_v27 = vld [vmem:[%s15300_s8 - $0x2c] sm:$0xff]  ;;  %v9999_v28 = vld [vmem:[%s15218_s3 + $0x66] sm:$0xff]  ;;  %v10557_v33 = vld [vmem:[%s15300_s8 - $0x24] sm:$0xff] }
 0x381   : >> { %11237 = vmatmul.mubr.msk.bf16.gmra.mrb[4].mxu1 %vm763_vm0, %v3035_v44  ;;  %v10000_v29 = vld [vmem:[%s15218_s3 + $0x6e] sm:$0xff]  ;;  %v3010_v30 = vpack.c.bf16 %v10556_v27, %v10555_v26  ;;  %v10558_v34 = vld [vmem:[%s15300_s8 - $0x1c] sm:$0xff]  ;;  %v10001_v35 = vld [vmem:[%s15218_s3 + $0x76] sm:$0xff]  ;;  %v13047_v26 = vmov 0  }
 0x382   : >> { %11357 = vmatmul.mubr.msk.bf16.gmra.mrb[4].mxu0 %vm763_vm0, %v3594_v56  ;;  %11240 = vmatprep.mubr.msk.bf16.mxu1 %vm13046_vm7, %v13045_v50  ;;  %v3749_v31 = vpack.c.bf16 %v10000_v29, %v9999_v28  ;;  %v12862_v32 = vld [vmem:[%s16928_s5 + $0x10] sm:$0xff]   ;;  %v10002_v36 = vld [vmem:[%s15218_s3 + $0x7e] sm:$0xff]  ;;  %v3011_v37 = vpack.c.bf16 %v10558_v34, %v10557_v33  ;;  %v10003_v41 = vld [vmem:[%s15218_s3 + $0x86] sm:$0xff] }
 0x383   : >> { %11360 = vmatprep.mubr.msk.bf16.mxu0 %vm13046_vm7, %v13045_v50  ;;  %v3750_v38 = vpack.c.bf16 %v10002_v36, %v10001_v35  ;;  %v10559_v39 = vld [vmem:[%s15300_s8 - $0x14] sm:$0xff]  ;;  %v10560_v40 = vld [vmem:[%s15300_s8 - $0xc] sm:$0xff]  ;;  %v10561_v4 = vld [vmem:[%s15300_s8 - $0x4] sm:$0xff]  ;;  %12855 = vset.pattern.permute.xlu0 %v13047_v26 }
 0x384   : >> { %v10004_v43 = vld [vmem:[%s15218_s3 + $0x8e] sm:$0xff]  ;;  %v3012_v3 = vpack.c.bf16 %v10560_v40, %v10559_v39  ;;  %v10562_v42 = vld [vmem:[%s15300_s8 + $0x4] sm:$0xff]  ;;  %v10005_v47 = vld [vmem:[%s15218_s3 + $0x96] sm:$0x3f]  ;;  %12856 = vset.pattern.permute.xlu1 %v13047_v26 }
 0x385   : >> { %v3751_v45 = vpack.c.bf16 %v10004_v43, %v10003_v41  ;;  %v3013_v48 = vpack.c.bf16 %v10562_v42, %v10561_v4  ;;  %v3752_v49 = vpack.c.bf16 %v10005_v47, %v10005_v47  ;;  %v10563_v51 = vld [vmem:[%s15300_s8 + $0xc] sm:$0xff]  ;;  %v10564_v52 = vld [vmem:[%s15300_s8 + $0x14] sm:$0xff]  ;;  %v10565_v57 = vld [vmem:[%s15300_s8 + $0x1c] sm:$0xff] }
 0x386   : >> { %v10018_v53 = vld [vmem:[%s15218_s3 + $0x68] sm:$0xff]  ;;  %v10019_v54 = vld [vmem:[%s15218_s3 + $0x70] sm:$0xff]  ;;  %v3014_v55 = vpack.c.bf16 %v10564_v52, %v10563_v51  ;;  %v12863_v56 = vld [vmem:[%s16928_s5 + $0x38] sm:$0xff]  }
 0x387   : >> { %v3899_v44 = vpack.c.bf16 %v10019_v54, %v10018_v53  ;;  %v10566_v58 = vld [vmem:[%s15300_s8 + $0x24] sm:$0xff]  ;;  %v10020_v59 = vld [vmem:[%s15218_s3 + $0x78] sm:$0xff]  ;;  %v10567_v63 = vld [vmem:[%s15300_s8 + $0x2c] sm:$0x3f]  ;;  %s16931_s8 = smul.u32 104, %s13035_s27  ;;  %s2990_s27 = sadd.s32 1, %s13035_s27  }
 0x388   : >> { %v10021_v60 = vld [vmem:[%s15218_s3 + $0x80] sm:$0xff]  ;;  %v10022_v1 = vld [vmem:[%s15218_s3 + $0x88] sm:$0xff]  ;;  %v10023_v2 = vld [vmem:[%s15218_s3 + $0x90] sm:$0xff]  ;;  %v3016_v5 = vpack.c.bf16 %v10567_v63, %v10567_v63  ;;  %p2987_p12 = scmp.ge.s32.totalorder %s2990_s27, 25  }
 0x389   : >> { %11241 = vmatmul.mubr.msk.bf16.gmra.mrb[8].mxu1 %vm763_vm0, %v3036_v61  ;;  %v3015_v61 = vpack.c.bf16 %v10566_v58, %v10565_v57  ;;  %v9919_v8 = vld [vmem:[%s15218_s3 + $0xa] sm:$0xff]  ;;  %v10024_v9 = vld [vmem:[%s15218_s3 + $0x98] sm:$0xff]  ;;  %v10025_v10 = vld [vmem:[%s15218_s3 + $0xa0] sm:$0xff]  ;;  %s15610_s26 = scalar_lea.vmem [#allocation3], %s16931_s8  ;;  %s15664_s9 = smov (%p2987_p12), 0  }
 0x38a   : >> { %11361 = vmatmul.mubr.msk.bf16.gmra.mrb[8].mxu0 %vm763_vm0, %v3595_v62  ;;  %11244 = vmatprep.mubr.msk.bf16.mxu1 %vm13046_vm7, %v13045_v50  ;;  %v3900_v62 = vpack.c.bf16 %v10021_v60, %v10020_v59  ;;  %v9921_v15 = vld [vmem:[%s15218_s3 + $0x1a] sm:$0xff]  ;;  %v10026_v16 = vld [vmem:[%s15218_s3 + $0xa8] sm:$0xff]  ;;  %v10027_v17 = vld [vmem:[%s15218_s3 + $0xb0] sm:$0xff] }
 0x38b   : >> { %11364 = vmatprep.mubr.msk.bf16.mxu0 %vm13046_vm7, %v13045_v50  ;;  %v9923_v21 = vld [vmem:[%s15218_s3 + $0x2a] sm:$0xff]  ;;  %v4396_v22 = vld [vmem:[%s16885_s22] sm:$0xff]  ;;  %v4403_v39 = vld [vmem:[%s16885_s22 + $0x38] sm:$0xff] }
 0x38c   : >> { %v4398_v23 = vld [vmem:[%s16885_s22 + $0x10] sm:$0xff]  ;;  %4411 = vperm.xlu0 %12855, %v4396_v22   ;;  %v4397_v28 = vld [vmem:[%s16885_s22 + $0x8] sm:$0xff]  ;;  %v9925_v33 = vld [vmem:[%s15218_s3 + $0x3a] sm:$0xff] }
 0x38d   : >> { %4421 = vperm.xlu1 %12856, %v4398_v23   ;;  %v4401_v34 = vld [vmem:[%s16885_s22 + $0x28] sm:$0xff]  ;;  %v4404_v40 = vld [vmem:[%s16885_s22 + $0x40] sm:$0xff]  ;;  %v10044_v4 = vld [vmem:[%s15218_s3 + $0x71] sm:$0xff] }
 0x38e   : >> { %v10030_v35 = vld [vmem:[%s15218_s3 + $0xc8] sm:$0x3f]  ;;  %v4406_v47 = vld [vmem:[%s16885_s22 + $0x50] sm:$0xff]  ;;  %v12865_v51 = vld [vmem:[%s16928_s5 + $0x40] sm:$0xff]  }
 0x38f   : >> { %v9926_v41 = vld [vmem:[%s15218_s3 + $0x42] sm:$0xff]  ;;  %v9927_v43 = vld [vmem:[%s15218_s3 + $0x4a] sm:$0xff]  ;;  %v9928_v53 = vld [vmem:[%s15218_s3 + $0x52] sm:$0xff] }
 0x390   : >> { %4416 = vperm.xlu0 %12855, %v4397_v28   ;;  %v3293_v42 = vpack.c.bf16 %v9927_v43, %v9926_v41  ;;  %v4408_v52 = vld [vmem:[%s16885_s22 + $0x60] sm:$0x3f]  ;;  %v10047_v59 = vld [vmem:[%s15218_s3 + $0x89] sm:$0xff]  ;;  %v10048_v60 = vld [vmem:[%s15218_s3 + $0x91] sm:$0xff] }
 0x391   : >> { %11245 = vmatmul.mubr.msk.bf16.gmra.mrb[12].mxu1 %vm763_vm0, %v3037_v6  ;;  %v3901_v6 = vpack.c.bf16 %v10023_v2, %v10022_v1  ;;  %v9929_v54 = vld [vmem:[%s15218_s3 + $0x5a] sm:$0xff]  ;;  %v9930_v58 = vld [vmem:[%s15218_s3 + $0x62] sm:$0x3f]  ;;  %v10068_v26 = vld [vmem:[%s15218_s3 + $0x6a] sm:$0xff] }
 0x392   : >> { %11365 = vmatmul.mubr.msk.bf16.gmra.mrb[12].mxu0 %vm763_vm0, %v3596_v7  ;;  %11248 = vmatprep.mubr.msk.bf16.mxu1 %vm13046_vm7, %v13045_v50  ;;  %v9918_v7 = vld [vmem:[%s15218_s3 + $0x2] sm:$0xff]  ;;  %v9943_v63 = vld [vmem:[%s15218_s3 + $0x34] sm:$0xff] }
 0x393   : >> { %11382 = vmatprep.mubr.msk.bf16.mxu0 %vm13046_vm7, %v13045_v50  ;;  %v3289_v11 = vpack.c.bf16 %v9919_v8, %v9918_v7  ;;  %v9944_v1 = vld [vmem:[%s15218_s3 + $0x3c] sm:$0xff]  ;;  %v9945_v8 = vld [vmem:[%s15218_s3 + $0x44] sm:$0xff] }
 0x394   : >> { %v10049_v2 = vld [vmem:[%s15218_s3 + $0x99] sm:$0xff] }
 0x395   : >> { %v9976_v41 = vld [vmem:[%s15218_s3 + $0x75] sm:$0xff]  ;;  %v9977_v43 = vld [vmem:[%s15218_s3 + $0x7d] sm:$0xff] }
 0x399   : >> { %11249 = vmatmul.mubr.msk.bf16.gmra.mrb[16].mxu1 %vm763_vm0, %v3038_v12  ;;  %v3902_v12 = vpack.c.bf16 %v10025_v10, %v10024_v9  ;;  %v9946_v9 = vld [vmem:[%s15218_s3 + $0x4c] sm:$0xff] }
 0x39a   : >> { %11383 = vmatmul.mubr.msk.bf16.vlgmr.msra.gmra.mrb[0].mxu0 %vm763_vm0, %v3746_v13  ;;  %11252 = vmatprep.mubr.msk.bf16.mxu1 %vm13046_vm7, %v13045_v50  ;;  %v12864_v13 = vld [vmem:[%s16928_s5 + $0x18] sm:$0xff]   ;;  %v10051_v10 = vld [vmem:[%s15218_s3 + $0xa9] sm:$0xff] }
 0x39b   : >> { %11411 = vmatpush3.bf16.msra.mxu0 %v12861_v14  ;;  %11386 = vmatprep.mubr.msk.bf16.mxu0 %vm13046_vm7, %v13045_v50  ;;  %v9920_v14 = vld [vmem:[%s15218_s3 + $0x12] sm:$0xff] }
 0x39c   : >> { %11440 = vmatprep.subr.bf16.mxu0 %v13045_v50  ;;  %v3290_v18 = vpack.c.bf16 %v9921_v15, %v9920_v14  ;;  %v9947_v14 = vld [vmem:[%s15218_s3 + $0x54] sm:$0xff]  ;;  %v9948_v15 = vld [vmem:[%s15218_s3 + $0x5c] sm:$0xff] }
 0x3a1   : >> { %11253 = vmatmul.mubr.msk.bf16.gmra.mrb[20].mxu1 %vm763_vm0, %v3039_v19  ;;  %v3903_v19 = vpack.c.bf16 %v10027_v17, %v10026_v16  ;;  %v10054_v16 = vld [vmem:[%s15218_s3 + $0xc1] sm:$0xff]  ;;  %v3443_v17 = vpack.c.bf16 %v9948_v15, %v9947_v14 }
 0x3a2   : >> { %11387 = vmatmul.mubr.msk.bf16.gmra.mrb[4].mxu0 %vm763_vm0, %v3747_v20  ;;  %11256 = vmatprep.mubr.msk.bf16.mxu1 %vm13046_vm7, %v13045_v50  ;;  %v9922_v20 = vld [vmem:[%s15218_s3 + $0x22] sm:$0xff] }
 0x3a3   : >> { %11390 = vmatprep.mubr.msk.bf16.mxu0 %vm13046_vm7, %v13045_v50  ;;  %v3291_v27 = vpack.c.bf16 %v9923_v21, %v9922_v20  ;;  %v9950_v20 = vld [vmem:[%s15218_s3 + $0x6c] sm:$0xff] }
 0x3a4   : >> { %v10055_v21 = vld [vmem:[%s15218_s3 + $0xc9] sm:$0x3f] }
 0x3a5   : >> { %v4058_v23 = vpack.c.bf16 %v10055_v21, %v10055_v21 }
 0x3a9   : >> { %11257 = vmatmul.mubr.msk.bf16.gmra.mrb[24].mxu1 %vm763_vm0, %v3040_v24  ;;  %v10028_v24 = vld [vmem:[%s15218_s3 + $0xb8] sm:$0xff] }
 0x3aa   : >> { %11391 = vmatmul.mubr.msk.bf16.gmra.mrb[8].mxu0 %vm763_vm0, %v3748_v25  ;;  %11262 = vmatprep.mubr.msk.bf16.mxu1 %vm13046_vm7, %v13045_v50  ;;  %v10029_v25 = vld [vmem:[%s15218_s3 + $0xc0] sm:$0xff] }
 0x3ab   : >> { %11394 = vmatprep.mubr.msk.bf16.mxu0 %vm13046_vm7, %v13045_v50  ;;  %v3904_v29 = vpack.c.bf16 %v10029_v25, %v10028_v24  ;;  %v9951_v24 = vld [vmem:[%s15218_s3 + $0x74] sm:$0xff]  ;;  %v9952_v25 = vld [vmem:[%s15218_s3 + $0x7c] sm:$0xff] }
 0x3ac   : >> { %v3445_v28 = vpack.c.bf16 %v9952_v25, %v9951_v24 }
 0x3b1   : >> { %11263 = vmatmul.mubr.msk.bf16.vlgmr.msra.gmra.mrb[0].mxu1 %vm763_vm0, %v3010_v30  ;;  %v4399_v30 = vld [vmem:[%s16885_s22 + $0x18] sm:$0xff] }
 0x3b2   : >> { %11395 = vmatmul.mubr.msk.bf16.gmra.mrb[12].mxu0 %vm763_vm0, %v3749_v31  ;;  %11266 = vmatprep.mubr.msk.bf16.mxu1 %vm13046_vm7, %v13045_v50  ;;  %v4400_v31 = vld [vmem:[%s16885_s22 + $0x20] sm:$0xff] }
 0x3b3   : >> { %11398 = vmatprep.mubr.msk.bf16.mxu0 %vm13046_vm7, %v13045_v50  ;;  %11291 = vmatpush3.bf16.msra.mxu1 %v12862_v32  ;;  %v9924_v32 = vld [vmem:[%s15218_s3 + $0x32] sm:$0xff] }
 0x3b4   : >> { %11320 = vmatprep.subr.bf16.mxu1 %v13045_v50  ;;  %4426 = vperm.xlu1 %12856, %v4399_v30   ;;  %v3292_v36 = vpack.c.bf16 %v9925_v33, %v9924_v32  ;;  %v9953_v30 = vld [vmem:[%s15218_s3 + $0x84] sm:$0xff]  ;;  %v10070_v32 = vld [vmem:[%s15218_s3 + $0x7a] sm:$0xff] }
 0x3b5   : >> { %4431 = vperm.xlu0 %12855, %v4400_v31   ;;  %v9954_v31 = vld [vmem:[%s15218_s3 + $0x8c] sm:$0xff]  ;;  %v10071_v33 = vld [vmem:[%s15218_s3 + $0x82] sm:$0xff] }
 0x3b8   : >> { %4436 = vperm.xlu1 %12856, %v4401_v34   ;;  %v3446_v34 = vpack.c.bf16 %v9954_v31, %v9953_v30 }
 0x3b9   : >> { %11267 = vmatmul.mubr.msk.bf16.gmra.mrb[4].mxu1 %vm763_vm0, %v3011_v37  ;;  %v4402_v37 = vld [vmem:[%s16885_s22 + $0x30] sm:$0xff] }
 0x3ba   : >> { %11399 = vmatmul.mubr.msk.bf16.gmra.mrb[16].mxu0 %vm763_vm0, %v3750_v38  ;;  %11270 = vmatprep.mubr.msk.bf16.mxu1 %vm13046_vm7, %v13045_v50  ;;  %v3905_v38 = vpack.c.bf16 %v10030_v35, %v10030_v35  ;;  %v4206_v35 = vpack.c.bf16 %v10071_v33, %v10070_v32 }
 0x3bb   : >> { %11402 = vmatprep.mubr.msk.bf16.mxu0 %vm13046_vm7, %v13045_v50  ;;  %4441 = vperm.xlu0 %12855, %v4402_v37   ;;  %v10072_v37 = vld [vmem:[%s15218_s3 + $0x8a] sm:$0xff] }
 0x3bc   : >> { %4446 = vperm.xlu1 %12856, %v4403_v39  }
 0x3bf   : >> { %4451 = vperm.xlu0 %12855, %v4404_v40  }
 0x3c1   : >> { %11271 = vmatmul.mubr.msk.bf16.gmra.mrb[8].mxu1 %vm763_vm0, %v3012_v3  ;;  %v4405_v3 = vld [vmem:[%s16885_s22 + $0x48] sm:$0xff] }
 0x3c2   : >> { %11403 = vmatmul.mubr.msk.bf16.gmra.mrb[20].mxu0 %vm763_vm0, %v3751_v45  ;;  %11274 = vmatprep.mubr.msk.bf16.mxu1 %vm13046_vm7, %v13045_v50  ;;  %v10043_v45 = vld [vmem:[%s15218_s3 + $0x69] sm:$0xff] }
 0x3c3   : >> { %11406 = vmatprep.mubr.msk.bf16.mxu0 %vm13046_vm7, %v13045_v50  ;;  %4456 = vperm.xlu1 %12856, %v4405_v3   ;;  %v10074_v3 = vld [vmem:[%s15218_s3 + $0x9a] sm:$0xff] }
 0x3c4   : >> { %4461 = vperm.xlu0 %12855, %v4406_v47   ;;  %v9978_v47 = vld [vmem:[%s15218_s3 + $0x85] sm:$0xff] }
 0x3c8   : >> { %4471 = vperm.xlu0 %12855, %v4408_v52  }
 0x3c9   : >> { %11275 = vmatmul.mubr.msk.bf16.gmra.mrb[12].mxu1 %vm763_vm0, %v3013_v48  ;;  %v4052_v48 = vpack.c.bf16 %v10044_v4, %v10043_v45  ;;  %v10075_v45 = vld [vmem:[%s15218_s3 + $0xa2] sm:$0xff]  ;;  %v3597_v4 = vpack.c.bf16 %v9977_v43, %v9976_v41 }
 0x3ca   : >> { %11407 = vmatmul.mubr.msk.bf16.gmra.mrb[24].mxu0 %vm763_vm0, %v3752_v49  ;;  %11278 = vmatprep.mubr.msk.bf16.mxu1 %vm13046_vm7, %v13045_v50  ;;  %v4407_v49 = vld [vmem:[%s16885_s22 + $0x58] sm:$0xff] }
 0x3cb   : >> { %11412 = vmatprep.mubr.msk.bf16.mxu0 %vm13046_vm7, %v13045_v50  ;;  %4466 = vperm.xlu1 %12856, %v4407_v49   ;;  %v10076_v49 = vld [vmem:[%s15218_s3 + $0xaa] sm:$0xff] }
 0x3d1   : >> { %11279 = vmatmul.mubr.msk.bf16.gmra.mrb[16].mxu1 %vm763_vm0, %v3014_v55  ;;  %v10045_v55 = vld [vmem:[%s15218_s3 + $0x79] sm:$0xff] }
 0x3d2   : >> { %11413 = vmatmul.mubr.msk.bf16.vlgmr.msra.gmra.mrb[0].mxu0 %vm763_vm0, %v3899_v44  ;;  %11282 = vmatprep.mubr.msk.bf16.mxu1 %vm13046_vm7, %v13045_v50  ;;  %v10046_v44 = vld [vmem:[%s15218_s3 + $0x81] sm:$0xff] }
 0x3d3   : >> { %11441 = vmatpush3.bf16.msra.mxu0 %v12863_v56  ;;  %11416 = vmatprep.mubr.msk.bf16.mxu0 %vm13046_vm7, %v13045_v50  ;;  %v3294_v56 = vpack.c.bf16 %v9929_v54, %v9928_v53  ;;  %v4053_v57 = vpack.c.bf16 %v10046_v44, %v10045_v55  ;;  %v9980_v54 = vld [vmem:[%s15218_s3 + $0x95] sm:$0x3f]  ;;  %v10079_v44 = vld [vmem:[%s15218_s3 + $0xc2] sm:$0xff] }
 0x3d4   : >> { %11470 = vmatprep.subr.bf16.mxu0 %v13045_v50  ;;  %v10078_v55 = vld [vmem:[%s15218_s3 + $0xba] sm:$0xff] }
 0x3d9   : >> { %11283 = vmatmul.mubr.msk.bf16.gmra.mrb[20].mxu1 %vm763_vm0, %v3015_v61  ;;  %v3295_v61 = vpack.c.bf16 %v9930_v58, %v9930_v58  ;;  %v10080_v58 = vld [vmem:[%s15218_s3 + $0xca] sm:$0x3f] }
 0x3da   : >> { %11417 = vmatmul.mubr.msk.bf16.gmra.mrb[4].mxu0 %vm763_vm0, %v3900_v62  ;;  %11286 = vmatprep.mubr.msk.bf16.mxu1 %vm13046_vm7, %v13045_v50  ;;  %v4054_v62 = vpack.c.bf16 %v10048_v60, %v10047_v59  ;;  %v4211_v59 = vpack.c.bf16 %v10080_v58, %v10080_v58 }
 0x3db   : >> { %11420 = vmatprep.mubr.msk.bf16.mxu0 %vm13046_vm7, %v13045_v50 }
 0x3e1   : >> { %11287 = vmatmul.mubr.msk.bf16.gmra.mrb[24].mxu1 %vm763_vm0, %v3016_v5  ;;  %v10050_v5 = vld [vmem:[%s15218_s3 + $0xa1] sm:$0xff] }
 0x3e2   : >> { %11421 = vmatmul.mubr.msk.bf16.gmra.mrb[8].mxu0 %vm763_vm0, %v3901_v6  ;;  %11292 = vmatprep.mubr.msk.bf16.mxu1 %vm13046_vm7, %v13045_v50  ;;  %v3441_v6 = vpack.c.bf16 %v9944_v1, %v9943_v63  ;;  %v4055_v7 = vpack.c.bf16 %v10050_v5, %v10049_v2 }
 0x3e3   : >> { %11424 = vmatprep.mubr.msk.bf16.mxu0 %vm13046_vm7, %v13045_v50 }
 0x3e9   : >> { %11293 = vmatmul.mubr.msk.bf16.vlgmr.msra.gmra.mrb[0].mxu1 %vm763_vm0, %v3289_v11  ;;  %v10052_v11 = vld [vmem:[%s15218_s3 + $0xb1] sm:$0xff] }
 0x3ea   : >> { %11425 = vmatmul.mubr.msk.bf16.gmra.mrb[12].mxu0 %vm763_vm0, %v3902_v12  ;;  %11296 = vmatprep.mubr.msk.bf16.mxu1 %vm13046_vm7, %v13045_v50  ;;  %v3442_v12 = vpack.c.bf16 %v9946_v9, %v9945_v8 }
 0x3eb   : >> { %11428 = vmatprep.mubr.msk.bf16.mxu0 %vm13046_vm7, %v13045_v50  ;;  %11321 = vmatpush3.bf16.msra.mxu1 %v12864_v13  ;;  %v4056_v13 = vpack.c.bf16 %v10052_v11, %v10051_v10 }
 0x3ec   : >> { %12245 = vmatprep.subr.bf16.mxu1 %v13045_v50 }
 0x3f1   : >> { %11297 = vmatmul.mubr.msk.bf16.gmra.mrb[4].mxu1 %vm763_vm0, %v3290_v18 }
 0x3f2   : >> { %11429 = vmatmul.mubr.msk.bf16.gmra.mrb[16].mxu0 %vm763_vm0, %v3903_v19  ;;  %11300 = vmatprep.mubr.msk.bf16.mxu1 %vm13046_vm7, %v13045_v50  ;;  %v9949_v19 = vld [vmem:[%s15218_s3 + $0x64] sm:$0xff] }
 0x3f3   : >> { %11432 = vmatprep.mubr.msk.bf16.mxu0 %vm13046_vm7, %v13045_v50  ;;  %v3444_v22 = vpack.c.bf16 %v9950_v20, %v9949_v19  ;;  %v15602_v19 = vld [vmem:[%s16930_s29] ss:$0 sm:$0xff] }
 0x3f9   : >> { %11301 = vmatmul.mubr.msk.bf16.gmra.mrb[8].mxu1 %vm763_vm0, %v3291_v27  ;;  %v10069_v27 = vld [vmem:[%s15218_s3 + $0x72] sm:$0xff] }
 0x3fa   : >> { %11433 = vmatmul.mubr.msk.bf16.gmra.mrb[20].mxu0 %vm763_vm0, %v3904_v29  ;;  %11304 = vmatprep.mubr.msk.bf16.mxu1 %vm13046_vm7, %v13045_v50  ;;  %v4205_v29 = vpack.c.bf16 %v10069_v27, %v10068_v26 }
 0x3fb   : >> { %11436 = vmatprep.mubr.msk.bf16.mxu0 %vm13046_vm7, %v13045_v50 }
 0x401   : >> { %11305 = vmatmul.mubr.msk.bf16.gmra.mrb[12].mxu1 %vm763_vm0, %v3292_v36  ;;  %v9955_v36 = vld [vmem:[%s15218_s3 + $0x94] sm:$0x3f] }
 0x402   : >> { %11437 = vmatmul.mubr.msk.bf16.gmra.mrb[24].mxu0 %vm763_vm0, %v3905_v38  ;;  %11308 = vmatprep.mubr.msk.bf16.mxu1 %vm13046_vm7, %v13045_v50  ;;  %v10073_v38 = vld [vmem:[%s15218_s3 + $0x92] sm:$0xff]  ;;  %v3447_v39 = vpack.c.bf16 %v9955_v36, %v9955_v36 }
 0x403   : >> { %11442 = vmatprep.mubr.msk.bf16.mxu0 %vm13046_vm7, %v13045_v50  ;;  %v4207_v40 = vpack.c.bf16 %v10073_v38, %v10072_v37 }
 0x409   : >> { %11309 = vmatmul.mubr.msk.bf16.gmra.mrb[16].mxu1 %vm763_vm0, %v3293_v42  ;;  %v4208_v42 = vpack.c.bf16 %v10075_v45, %v10074_v3 }
 0x40a   : >> { %11443 = vmatmul.mubr.msk.bf16.vlgmr.msra.gmra.mrb[0].mxu0 %vm763_vm0, %v4052_v48  ;;  %11312 = vmatprep.mubr.msk.bf16.mxu1 %vm13046_vm7, %v13045_v50  ;;  %v9979_v48 = vld [vmem:[%s15218_s3 + $0x8d] sm:$0xff] }
 0x40b   : >> { %11471 = vmatpush3.bf16.msra.mxu0 %v12865_v51  ;;  %11446 = vmatprep.mubr.msk.bf16.mxu0 %vm13046_vm7, %v13045_v50  ;;  %v10077_v51 = vld [vmem:[%s15218_s3 + $0xb2] sm:$0xff]  ;;  %v3598_v52 = vpack.c.bf16 %v9979_v48, %v9978_v47 }
 0x40c   : >> { %v4209_v53 = vpack.c.bf16 %v10077_v51, %v10076_v49 }
 0x411   : >> { %11313 = vmatmul.mubr.msk.bf16.gmra.mrb[20].mxu1 %vm763_vm0, %v3294_v56  ;;  %v3599_v56 = vpack.c.bf16 %v9980_v54, %v9980_v54 }
 0x412   : >> { %11447 = vmatmul.mubr.msk.bf16.gmra.mrb[4].mxu0 %vm763_vm0, %v4053_v57  ;;  %11316 = vmatprep.mubr.msk.bf16.mxu1 %vm13046_vm7, %v13045_v50  ;;  %v4210_v57 = vpack.c.bf16 %v10079_v44, %v10078_v55 }
 0x413   : >> { %11450 = vmatprep.mubr.msk.bf16.mxu0 %vm13046_vm7, %v13045_v50 }
 0x419   : >> { %11317 = vmatmul.mubr.msk.bf16.gmra.mrb[24].mxu1 %vm763_vm0, %v3295_v61 }
 0x41a   : >> { %11451 = vmatmul.mubr.msk.bf16.gmra.mrb[8].mxu0 %vm763_vm0, %v4054_v62  ;;  %11322 = vmatprep.mubr.msk.bf16.mxu1 %vm13046_vm7, %v13045_v50 }
 0x41b   : >> { %11454 = vmatprep.mubr.msk.bf16.mxu0 %vm13046_vm7, %v13045_v50 }
 0x421   : >> { %11323 = vmatmul.mubr.msk.bf16.vlgmr.msra.gmra.mrb[0].mxu1 %vm763_vm0, %v3441_v6 }
 0x422   : >> { %11455 = vmatmul.mubr.msk.bf16.gmra.mrb[12].mxu0 %vm763_vm0, %v4055_v7  ;;  %11326 = vmatprep.mubr.msk.bf16.mxu1 %vm13046_vm7, %v13045_v50 }
 0x423   : >> { %11458 = vmatprep.mubr.msk.bf16.mxu0 %vm13046_vm7, %v13045_v50  ;;  %12246 = vmatpush3.bf16.msra.mxu1 %v15201_v46  ;;  %v10053_v46 = vld [vmem:[%s15218_s3 + $0xb9] sm:$0xff]  ;;  %s16929_s3 = sld [smem:[#allocation27_spill]] }
 0x424   : >> { %v4057_v18 = vpack.c.bf16 %v10054_v16, %v10053_v46 }
 0x429   : >> { %11327 = vmatmul.mubr.msk.bf16.gmra.mrb[4].mxu1 %vm763_vm0, %v3442_v12  ;;  %v15597_v15 = vld [vmem:[%s16929_s3] ss:$0 sm:$0xff] }
 0x42a   : >> { %11459 = vmatmul.mubr.msk.bf16.gmra.mrb[16].mxu0 %vm763_vm0, %v4056_v13  ;;  %11330 = vmatprep.mubr.msk.bf16.mxu1 %vm13046_vm7, %v13045_v50 }
 0x42b   : >> { %11462 = vmatprep.mubr.msk.bf16.mxu0 %vm13046_vm7, %v13045_v50 }
 0x431   : >> { %11331 = vmatmul.mubr.msk.bf16.gmra.mrb[8].mxu1 %vm763_vm0, %v3443_v17 }
 0x432   : >> { %11463 = vmatmul.mubr.msk.bf16.gmra.mrb[20].mxu0 %vm763_vm0, %v4057_v18  ;;  %11334 = vmatprep.mubr.msk.bf16.mxu1 %vm13046_vm7, %v13045_v50  ;;  %v4412_v18 = vpop.permute.xlu0 %4411 }
 0x433   : >> { %11466 = vmatprep.mubr.msk.bf16.mxu0 %vm13046_vm7, %v13045_v50 }
 0x439   : >> { %11335 = vmatmul.mubr.msk.bf16.gmra.mrb[12].mxu1 %vm763_vm0, %v3444_v22 }
 0x43a   : >> { %11467 = vmatmul.mubr.msk.bf16.gmra.mrb[24].mxu0 %vm763_vm0, %v4058_v23  ;;  %11338 = vmatprep.mubr.msk.bf16.mxu1 %vm13046_vm7, %v13045_v50 }
 0x43b   : >> { %11472 = vmatprep.mubr.msk.bf16.mxu0 %vm13046_vm7, %v13045_v50 }
 0x441   : >> { %11339 = vmatmul.mubr.msk.bf16.gmra.mrb[16].mxu1 %vm763_vm0, %v3445_v28  ;;  %v4417_v28 = vpop.permute.xlu0 %4416 }
 0x442   : >> { %11473 = vmatmul.mubr.msk.bf16.vlgmr.msra.gmra.mrb[0].mxu0 %vm763_vm0, %v4205_v29  ;;  %11342 = vmatprep.mubr.msk.bf16.mxu1 %vm13046_vm7, %v13045_v50 }
 0x443   : >> { %11476 = vmatprep.mubr.msk.bf16.mxu0 %vm13046_vm7, %v13045_v50 }
 0x449   : >> { %11343 = vmatmul.mubr.msk.bf16.gmra.mrb[20].mxu1 %vm763_vm0, %v3446_v34  ;;  %v4422_v34 = vpop.permute.xlu1 %4421 }
 0x44a   : >> { %11477 = vmatmul.mubr.msk.bf16.gmra.mrb[4].mxu0 %vm763_vm0, %v4206_v35  ;;  %11346 = vmatprep.mubr.msk.bf16.mxu1 %vm13046_vm7, %v13045_v50 }
 0x44b   : >> { %11480 = vmatprep.mubr.msk.bf16.mxu0 %vm13046_vm7, %v13045_v50 }
 0x44d   : >> { %v4427_v45 = vpop.permute.xlu1 %4426 }
 0x451   : >> { %11347 = vmatmul.mubr.msk.bf16.gmra.mrb[24].mxu1 %vm763_vm0, %v3447_v39  ;;  %v4437_v58 = vpop.permute.xlu1 %4436 }
 0x452   : >> { %11481 = vmatmul.mubr.msk.bf16.gmra.mrb[8].mxu0 %vm763_vm0, %v4207_v40  ;;  %11368 = vmatprep.mubr.msk.bf16.mxu1 %vm13046_vm7, %v13045_v50 }
 0x453   : >> { %11484 = vmatprep.mubr.msk.bf16.mxu0 %vm13046_vm7, %v13045_v50 }
 0x459   : >> { %11369 = vmatmul.mubr.msk.bf16.vlgmr.msra.gmra.mrb[16].mxu1 %vm763_vm0, %v3597_v4 }
 0x45a   : >> { %11485 = vmatmul.mubr.msk.bf16.gmra.mrb[12].mxu0 %vm763_vm0, %v4208_v42  ;;  %11372 = vmatprep.mubr.msk.bf16.mxu1 %vm13046_vm7, %v13045_v50 }
 0x45b   : >> { %11488 = vmatprep.mubr.msk.bf16.mxu0 %vm13046_vm7, %v13045_v50 }
 0x461   : >> { %11373 = vmatmul.mubr.msk.bf16.gmra.mrb[20].mxu1 %vm763_vm0, %v3598_v52 }
 0x462   : >> { %11489 = vmatmul.mubr.msk.bf16.gmra.mrb[16].mxu0 %vm763_vm0, %v4209_v53  ;;  %11376 = vmatprep.mubr.msk.bf16.mxu1 %vm13046_vm7, %v13045_v50 }
 0x463   : >> { %11492 = vmatprep.mubr.msk.bf16.mxu0 %vm13046_vm7, %v13045_v50 }
 0x469   : >> { %11377 = vmatmul.mubr.msk.bf16.gmra.mrb[24].mxu1 %vm763_vm0, %v3599_v56  ;;  %v4432_v56 = vpop.permute.xlu0 %4431 }
 0x46a   : >> { %11493 = vmatmul.mubr.msk.bf16.gmra.mrb[20].mxu0 %vm763_vm0, %v4210_v57 }
 0x46b   : >> { %11496 = vmatprep.mubr.msk.bf16.mxu0 %vm13046_vm7, %v13045_v50 }
 0x472   : >> { %11497 = vmatmul.mubr.msk.bf16.gmra.mrb[24].mxu0 %vm763_vm0, %v4211_v59 }
 0x4f4   : >> { %v3512_v60 = vpop.f32.mrb[0].mxu1 }
 0x4f5   : >> { %v11324_v61 = vpop.f32.mrb[1].mxu1 }
 0x4f6   : >> { %v3515_v62 = vpop.f32.mrb[2].mxu1 }
 0x4f7   : >> { %v11325_v63 = vpop.f32.mrb[3].mxu1 }
 0x4fc   : >> { %v3520_v1 = vpop.f32.mrb[4].mxu1 }
 0x4fd   : >> { %v11328_v2 = vpop.f32.mrb[5].mxu1 }
 0x4fe   : >> { %v3523_v5 = vpop.f32.mrb[6].mxu1 }
 0x4ff   : >> { %v11329_v6 = vpop.f32.mrb[7].mxu1 }
 0x504   : >> { %v3528_v7 = vpop.f32.mrb[8].mxu1 }
 0x505   : >> { %v11332_v8 = vpop.f32.mrb[9].mxu1 }
 0x506   : >> { %v3531_v9 = vpop.f32.mrb[10].mxu1 }
 0x507   : >> { %v11333_v10 = vpop.f32.mrb[11].mxu1 }
 0x50c   : >> { %v3536_v11 = vpop.f32.mrb[12].mxu1 }
 0x50d   : >> { %v11336_v12 = vpop.f32.mrb[13].mxu1 }
 0x50e   : >> { %v15592_v13 = vpop.f32.mrb[14].mxu1 }
 0x50f   : >> { %v11337_v50 = vpop.f32.mrb[15].mxu1 }
 0x515   : >> { %v4276_v14 = vpop.f32.mrb[0].mxu0 }
 0x516   : >> { %v12247_v46 = vadd.f32 %v4276_v14, %v3512_v60  ;;  %v11474_v16 = vpop.f32.mrb[1].mxu0 }
 0x517   : >> { %v4279_v17 = vpop.f32.mrb[2].mxu0 }
 0x518   : >> { %v4350_v20 = vmul.f32 %v12247_v46, %v15597_v15  ;;  %v12248_v21 = vadd.f32 %v4279_v17, %v3515_v62  ;;  %v11475_v22 = vpop.f32.mrb[3].mxu0  ;;  %v4447_v17 = vpop.permute.xlu1 %4446 }
 0x51a   : >> { %v4351_v23 = vmul.f32 %v12248_v21, %v15597_v15  ;;  %v4370_v24 = vadd.f32 %v15602_v19, %v4350_v20 }
 0x51c   : >> { %v4383_v25 = vmax.f32 %v4370_v24, 0.0  ;;  %v4371_v26 = vadd.f32 %v15602_v19, %v4351_v23 }
 0x51d   : >> { %v4284_v27 = vpop.f32.mrb[4].mxu0 }
 0x51e   : >> { %v4474_v29 = vmul.f32 %v4412_v18, %v4383_v25  ;;  %v12249_v30 = vadd.f32 %v4284_v27, %v3520_v1  ;;  %v11478_v31 = vpop.f32.mrb[5].mxu0  ;;  %v4384_v32 = vmax.f32 %v4371_v26, 0.0 }
 0x51f   : >> { %v4287_v33 = vpop.f32.mrb[6].mxu0 }
 0x520   : >> { %10095 = vst.msk [vmem:[%s15610_s26 + $0x35] sm:$0xff] %vm763_vm0, %v4474_v29  ;;  %v4352_v35 = vmul.f32 %v12249_v30, %v15597_v15  ;;  %v4475_v36 = vmul.f32 %v4417_v28, %v4384_v32  ;;  %v12250_v37 = vadd.f32 %v4287_v33, %v3523_v5  ;;  %v11479_v38 = vpop.f32.mrb[7].mxu0 }
 0x522   : >> { %10096 = vst.msk [vmem:[%s15610_s26 + $0x3d] sm:$0xff] %vm763_vm0, %v4475_v36  ;;  %v4353_v39 = vmul.f32 %v12250_v37, %v15597_v15  ;;  %v4372_v40 = vadd.f32 %v15602_v19, %v4352_v35  ;;  %v4457_v36 = vpop.permute.xlu1 %4456 }
 0x524   : >> { %v4385_v41 = vmax.f32 %v4372_v40, 0.0  ;;  %v4373_v43 = vadd.f32 %v15602_v19, %v4353_v39 }
 0x525   : >> { %v4292_v3 = vpop.f32.mrb[8].mxu0 }
 0x526   : >> { %v4476_v4 = vmul.f32 %v4422_v34, %v4385_v41  ;;  %v12251_v42 = vadd.f32 %v4292_v3, %v3528_v7  ;;  %v11482_v47 = vpop.f32.mrb[9].mxu0  ;;  %v4386_v48 = vmax.f32 %v4373_v43, 0.0 }
 0x527   : >> { %v4295_v49 = vpop.f32.mrb[10].mxu0 }
 0x528   : >> { %10097 = vst.msk [vmem:[%s15610_s26 + $0x45] sm:$0xff] %vm763_vm0, %v4476_v4  ;;  %v4354_v51 = vmul.f32 %v12251_v42, %v15597_v15  ;;  %v4477_v52 = vmul.f32 %v4427_v45, %v4386_v48  ;;  %v12252_v53 = vadd.f32 %v4295_v49, %v3531_v9  ;;  %v11483_v54 = vpop.f32.mrb[11].mxu0 }
 0x52a   : >> { %v4374_v55 = vadd.f32 %v15602_v19, %v4354_v51  ;;  %10098 = vst.msk [vmem:[%s15610_s26 + $0x4d] sm:$0xff] %vm763_vm0, %v4477_v52  ;;  %v4355_v44 = vmul.f32 %v12252_v53, %v15597_v15 }
 0x52c   : >> { %v4387_v57 = vmax.f32 %v4374_v55, 0.0  ;;  %v4375_v59 = vadd.f32 %v15602_v19, %v4355_v44  ;;  %v3696_v60 = vpop.f32.mrb[16].mxu1 }
 0x52d   : >> { %v4300_v61 = vpop.f32.mrb[12].mxu0  ;;  %v11370_v62 = vpop.f32.mrb[17].mxu1 }
 0x52e   : >> { %v4478_v63 = vmul.f32 %v4432_v56, %v4387_v57  ;;  %v4388_v1 = vmax.f32 %v4375_v59, 0.0  ;;  %v12253_v2 = vadd.f32 %v4300_v61, %v3536_v11  ;;  %v11486_v5 = vpop.f32.mrb[13].mxu0  ;;  %v3699_v6 = vpop.f32.mrb[18].mxu1 }
 0x52f   : >> { %v4303_v7 = vpop.f32.mrb[14].mxu0  ;;  %v11371_v8 = vpop.f32.mrb[19].mxu1 }
 0x530   : >> { %10099 = vst.msk [vmem:[%s15610_s26 + $0x55] sm:$0xff] %vm763_vm0, %v4478_v63  ;;  %v4479_v9 = vmul.f32 %v4437_v58, %v4388_v1  ;;  %v4356_v10 = vmul.f32 %v12253_v2, %v15597_v15  ;;  %v12254_v12 = vadd.f32 %v4303_v7, %v15592_v13  ;;  %v11487_v50 = vpop.f32.mrb[15].mxu0  ;;  %v4442_v11 = vpop.permute.xlu0 %4441 }
 0x531   : >> { %v4467_v63 = vpop.permute.xlu1 %4466 }
 0x532   : >> { %10100 = vst.msk [vmem:[%s15610_s26 + $0x5d] sm:$0xff] %vm763_vm0, %v4479_v9  ;;  %v4376_v14 = vadd.f32 %v15602_v19, %v4356_v10  ;;  %v4357_v46 = vmul.f32 %v12254_v12, %v15597_v15 }
 0x534   : >> { %v4389_v16 = vmax.f32 %v4376_v14, 0.0  ;;  %v4377_v18 = vadd.f32 %v15602_v19, %v4357_v46  ;;  %v3704_v20 = vpop.f32.mrb[20].mxu1  ;;  %v4452_v35 = vpop.permute.xlu0 %4451 }
 0x535   : >> { %v4308_v21 = vpop.f32.mrb[16].mxu0  ;;  %v11374_v22 = vpop.f32.mrb[21].mxu1 }
 0x536   : >> { %v4480_v23 = vmul.f32 %v4442_v11, %v4389_v16  ;;  %v4390_v24 = vmax.f32 %v4377_v18, 0.0  ;;  %v12255_v13 = vadd.f32 %v4308_v21, %v3696_v60  ;;  %v11490_v25 = vpop.f32.mrb[17].mxu0  ;;  %v3707_v26 = vpop.f32.mrb[22].mxu1 }
 0x537   : >> { %v4311_v27 = vpop.f32.mrb[18].mxu0  ;;  %v11375_v28 = vpop.f32.mrb[23].mxu1 }
 0x538   : >> { %10101 = vst.msk [vmem:[%s15610_s26 + $0x65] sm:$0xff] %vm763_vm0, %v4480_v23  ;;  %v4481_v29 = vmul.f32 %v4447_v17, %v4390_v24  ;;  %v4358_v30 = vmul.f32 %v12255_v13, %v15597_v15  ;;  %v12256_v31 = vadd.f32 %v4311_v27, %v3699_v6  ;;  %v11491_v32 = vpop.f32.mrb[19].mxu0  ;;  %v4462_v57 = vpop.permute.xlu0 %4461 }
 0x53a   : >> { %10102 = vst.msk [vmem:[%s15610_s26 + $0x6d] sm:$0xff] %vm763_vm0, %v4481_v29  ;;  %v4378_v33 = vadd.f32 %v15602_v19, %v4358_v30  ;;  %v4359_v34 = vmul.f32 %v12256_v31, %v15597_v15 }
 0x53c   : >> { %v4391_v37 = vmax.f32 %v4378_v33, 0.0  ;;  %v4379_v38 = vadd.f32 %v15602_v19, %v4359_v34  ;;  %v3712_v39 = vpop.f32.mrb[24].mxu1  ;;  %v4472_v9 = vpop.permute.xlu0 %4471 }
 0x53d   : >> { %v4316_v40 = vpop.f32.mrb[20].mxu0  ;;  %v11378_v41 = vpop.f32.mrb[25].mxu1 }
 0x53e   : >> { %v4482_v43 = vmul.f32 %v4452_v35, %v4391_v37  ;;  %v4392_v3 = vmax.f32 %v4379_v38, 0.0  ;;  %v12257_v45 = vadd.f32 %v4316_v40, %v3704_v20  ;;  %v11494_v4 = vpop.f32.mrb[21].mxu0  ;;  %v3715_v42 = vpop.f32.mrb[26].mxu1 }
 0x53f   : >> { %v4319_v47 = vpop.f32.mrb[22].mxu0  ;;  %v11379_v48 = vpop.f32.mrb[27].mxu1 }
 0x540   : >> { %10103 = vst.msk [vmem:[%s15610_s26 + $0x75] sm:$0xff] %vm763_vm0, %v4482_v43  ;;  %v4483_v49 = vmul.f32 %v4457_v36, %v4392_v3  ;;  %v4360_v51 = vmul.f32 %v12257_v45, %v15597_v15  ;;  %v12258_v52 = vadd.f32 %v4319_v47, %v3707_v26  ;;  %v11495_v53 = vpop.f32.mrb[23].mxu0 }
 0x542   : >> { %10104 = vst.msk [vmem:[%s15610_s26 + $0x7d] sm:$0xff] %vm763_vm0, %v4483_v49  ;;  %v4380_v54 = vadd.f32 %v15602_v19, %v4360_v51  ;;  %v4361_v55 = vmul.f32 %v12258_v52, %v15597_v15 }
 0x544   : >> { %v4393_v44 = vmax.f32 %v4380_v54, 0.0  ;;  %v4381_v56 = vadd.f32 %v15602_v19, %v4361_v55 }
 0x545   : >> { %v4324_v58 = vpop.f32.mrb[24].mxu0 }
 0x546   : >> { %v4484_v59 = vmul.f32 %v4462_v57, %v4393_v44  ;;  %v4394_v60 = vmax.f32 %v4381_v56, 0.0  ;;  %v12259_v61 = vadd.f32 %v4324_v58, %v3712_v39  ;;  %v11498_v62 = vpop.f32.mrb[25].mxu0 }
 0x547   : >> { %v4327_v1 = vpop.f32.mrb[26].mxu0 }
 0x548   : >> { %10105 = vst.msk [vmem:[%s15610_s26 + $0x85] sm:$0xff] %vm763_vm0, %v4484_v59  ;;  %v4485_v2 = vmul.f32 %v4467_v63, %v4394_v60  ;;  %v4362_v5 = vmul.f32 %v12259_v61, %v15597_v15  ;;  %v11499_v6 = vpop.f32.mrb[27].mxu0 }
 0x54a   : >> { %10106 = vst.msk [vmem:[%s15610_s26 + $0x8d] sm:$0xff] %vm763_vm0, %v4485_v2  ;;  %v4382_v7 = vadd.f32 %v15602_v19, %v4362_v5  ;;  %2989 = sbr.rel (!%p2987_p12) target bundleno = 879 (0x36f), region = 275 }
 0x54c   : >> { %v4395_v8 = vmax.f32 %v4382_v7, 0.0 }
 0x54e   : >> { %v4486_v10 = vmul.f32 %v4472_v9, %v4395_v8 }
 0x550   : >> { %10107 = vst.msk [vmem:[%s15610_s26 + $0x95] sm:$0x3f] %vm2983_vm6, %v4486_v10 }
 0x551 LB: >> { %s10108_s25 = smul.u32 260, %s13039_s9  ;;  %vm4590_vm8 = vcmask 123904   ;;  %s13039_s9 = sphi %s15664_s9, %s4507_s9  }
 0x552   : >> { %s9622_s27 = smul.u32 12, %s13039_s9  ;;  %s4507_s9 = sadd.s32 1, %s13039_s9  }
 0x553   : >> { %s15670_s0 = scalar_lea.vmem [#allocation3], %s10108_s25  ;;  %p4504_p13 = scmp.ge.s32.totalorder %s4507_s9, 10  }
 0x554   : >> { %s9623_s3 = scalar_lea.vmem [#allocation5], %s9622_s27  ;;  %s16932_s29 = sld [smem:[#allocation29_spill]] (%p4504_p13)  ;;  %vm6275_vm9 = vcmask (%p4504_p13), 259072   ;;  %vm13049_vm10 = vmmov (%p4504_p13), 0   ;;  %vm8019_vm11 = vcmask (%p4504_p13), 254976   ;;  %vm8653_vm12 = vcmask (%p4504_p13), 521216  }
 0x555   : > { %s16934_s28 = sld [smem:[#allocation30_spill]] (%p4504_p13)  ;;  %s16935_s26 = sld [smem:[#allocation31_spill]] (%p4504_p13)  ;;  %vm9391_vm13 = vcmask (%p4504_p13), 517120   ;;  %vm9397_vm14 = vcmask (%p4504_p13), 516096   ;;  %vm9481_vm15 = vcmask (%p4504_p13), 16384  }
 0x556   : > { %s10550_s25 = sshll.u32 (%p4504_p13), %s13202_s7, 4  ;;  %s9496_s9 = sshll.u32 (%p4504_p13), %s14709_s6, 4  ;;  %s16820_s9 = int_to_ptr.vmem [resolvable:$true] %s9496_s9 }
 0x557   : >> { %v10109_v15 = vld [vmem:[%s15670_s0 + $0x35] sm:$0xff]  ;;  %v10117_v19 = vld [vmem:[%s15670_s0 + $0x69] sm:$0xff]  ;;  %v10125_v12 = vld [vmem:[%s15670_s0 + $0x9d] sm:$0xff]  ;;  %s16938_s1 = sand.u32 (%p4504_p13), 1, %s13019_s2   ;;  %s13050_s7 = smov (%p4504_p13), [#allocation14]  }
 0x558   : >> { %v4529_v50 = vmax.f32 %v10109_v15, %v10117_v19  ;;  %v10110_v14 = vld [vmem:[%s15670_s0 + $0x3d] sm:$0xff]  ;;  %v10133_v46 = vld [vmem:[%s15670_s0 + $0xd1] sm:$0xff]  ;;  %v10126_v16 = vld [vmem:[%s15670_s0 + $0xa5] sm:$0xff]  ;;  %s12957_s5 = sshll.u32 (%p4504_p13), %s13050_s7, 4  ;;  %s12958_s5 = int_to_ptr.vmem [resolvable:$false] %s12957_s5 }
 0x559   : >> { %v10118_v11 = vld [vmem:[%s15670_s0 + $0x71] sm:$0xff]  ;;  %v10141_v18 = vld [vmem:[%s15670_s0 + $0x105] sm:$0xff]  ;;  %v10119_v22 = vld [vmem:[%s15670_s0 + $0x79] sm:$0xff]  ;;  %p12960_p3 = scmp.lt.s32.totalorder (%p4504_p13), %s16820_s9, %s12958_s5 }
 0x55a   : >> { %v4545_v17 = vmax.f32 %v4529_v50, %v10125_v12  ;;  %v4530_v20 = vmax.f32 %v10110_v14, %v10118_v11  ;;  %v10111_v21 = vld [vmem:[%s15670_s0 + $0x45] sm:$0xff]  ;;  %v10134_v23 = vld [vmem:[%s15670_s0 + $0xd9] sm:$0xff]  ;;  %v10127_v13 = vld [vmem:[%s15670_s0 + $0xad] sm:$0xff]  ;;  %s16933_s8 = smov (%p4504_p13), %s16932_s29 }
 0x55b   : >> { %v4531_v24 = vmax.f32 %v10111_v21, %v10119_v22  ;;  %v10135_v25 = vld [vmem:[%s15670_s0 + $0xe1] sm:$0xff]  ;;  %v10112_v28 = vld [vmem:[%s15670_s0 + $0x4d] sm:$0xff]  ;;  %v10128_v30 = vld [vmem:[%s15670_s0 + $0xb5] sm:$0xff] }
 0x55c   : >> { %v4561_v26 = vmax.f32 %v4545_v17, %v10133_v46  ;;  %v4546_v27 = vmax.f32 %v4530_v20, %v10126_v16  ;;  %v10120_v29 = vld [vmem:[%s15670_s0 + $0x81] sm:$0xff]  ;;  %v10142_v31 = vld [vmem:[%s15670_s0 + $0x10d] sm:$0xff]  ;;  %v10143_v33 = vld [vmem:[%s15670_s0 + $0x115] sm:$0xff] }
 0x55d   : >> { %v4547_v32 = vmax.f32 %v4531_v24, %v10127_v13  ;;  %v4532_v34 = vmax.f32 %v10112_v28, %v10120_v29  ;;  %v10113_v35 = vld [vmem:[%s15670_s0 + $0x55] sm:$0xff]  ;;  %v10136_v38 = vld [vmem:[%s15670_s0 + $0xe9] sm:$0xff]  ;;  %v10129_v40 = vld [vmem:[%s15670_s0 + $0xbd] sm:$0xff] }
 0x55e   : >> { %v4577_v36 = vmax.f32 %v4561_v26, %v10141_v18  ;;  %v4562_v37 = vmax.f32 %v4546_v27, %v10134_v23  ;;  %v10121_v39 = vld [vmem:[%s15670_s0 + $0x89] sm:$0xff]  ;;  %v10144_v3 = vld [vmem:[%s15670_s0 + $0x11d] sm:$0xff]  ;;  %v10122_v42 = vld [vmem:[%s15670_s0 + $0x91] sm:$0xff] }
 0x55f   : >> { %v4563_v41 = vmax.f32 %v4547_v32, %v10135_v25  ;;  %v4548_v43 = vmax.f32 %v4532_v34, %v10128_v30  ;;  %v4533_v45 = vmax.f32 %v10113_v35, %v10121_v39  ;;  %v10114_v4 = vld [vmem:[%s15670_s0 + $0x5d] sm:$0xff]  ;;  %v10137_v48 = vld [vmem:[%s15670_s0 + $0xf1] sm:$0xff]  ;;  %v10130_v51 = vld [vmem:[%s15670_s0 + $0xc5] sm:$0xff] }
 0x560   : >> { %4584 = vst.msk [vmem:[#allocation4] sm:$0xff] %vm763_vm0, %v4577_v36  ;;  %v4578_v47 = vmax.f32 %v4562_v37, %v10142_v31  ;;  %v4534_v49 = vmax.f32 %v10114_v4, %v10122_v42  ;;  %v10138_v52 = vld [vmem:[%s15670_s0 + $0xf9] sm:$0xff]  ;;  %v10115_v44 = vld [vmem:[%s15670_s0 + $0x65] sm:$0x3]  ;;  %v10131_v57 = vld [vmem:[%s15670_s0 + $0xcd] sm:$0x3] }
 0x561   : >> { %v4579_v53 = vmax.f32 %v4563_v41, %v10143_v33  ;;  %v4564_v54 = vmax.f32 %v4548_v43, %v10136_v38  ;;  %v4549_v55 = vmax.f32 %v4533_v45, %v10129_v40  ;;  %v10123_v56 = vld [vmem:[%s15670_s0 + $0x99] sm:$0x3]  ;;  %v10145_v58 = vld [vmem:[%s15670_s0 + $0x125] sm:$0xff]  ;;  %v10146_v63 = vld [vmem:[%s15670_s0 + $0x12d] sm:$0xff] }
 0x562   : >> { %4585 = vst.msk [vmem:[#allocation4 + $0x8] sm:$0xff] %vm763_vm0, %v4578_v47  ;;  %v4550_v59 = vmax.f32 %v4534_v49, %v10130_v51  ;;  %v4535_v60 = vmax.f32 %v10115_v44, %v10123_v56  ;;  %v10139_v1 = vld [vmem:[%s15670_s0 + $0x101] sm:$0x3]  ;;  %v10147_v7 = vld [vmem:[%s15670_s0 + $0x135] sm:$0x3]  ;;  %v12868_v27 = vld [vmem:[%s16932_s29 + $0x8] sm:$0xff] (%p4504_p13)  }
 0x563   : >> { %4586 = vst.msk [vmem:[#allocation4 + $0x10] sm:$0xff] %vm763_vm0, %v4579_v53  ;;  %v4580_v61 = vmax.f32 %v4564_v54, %v10144_v3  ;;  %v4565_v62 = vmax.f32 %v4549_v55, %v10137_v48  ;;  %11500 = vmatprep.subr.bf16.mxu0 (%p4504_p13), %v12868_v27  ;;  %v12869_v34 = vld [vmem:[%s16933_s8] sm:$0xff] (%p4504_p13)   ;;  %v12870_v43 = vld [vmem:[%s16933_s8 + $0x10] sm:$0xff] (%p4504_p13)   ;;  %s9484_s29 = scalar_lea.sflag (%p4504_p13), [#allocation15], %s16938_s1 }
 0x564   : >> { %v4566_v2 = vmax.f32 %v4550_v59, %v10138_v52  ;;  %v4551_v5 = vmax.f32 %v4535_v60, %v10131_v57  ;;  %11501 = vmatpush3.bf16.msra.mxu0 (%p4504_p13), %v12868_v27 }
 0x565   : >> { %4587 = vst.msk [vmem:[#allocation4 + $0x18] sm:$0xff] %vm763_vm0, %v4580_v61  ;;  %v4581_v6 = vmax.f32 %v4565_v62, %v10145_v58  ;;  %11518 = vmatprep.subr.bf16.mxu0 (%p4504_p13), %v12869_v34  ;;  %v12871_v61 = vld [vmem:[%s16933_s8 + $0x18] sm:$0xff] (%p4504_p13)  }
 0x566   : >> { %v4582_v8 = vmax.f32 %v4566_v2, %v10146_v63  ;;  %v4567_v9 = vmax.f32 %v4551_v5, %v10139_v1 }
 0x567   : >> { %4588 = vst.msk [vmem:[#allocation4 + $0x20] sm:$0xff] %vm763_vm0, %v4581_v6 }
 0x568   : >> { %4589 = vst.msk [vmem:[#allocation4 + $0x28] sm:$0xff] %vm763_vm0, %v4582_v8  ;;  %v4583_v10 = vmax.f32 %v4567_v9, %v10147_v7 }
 0x56a   : >> { %4591 = vst.msk [vmem:[#allocation4 + $0x30] sm:$0x3] %vm4590_vm8, %v4583_v10 }
 0x56e   : >> { %v4592_v15 = vld [vmem:[#allocation4] ss:$5 sm:$0xff]  ;;  %v4596_v19 = vld [vmem:[#allocation4 + $0x1] ss:$5 sm:$0xff] }
 0x56f   : >> { %v4599_v12 = vmax.f32 %v4592_v15, %v4596_v19  ;;  %v4602_v50 = vld [vmem:[#allocation4 + $0x2] ss:$5 sm:$0xff]  ;;  %v4594_v14 = vld [vmem:[#allocation4 + $0x28] ss:$5 sm:$0x3] }
 0x570   : >> { %v4598_v46 = vld [vmem:[#allocation4 + $0x29] ss:$5 sm:$0x3]  ;;  %v4608_v17 = vld [vmem:[#allocation4 + $0x3] ss:$5 sm:$0xff] }
 0x571   : >> { %v4605_v11 = vmax.f32 %v4599_v12, %v4602_v50  ;;  %v4600_v16 = vmax.f32 %v4594_v14, %v4598_v46  ;;  %v4604_v18 = vld [vmem:[#allocation4 + $0x2a] ss:$5 sm:$0x3]  ;;  %v4614_v22 = vld [vmem:[#allocation4 + $0x4] ss:$5 sm:$0xff] }
 0x572   : >> { %v4610_v23 = vld [vmem:[#allocation4 + $0x2b] ss:$5 sm:$0x3]  ;;  %v4616_v25 = vld [vmem:[#allocation4 + $0x2c] ss:$5 sm:$0x3] }
 0x573   : >> { %v4611_v20 = vmax.f32 %v4605_v11, %v4608_v17  ;;  %v4606_v21 = vmax.f32 %v4600_v16, %v4604_v18  ;;  %4506 = sbr.rel (!%p4504_p13) target bundleno = 1361 (0x551), region = 286 }
 0x575   : >> { %v4617_v24 = vmax.f32 %v4611_v20, %v4614_v22  ;;  %v4612_v13 = vmax.f32 %v4606_v21, %v4610_v23 }
 0x577   : >> { %10148 = vst.msk [vmem:[%s9623_s3 + $0xd] sm:$0xff] %vm763_vm0, %v4617_v24  ;;  %v4618_v26 = vmax.f32 %v4612_v13, %v4616_v25  ;;  %v12872_v13 = vld [vmem:[%s16933_s8 + $0x20] sm:$0xff] (%p4504_p13)  }
 0x579   : >> { %10149 = vst.msk [vmem:[%s9623_s3 + $0x15] sm:$0x3] %vm4590_vm8, %v4618_v26  ;;  %s16937_s3 = sld [smem:[#allocation32_spill]] (%p4504_p13) }
 0x580   : > { %v4650_v28 = vld [vmem:[#allocation5 + $0x1] sm:$0xff]  ;;  %v4651_v29 = vld [vmem:[#allocation5 + $0x9] sm:$0xff]  ;;  %v4652_v30 = vld [vmem:[#allocation5 + $0x11] sm:$0xff] }
 0x581   : > { %v4665_v31 = vpack.c.bf16 %v4651_v29, %v4650_v28  ;;  %v15723_v32 = vld [vmem:[#allocation5 + $0x19] sm:$0xff]  ;;  %v15729_v35 = vld [vmem:[#allocation5 + $0x21] sm:$0xff]  ;;  %v15731_v36 = vld [vmem:[#allocation5 + $0x29] sm:$0xff] }
 0x582   : > { %v4666_v33 = vpack.c.bf16 %v15723_v32, %v4652_v30  ;;  %v4667_v37 = vpack.c.bf16 %v15731_v36, %v15729_v35  ;;  %v15738_v38 = vld [vmem:[#allocation5 + $0x31] sm:$0xff]  ;;  %v15740_v39 = vld [vmem:[#allocation5 + $0x39] sm:$0xff]  ;;  %v15742_v40 = vld [vmem:[#allocation5 + $0x41] sm:$0xff] }
 0x583   : > { %11502 = vmatprep.mubr.msk.bf16.mxu0 %vm763_vm0, %v4665_v31  ;;  %v15744_v41 = vld [vmem:[#allocation5 + $0x49] sm:$0xff]  ;;  %v4668_v3 = vpack.c.bf16 %v15740_v39, %v15738_v38  ;;  %v15755_v4 = vld [vmem:[#allocation5 + $0x51] sm:$0xff]  ;;  %v15757_v42 = vld [vmem:[#allocation5 + $0x59] sm:$0xff] }
 0x584   : > { %11503 = vmatmul.mubr.msk.bf16.vlgmr.msra.gmra.mrb[0].mxu0 %vm763_vm0, %v4666_v33  ;;  %v4669_v45 = vpack.c.bf16 %v15744_v41, %v15742_v40  ;;  %v15759_v47 = vld [vmem:[#allocation5 + $0x61] sm:$0xff]  ;;  %v15761_v48 = vld [vmem:[#allocation5 + $0x69] sm:$0xff]  ;;  %v4670_v49 = vpack.c.bf16 %v15757_v42, %v15755_v4  ;;  %v4664_v52 = vld [vmem:[#allocation5 + $0x71] sm:$0x3f] }
 0x585   : > { %11519 = vmatpush3.bf16.msra.mxu0 %v12869_v34  ;;  %11506 = vmatprep.mubr.msk.bf16.mxu0 %vm763_vm0, %v4667_v37  ;;  %v4671_v51 = vpack.c.bf16 %v15761_v48, %v15759_v47  ;;  %v4625_v53 = vld [vmem:[#allocation5] sm:$0xff]  ;;  %v4626_v54 = vld [vmem:[#allocation5 + $0x8] sm:$0xff]  ;;  %v4672_v55 = vpack.c.bf16 %v4664_v52, %v4664_v52  ;;  %v4627_v56 = vld [vmem:[#allocation5 + $0x10] sm:$0xff] }
 0x586   : > { %11536 = vmatprep.subr.bf16.mxu0 %v12870_v43  ;;  %v4640_v44 = vpack.c.bf16 %v4626_v54, %v4625_v53  ;;  %v15771_v57 = vld [vmem:[#allocation5 + $0x18] sm:$0xff]  ;;  %v15773_v58 = vld [vmem:[#allocation5 + $0x20] sm:$0xff]  ;;  %v15775_v59 = vld [vmem:[#allocation5 + $0x28] sm:$0xff] }
 0x587   : > { %v4641_v60 = vpack.c.bf16 %v15771_v57, %v4627_v56  ;;  %v4642_v62 = vpack.c.bf16 %v15775_v59, %v15773_v58  ;;  %v15785_v63 = vld [vmem:[#allocation5 + $0x30] sm:$0xff]  ;;  %v15787_v1 = vld [vmem:[#allocation5 + $0x38] sm:$0xff]  ;;  %v15789_v2 = vld [vmem:[#allocation5 + $0x40] sm:$0xff]  ;;  %v5611_v22 = vpack.c.bf16 %v15773_v58, %v15771_v57 }
 0x588   : > { %v15791_v5 = vld [vmem:[#allocation5 + $0x48] sm:$0xff]  ;;  %v4643_v6 = vpack.c.bf16 %v15787_v1, %v15785_v63  ;;  %v15798_v8 = vld [vmem:[#allocation5 + $0x50] sm:$0xff]  ;;  %v15800_v9 = vld [vmem:[#allocation5 + $0x58] sm:$0xff]  ;;  %v5612_v23 = vpack.c.bf16 %v15785_v63, %v15775_v59  ;;  %v5613_v30 = vpack.c.bf16 %v15789_v2, %v15787_v1 }
 0x589   : > { %v4644_v7 = vpack.c.bf16 %v15791_v5, %v15789_v2  ;;  %v15803_v10 = vld [vmem:[#allocation5 + $0x60] sm:$0xff]  ;;  %v15805_v15 = vld [vmem:[#allocation5 + $0x68] sm:$0xff]  ;;  %v4645_v19 = vpack.c.bf16 %v15800_v9, %v15798_v8  ;;  %v4639_v50 = vld [vmem:[#allocation5 + $0x70] sm:$0x3f]  ;;  %v5614_v31 = vpack.c.bf16 %v15798_v8, %v15791_v5 }
 0x58a   : > { %v4646_v12 = vpack.c.bf16 %v15805_v15, %v15803_v10  ;;  %v4928_v14 = vld [vmem:[#allocation5 + $0x2] sm:$0xff]  ;;  %v4929_v46 = vld [vmem:[#allocation5 + $0xa] sm:$0xff]  ;;  %v4647_v11 = vpack.c.bf16 %v4639_v50, %v4639_v50  ;;  %v4930_v17 = vld [vmem:[#allocation5 + $0x12] sm:$0xff]  ;;  %v5615_v57 = vpack.c.bf16 %v15803_v10, %v15800_v9 }
 0x58b   : > { %v4943_v16 = vpack.c.bf16 %v4929_v46, %v4928_v14  ;;  %v15813_v18 = vld [vmem:[#allocation5 + $0x1a] sm:$0xff]  ;;  %v15816_v20 = vld [vmem:[#allocation5 + $0x22] sm:$0xff]  ;;  %v15818_v21 = vld [vmem:[#allocation5 + $0x2a] sm:$0xff] }
 0x58c   : > { %11507 = vmatmul.mubr.msk.bf16.gmra.mrb[4].mxu0 %vm763_vm0, %v4668_v3  ;;  %v4944_v24 = vpack.c.bf16 %v15813_v18, %v4930_v17  ;;  %v4945_v25 = vpack.c.bf16 %v15818_v21, %v15816_v20  ;;  %v15831_v26 = vld [vmem:[#allocation5 + $0x32] sm:$0xff]  ;;  %v15833_v27 = vld [vmem:[#allocation5 + $0x3a] sm:$0xff]  ;;  %v15836_v28 = vld [vmem:[#allocation5 + $0x42] sm:$0xff] }
 0x58d   : > { %11510 = vmatprep.mubr.msk.bf16.mxu0 %vm763_vm0, %v4669_v45  ;;  %v15838_v29 = vld [vmem:[#allocation5 + $0x4a] sm:$0xff]  ;;  %v4946_v33 = vpack.c.bf16 %v15833_v27, %v15831_v26  ;;  %v15849_v37 = vld [vmem:[#allocation5 + $0x52] sm:$0xff]  ;;  %v15854_v3 = vld [vmem:[#allocation5 + $0x62] sm:$0xff] }
 0x58e   : > { %v4947_v34 = vpack.c.bf16 %v15838_v29, %v15836_v28  ;;  %v15857_v45 = vld [vmem:[#allocation5 + $0x6a] sm:$0xff]  ;;  %v4942_v52 = vld [vmem:[#allocation5 + $0x72] sm:$0x3f]  ;;  %v5097_v56 = vld [vmem:[#allocation5 + $0x1c] sm:$0xff] }
 0x58f   : > { %v5095_v53 = vld [vmem:[#allocation5 + $0xc] sm:$0xff]  ;;  %v5096_v54 = vld [vmem:[#allocation5 + $0x14] sm:$0xff]  ;;  %v5102_v50 = vld [vmem:[#allocation5 + $0x44] sm:$0xff] }
 0x590   : > { %v5103_v14 = vld [vmem:[#allocation5 + $0x4c] sm:$0xff]  ;;  %v5104_v46 = vld [vmem:[#allocation5 + $0x54] sm:$0xff]  ;;  %v5105_v17 = vld [vmem:[#allocation5 + $0x5c] sm:$0xff] }
 0x591   : > { %v5607_v58 = vld [vmem:[#allocation5 + $0x70] sm:$0xff]  ;;  %v5608_v59 = vld [vmem:[#allocation5 + $0x78] sm:$0xff]  ;;  %v5609_v63 = vld [vmem:[#allocation5 + $0x80] sm:$0xff] }
 0x592   : > { %v5616_v1 = vpack.c.bf16 %v5607_v58, %v15805_v15  ;;  %v5617_v2 = vpack.c.bf16 %v5609_v63, %v5608_v59  ;;  %v7894_v5 = vld [vmem:[%s16886_s23 + $0x70] sm:$0x3f]  ;;  %v5610_v8 = vld [vmem:[#allocation5 + $0x88] sm:$0x3f] }
 0x593   : > { %v8646_v9 = vld [vmem:[%s16887_s24] sm:$0x3f]  ;;  %v5618_v10 = vpack.c.bf16 %v5610_v8, %v5610_v8 }
 0x594   : > { %11511 = vmatmul.mubr.msk.bf16.gmra.mrb[8].mxu0 %vm763_vm0, %v4670_v49  ;;  %v9380_v15 = vld [vmem:[%s16887_s24] sm:$0x3f] }
 0x595   : > { %11514 = vmatprep.mubr.msk.bf16.mxu0 %vm763_vm0, %v4671_v51  ;;  %v4949_v51 = vpack.c.bf16 %v15857_v45, %v15854_v3 }
 0x59c   : > { %11515 = vmatmul.mubr.msk.bf16.gmra.mrb[12].mxu0 %vm763_vm0, %v4672_v55  ;;  %v4950_v55 = vpack.c.bf16 %v4942_v52, %v4942_v52  ;;  %v5263_v52 = vld [vmem:[#allocation5 + $0x15] sm:$0xff] }
 0x59d   : > { %11520 = vmatprep.mubr.msk.bf16.mxu0 %vm763_vm0, %v4640_v44  ;;  %v5110_v44 = vpack.c.bf16 %v5096_v54, %v5095_v53 }
 0x5a4   : > { %11521 = vmatmul.mubr.msk.bf16.vlgmr.msra.gmra.mrb[0].mxu0 %vm763_vm0, %v4641_v60  ;;  %v5098_v60 = vld [vmem:[#allocation5 + $0x24] sm:$0xff] }
 0x5a5   : > { %11537 = vmatpush3.bf16.msra.mxu0 %v12870_v43  ;;  %11524 = vmatprep.mubr.msk.bf16.mxu0 %vm763_vm0, %v4642_v62  ;;  %v15851_v43 = vld [vmem:[#allocation5 + $0x5a] sm:$0xff] }
 0x5a6   : > { %11554 = vmatprep.subr.bf16.mxu0 %v12871_v61  ;;  %v4948_v49 = vpack.c.bf16 %v15851_v43, %v15849_v37  ;;  %v5100_v62 = vld [vmem:[#allocation5 + $0x34] sm:$0xff] }
 0x5ac   : > { %11525 = vmatmul.mubr.msk.bf16.gmra.mrb[4].mxu0 %vm763_vm0, %v4643_v6  ;;  %v5111_v6 = vpack.c.bf16 %v5098_v60, %v5097_v56  ;;  %v5266_v56 = vld [vmem:[#allocation5 + $0x2d] sm:$0xff]  ;;  %v5267_v60 = vld [vmem:[#allocation5 + $0x35] sm:$0xff] }
 0x5ad   : > { %11528 = vmatprep.mubr.msk.bf16.mxu0 %vm763_vm0, %v4644_v7 }
 0x5b4   : > { %11529 = vmatmul.mubr.msk.bf16.gmra.mrb[8].mxu0 %vm763_vm0, %v4645_v19  ;;  %v12873_v19 = vld [vmem:[%s16933_s8 + $0x28] sm:$0xff]  }
 0x5b5   : > { %11532 = vmatprep.mubr.msk.bf16.mxu0 %vm763_vm0, %v4646_v12  ;;  %v5101_v12 = vld [vmem:[#allocation5 + $0x3c] sm:$0xff] }
 0x5bc   : > { %11533 = vmatmul.mubr.msk.bf16.gmra.mrb[12].mxu0 %vm763_vm0, %v4647_v11  ;;  %v5113_v11 = vpack.c.bf16 %v5102_v50, %v5101_v12  ;;  %v5269_v12 = vld [vmem:[#allocation5 + $0x45] sm:$0xff]  ;;  %v5270_v50 = vld [vmem:[#allocation5 + $0x4d] sm:$0xff] }
 0x5bd   : > { %11538 = vmatprep.mubr.msk.bf16.mxu0 %vm763_vm0, %v4943_v16  ;;  %v5114_v16 = vpack.c.bf16 %v5104_v46, %v5103_v14  ;;  %v5271_v14 = vld [vmem:[#allocation5 + $0x55] sm:$0xff] }
 0x5c4   : > { %11539 = vmatmul.mubr.msk.bf16.vlgmr.msra.gmra.mrb[0].mxu0 %vm763_vm0, %v4944_v24  ;;  %v5106_v24 = vld [vmem:[#allocation5 + $0x64] sm:$0xff] }
 0x5c5   : > { %11555 = vmatpush3.bf16.msra.mxu0 %v12871_v61  ;;  %11542 = vmatprep.mubr.msk.bf16.mxu0 %vm763_vm0, %v4945_v25  ;;  %v5099_v61 = vld [vmem:[#allocation5 + $0x2c] sm:$0xff] }
 0x5c6   : > { %11572 = vmatprep.subr.bf16.mxu0 %v12872_v13  ;;  %v5112_v7 = vpack.c.bf16 %v5100_v62, %v5099_v61  ;;  %v5107_v25 = vld [vmem:[#allocation5 + $0x6c] sm:$0xff]  ;;  %v5279_v62 = vpack.c.bf16 %v5267_v60, %v5266_v56  ;;  %v13048_v56 = vmov 0  }
 0x5c7   : > { %12866 = vset.pattern.permute.xlu0 %v13048_v56  ;;  %v5433_v60 = vld [vmem:[#allocation5 + $0x2e] sm:$0xff]  ;;  %12867 = vset.pattern.permute.xlu1 %v13048_v56  ;;  %v6162_v56 = vld [vmem:[%s16886_s23 + $0x30] sm:$0xff] }
 0x5cc   : > { %11543 = vmatmul.mubr.msk.bf16.gmra.mrb[4].mxu0 %vm763_vm0, %v4946_v33  ;;  %v5108_v33 = vld [vmem:[#allocation5 + $0x74] sm:$0xff] }
 0x5cd   : > { %11546 = vmatprep.mubr.msk.bf16.mxu0 %vm763_vm0, %v4947_v34  ;;  %v5115_v34 = vpack.c.bf16 %v5106_v24, %v5105_v17  ;;  %v5273_v17 = vld [vmem:[#allocation5 + $0x65] sm:$0xff]  ;;  %v5274_v24 = vld [vmem:[#allocation5 + $0x6d] sm:$0xff] }
 0x5d4   : > { %11547 = vmatmul.mubr.msk.bf16.gmra.mrb[8].mxu0 %vm763_vm0, %v4948_v49  ;;  %v5116_v49 = vpack.c.bf16 %v5108_v33, %v5107_v25  ;;  %v5275_v25 = vld [vmem:[#allocation5 + $0x75] sm:$0xff] }
 0x5d5   : > { %11550 = vmatprep.mubr.msk.bf16.mxu0 %vm763_vm0, %v4949_v51  ;;  %v5262_v51 = vld [vmem:[#allocation5 + $0xd] sm:$0xff] }
 0x5d6   : > { %v5277_v54 = vpack.c.bf16 %v5263_v52, %v5262_v51 }
 0x5dc   : > { %11551 = vmatmul.mubr.msk.bf16.gmra.mrb[12].mxu0 %vm763_vm0, %v4950_v55  ;;  %v5264_v55 = vld [vmem:[#allocation5 + $0x1d] sm:$0xff] }
 0x5dd   : > { %11556 = vmatprep.mubr.msk.bf16.mxu0 %vm763_vm0, %v5110_v44  ;;  %v5265_v44 = vld [vmem:[#allocation5 + $0x25] sm:$0xff] }
 0x5de   : > { %v5278_v61 = vpack.c.bf16 %v5265_v44, %v5264_v55  ;;  %v5431_v55 = vld [vmem:[#allocation5 + $0x1e] sm:$0xff]  ;;  %v5432_v44 = vld [vmem:[#allocation5 + $0x26] sm:$0xff] }
 0x5e4   : > { %11557 = vmatmul.mubr.msk.bf16.vlgmr.msra.gmra.mrb[0].mxu0 %vm763_vm0, %v5111_v6  ;;  %v12874_v6 = vld [vmem:[%s16933_s8 + $0x30] sm:$0xff]  }
 0x5e5   : > { %11573 = vmatpush3.bf16.msra.mxu0 %v12872_v13  ;;  %11560 = vmatprep.mubr.msk.bf16.mxu0 %vm763_vm0, %v5112_v7  ;;  %v5109_v13 = vld [vmem:[#allocation5 + $0x7c] sm:$0x3f] }
 0x5e6   : > { %11590 = vmatprep.subr.bf16.mxu0 %v12873_v19  ;;  %v5117_v53 = vpack.c.bf16 %v5109_v13, %v5109_v13  ;;  %v5268_v7 = vld [vmem:[#allocation5 + $0x3d] sm:$0xff] }
 0x5e7   : > { %v5280_v46 = vpack.c.bf16 %v5269_v12, %v5268_v7  ;;  %v5430_v13 = vld [vmem:[#allocation5 + $0x16] sm:$0xff]  ;;  %v5445_v7 = vpack.c.bf16 %v5432_v44, %v5431_v55  ;;  %v5441_v55 = vld [vmem:[#allocation5 + $0x6e] sm:$0xff] }
 0x5e8   : > { %v15909_v12 = vld [vmem:[%s16886_s23 + $0x68] sm:$0xff] }
 0x5e9   : > { %v5442_v44 = vld [vmem:[#allocation5 + $0x76] sm:$0xff] }
 0x5ec   : > { %11561 = vmatmul.mubr.msk.bf16.gmra.mrb[4].mxu0 %vm763_vm0, %v5113_v11  ;;  %v5281_v11 = vpack.c.bf16 %v5271_v14, %v5270_v50  ;;  %v12875_v14 = vld [vmem:[%s16933_s8 + $0x38] sm:$0xff]  }
 0x5ed   : > { %11564 = vmatprep.mubr.msk.bf16.mxu0 %vm763_vm0, %v5114_v16  ;;  %v5272_v16 = vld [vmem:[#allocation5 + $0x5d] sm:$0xff] }
 0x5ee   : > { %v5282_v33 = vpack.c.bf16 %v5273_v17, %v5272_v16  ;;  %v5435_v16 = vld [vmem:[#allocation5 + $0x3e] sm:$0xff]  ;;  %v5436_v17 = vld [vmem:[#allocation5 + $0x46] sm:$0xff] }
 0x5f4   : > { %11565 = vmatmul.mubr.msk.bf16.gmra.mrb[8].mxu0 %vm763_vm0, %v5115_v34  ;;  %v5283_v34 = vpack.c.bf16 %v5275_v25, %v5274_v24  ;;  %v5437_v24 = vld [vmem:[#allocation5 + $0x4e] sm:$0xff]  ;;  %v5438_v25 = vld [vmem:[#allocation5 + $0x56] sm:$0xff] }
 0x5f5   : > { %11568 = vmatprep.mubr.msk.bf16.mxu0 %vm763_vm0, %v5116_v49  ;;  %v5429_v49 = vld [vmem:[#allocation5 + $0xe] sm:$0xff] }
 0x5f6   : > { %v5444_v52 = vpack.c.bf16 %v5430_v13, %v5429_v49  ;;  %v5448_v49 = vpack.c.bf16 %v5438_v25, %v5437_v24  ;;  %v6161_v13 = vld [vmem:[%s16886_s23 + $0x28] sm:$0xff]  ;;  %v6170_v24 = vld [vmem:[%s16886_s23 + $0x70] sm:$0x3f] }
 0x5fc   : > { %11569 = vmatmul.mubr.msk.bf16.gmra.mrb[12].mxu0 %vm763_vm0, %v5117_v53  ;;  %v15891_v53 = vld [vmem:[%s16886_s23 + $0x50] sm:$0xff] }
 0x5fd   : > { %11574 = vmatprep.mubr.msk.bf16.mxu0 %vm763_vm0, %v5277_v54  ;;  %v15896_v54 = vld [vmem:[%s16886_s23 + $0x60] sm:$0xff]  ;;  %6223 = vperm.xlu0 %12866, %v15891_v53  }
 0x5fe   : > { %6233 = vperm.xlu1 %12867, %v15896_v54  }
 0x602   : > { %6238 = vperm.xlu1 %12867, %v15909_v12  }
 0x604   : > { %11575 = vmatmul.mubr.msk.bf16.vlgmr.msra.gmra.mrb[0].mxu0 %vm763_vm0, %v5278_v61  ;;  %v5434_v61 = vld [vmem:[#allocation5 + $0x36] sm:$0xff] }
 0x605   : > { %11591 = vmatpush3.bf16.msra.mxu0 %v12873_v19  ;;  %11578 = vmatprep.mubr.msk.bf16.mxu0 %vm763_vm0, %v5279_v62  ;;  %v5276_v19 = vld [vmem:[#allocation5 + $0x7d] sm:$0x3f]  ;;  %v5446_v50 = vpack.c.bf16 %v5434_v61, %v5433_v60 }
 0x606   : > { %11608 = vmatprep.subr.bf16.mxu0 %v12874_v6  ;;  %v5284_v51 = vpack.c.bf16 %v5276_v19, %v5276_v19  ;;  %v15904_v62 = vld [vmem:[%s16886_s23 + $0x58] sm:$0xff] }
 0x607   : > { %6228 = vperm.xlu0 %12866, %v15904_v62   ;;  %v6159_v19 = vld [vmem:[%s16886_s23 + $0x18] sm:$0xff] }
 0x608   : > { %v6163_v61 = vld [vmem:[%s16886_s23 + $0x38] sm:$0xff] }
 0x60c   : > { %11579 = vmatmul.mubr.msk.bf16.gmra.mrb[4].mxu0 %vm763_vm0, %v5280_v46  ;;  %v6156_v46 = vld [vmem:[%s16886_s23] sm:$0xff] }
 0x60d   : > { %11582 = vmatprep.mubr.msk.bf16.mxu0 %vm763_vm0, %v5281_v11  ;;  %v6157_v11 = vld [vmem:[%s16886_s23 + $0x8] sm:$0xff]  ;;  %6173 = vperm.xlu0 %12866, %v6156_v46  }
 0x60e   : > { %6178 = vperm.xlu1 %12867, %v6157_v11  }
 0x612   : > { %6188 = vperm.xlu1 %12867, %v6159_v19  }
 0x614   : > { %11583 = vmatmul.mubr.msk.bf16.gmra.mrb[8].mxu0 %vm763_vm0, %v5282_v33  ;;  %v6158_v33 = vld [vmem:[%s16886_s23 + $0x10] sm:$0xff] }
 0x615   : > { %11586 = vmatprep.mubr.msk.bf16.mxu0 %vm763_vm0, %v5283_v34  ;;  %v5447_v34 = vpack.c.bf16 %v5436_v17, %v5435_v16  ;;  %6183 = vperm.xlu0 %12866, %v6158_v33   ;;  %v6165_v16 = vld [vmem:[%s16886_s23 + $0x48] sm:$0xff]  ;;  %v5443_v17 = vld [vmem:[#allocation5 + $0x7e] sm:$0x3f] }
 0x616   : > { %6198 = vperm.xlu1 %12867, %v6161_v13   ;;  %v5451_v25 = vpack.c.bf16 %v5443_v17, %v5443_v17 }
 0x61a   : > { %6208 = vperm.xlu1 %12867, %v6163_v61  }
 0x61c   : > { %11587 = vmatmul.mubr.msk.bf16.gmra.mrb[12].mxu0 %vm763_vm0, %v5284_v51  ;;  %v5439_v51 = vld [vmem:[#allocation5 + $0x5e] sm:$0xff] }
 0x61d   : > { %11592 = vmatprep.mubr.msk.bf16.mxu0 %vm763_vm0, %v5444_v52  ;;  %v5440_v52 = vld [vmem:[#allocation5 + $0x66] sm:$0xff] }
 0x61e   : > { %v5449_v60 = vpack.c.bf16 %v5440_v52, %v5439_v51  ;;  %6218 = vperm.xlu1 %12867, %v6165_v16  }
 0x622   : > { %7897 = vperm.xlu1 %12867, %v6156_v46  }
 0x624   : > { %11593 = vmatmul.mubr.msk.bf16.vlgmr.msra.gmra.mrb[0].mxu0 %vm763_vm0, %v5445_v7  ;;  %v5450_v7 = vpack.c.bf16 %v5442_v44, %v5441_v55 }
 0x625   : > { %11609 = vmatpush3.bf16.msra.mxu0 %v12874_v6  ;;  %11596 = vmatprep.mubr.msk.bf16.mxu0 %vm763_vm0, %v5446_v50  ;;  %v6160_v6 = vld [vmem:[%s16886_s23 + $0x20] sm:$0xff] }
 0x626   : > { %11626 = vmatprep.subr.bf16.mxu0 %v12875_v14  ;;  %6193 = vperm.xlu0 %12866, %v6160_v6   ;;  %v6164_v50 = vld [vmem:[%s16886_s23 + $0x40] sm:$0xff] }
 0x627   : > { %7907 = vperm.xlu1 %12867, %v6158_v33   ;;  %v16057_v33 = vld [vmem:[%s16934_s28] ss:$0 sm:$0xff]  ;;  %s16818_s28 = scalar_lea.hbm %s16937_s3, %s10550_s25 }
 0x62a   : > { %6203 = vperm.xlu0 %12866, %v6162_v56  }
 0x62b   : > { %7917 = vperm.xlu1 %12867, %v6160_v6  }
 0x62c   : > { %11597 = vmatmul.mubr.msk.bf16.gmra.mrb[4].mxu0 %vm763_vm0, %v5447_v34  ;;  %v12876_v34 = vld [vmem:[%s16933_s8 + $0x40] sm:$0xff]   ;;  %s12959_s8 = scalar_lea.vmem %s12958_s5, 32 }
 0x62d   : > { %11600 = vmatprep.mubr.msk.bf16.mxu0 %vm763_vm0, %v5448_v49  ;;  %v16062_v49 = vld [vmem:[%s16935_s26] ss:$0 sm:$0xff]  ;;  %s12953_s26 = scalar_lea.vmem %s16820_s9, 16 }
 0x62e   : > { %6213 = vperm.xlu0 %12866, %v6164_v50   ;;  %p12954_p0 = scmp.ne.s32.totalorder %s16820_s9, %s12953_s26  ;;  %p12961_p4 = scmp.lt.s32.totalorder %s12959_s8, %s12953_s26 }
 0x62f   : > { %7927 = vperm.xlu1 %12867, %v6162_v56  }
 0x630   : > { %p12955_p1 = pnand %p12954_p0, %p13219_p5  ;;  %p12962_p7 = por %p12961_p4, %p12960_p3 }
 0x632   : > { %6243 = vperm.xlu0 %12866, %v6170_v24   ;;  %p12956_p2 = pneg %p12955_p1 }
 0x633   : > { %7937 = vperm.xlu1 %12867, %v6164_v50  }
 0x634   : > { %11601 = vmatmul.mubr.msk.bf16.gmra.mrb[8].mxu0 %vm763_vm0, %v5449_v60  ;;  %p12963_p8 = pnand %p12962_p7, %p12956_p2 }
 0x635   : > { %11604 = vmatprep.mubr.msk.bf16.mxu0 %vm763_vm0, %v5450_v7 }
 0x636   : > { %7902 = vperm.xlu0 %12866, %v6157_v11  }
 0x637   : > { %7947 = vperm.xlu1 %12867, %v15891_v53   ;;  %v5777_v53 = vld [vmem:[#allocation5 + $0x89] sm:$0x3f] }
 0x63a   : > { %7912 = vperm.xlu0 %12866, %v6159_v19  }
 0x63b   : > { %7957 = vperm.xlu1 %12867, %v15896_v54   ;;  %v5785_v54 = vpack.c.bf16 %v5777_v53, %v5777_v53 }
 0x63c   : > { %11605 = vmatmul.mubr.msk.bf16.gmra.mrb[12].mxu0 %vm763_vm0, %v5451_v25 }
 0x63d   : > { %11610 = vmatprep.mubr.msk.bf16.mxu0 %vm763_vm0, %v5611_v22  ;;  %v5778_v22 = vpack.c.bf16 %v15729_v35, %v15723_v32  ;;  %v5781_v32 = vpack.c.bf16 %v15755_v4, %v15744_v41  ;;  %v5782_v35 = vpack.c.bf16 %v15759_v47, %v15757_v42  ;;  %v5945_v41 = vpack.c.bf16 %v15816_v20, %v15813_v18  ;;  %v5941_v18 = vld [vmem:[#allocation5 + $0x72] sm:$0xff]  ;;  %v5942_v20 = vld [vmem:[#allocation5 + $0x7a] sm:$0xff] }
 0x63e   : > { %7922 = vperm.xlu0 %12866, %v6161_v13   ;;  %v5946_v4 = vpack.c.bf16 %v15831_v26, %v15818_v21  ;;  %v5947_v42 = vpack.c.bf16 %v15836_v28, %v15833_v27  ;;  %v5948_v47 = vpack.c.bf16 %v15849_v37, %v15838_v29  ;;  %v5943_v21 = vld [vmem:[#allocation5 + $0x82] sm:$0xff]  ;;  %v5950_v26 = vpack.c.bf16 %v5941_v18, %v15857_v45  ;;  %v5944_v28 = vld [vmem:[#allocation5 + $0x8a] sm:$0x3f]  ;;  %v12877_v29 = vld [vmem:[%s16873_s10 + $0x10] sm:$0xff]  }
 0x63f   : > { %7967 = vperm.xlu1 %12867, %v7894_v5   ;;  %v5951_v27 = vpack.c.bf16 %v5943_v21, %v5942_v20  ;;  %12456 = vmatprep.subr.bf16.mxu1 %v12877_v29  ;;  %v12878_v37 = vld [vmem:[%s16873_s10 + $0x18] sm:$0xff]  }
 0x640   : > { %12458 = vmatpush3.bf16.msra.mxu1 %v12877_v29 }
 0x641   : > { %12457 = vmatprep.subr.bf16.mxu1 %v12878_v37 }
 0x642   : > { %7932 = vperm.xlu0 %12866, %v6163_v61  }
 0x643   : > { %9383 = vperm.xlu1 %12867, %v9380_v15  }
 0x644   : > { %11611 = vmatmul.mubr.msk.bf16.vlgmr.msra.gmra.mrb[0].mxu0 %vm763_vm0, %v5612_v23  ;;  %v5779_v23 = vpack.c.bf16 %v15738_v38, %v15731_v36  ;;  %v5775_v36 = vld [vmem:[#allocation5 + $0x79] sm:$0xff]  ;;  %v5776_v38 = vld [vmem:[#allocation5 + $0x81] sm:$0xff]  ;;  %12459 = vmatpush3.bf16.msra.mxu1 %v12878_v37 }
 0x645   : > { %11627 = vmatpush3.bf16.msra.mxu0 %v12875_v14  ;;  %11614 = vmatprep.mubr.msk.bf16.mxu0 %vm763_vm0, %v5613_v30  ;;  %v5780_v30 = vpack.c.bf16 %v15742_v40, %v15740_v39  ;;  %v5784_v40 = vpack.c.bf16 %v5776_v38, %v5775_v36 }
 0x646   : > { %11644 = vmatprep.subr.bf16.mxu0 %v12876_v34  ;;  %7942 = vperm.xlu0 %12866, %v6165_v16  }
 0x64a   : > { %7952 = vperm.xlu0 %12866, %v15904_v62   ;;  %v5952_v62 = vpack.c.bf16 %v5944_v28, %v5944_v28 }
 0x64c   : > { %11615 = vmatmul.mubr.msk.bf16.gmra.mrb[4].mxu0 %vm763_vm0, %v5614_v31  ;;  %v5774_v31 = vld [vmem:[#allocation5 + $0x71] sm:$0xff] }
 0x64d   : > { %11618 = vmatprep.mubr.msk.bf16.mxu0 %vm763_vm0, %v5615_v57  ;;  %v5783_v39 = vpack.c.bf16 %v5774_v31, %v15761_v48  ;;  %v5949_v48 = vpack.c.bf16 %v15854_v3, %v15851_v43  ;;  %v16043_v43 = vld [vmem:[%s16873_s10] sm:$0xff]  }
 0x64e   : > { %7962 = vperm.xlu0 %12866, %v15909_v12   ;;  %11682 = vmatprep.subr.bf16.mxu1 %v16043_v43 }
 0x652   : > { %8649 = vperm.xlu0 %12866, %v8646_v9  }
 0x654   : > { %11619 = vmatmul.mubr.msk.bf16.gmra.mrb[8].mxu0 %vm763_vm0, %v5616_v1 }
 0x655   : > { %11622 = vmatprep.mubr.msk.bf16.mxu0 %vm763_vm0, %v5617_v2 }
 0x65c   : > { %11623 = vmatmul.mubr.msk.bf16.gmra.mrb[12].mxu0 %vm763_vm0, %v5618_v10 }
 0x65d   : > { %11628 = vmatprep.mubr.msk.bf16.mxu0 %vm763_vm0, %v5778_v22 }
 0x664   : > { %11629 = vmatmul.mubr.msk.bf16.vlgmr.msra.gmra.mrb[0].mxu0 %vm763_vm0, %v5779_v23 }
 0x665   : > { %11645 = vmatpush3.bf16.msra.mxu0 %v12876_v34  ;;  %11632 = vmatprep.mubr.msk.bf16.mxu0 %vm763_vm0, %v5780_v30 }
 0x666   : > { %11662 = vmatprep.subr.bf16.mxu0 %v12877_v29 }
 0x66c   : > { %11633 = vmatmul.mubr.msk.bf16.gmra.mrb[4].mxu0 %vm763_vm0, %v5781_v32 }
 0x66d   : > { %11636 = vmatprep.mubr.msk.bf16.mxu0 %vm763_vm0, %v5782_v35 }
 0x674   : > { %11637 = vmatmul.mubr.msk.bf16.gmra.mrb[8].mxu0 %vm763_vm0, %v5783_v39 }
 0x675   : > { %11640 = vmatprep.mubr.msk.bf16.mxu0 %vm763_vm0, %v5784_v40 }
 0x67c   : > { %11641 = vmatmul.mubr.msk.bf16.gmra.mrb[12].mxu0 %vm763_vm0, %v5785_v54  ;;  %v16046_v3 = vpop.permute.xlu0 %6223 }
 0x67d   : > { %11646 = vmatprep.mubr.msk.bf16.mxu0 %vm763_vm0, %v5945_v41  ;;  %v16048_v45 = vpop.permute.xlu1 %6233 }
 0x681   : > { %v16052_v14 = vpop.permute.xlu1 %6238 }
 0x684   : > { %11647 = vmatmul.mubr.msk.bf16.vlgmr.msra.gmra.mrb[0].mxu0 %vm763_vm0, %v5946_v4  ;;  %v6304_v4 = vld [vmem:[#allocation6 + $0x1] sm:$0xff] }
 0x685   : > { %11650 = vmatprep.mubr.msk.bf16.mxu0 %vm763_vm0, %v5947_v42  ;;  %11663 = vmatpush3.bf16.msra.mxu0 %v12877_v29 }
 0x686   : > { %11664 = vmatprep.subr.bf16.mxu0 %v12878_v37  ;;  %v16050_v12 = vpop.permute.xlu0 %6228 }
 0x689   : > { %11665 = vmatpush3.bf16.msra.mxu0 %v12878_v37 }
 0x68a   : > { %11842 = vmatprep.subr.bf16.mxu0 %v13041_v0 }
 0x68c   : > { %11651 = vmatmul.mubr.msk.bf16.gmra.mrb[4].mxu0 %vm763_vm0, %v5948_v47  ;;  %v6174_v46 = vpop.permute.xlu0 %6173 }
 0x68d   : > { %11654 = vmatprep.mubr.msk.bf16.mxu0 %vm763_vm0, %v5949_v48  ;;  %v6179_v11 = vpop.permute.xlu1 %6178 }
 0x691   : > { %v6189_v61 = vpop.permute.xlu1 %6188 }
 0x694   : > { %11655 = vmatmul.mubr.msk.bf16.gmra.mrb[8].mxu0 %vm763_vm0, %v5950_v26  ;;  %v6184_v51 = vpop.permute.xlu0 %6183 }
 0x695   : > { %11658 = vmatprep.mubr.msk.bf16.mxu0 %vm763_vm0, %v5951_v27  ;;  %v6199_v9 = vpop.permute.xlu1 %6198 }
 0x699   : > { %v6209_v42 = vpop.permute.xlu1 %6208 }
 0x69c   : > { %11659 = vmatmul.mubr.msk.bf16.gmra.mrb[12].mxu0 %vm763_vm0, %v5952_v62 }
 0x6a5   : > { %v6194_v58 = vpop.permute.xlu0 %6193 }
 0x6a9   : > { %v6204_v39 = vpop.permute.xlu0 %6203 }
 0x757   : > { %v11648_v19 = vpop.f32.mrb[0].mxu0 }
 0x758   : > { %v6106_v6 = vmul.f32 %v11648_v19, %v16057_v33  ;;  %v6020_v13 = vpop.f32.mrb[1].mxu0 }
 0x759   : > { %v6104_v52 = vmul.f32 %v16057_v33, %v6020_v13  ;;  %v11649_v55 = vpop.f32.mrb[2].mxu0 }
 0x75a   : > { %v6128_v44 = vadd.f32 %v16062_v49, %v6106_v6  ;;  %v6107_v56 = vmul.f32 %v11649_v55, %v16057_v33  ;;  %v6023_v60 = vpop.f32.mrb[3].mxu0 }
 0x75b   : > { %v6126_v7 = vadd.f32 %v16062_v49, %v6104_v52  ;;  %v6105_v50 = vmul.f32 %v16057_v33, %v6023_v60 }
 0x75c   : > { %v6143_v16 = vmax.f32 %v6128_v44, 0.0  ;;  %v6129_v17 = vadd.f32 %v16062_v49, %v6107_v56 }
 0x75d   : > { %v6141_v24 = vmax.f32 %v6126_v7, 0.0  ;;  %v6127_v25 = vadd.f32 %v16062_v49, %v6105_v50 }
 0x75e   : > { %v6248_v34 = vmul.f32 %v6184_v51, %v6143_v16  ;;  %v6144_v57 = vmax.f32 %v6129_v17, 0.0 }
 0x75f   : > { %v6246_v59 = vmul.f32 %v6174_v46, %v6141_v24  ;;  %v6142_v63 = vmax.f32 %v6127_v25, 0.0  ;;  %v11652_v1 = vpop.f32.mrb[4].mxu0 }
 0x760   : > { %6263 = vst.msk [vmem:[#allocation6 + $0x1d] sm:$0xff] %vm1458_vm1, %v6248_v34  ;;  %v6249_v2 = vmul.f32 %v6189_v61, %v6144_v57  ;;  %v6110_v5 = vmul.f32 %v11652_v1, %v16057_v33  ;;  %v6036_v8 = vpop.f32.mrb[5].mxu0  ;;  %v6214_v57 = vpop.permute.xlu0 %6213 }
 0x761   : > { %6261 = vst.msk [vmem:[#allocation6 + $0xd] sm:$0xff] %vm1458_vm1, %v6246_v59  ;;  %v6247_v10 = vmul.f32 %v6179_v11, %v6142_v63  ;;  %v6108_v15 = vmul.f32 %v16057_v33, %v6036_v8  ;;  %v11653_v22 = vpop.f32.mrb[6].mxu0  ;;  %v6219_v8 = vpop.permute.xlu1 %6218 }
 0x762   : > { %6264 = vst.msk [vmem:[#allocation6 + $0x25] sm:$0xff] %vm1458_vm1, %v6249_v2  ;;  %v6132_v23 = vadd.f32 %v16062_v49, %v6110_v5  ;;  %v6111_v30 = vmul.f32 %v11653_v22, %v16057_v33  ;;  %v6039_v32 = vpop.f32.mrb[7].mxu0 }
 0x763   : > { %6262 = vst.msk [vmem:[#allocation6 + $0x15] sm:$0xff] %vm1458_vm1, %v6247_v10  ;;  %v6130_v35 = vadd.f32 %v16062_v49, %v6108_v15  ;;  %v6109_v31 = vmul.f32 %v16057_v33, %v6039_v32 }
 0x764   : > { %v6147_v36 = vmax.f32 %v6132_v23, 0.0  ;;  %v6133_v38 = vadd.f32 %v16062_v49, %v6111_v30 }
 0x765   : > { %v6145_v40 = vmax.f32 %v6130_v35, 0.0  ;;  %v6131_v53 = vadd.f32 %v16062_v49, %v6109_v31 }
 0x766   : > { %v6252_v54 = vmul.f32 %v6204_v39, %v6147_v36  ;;  %v6148_v41 = vmax.f32 %v6133_v38, 0.0 }
 0x767   : > { %v6250_v47 = vmul.f32 %v6194_v58, %v6145_v40  ;;  %v6146_v48 = vmax.f32 %v6131_v53, 0.0  ;;  %v11656_v18 = vpop.f32.mrb[8].mxu0 }
 0x768   : > { %6267 = vst.msk [vmem:[#allocation6 + $0x3d] sm:$0xff] %vm1458_vm1, %v6252_v54  ;;  %v6253_v20 = vmul.f32 %v6209_v42, %v6148_v41  ;;  %v6114_v21 = vmul.f32 %v11656_v18, %v16057_v33  ;;  %v6052_v26 = vpop.f32.mrb[9].mxu0  ;;  %v6305_v27 = vld [vmem:[#allocation6 + $0x9] sm:$0xff] }
 0x769   : > { %6265 = vst.msk [vmem:[#allocation6 + $0x2d] sm:$0xff] %vm1458_vm1, %v6250_v47  ;;  %v6251_v28 = vmul.f32 %v6199_v9, %v6146_v48  ;;  %v6112_v62 = vmul.f32 %v16057_v33, %v6052_v26  ;;  %v11657_v29 = vpop.f32.mrb[10].mxu0  ;;  %v6319_v37 = vpack.c.bf16 %v6305_v27, %v6304_v4  ;;  %v16088_v46 = vld [vmem:[#allocation6 + $0x21] sm:$0xff] }
 0x76a   : > { %6268 = vst.msk [vmem:[#allocation6 + $0x45] sm:$0xff] %vm1458_vm1, %v6253_v20  ;;  %v6136_v11 = vadd.f32 %v16062_v49, %v6114_v21  ;;  %v6115_v19 = vmul.f32 %v11657_v29, %v16057_v33  ;;  %v6055_v6 = vpop.f32.mrb[11].mxu0  ;;  %v6306_v13 = vld [vmem:[#allocation6 + $0x11] sm:$0xff]  ;;  %v16093_v51 = vld [vmem:[#allocation6 + $0x19] sm:$0xff]  ;;  %v16109_v17 = vld [vmem:[#allocation6 + $0x22] sm:$0xff]  ;;  %v6244_v20 = vpop.permute.xlu0 %6243 }
 0x76b   : > { %v16095_v52 = vld [vmem:[#allocation6 + $0x20] sm:$0xff]  ;;  %6266 = vst.msk [vmem:[#allocation6 + $0x35] sm:$0xff] %vm1458_vm1, %v6251_v28  ;;  %v6134_v55 = vadd.f32 %v16062_v49, %v6112_v62  ;;  %v6113_v44 = vmul.f32 %v16057_v33, %v6055_v6  ;;  %11666 = vmatprep.mubr.msk.bf16.mxu0 %vm1458_vm1, %v6319_v37  ;;  %v6320_v56 = vpack.c.bf16 %v16093_v51, %v6306_v13  ;;  %v16102_v60 = vld [vmem:[#allocation6 + $0x18] sm:$0xff] }
 0x76c   : > { %v7486_v61 = vpack.c.bf16 %v16088_v46, %v16093_v51  ;;  %v6151_v7 = vmax.f32 %v6136_v11, 0.0  ;;  %v6137_v50 = vadd.f32 %v16062_v49, %v6115_v19  ;;  %v16107_v16 = vld [vmem:[#allocation6 + $0x1a] sm:$0xff]  ;;  %v7311_v34 = vpack.c.bf16 %v16095_v52, %v16102_v60 }
 0x76d   : > { %v6149_v24 = vmax.f32 %v6134_v55, 0.0  ;;  %v6135_v25 = vadd.f32 %v16062_v49, %v6113_v44  ;;  %11667 = vmatmul.mubr.msk.bf16.vlgmr.msra.gmra.mrb[16].mxu0 %vm1458_vm1, %v6320_v56  ;;  %v7661_v5 = vpack.c.bf16 %v16109_v17, %v16107_v16 }
 0x76e   : > { %v6256_v58 = vmul.f32 %v16046_v3, %v6151_v7  ;;  %v6152_v59 = vmax.f32 %v6137_v50, 0.0 }
 0x76f   : > { %v6254_v63 = vmul.f32 %v6214_v57, %v6149_v24  ;;  %v6150_v1 = vmax.f32 %v6135_v25, 0.0  ;;  %v11660_v2 = vpop.f32.mrb[12].mxu0 }
 0x770   : > { %6271 = vst.msk [vmem:[#allocation6 + $0x5d] sm:$0xff] %vm1458_vm1, %v6256_v58  ;;  %v6257_v9 = vmul.f32 %v16050_v12, %v6152_v59  ;;  %v6118_v10 = vmul.f32 %v11660_v2, %v16057_v33  ;;  %v6068_v15 = vpop.f32.mrb[13].mxu0  ;;  %v16121_v22 = vld [vmem:[#allocation6 + $0x29] sm:$0xff] }
 0x771   : > { %6269 = vst.msk [vmem:[#allocation6 + $0x4d] sm:$0xff] %vm1458_vm1, %v6254_v63  ;;  %v6255_v3 = vmul.f32 %v6219_v8, %v6150_v1  ;;  %v6116_v23 = vmul.f32 %v16057_v33, %v6068_v15  ;;  %v11661_v30 = vpop.f32.mrb[14].mxu0  ;;  %v6321_v32 = vpack.c.bf16 %v16121_v22, %v16088_v46  ;;  %v16127_v35 = vld [vmem:[#allocation6 + $0x28] sm:$0xff]  ;;  %v16129_v31 = vld [vmem:[#allocation6 + $0x40] sm:$0xff] }
 0x772   : > { %6272 = vst.msk [vmem:[#allocation6 + $0x65] sm:$0xff] %vm1458_vm1, %v6257_v9  ;;  %v6140_v12 = vadd.f32 %v16062_v49, %v6118_v10  ;;  %v6071_v36 = vpop.f32.mrb[15].mxu0  ;;  %v16133_v38 = vld [vmem:[#allocation6 + $0x31] sm:$0xff]  ;;  %v16135_v39 = vld [vmem:[#allocation6 + $0x39] sm:$0xff]  ;;  %v16145_v4 = vld [vmem:[#allocation6 + $0x41] sm:$0xff] }
 0x773   : > { %v16137_v40 = vld [vmem:[#allocation6 + $0x30] sm:$0xff]  ;;  %6270 = vst.msk [vmem:[#allocation6 + $0x55] sm:$0xff] %vm1458_vm1, %v6255_v3  ;;  %v6138_v53 = vadd.f32 %v16062_v49, %v6116_v23  ;;  %v6117_v54 = vmul.f32 %v16057_v33, %v6071_v36  ;;  %11670 = vmatprep.mubr.msk.bf16.mxu0 %vm1458_vm1, %v6321_v32  ;;  %v6322_v41 = vpack.c.bf16 %v16135_v39, %v16133_v38  ;;  %v16147_v42 = vld [vmem:[#allocation6 + $0x38] sm:$0xff]  ;;  %v16159_v28 = vld [vmem:[#allocation6 + $0x42] sm:$0xff] }
 0x774   : > { %v7312_v47 = vpack.c.bf16 %v16137_v40, %v16127_v35  ;;  %v6155_v48 = vmax.f32 %v6140_v12, 0.0  ;;  %v7313_v18 = vpack.c.bf16 %v16129_v31, %v16147_v42  ;;  %v16155_v26 = vld [vmem:[#allocation6 + $0x32] sm:$0xff]  ;;  %v16157_v27 = vld [vmem:[#allocation6 + $0x3a] sm:$0xff]  ;;  %v7487_v62 = vpack.c.bf16 %v16133_v38, %v16121_v22  ;;  %v16166_v6 = vld [vmem:[#allocation6 + $0x2a] sm:$0xff] }
 0x775   : > { %v6153_v21 = vmax.f32 %v6138_v53, 0.0  ;;  %v6139_v33 = vadd.f32 %v16062_v49, %v6117_v54  ;;  %11671 = vmatmul.mubr.msk.bf16.gmra.mrb[20].mxu0 %vm1458_vm1, %v6322_v41  ;;  %v7488_v37 = vpack.c.bf16 %v16145_v4, %v16135_v39  ;;  %v7662_v55 = vpack.c.bf16 %v16155_v26, %v16166_v6  ;;  %v6277_v12 = vld [vmem:[#allocation6] sm:$0xff]  ;;  %v6278_v36 = vld [vmem:[#allocation6 + $0x8] sm:$0xff] }
 0x776   : > { %v6260_v29 = vmul.f32 %v6244_v20, %v6155_v48  ;;  %v7663_v44 = vpack.c.bf16 %v16159_v28, %v16157_v27  ;;  %v12880_v41 = vld [vmem:[%s16873_s10 + $0x8] sm:$0xff]   ;;  %v6292_v48 = vpack.c.bf16 %v6278_v36, %v6277_v12  ;;  %v12881_v20 = vld [vmem:[%s16873_s10 + $0x20] sm:$0xff]  }
 0x777   : > { %v6258_v11 = vmul.f32 %v16048_v45, %v6153_v21  ;;  %v6154_v19 = vmax.f32 %v6139_v33, 0.0  ;;  %v6279_v21 = vld [vmem:[#allocation6 + $0x10] sm:$0xff]  ;;  %v6596_v36 = vld [vmem:[#allocation6 + $0x2] sm:$0xff] }
 0x778   : > { %6276 = vst.msk [vmem:[#allocation6 + $0x7d] sm:$0x3f] %vm6275_vm9, %v6260_v29  ;;  %v16169_v49 = vld [vmem:[#allocation6 + $0x49] sm:$0xff]  ;;  %v6293_v33 = vpack.c.bf16 %v16102_v60, %v6279_v21  ;;  %v12882_v29 = vld [vmem:[%s16873_s10 + $0x28] sm:$0xff]  }
 0x779   : > { %v16171_v13 = vld [vmem:[#allocation6 + $0x48] sm:$0xff]  ;;  %6273 = vst.msk [vmem:[#allocation6 + $0x6d] sm:$0xff] %vm1458_vm1, %v6258_v11  ;;  %v6259_v56 = vmul.f32 %v16052_v14, %v6154_v19  ;;  %v6323_v45 = vpack.c.bf16 %v16169_v49, %v16145_v4  ;;  %v16183_v50 = vld [vmem:[#allocation6 + $0x60] sm:$0xff]  ;;  %v6294_v11 = vpack.c.bf16 %v16127_v35, %v16095_v52  ;;  %v6295_v19 = vpack.c.bf16 %v16147_v42, %v16137_v40  ;;  %v12884_v21 = vld [vmem:[%s16873_s10 + $0x38] sm:$0xff]  }
 0x77a   : > { %v16181_v7 = vld [vmem:[#allocation6 + $0x61] sm:$0xff]  ;;  %v16185_v24 = vld [vmem:[#allocation6 + $0x4a] sm:$0xff]  ;;  %v16191_v58 = vld [vmem:[#allocation6 + $0x59] sm:$0xff] }
 0x77b   : > { %v16187_v25 = vld [vmem:[#allocation6 + $0x62] sm:$0xff]  ;;  %v16189_v57 = vld [vmem:[#allocation6 + $0x51] sm:$0xff]  ;;  %6274 = vst.msk [vmem:[#allocation6 + $0x75] sm:$0xff] %vm1458_vm1, %v6259_v56  ;;  %11674 = vmatprep.mubr.msk.bf16.mxu0 %vm1458_vm1, %v6323_v45  ;;  %v16203_v2 = vld [vmem:[#allocation6 + $0x5a] sm:$0xff]  ;;  %v7490_v10 = vpack.c.bf16 %v16181_v7, %v16191_v58  ;;  %v6296_v56 = vpack.c.bf16 %v16171_v13, %v16129_v31 }
 0x77c   : > { %v16193_v59 = vld [vmem:[#allocation6 + $0x50] sm:$0xff]  ;;  %v6324_v14 = vpack.c.bf16 %v16191_v58, %v16189_v57  ;;  %v16199_v63 = vld [vmem:[#allocation6 + $0x58] sm:$0xff]  ;;  %v7489_v9 = vpack.c.bf16 %v16189_v57, %v16169_v49  ;;  %v7310_v42 = vld [vmem:[#allocation6 + $0x88] sm:$0x3f] }
 0x77d   : > { %v16201_v1 = vld [vmem:[#allocation6 + $0x52] sm:$0xff]  ;;  %v7314_v8 = vpack.c.bf16 %v16193_v59, %v16171_v13  ;;  %v7315_v15 = vpack.c.bf16 %v16183_v50, %v16199_v63  ;;  %v7318_v13 = vpack.c.bf16 %v7310_v42, %v7310_v42 }
 0x77e   : > { %v7664_v3 = vpack.c.bf16 %v16201_v1, %v16185_v24  ;;  %11675 = vmatmul.mubr.msk.bf16.gmra.mrb[24].mxu0 %vm1458_vm1, %v6324_v14  ;;  %v6297_v14 = vpack.c.bf16 %v16199_v63, %v16193_v59  ;;  %v12893_v52 = vld [vmem:[%s16873_s10 + $0x80] sm:$0xff]  }
 0x77f   : > { %v7309_v31 = vld [vmem:[#allocation6 + $0x80] sm:$0xff]  ;;  %11846 = vmatprep.mubr.msk.bf16.mxu0 %vm13049_vm10, %v13041_v0 }
 0x780   : > { %v16218_v30 = vld [vmem:[#allocation6 + $0x69] sm:$0xff]  ;;  %v7484_v4 = vld [vmem:[#allocation6 + $0x81] sm:$0xff] }
 0x781   : > { %v6325_v32 = vpack.c.bf16 %v16218_v30, %v16181_v7  ;;  %v16249_v45 = vld [vmem:[#allocation6 + $0x68] sm:$0xff]  ;;  %v7898_v7 = vpop.permute.xlu1 %7897 }
 0x782   : > { %v6318_v53 = vld [vmem:[#allocation6 + $0x71] sm:$0x3f]  ;;  %v7483_v38 = vld [vmem:[#allocation6 + $0x79] sm:$0xff] }
 0x783   : > { %11678 = vmatprep.mubr.msk.bf16.mxu1 %vm1458_vm1, %v6325_v32  ;;  %v6326_v54 = vpack.c.bf16 %v6318_v53, %v6318_v53  ;;  %v6298_v32 = vpack.c.bf16 %v16249_v45, %v16183_v50  ;;  %v6291_v12 = vld [vmem:[#allocation6 + $0x70] sm:$0x3f] }
 0x784   : > { %v6597_v53 = vld [vmem:[#allocation6 + $0xa] sm:$0xff] }
 0x785   : > { %11679 = vmatmul.mubr.msk.bf16.vlgmr.msra.gmra.mrb[0].mxu1 %vm1458_vm1, %v6326_v54  ;;  %v6299_v54 = vpack.c.bf16 %v6291_v12, %v6291_v12  ;;  %v6772_v12 = vld [vmem:[#allocation6 + $0x14] sm:$0xff] }
 0x786   : > { %11683 = vmatpush3.bf16.msra.mxu1 %v16043_v43  ;;  %11686 = vmatprep.mubr.msk.bf16.mxu1 %vm1458_vm1, %v6292_v48  ;;  %v12883_v43 = vld [vmem:[%s16873_s10 + $0x30] sm:$0xff]   ;;  %v6598_v48 = vld [vmem:[#allocation6 + $0x12] sm:$0xff] }
 0x787   : > { %11684 = vmatprep.subr.bf16.mxu1 %v12880_v41  ;;  %v7307_v60 = vld [vmem:[#allocation6 + $0x70] sm:$0xff] }
 0x788   : > { %v7316_v35 = vpack.c.bf16 %v7307_v60, %v16249_v45  ;;  %v7482_v22 = vld [vmem:[#allocation6 + $0x71] sm:$0xff] }
 0x789   : > { %v7491_v39 = vpack.c.bf16 %v7482_v22, %v16218_v30 }
 0x78a   : > { %11685 = vmatpush3.bf16.msra.mxu1 %v12880_v41  ;;  %v6611_v41 = vpack.c.bf16 %v6597_v53, %v6596_v36  ;;  %v6771_v53 = vld [vmem:[#allocation6 + $0xc] sm:$0xff] }
 0x78b   : > { %11702 = vmatprep.subr.bf16.mxu1 %v12881_v20 }
 0x78d   : > { %11687 = vmatmul.mubr.msk.bf16.vlgmr.msra.gmra.mrb[4].mxu1 %vm1458_vm1, %v6293_v33  ;;  %v6613_v33 = vpack.c.bf16 %v16166_v6, %v16109_v17  ;;  %v7657_v17 = vld [vmem:[#allocation6 + $0x72] sm:$0xff]  ;;  %v7659_v6 = vld [vmem:[#allocation6 + $0x82] sm:$0xff] }
 0x78e   : > { %11690 = vmatprep.mubr.msk.bf16.mxu1 %vm1458_vm1, %v6294_v11  ;;  %11703 = vmatpush3.bf16.msra.mxu1 %v12881_v20  ;;  %v6612_v20 = vpack.c.bf16 %v16107_v16, %v6598_v48  ;;  %v6614_v11 = vpack.c.bf16 %v16157_v27, %v16155_v26  ;;  %v6774_v48 = vld [vmem:[#allocation6 + $0x24] sm:$0xff]  ;;  %v16936_v16 = vpack.c.bf16 %v16187_v25, %v16203_v2 }
 0x78f   : > { %11704 = vmatprep.subr.bf16.mxu1 %v12882_v29  ;;  %v7660_v27 = vld [vmem:[#allocation6 + $0x8a] sm:$0x3f] }
 0x792   : > { %11705 = vmatpush3.bf16.msra.mxu1 %v12882_v29  ;;  %v12885_v29 = vld [vmem:[%s16873_s10 + $0x40] sm:$0xff]  }
 0x793   : > { %11722 = vmatprep.subr.bf16.mxu1 %v12883_v43 }
 0x795   : > { %11691 = vmatmul.mubr.msk.bf16.gmra.mrb[8].mxu1 %vm1458_vm1, %v6295_v19  ;;  %v6615_v19 = vpack.c.bf16 %v16185_v24, %v16159_v28  ;;  %v7668_v28 = vpack.c.bf16 %v7660_v27, %v7660_v27  ;;  %v7908_v24 = vpop.permute.xlu1 %7907 }
 0x796   : > { %11694 = vmatprep.mubr.msk.bf16.mxu1 %vm1458_vm1, %v6296_v56  ;;  %v16276_v56 = vld [vmem:[#allocation6 + $0x6a] sm:$0xff] }
 0x797   : > { %v7666_v26 = vpack.c.bf16 %v7657_v17, %v16276_v56 }
 0x799   : > { %v7918_v57 = vpop.permute.xlu1 %7917 }
 0x79d   : > { %11695 = vmatmul.mubr.msk.bf16.gmra.mrb[12].mxu1 %vm1458_vm1, %v6297_v14  ;;  %v6617_v14 = vpack.c.bf16 %v16276_v56, %v16187_v25  ;;  %v7903_v25 = vpop.permute.xlu0 %7902 }
 0x79e   : > { %11698 = vmatprep.mubr.msk.bf16.mxu1 %vm1458_vm1, %v6298_v32  ;;  %v6610_v32 = vld [vmem:[#allocation6 + $0x72] sm:$0x3f] }
 0x79f   : > { %v6618_v36 = vpack.c.bf16 %v6610_v32, %v6610_v32  ;;  %v6778_v32 = vld [vmem:[#allocation6 + $0x44] sm:$0xff] }
 0x7a5   : > { %11699 = vmatmul.mubr.msk.bf16.gmra.mrb[0].mxu1 %vm1458_vm1, %v6299_v54  ;;  %v6786_v54 = vpack.c.bf16 %v6772_v12, %v6771_v53  ;;  %v6780_v12 = vld [vmem:[#allocation6 + $0x54] sm:$0xff]  ;;  %v6779_v53 = vld [vmem:[#allocation6 + $0x4c] sm:$0xff] }
 0x7a6   : > { %11706 = vmatprep.mubr.msk.bf16.mxu1 %vm1458_vm1, %v6611_v41  ;;  %v6773_v41 = vld [vmem:[#allocation6 + $0x1c] sm:$0xff] }
 0x7ad   : > { %11707 = vmatmul.mubr.msk.bf16.vlgmr.msra.gmra.mrb[4].mxu1 %vm1458_vm1, %v6612_v20  ;;  %v6776_v20 = vld [vmem:[#allocation6 + $0x34] sm:$0xff] }
 0x7ae   : > { %11710 = vmatprep.mubr.msk.bf16.mxu1 %vm1458_vm1, %v6613_v33  ;;  %11723 = vmatpush3.bf16.msra.mxu1 %v12883_v43  ;;  %v6616_v43 = vpack.c.bf16 %v16203_v2, %v16201_v1  ;;  %v6775_v33 = vld [vmem:[#allocation6 + $0x2c] sm:$0xff]  ;;  %v16448_v1 = vld [vmem:[%s16874_s11] ss:$0 sm:$0xff] }
 0x7af   : > { %11724 = vmatprep.subr.bf16.mxu1 %v12884_v21 }
 0x7b2   : > { %11725 = vmatpush3.bf16.msra.mxu1 %v12884_v21  ;;  %v6787_v21 = vpack.c.bf16 %v6774_v48, %v6773_v41  ;;  %v6781_v41 = vld [vmem:[#allocation6 + $0x5c] sm:$0xff]  ;;  %v6782_v48 = vld [vmem:[#allocation6 + $0x64] sm:$0xff] }
 0x7b3   : > { %11742 = vmatprep.subr.bf16.mxu1 %v12885_v29 }
 0x7b5   : > { %11711 = vmatmul.mubr.msk.bf16.gmra.mrb[8].mxu1 %vm1458_vm1, %v6614_v11  ;;  %v12886_v11 = vld [vmem:[%s16873_s10 + $0x48] sm:$0xff]  }
 0x7b6   : > { %11714 = vmatprep.mubr.msk.bf16.mxu1 %vm1458_vm1, %v6615_v19  ;;  %v6788_v19 = vpack.c.bf16 %v6776_v20, %v6775_v33  ;;  %v6791_v20 = vpack.c.bf16 %v6782_v48, %v6781_v41  ;;  %v6950_v41 = vld [vmem:[#allocation6 + $0x2d] sm:$0xff] }
 0x7b7   : > { %v12888_v48 = vld [vmem:[%s16873_s10 + $0x58] sm:$0xff]  }
 0x7bd   : > { %11715 = vmatmul.mubr.msk.bf16.gmra.mrb[12].mxu1 %vm1458_vm1, %v6616_v43  ;;  %v12887_v43 = vld [vmem:[%s16873_s10 + $0x50] sm:$0xff]  }
 0x7be   : > { %11718 = vmatprep.mubr.msk.bf16.mxu1 %vm1458_vm1, %v6617_v14  ;;  %v6777_v14 = vld [vmem:[#allocation6 + $0x3c] sm:$0xff] }
 0x7c5   : > { %11719 = vmatmul.mubr.msk.bf16.gmra.mrb[0].mxu1 %vm1458_vm1, %v6618_v36  ;;  %v6789_v36 = vpack.c.bf16 %v6778_v32, %v6777_v14  ;;  %v6946_v32 = vld [vmem:[#allocation6 + $0xd] sm:$0xff] }
 0x7c6   : > { %11726 = vmatprep.mubr.msk.bf16.mxu1 %vm1458_vm1, %v6786_v54  ;;  %v6790_v54 = vpack.c.bf16 %v6780_v12, %v6779_v53  ;;  %v6949_v12 = vld [vmem:[#allocation6 + $0x25] sm:$0xff]  ;;  %v6948_v53 = vld [vmem:[#allocation6 + $0x1d] sm:$0xff] }
 0x7cd   : > { %11727 = vmatmul.mubr.msk.bf16.vlgmr.msra.gmra.mrb[4].mxu1 %vm1458_vm1, %v6787_v21  ;;  %v6783_v21 = vld [vmem:[#allocation6 + $0x6c] sm:$0xff] }
 0x7ce   : > { %11730 = vmatprep.mubr.msk.bf16.mxu1 %vm1458_vm1, %v6788_v19  ;;  %11743 = vmatpush3.bf16.msra.mxu1 %v12885_v29  ;;  %v6784_v29 = vld [vmem:[#allocation6 + $0x74] sm:$0xff]  ;;  %v6785_v19 = vld [vmem:[#allocation6 + $0x7c] sm:$0x3f] }
 0x7cf   : > { %11744 = vmatprep.subr.bf16.mxu1 %v12886_v11  ;;  %v6792_v33 = vpack.c.bf16 %v6784_v29, %v6783_v21  ;;  %v6793_v14 = vpack.c.bf16 %v6785_v19, %v6785_v19  ;;  %v6955_v21 = vld [vmem:[#allocation6 + $0x55] sm:$0xff] }
 0x7d2   : > { %11745 = vmatpush3.bf16.msra.mxu1 %v12886_v11  ;;  %v6947_v11 = vld [vmem:[#allocation6 + $0x15] sm:$0xff] }
 0x7d3   : > { %11762 = vmatprep.subr.bf16.mxu1 %v12887_v43  ;;  %v6961_v23 = vpack.c.bf16 %v6947_v11, %v6946_v32  ;;  %v6954_v11 = vld [vmem:[#allocation6 + $0x4d] sm:$0xff]  ;;  %v6957_v32 = vld [vmem:[#allocation6 + $0x65] sm:$0xff] }
 0x7d5   : > { %11731 = vmatmul.mubr.msk.bf16.gmra.mrb[8].mxu1 %vm1458_vm1, %v6789_v36  ;;  %v6951_v36 = vld [vmem:[#allocation6 + $0x35] sm:$0xff] }
 0x7d6   : > { %11734 = vmatprep.mubr.msk.bf16.mxu1 %vm1458_vm1, %v6790_v54  ;;  %v6962_v54 = vpack.c.bf16 %v6949_v12, %v6948_v53  ;;  %v6963_v29 = vpack.c.bf16 %v6951_v36, %v6950_v41  ;;  %v6959_v12 = vld [vmem:[#allocation6 + $0x75] sm:$0xff]  ;;  %v6958_v53 = vld [vmem:[#allocation6 + $0x6d] sm:$0xff]  ;;  %v6960_v41 = vld [vmem:[#allocation6 + $0x7d] sm:$0x3f] }
 0x7dd   : > { %11735 = vmatmul.mubr.msk.bf16.gmra.mrb[12].mxu1 %vm1458_vm1, %v6791_v20  ;;  %v6953_v20 = vld [vmem:[#allocation6 + $0x45] sm:$0xff] }
 0x7de   : > { %11738 = vmatprep.mubr.msk.bf16.mxu1 %vm1458_vm1, %v6792_v33  ;;  %v6952_v33 = vld [vmem:[#allocation6 + $0x3d] sm:$0xff] }
 0x7df   : > { %v6964_v19 = vpack.c.bf16 %v6953_v20, %v6952_v33  ;;  %v6968_v20 = vpack.c.bf16 %v6960_v41, %v6960_v41  ;;  %v7130_v41 = vld [vmem:[#allocation6 + $0x56] sm:$0xff] }
 0x7e5   : > { %11739 = vmatmul.mubr.msk.bf16.gmra.mrb[0].mxu1 %vm1458_vm1, %v6793_v14  ;;  %v6965_v14 = vpack.c.bf16 %v6955_v21, %v6954_v11  ;;  %v7124_v21 = vld [vmem:[#allocation6 + $0x26] sm:$0xff]  ;;  %v7126_v11 = vld [vmem:[#allocation6 + $0x36] sm:$0xff] }
 0x7e6   : > { %11746 = vmatprep.mubr.msk.bf16.mxu1 %vm1458_vm1, %v6961_v23  ;;  %v12889_v23 = vld [vmem:[%s16873_s10 + $0x60] sm:$0xff]  }
 0x7ed   : > { %11747 = vmatmul.mubr.msk.bf16.vlgmr.msra.gmra.mrb[4].mxu1 %vm1458_vm1, %v6962_v54  ;;  %v6967_v54 = vpack.c.bf16 %v6959_v12, %v6958_v53  ;;  %v12890_v12 = vld [vmem:[%s16873_s10 + $0x68] sm:$0xff]  }
 0x7ee   : > { %11750 = vmatprep.mubr.msk.bf16.mxu1 %vm1458_vm1, %v6963_v29  ;;  %11763 = vmatpush3.bf16.msra.mxu1 %v12887_v43  ;;  %v6956_v43 = vld [vmem:[#allocation6 + $0x5d] sm:$0xff]  ;;  %v7128_v53 = vld [vmem:[#allocation6 + $0x46] sm:$0xff] }
 0x7ef   : > { %11764 = vmatprep.subr.bf16.mxu1 %v12888_v48  ;;  %v6966_v36 = vpack.c.bf16 %v6957_v32, %v6956_v43  ;;  %v7122_v29 = vld [vmem:[#allocation6 + $0x16] sm:$0xff] }
 0x7f2   : > { %11765 = vmatpush3.bf16.msra.mxu1 %v12888_v48  ;;  %v7121_v48 = vld [vmem:[#allocation6 + $0xe] sm:$0xff] }
 0x7f3   : > { %11782 = vmatprep.subr.bf16.mxu1 %v12889_v23  ;;  %v7136_v33 = vpack.c.bf16 %v7122_v29, %v7121_v48  ;;  %v7127_v48 = vld [vmem:[#allocation6 + $0x3e] sm:$0xff] }
 0x7f4   : > { %v7139_v29 = vpack.c.bf16 %v7128_v53, %v7127_v48 }
 0x7f5   : > { %11751 = vmatmul.mubr.msk.bf16.gmra.mrb[8].mxu1 %vm1458_vm1, %v6964_v19  ;;  %v7125_v19 = vld [vmem:[#allocation6 + $0x2e] sm:$0xff] }
 0x7f6   : > { %11754 = vmatprep.mubr.msk.bf16.mxu1 %vm1458_vm1, %v6965_v14  ;;  %v7123_v14 = vld [vmem:[#allocation6 + $0x1e] sm:$0xff]  ;;  %v7138_v43 = vpack.c.bf16 %v7126_v11, %v7125_v19 }
 0x7f7   : > { %v7137_v32 = vpack.c.bf16 %v7124_v21, %v7123_v14  ;;  %v7133_v21 = vld [vmem:[#allocation6 + $0x6e] sm:$0xff]  ;;  %v7131_v19 = vld [vmem:[#allocation6 + $0x5e] sm:$0xff] }
 0x7fd   : > { %11755 = vmatmul.mubr.msk.bf16.gmra.mrb[12].mxu1 %vm1458_vm1, %v6966_v36  ;;  %v12891_v36 = vld [vmem:[%s16873_s10 + $0x70] sm:$0xff]  }
 0x7fe   : > { %11758 = vmatprep.mubr.msk.bf16.mxu1 %vm1458_vm1, %v6967_v54  ;;  %v7129_v54 = vld [vmem:[#allocation6 + $0x4e] sm:$0xff] }
 0x805   : > { %11759 = vmatmul.mubr.msk.bf16.gmra.mrb[0].mxu1 %vm1458_vm1, %v6968_v20  ;;  %v7140_v20 = vpack.c.bf16 %v7130_v41, %v7129_v54 }
 0x806   : > { %11766 = vmatprep.mubr.msk.bf16.mxu1 %vm1458_vm1, %v7136_v33  ;;  %v7132_v33 = vld [vmem:[#allocation6 + $0x66] sm:$0xff] }
 0x807   : > { %v7141_v11 = vpack.c.bf16 %v7132_v33, %v7131_v19  ;;  %v7928_v19 = vpop.permute.xlu1 %7927 }
 0x80d   : > { %11767 = vmatmul.mubr.msk.bf16.vlgmr.msra.gmra.mrb[4].mxu1 %vm1458_vm1, %v7137_v32  ;;  %v7135_v32 = vld [vmem:[#allocation6 + $0x7e] sm:$0x3f] }
 0x80e   : > { %11770 = vmatprep.mubr.msk.bf16.mxu1 %vm1458_vm1, %v7138_v43  ;;  %11783 = vmatpush3.bf16.msra.mxu1 %v12889_v23  ;;  %v7134_v23 = vld [vmem:[#allocation6 + $0x76] sm:$0xff]  ;;  %v7143_v43 = vpack.c.bf16 %v7135_v32, %v7135_v32 }
 0x80f   : > { %11784 = vmatprep.subr.bf16.mxu1 %v12890_v12  ;;  %v7142_v14 = vpack.c.bf16 %v7134_v23, %v7133_v21 }
 0x812   : > { %11785 = vmatpush3.bf16.msra.mxu1 %v12890_v12  ;;  %v12892_v12 = vld [vmem:[%s16873_s10 + $0x78] sm:$0xff]  }
 0x813   : > { %11802 = vmatprep.subr.bf16.mxu1 %v12891_v36 }
 0x815   : > { %11771 = vmatmul.mubr.msk.bf16.gmra.mrb[8].mxu1 %vm1458_vm1, %v7139_v29 }
 0x816   : > { %11774 = vmatprep.mubr.msk.bf16.mxu1 %vm1458_vm1, %v7140_v20 }
 0x81d   : > { %11775 = vmatmul.mubr.msk.bf16.gmra.mrb[12].mxu1 %vm1458_vm1, %v7141_v11 }
 0x81e   : > { %11778 = vmatprep.mubr.msk.bf16.mxu1 %vm1458_vm1, %v7142_v14 }
 0x825   : > { %11779 = vmatmul.mubr.msk.bf16.gmra.mrb[0].mxu1 %vm1458_vm1, %v7143_v43 }
 0x826   : > { %11786 = vmatprep.mubr.msk.bf16.mxu1 %vm1458_vm1, %v7311_v34  ;;  %v7308_v34 = vld [vmem:[#allocation6 + $0x78] sm:$0xff] }
 0x827   : > { %v7317_v40 = vpack.c.bf16 %v7309_v31, %v7308_v34 }
 0x82d   : > { %11787 = vmatmul.mubr.msk.bf16.vlgmr.msra.gmra.mrb[4].mxu1 %vm1458_vm1, %v7312_v47 }
 0x82e   : > { %11790 = vmatprep.mubr.msk.bf16.mxu1 %vm1458_vm1, %v7313_v18  ;;  %11803 = vmatpush3.bf16.msra.mxu1 %v12891_v36  ;;  %v12894_v36 = vld [vmem:[%s16873_s10 + $0x88] sm:$0xff]  }
 0x82f   : > { %11804 = vmatprep.subr.bf16.mxu1 %v12892_v12 }
 0x832   : > { %11805 = vmatpush3.bf16.msra.mxu1 %v12892_v12 }
 0x833   : > { %11822 = vmatprep.subr.bf16.mxu1 %v12893_v52 }
 0x835   : > { %11791 = vmatmul.mubr.msk.bf16.gmra.mrb[8].mxu1 %vm1458_vm1, %v7314_v8 }
 0x836   : > { %11794 = vmatprep.mubr.msk.bf16.mxu1 %vm1458_vm1, %v7315_v15 }
 0x83d   : > { %11795 = vmatmul.mubr.msk.bf16.gmra.mrb[12].mxu1 %vm1458_vm1, %v7316_v35 }
 0x83e   : > { %11798 = vmatprep.mubr.msk.bf16.mxu1 %vm1458_vm1, %v7317_v40 }
 0x840   : > { %v16356_v47 = vpop.f32.mrb[16].mxu0 }
 0x841   : > { %v16358_v18 = vpop.f32.mrb[17].mxu0 }
 0x842   : > { %v16360_v59 = vpop.f32.mrb[18].mxu0 }
 0x843   : > { %v16362_v50 = vpop.f32.mrb[19].mxu0 }
 0x845   : > { %11799 = vmatmul.mubr.msk.bf16.gmra.mrb[0].mxu1 %vm1458_vm1, %v7318_v13 }
 0x846   : > { %11806 = vmatprep.mubr.msk.bf16.mxu1 %vm1458_vm1, %v7486_v61 }
 0x848   : > { %v16369_v63 = vpop.f32.mrb[20].mxu0 }
 0x849   : > { %v16371_v8 = vpop.f32.mrb[21].mxu0 }
 0x84a   : > { %v16373_v15 = vpop.f32.mrb[22].mxu0 }
 0x84b   : > { %v16375_v45 = vpop.f32.mrb[23].mxu0 }
 0x84d   : > { %11807 = vmatmul.mubr.msk.bf16.vlgmr.msra.gmra.mrb[4].mxu1 %vm1458_vm1, %v7487_v62  ;;  %v7492_v62 = vpack.c.bf16 %v7484_v4, %v7483_v38 }
 0x84e   : > { %11810 = vmatprep.mubr.msk.bf16.mxu1 %vm1458_vm1, %v7488_v37  ;;  %11823 = vmatpush3.bf16.msra.mxu1 %v12893_v52  ;;  %v7485_v37 = vld [vmem:[#allocation6 + $0x89] sm:$0x3f] }
 0x84f   : > { %11824 = vmatprep.subr.bf16.mxu1 %v12894_v36  ;;  %v7493_v54 = vpack.c.bf16 %v7485_v37, %v7485_v37 }
 0x851   : > { %v16388_v46 = vpop.f32.mrb[24].mxu0 }
 0x852   : > { %v16390_v51 = vpop.f32.mrb[25].mxu0  ;;  %11825 = vmatpush3.bf16.msra.mxu1 %v12894_v36 }
 0x853   : > { %v16392_v61 = vpop.f32.mrb[26].mxu0  ;;  %11914 = vmatprep.subr.bf16.mxu1 %v13041_v0 }
 0x854   : > { %v16394_v53 = vpop.f32.mrb[27].mxu0 }
 0x855   : > { %11811 = vmatmul.mubr.msk.bf16.gmra.mrb[8].mxu1 %vm1458_vm1, %v7489_v9 }
 0x856   : > { %11814 = vmatprep.mubr.msk.bf16.mxu1 %vm1458_vm1, %v7490_v10  ;;  %v7913_v10 = vpop.permute.xlu0 %7912 }
 0x85a   : > { %v7923_v12 = vpop.permute.xlu0 %7922 }
 0x85d   : > { %11815 = vmatmul.mubr.msk.bf16.gmra.mrb[12].mxu1 %vm1458_vm1, %v7491_v39  ;;  %v7938_v39 = vpop.permute.xlu1 %7937 }
 0x85e   : > { %11818 = vmatprep.mubr.msk.bf16.mxu1 %vm1458_vm1, %v7492_v62 }
 0x865   : > { %11819 = vmatmul.mubr.msk.bf16.gmra.mrb[0].mxu1 %vm1458_vm1, %v7493_v54  ;;  %v7933_v54 = vpop.permute.xlu0 %7932 }
 0x866   : > { %11826 = vmatprep.mubr.msk.bf16.mxu1 %vm1458_vm1, %v7661_v5  ;;  %v7658_v5 = vld [vmem:[#allocation6 + $0x7a] sm:$0xff] }
 0x867   : > { %v7667_v49 = vpack.c.bf16 %v7659_v6, %v7658_v5 }
 0x86d   : > { %11827 = vmatmul.mubr.msk.bf16.vlgmr.msra.gmra.mrb[4].mxu1 %vm1458_vm1, %v7662_v55  ;;  %v12895_v55 = vld [vmem:[%s16876_s13 + $0x10] sm:$0xff]  }
 0x86e   : > { %11830 = vmatprep.mubr.msk.bf16.mxu1 %vm1458_vm1, %v7663_v44  ;;  %11843 = vmatpush3.bf16.msra.mxu0 %v12895_v55  ;;  %v12896_v44 = vld [vmem:[%s16876_s13 + $0x18] sm:$0xff]  }
 0x86f   : > { %11844 = vmatprep.subr.bf16.mxu0 %v13041_v0 }
 0x872   : > { %11845 = vmatpush3.bf16.msra.mxu0 %v12896_v44  ;;  %v7948_v44 = vpop.permute.xlu1 %7947 }
 0x873   : > { %11850 = vmatprep.subr.bf16.mxu0 %v13041_v0 }
 0x875   : > { %11831 = vmatmul.mubr.msk.bf16.gmra.mrb[8].mxu1 %vm1458_vm1, %v7664_v3  ;;  %v16454_v3 = vld [vmem:[%s16875_s12] ss:$0 sm:$0xff] }
 0x876   : > { %11834 = vmatprep.mubr.msk.bf16.mxu1 %vm1458_vm1, %v16936_v16 }
 0x87d   : > { %11835 = vmatmul.mubr.msk.bf16.gmra.mrb[12].mxu1 %vm1458_vm1, %v7666_v26 }
 0x87e   : > { %11838 = vmatprep.mubr.msk.bf16.mxu1 %vm1458_vm1, %v7667_v49 }
 0x885   : > { %11839 = vmatmul.mubr.msk.bf16.gmra.mrb[0].mxu1 %vm1458_vm1, %v7668_v28 }
 0x886   : > { %11922 = vmatprep.mubr.msk.bf16.mxu1 %vm13049_vm10, %v13041_v0 }
 0x940   : > { %v11828_v58 = vpop.f32.mrb[4].mxu1 }
 0x941   : > { %v12460_v2 = vadd.f32 %v11828_v58, %v16356_v47  ;;  %v7744_v9 = vpop.f32.mrb[5].mxu1 }
 0x942   : > { %v12461_v30 = vadd.f32 %v7744_v9, %v16358_v18  ;;  %v11829_v56 = vpop.f32.mrb[6].mxu1 }
 0x943   : > { %v7830_v41 = vmul.f32 %v12460_v2, %v16448_v1  ;;  %v12462_v48 = vadd.f32 %v11829_v56, %v16360_v59  ;;  %v7747_v29 = vpop.f32.mrb[7].mxu1  ;;  %v7943_v56 = vpop.permute.xlu0 %7942 }
 0x944   : > { %v7828_v20 = vmul.f32 %v12461_v30, %v16448_v1  ;;  %v12463_v33 = vadd.f32 %v7747_v29, %v16362_v50 }
 0x945   : > { %v7852_v21 = vadd.f32 %v16454_v3, %v7830_v41  ;;  %v7831_v23 = vmul.f32 %v12462_v48, %v16448_v1 }
 0x946   : > { %v7850_v11 = vadd.f32 %v16454_v3, %v7828_v20  ;;  %v7829_v14 = vmul.f32 %v12463_v33, %v16448_v1 }
 0x947   : > { %v7867_v32 = vmax.f32 %v7852_v21, 0.0  ;;  %v7853_v43 = vadd.f32 %v16454_v3, %v7831_v23 }
 0x948   : > { %v7865_v52 = vmax.f32 %v7850_v11, 0.0  ;;  %v7851_v60 = vadd.f32 %v16454_v3, %v7829_v14  ;;  %v11832_v34 = vpop.f32.mrb[8].mxu1 }
 0x949   : > { %v7972_v35 = vmul.f32 %v7908_v24, %v7867_v32  ;;  %v7868_v31 = vmax.f32 %v7853_v43, 0.0  ;;  %v12464_v40 = vadd.f32 %v11832_v34, %v16369_v63  ;;  %v7760_v42 = vpop.f32.mrb[9].mxu1 }
 0x94a   : > { %v7970_v47 = vmul.f32 %v7898_v7, %v7865_v52  ;;  %v7866_v18 = vmax.f32 %v7851_v60, 0.0  ;;  %v12465_v13 = vadd.f32 %v7760_v42, %v16371_v8  ;;  %v11833_v59 = vpop.f32.mrb[10].mxu1 }
 0x94b   : > { %7987 = vst.msk [vmem:[#allocation7 + $0x1d] sm:$0xff] %vm1458_vm1, %v7972_v35  ;;  %v7973_v50 = vmul.f32 %v7913_v10, %v7868_v31  ;;  %v7834_v36 = vmul.f32 %v12464_v40, %v16448_v1  ;;  %v12466_v22 = vadd.f32 %v11833_v59, %v16373_v15  ;;  %v7763_v38 = vpop.f32.mrb[11].mxu1  ;;  %v7953_v31 = vpop.permute.xlu0 %7952 }
 0x94c   : > { %7985 = vst.msk [vmem:[#allocation7 + $0xd] sm:$0xff] %vm1458_vm1, %v7970_v47  ;;  %v7971_v4 = vmul.f32 %v7903_v25, %v7866_v18  ;;  %v7832_v63 = vmul.f32 %v12465_v13, %v16448_v1  ;;  %v12467_v62 = vadd.f32 %v7763_v38, %v16375_v45 }
 0x94d   : > { %7988 = vst.msk [vmem:[#allocation7 + $0x25] sm:$0xff] %vm1458_vm1, %v7973_v50  ;;  %v7856_v8 = vadd.f32 %v16454_v3, %v7834_v36  ;;  %v7835_v37 = vmul.f32 %v12466_v22, %v16448_v1 }
 0x94e   : > { %7986 = vst.msk [vmem:[#allocation7 + $0x15] sm:$0xff] %vm1458_vm1, %v7971_v4  ;;  %v7854_v15 = vadd.f32 %v16454_v3, %v7832_v63  ;;  %v7833_v16 = vmul.f32 %v12467_v62, %v16448_v1 }
 0x94f   : > { %v7871_v17 = vmax.f32 %v7856_v8, 0.0  ;;  %v7857_v5 = vadd.f32 %v16454_v3, %v7835_v37 }
 0x950   : > { %v7869_v26 = vmax.f32 %v7854_v15, 0.0  ;;  %v7855_v6 = vadd.f32 %v16454_v3, %v7833_v16  ;;  %v11836_v45 = vpop.f32.mrb[12].mxu1  ;;  %v12913_v16 = vld [vmem:[%s16879_s16 + $0x20] sm:$0xff]  }
 0x951   : > { %v7976_v49 = vmul.f32 %v7928_v19, %v7871_v17  ;;  %v7872_v27 = vmax.f32 %v7857_v5, 0.0  ;;  %v12468_v28 = vadd.f32 %v11836_v45, %v16388_v46  ;;  %v7776_v55 = vpop.f32.mrb[13].mxu1  ;;  %11915 = vmatpush3.bf16.msra.mxu1 %v12913_v16  ;;  %v12902_v16 = vld [vmem:[%s16876_s13 + $0x38] sm:$0xff]  }
 0x952   : > { %v7974_v7 = vmul.f32 %v7918_v57, %v7869_v26  ;;  %v7870_v24 = vmax.f32 %v7855_v6, 0.0  ;;  %v12469_v25 = vadd.f32 %v7776_v55, %v16390_v51  ;;  %v11837_v58 = vpop.f32.mrb[14].mxu1  ;;  %11916 = vmatprep.subr.bf16.mxu1 %v13041_v0 }
 0x953   : > { %7991 = vst.msk [vmem:[#allocation7 + $0x3d] sm:$0xff] %vm1458_vm1, %v7976_v49  ;;  %v7977_v2 = vmul.f32 %v7933_v54, %v7872_v27  ;;  %v7838_v9 = vmul.f32 %v12468_v28, %v16448_v1  ;;  %v12470_v10 = vadd.f32 %v11837_v58, %v16392_v61  ;;  %v7779_v30 = vpop.f32.mrb[15].mxu1  ;;  %v8000_v20 = vld [vmem:[#allocation7 + $0xd] sm:$0xff] }
 0x954   : > { %7989 = vst.msk [vmem:[#allocation7 + $0x2d] sm:$0xff] %vm1458_vm1, %v7974_v7  ;;  %v7975_v41 = vmul.f32 %v7923_v12, %v7870_v24  ;;  %v7836_v46 = vmul.f32 %v12469_v25, %v16448_v1  ;;  %v12471_v57 = vadd.f32 %v7779_v30, %v16394_v53  ;;  %v7958_v53 = vpop.permute.xlu1 %7957  ;;  %v8003_v12 = vld [vmem:[#allocation7 + $0x21] sm:$0x3]  ;;  %v8006_v40 = vld [vmem:[#allocation7 + $0x25] sm:$0xff]  ;;  %v12914_v28 = vld [vmem:[%s16879_s16 + $0x28] sm:$0xff]   ;;  %v7963_v25 = vpop.permute.xlu0 %7962 }
 0x955   : > { %v8002_v48 = vld [vmem:[#allocation7 + $0x19] sm:$0xff]  ;;  %7992 = vst.msk [vmem:[#allocation7 + $0x45] sm:$0xff] %vm1458_vm1, %v7977_v2  ;;  %v7860_v51 = vadd.f32 %v16454_v3, %v7838_v9  ;;  %v7839_v29 = vmul.f32 %v12470_v10, %v16448_v1  ;;  %v8001_v21 = vld [vmem:[#allocation7 + $0x15] sm:$0x3]  ;;  %11917 = vmatpush3.bf16.msra.mxu1 %v12914_v28 }
 0x956   : > { %7990 = vst.msk [vmem:[#allocation7 + $0x35] sm:$0xff] %vm1458_vm1, %v7975_v41  ;;  %v7858_v61 = vadd.f32 %v16454_v3, %v7836_v46  ;;  %v7837_v33 = vmul.f32 %v12471_v57, %v16448_v1  ;;  %v8004_v23 = vmax.f32 %v8000_v20, %v8002_v48  ;;  %v8005_v42 = vmax.f32 %v8001_v21, %v8003_v12 }
 0x957   : > { %v7875_v19 = vmax.f32 %v7860_v51, 0.0  ;;  %v7861_v11 = vadd.f32 %v16454_v3, %v7839_v29  ;;  %11918 = vmatprep.subr.bf16.mxu1 %v13041_v0 }
 0x958   : > { %v7873_v14 = vmax.f32 %v7858_v61, 0.0  ;;  %v7859_v32 = vadd.f32 %v16454_v3, %v7837_v33  ;;  %v11840_v43 = vpop.f32.mrb[0].mxu1  ;;  %v8008_v36 = vmax.f32 %v8004_v23, %v8006_v40  ;;  %v7968_v17 = vpop.permute.xlu1 %7967 }
 0x959   : > { %v7980_v52 = vmul.f32 %v7948_v44, %v7875_v19  ;;  %v7876_v60 = vmax.f32 %v7861_v11, 0.0  ;;  %v7842_v34 = vmul.f32 %v11840_v43, %v16448_v1  ;;  %v7792_v35 = vpop.f32.mrb[1].mxu1 }
 0x95a   : > { %v7978_v47 = vmul.f32 %v7938_v39, %v7873_v14  ;;  %v7874_v18 = vmax.f32 %v7859_v32, 0.0  ;;  %v7840_v13 = vmul.f32 %v16448_v1, %v7792_v35  ;;  %v11841_v59 = vpop.f32.mrb[2].mxu1  ;;  %v8014_v49 = vld [vmem:[#allocation7 + $0x3d] sm:$0xff] }
 0x95b   : > { %v8007_v50 = vld [vmem:[#allocation7 + $0x2d] sm:$0x3]  ;;  %7995 = vst.msk [vmem:[#allocation7 + $0x5d] sm:$0xff] %vm1458_vm1, %v7980_v52  ;;  %v7981_v22 = vmul.f32 %v7953_v31, %v7876_v60  ;;  %v7864_v38 = vadd.f32 %v16454_v3, %v7842_v34  ;;  %v7795_v4 = vpop.f32.mrb[3].mxu1 }
 0x95c   : > { %v8009_v63 = vmax.f32 %v8005_v42, %v8007_v50  ;;  %7993 = vst.msk [vmem:[#allocation7 + $0x4d] sm:$0xff] %vm1458_vm1, %v7978_v47  ;;  %v7979_v62 = vmul.f32 %v7943_v56, %v7874_v18  ;;  %v7862_v8 = vadd.f32 %v16454_v3, %v7840_v13  ;;  %v7841_v39 = vmul.f32 %v16448_v1, %v7795_v4  ;;  %v8015_v27 = vld [vmem:[#allocation7 + $0x45] sm:$0x3]  ;;  %v12897_v59 = vld [vmem:[%s16876_s13] sm:$0xff]   ;;  %v12898_v4 = vld [vmem:[%s16876_s13 + $0x8] sm:$0xff]  }
 0x95d   : > { %v8010_v37 = vld [vmem:[#allocation7 + $0x31] sm:$0xff]  ;;  %v8011_v54 = vld [vmem:[#allocation7 + $0x39] sm:$0x3]  ;;  %7996 = vst.msk [vmem:[#allocation7 + $0x65] sm:$0xff] %vm1458_vm1, %v7981_v22  ;;  %v7879_v15 = vmax.f32 %v7864_v38, 0.0 }
 0x95e   : > { %v8012_v5 = vmax.f32 %v8008_v36, %v8010_v37  ;;  %v8013_v26 = vmax.f32 %v8009_v63, %v8011_v54  ;;  %7994 = vst.msk [vmem:[#allocation7 + $0x55] sm:$0xff] %vm1458_vm1, %v7979_v62  ;;  %v7877_v6 = vmax.f32 %v7862_v8, 0.0  ;;  %v7863_v45 = vadd.f32 %v16454_v3, %v7841_v39  ;;  %v12899_v62 = vld [vmem:[%s16876_s13 + $0x20] sm:$0xff]   ;;  %v12900_v39 = vld [vmem:[%s16876_s13 + $0x28] sm:$0xff]   ;;  %v12901_v54 = vld [vmem:[%s16876_s13 + $0x30] sm:$0xff]  }
 0x95f   : > { %v7984_v1 = vmul.f32 %v7968_v17, %v7879_v15 }
 0x960   : > { %v8016_v55 = vmax.f32 %v8012_v5, %v8014_v49  ;;  %v8017_v44 = vmax.f32 %v8013_v26, %v8015_v27  ;;  %v7982_v7 = vmul.f32 %v7958_v53, %v7877_v6  ;;  %v7878_v24 = vmax.f32 %v7863_v45, 0.0  ;;  %v12903_v5 = vld [vmem:[%s16876_s13 + $0x40] sm:$0xff]   ;;  %v12904_v6 = vld [vmem:[%s16876_s13 + $0x48] sm:$0xff]   ;;  %v12905_v49 = vld [vmem:[%s16876_s13 + $0x50] sm:$0xff]  }
 0x961   : > { %7999 = vst.msk [vmem:[#allocation7 + $0x7d] sm:$0x3f] %vm6275_vm9, %v7984_v1  ;;  %v12906_v1 = vld [vmem:[%s16876_s13 + $0x58] sm:$0xff]  }
 0x962   : > { %8018 = vst.msk [vmem:[#allocation8] sm:$0xff] %vm1458_vm1, %v8016_v55  ;;  %7997 = vst.msk [vmem:[#allocation7 + $0x6d] sm:$0xff] %vm1458_vm1, %v7982_v7  ;;  %v7983_v3 = vmul.f32 %v7963_v25, %v7878_v24  ;;  %v8038_v58 = vld [vmem:[#allocation7 + $0x5d] sm:$0x3]  ;;  %v12907_v55 = vld [vmem:[%s16876_s13 + $0x60] sm:$0xff]  }
 0x963   : > { %8020 = vst.msk [vmem:[#allocation8 + $0x8] sm:$0x3] %vm8019_vm11, %v8017_v44  ;;  %v8036_v2 = vld [vmem:[#allocation7 + $0x51] sm:$0x3]  ;;  %v8035_v9 = vld [vmem:[#allocation7 + $0x49] sm:$0xff]  ;;  %v12909_v25 = vld [vmem:[%s16876_s13 + $0x70] sm:$0xff]  }
 0x964   : > { %7998 = vst.msk [vmem:[#allocation7 + $0x75] sm:$0xff] %vm1458_vm1, %v7983_v3  ;;  %v8040_v30 = vmax.f32 %v8036_v2, %v8038_v58  ;;  %v8041_v41 = vld [vmem:[#allocation7 + $0x61] sm:$0xff]  ;;  %v8042_v46 = vld [vmem:[#allocation7 + $0x69] sm:$0x3]  ;;  %v12908_v7 = vld [vmem:[%s16876_s13 + $0x68] sm:$0xff]  }
 0x965   : > { %v8037_v10 = vld [vmem:[#allocation7 + $0x55] sm:$0xff]  ;;  %v12910_v58 = vld [vmem:[%s16876_s13 + $0x78] sm:$0xff]  }
 0x966   : > { %v8039_v56 = vmax.f32 %v8035_v9, %v8037_v10  ;;  %v8044_v20 = vmax.f32 %v8040_v30, %v8042_v46  ;;  %v12911_v9 = vld [vmem:[%s16876_s13 + $0x80] sm:$0xff]   ;;  %v12912_v30 = vld [vmem:[%s16876_s13 + $0x88] sm:$0xff]   ;;  %v12915_v46 = vld [vmem:[%s16879_s16 + $0x30] sm:$0xff]  }
 0x967   : > { %11919 = vmatpush3.bf16.msra.mxu1 %v12915_v46  ;;  %v12949_v46 = vld [vmem:[%s16882_s19] sm:$0xff]  }
 0x968   : > { %v8043_v57 = vmax.f32 %v8039_v56, %v8041_v41  ;;  %v8050_v19 = vld [vmem:[#allocation7 + $0x81] sm:$0x3]  ;;  %11920 = vmatprep.subr.bf16.mxu1 %v13041_v0 }
 0x969   : > { %v8045_v48 = vld [vmem:[#allocation7 + $0x6d] sm:$0xff] }
 0x96a   : > { %v8021_v51 = vld [vmem:[#allocation8] ss:$5 sm:$0x3]  ;;  %v8047_v29 = vmax.f32 %v8043_v57, %v8045_v48  ;;  %v8023_v61 = vld [vmem:[#allocation8 + $0x1] ss:$5 sm:$0x3] }
 0x96b   : > { %v8046_v33 = vld [vmem:[#allocation7 + $0x75] sm:$0x3]  ;;  %v8049_v21 = vld [vmem:[#allocation7 + $0x79] sm:$0xff]  ;;  %v8024_v23 = vmax.f32 %v8021_v51, %v8023_v61  ;;  %v8026_v14 = vld [vmem:[#allocation8 + $0x2] ss:$5 sm:$0x3] }
 0x96c   : > { %v8048_v11 = vmax.f32 %v8044_v20, %v8046_v33  ;;  %v8051_v53 = vmax.f32 %v8047_v29, %v8049_v21  ;;  %v8029_v43 = vld [vmem:[#allocation8 + $0x3] ss:$5 sm:$0x3]  ;;  %v8032_v12 = vld [vmem:[#allocation8 + $0x4] ss:$5 sm:$0x3] }
 0x96d   : > { %v8027_v32 = vmax.f32 %v8024_v23, %v8026_v14  ;;  %v12916_v57 = vld [vmem:[%s16879_s16 + $0x38] sm:$0xff]   ;;  %v10432_v48 = vld [vmem:[%s16877_s14] ss:$0 sm:$0xff] }
 0x96e   : > { %v8052_v52 = vmax.f32 %v8048_v11, %v8050_v19  ;;  %8053 = vst.msk [vmem:[#allocation8] sm:$0xff] %vm1458_vm1, %v8051_v53  ;;  %11921 = vmatpush3.bf16.msra.mxu1 %v12916_v57  ;;  %v10433_v29 = vld [vmem:[%s16878_s15] ss:$0 sm:$0xff]  ;;  %v8650_v11 = vpop.permute.xlu0 %8649  ;;  %v12950_v57 = vld [vmem:[%s16882_s19 + $0x8] sm:$0xff]  }
 0x96f   : > { %v8030_v60 = vmax.f32 %v8027_v32, %v8029_v43  ;;  %11926 = vmatprep.subr.bf16.mxu1 %v13041_v0  ;;  %v12917_v32 = vld [vmem:[%s16879_s16] sm:$0xff]  }
 0x970   : > { %8054 = vst.msk [vmem:[#allocation8 + $0x8] sm:$0x3] %vm8019_vm11, %v8052_v52  ;;  %v12919_v52 = vld [vmem:[%s16879_s16 + $0x10] sm:$0xff]  }
 0x971   : > { %v8033_v34 = vmax.f32 %v8030_v60, %v8032_v12  ;;  %v12918_v12 = vld [vmem:[%s16879_s16 + $0x8] sm:$0xff]   ;;  %v12920_v60 = vld [vmem:[%s16879_s16 + $0x18] sm:$0xff]  }
 0x973   : > { %8034 = vst.msk [vmem:[#allocation9 + $0x5] sm:$0x3] %vm8019_vm11, %v8033_v34 }
 0x975   : > { %v8055_v35 = vld [vmem:[#allocation8] ss:$5 sm:$0x3]  ;;  %v8056_v31 = vld [vmem:[#allocation8 + $0x1] ss:$5 sm:$0x3] }
 0x976   : > { %v8057_v40 = vmax.f32 %v8055_v35, %v8056_v31  ;;  %v8058_v42 = vld [vmem:[#allocation8 + $0x2] ss:$5 sm:$0x3]  ;;  %v12921_v35 = vld [vmem:[%s16879_s16 + $0x40] sm:$0xff]  }
 0x977   : > { %v8060_v18 = vld [vmem:[#allocation8 + $0x3] ss:$5 sm:$0x3]  ;;  %v8062_v22 = vld [vmem:[#allocation8 + $0x4] ss:$5 sm:$0x3] }
 0x978   : > { %v8059_v47 = vmax.f32 %v8057_v40, %v8058_v42  ;;  %v12922_v40 = vld [vmem:[%s16879_s16 + $0x48] sm:$0xff]   ;;  %v12923_v42 = vld [vmem:[%s16879_s16 + $0x50] sm:$0xff]  }
 0x97a   : > { %v8071_v13 = vld [vmem:[#allocation9 + $0x1] sm:$0x3f]  ;;  %v8061_v50 = vmax.f32 %v8059_v47, %v8060_v18 }
 0x97b   : > { %v8072_v36 = vpack.c.bf16 %v8071_v13, %v8071_v13  ;;  %v8065_v63 = vld [vmem:[#allocation9] sm:$0x3f]  ;;  %v12925_v13 = vld [vmem:[%s16879_s16 + $0x60] sm:$0xff]  }
 0x97c   : > { %v8063_v38 = vmax.f32 %v8061_v50, %v8062_v22  ;;  %v8066_v8 = vpack.c.bf16 %v8065_v63, %v8065_v63  ;;  %v8188_v37 = vld [vmem:[#allocation9 + $0x2] sm:$0x3f]  ;;  %v12926_v50 = vld [vmem:[%s16879_s16 + $0x68] sm:$0xff]  }
 0x97d   : > { %11847 = vmatmul.mubr.msk.bf16.vlgmr.msra.gmra.mrb[28].mxu0 %vm1458_vm1, %v8072_v36  ;;  %v8189_v15 = vpack.c.bf16 %v8188_v37, %v8188_v37  ;;  %v12924_v47 = vld [vmem:[%s16879_s16 + $0x58] sm:$0xff]   ;;  %v12927_v36 = vld [vmem:[%s16879_s16 + $0x70] sm:$0xff]  }
 0x97e   : > { %11851 = vmatpush3.bf16.msra.mxu0 %v12897_v59  ;;  %11854 = vmatprep.mubr.msk.bf16.mxu0 %vm13049_vm10, %v13041_v0  ;;  %8064 = vst.msk [vmem:[#allocation9 + $0x9] sm:$0x3] %vm8019_vm11, %v8063_v38  ;;  %v12928_v22 = vld [vmem:[%s16879_s16 + $0x78] sm:$0xff]  }
 0x97f   : > { %11852 = vmatprep.subr.bf16.mxu0 %v13041_v0 }
 0x982   : > { %11853 = vmatpush3.bf16.msra.mxu0 %v12898_v4  ;;  %v12929_v4 = vld [vmem:[%s16879_s16 + $0x80] sm:$0xff]  }
 0x983   : > { %11858 = vmatprep.subr.bf16.mxu0 %v13041_v0 }
 0x985   : > { %v8251_v17 = vld [vmem:[#allocation9 + $0x4] sm:$0x3f]  ;;  %v8566_v56 = vld [vmem:[#allocation9 + $0xa] sm:$0x3f] }
 0x986   : > { %v8252_v26 = vpack.c.bf16 %v8251_v17, %v8251_v17  ;;  %v8314_v45 = vld [vmem:[#allocation9 + $0x5] sm:$0x3f]  ;;  %v8567_v41 = vpack.c.bf16 %v8566_v56, %v8566_v56  ;;  %v12935_v17 = vld [vmem:[%s16879_s16 + $0xb0] sm:$0xff]  }
 0x987   : > { %v8315_v27 = vpack.c.bf16 %v8314_v45, %v8314_v45  ;;  %v8377_v28 = vld [vmem:[#allocation9 + $0x6] sm:$0x3f] }
 0x988   : > { %v8378_v44 = vpack.c.bf16 %v8377_v28, %v8377_v28  ;;  %v8440_v24 = vld [vmem:[#allocation9 + $0x8] sm:$0x3f] }
 0x989   : > { %11855 = vmatmul.mubr.msk.bf16.vlgmr.msra.gmra.mrb[28].mxu0 %vm1458_vm1, %v8066_v8  ;;  %v8441_v3 = vpack.c.bf16 %v8440_v24, %v8440_v24  ;;  %v8503_v2 = vld [vmem:[#allocation9 + $0x9] sm:$0x3f]  ;;  %v12931_v8 = vld [vmem:[%s16879_s16 + $0x90] sm:$0xff]  }
 0x98a   : > { %11859 = vmatpush3.bf16.msra.mxu0 %v12899_v62  ;;  %11862 = vmatprep.mubr.msk.bf16.mxu0 %vm13049_vm10, %v13041_v0  ;;  %v8504_v10 = vpack.c.bf16 %v8503_v2, %v8503_v2  ;;  %v12930_v62 = vld [vmem:[%s16879_s16 + $0x88] sm:$0xff]   ;;  %v12943_v24 = vld [vmem:[%s16879_s16 + $0xf0] sm:$0xff]  }
 0x98b   : > { %11860 = vmatprep.subr.bf16.mxu0 %v13041_v0 }
 0x98e   : > { %11861 = vmatpush3.bf16.msra.mxu0 %v12900_v39  ;;  %v12932_v39 = vld [vmem:[%s16879_s16 + $0x98] sm:$0xff]  }
 0x98f   : > { %11866 = vmatprep.subr.bf16.mxu0 %v13041_v0 }
 0x995   : > { %11863 = vmatmul.mubr.msk.bf16.vlgmr.msra.gmra.mrb[28].mxu0 %vm1458_vm1, %v8189_v15 }
 0x996   : > { %11867 = vmatpush3.bf16.msra.mxu0 %v12901_v54  ;;  %11870 = vmatprep.mubr.msk.bf16.mxu0 %vm13049_vm10, %v13041_v0  ;;  %v12933_v54 = vld [vmem:[%s16879_s16 + $0xa0] sm:$0xff]  }
 0x997   : > { %11868 = vmatprep.subr.bf16.mxu0 %v13041_v0 }
 0x99a   : > { %11869 = vmatpush3.bf16.msra.mxu0 %v12902_v16  ;;  %v12934_v16 = vld [vmem:[%s16879_s16 + $0xa8] sm:$0xff]  }
 0x99b   : > { %11874 = vmatprep.subr.bf16.mxu0 %v13041_v0 }
 0x9a1   : > { %11871 = vmatmul.mubr.msk.bf16.vlgmr.msra.gmra.mrb[28].mxu0 %vm1458_vm1, %v8252_v26 }
 0x9a2   : > { %11875 = vmatpush3.bf16.msra.mxu0 %v12903_v5  ;;  %11878 = vmatprep.mubr.msk.bf16.mxu0 %vm13049_vm10, %v13041_v0  ;;  %v12936_v5 = vld [vmem:[%s16879_s16 + $0xb8] sm:$0xff]  }
 0x9a3   : > { %11876 = vmatprep.subr.bf16.mxu0 %v13041_v0 }
 0x9a6   : > { %11877 = vmatpush3.bf16.msra.mxu0 %v12904_v6  ;;  %v12937_v6 = vld [vmem:[%s16879_s16 + $0xc0] sm:$0xff]  }
 0x9a7   : > { %11882 = vmatprep.subr.bf16.mxu0 %v13041_v0 }
 0x9ad   : > { %11879 = vmatmul.mubr.msk.bf16.vlgmr.msra.gmra.mrb[28].mxu0 %vm1458_vm1, %v8315_v27  ;;  %v12939_v27 = vld [vmem:[%s16879_s16 + $0xd0] sm:$0xff]  }
 0x9ae   : > { %11883 = vmatpush3.bf16.msra.mxu0 %v12905_v49  ;;  %11886 = vmatprep.mubr.msk.bf16.mxu0 %vm13049_vm10, %v13041_v0  ;;  %v12938_v49 = vld [vmem:[%s16879_s16 + $0xc8] sm:$0xff]  }
 0x9af   : > { %11884 = vmatprep.subr.bf16.mxu0 %v13041_v0 }
 0x9b2   : > { %11885 = vmatpush3.bf16.msra.mxu0 %v12906_v1  ;;  %v12940_v1 = vld [vmem:[%s16879_s16 + $0xd8] sm:$0xff]  }
 0x9b3   : > { %11890 = vmatprep.subr.bf16.mxu0 %v13041_v0 }
 0x9b9   : > { %11887 = vmatmul.mubr.msk.bf16.vlgmr.msra.gmra.mrb[28].mxu0 %vm1458_vm1, %v8378_v44 }
 0x9ba   : > { %11891 = vmatpush3.bf16.msra.mxu0 %v12907_v55  ;;  %11894 = vmatprep.mubr.msk.bf16.mxu0 %vm13049_vm10, %v13041_v0  ;;  %v12941_v55 = vld [vmem:[%s16879_s16 + $0xe0] sm:$0xff]  }
 0x9bb   : > { %11892 = vmatprep.subr.bf16.mxu0 %v13041_v0 }
 0x9be   : > { %11893 = vmatpush3.bf16.msra.mxu0 %v12908_v7  ;;  %v12942_v7 = vld [vmem:[%s16879_s16 + $0xe8] sm:$0xff]  }
 0x9bf   : > { %11898 = vmatprep.subr.bf16.mxu0 %v13041_v0 }
 0x9c5   : > { %11895 = vmatmul.mubr.msk.bf16.vlgmr.msra.gmra.mrb[28].mxu0 %vm1458_vm1, %v8441_v3 }
 0x9c6   : > { %11899 = vmatpush3.bf16.msra.mxu0 %v12909_v25  ;;  %11902 = vmatprep.mubr.msk.bf16.mxu0 %vm13049_vm10, %v13041_v0  ;;  %v12944_v25 = vld [vmem:[%s16879_s16 + $0xf8] sm:$0xff]  }
 0x9c7   : > { %11900 = vmatprep.subr.bf16.mxu0 %v13041_v0 }
 0x9ca   : > { %11901 = vmatpush3.bf16.msra.mxu0 %v12910_v58  ;;  %v12945_v58 = vld [vmem:[%s16879_s16 + $0x100] sm:$0xff]  }
 0x9cb   : > { %11906 = vmatprep.subr.bf16.mxu0 %v13041_v0 }
 0x9d1   : > { %11903 = vmatmul.mubr.msk.bf16.vlgmr.msra.gmra.mrb[28].mxu0 %vm1458_vm1, %v8504_v10  ;;  %v12947_v10 = vld [vmem:[%s16879_s16 + $0x110] sm:$0xff]  }
 0x9d2   : > { %11907 = vmatpush3.bf16.msra.mxu0 %v12911_v9  ;;  %11910 = vmatprep.mubr.msk.bf16.mxu0 %vm13049_vm10, %v13041_v0  ;;  %v12946_v9 = vld [vmem:[%s16879_s16 + $0x108] sm:$0xff]  }
 0x9d3   : > { %11908 = vmatprep.subr.bf16.mxu0 %v13041_v0 }
 0x9d6   : > { %11909 = vmatpush3.bf16.msra.mxu0 %v12912_v30  ;;  %v12948_v30 = vld [vmem:[%s16879_s16 + $0x118] sm:$0xff]  }
 0x9d7   : > { %12022 = vmatprep.subr.bf16.mxu0 %v13041_v0 }
 0x9dd   : > { %11911 = vmatmul.mubr.msk.bf16.vlgmr.msra.gmra.mrb[28].mxu0 %vm1458_vm1, %v8567_v41 }
 0x9de   : > { %12030 = vmatprep.mubr.msk.bf16.mxu0 %vm13049_vm10, %v13041_v0  ;;  %12023 = vmatpush3.bf16.msra.mxu0 %v12949_v46 }
 0x9df   : > { %12024 = vmatprep.subr.bf16.mxu0 %v13041_v0 }
 0x9e2   : > { %12025 = vmatpush3.bf16.msra.mxu0 %v12950_v57 }
 0x9e3   : > { %12026 = vmatprep.subr.bf16.mxu0 %v13041_v0 }
 0xab0   : > { %v8622_v51 = vpop.f32.mrb[28].mxu0 }
 0xab1   : > { %v8636_v20 = vmul.f32 %v10432_v48, %v8622_v51  ;;  %v11912_v61 = vpop.f32.mrb[29].mxu0  ;;  %v12951_v48 = vld [vmem:[%s16882_s19 + $0x10] sm:$0xff]   ;;  %v12952_v51 = vld [vmem:[%s16882_s19 + $0x18] sm:$0xff]  }
 0xab2   : > { %v8625_v33 = vpop.f32.mrb[30].mxu0  ;;  %12027 = vmatpush3.bf16.msra.mxu0 %v12951_v48  ;;  %v10544_v61 = vld [vmem:[%s16881_s18] ss:$0 sm:$0xff] }
 0xab3   : > { %v8644_v21 = vadd.f32 %v10433_v29, %v8636_v20  ;;  %v11913_v23 = vpop.f32.mrb[31].mxu0  ;;  %12028 = vmatprep.subr.bf16.mxu0 %v13041_v0  ;;  %v10543_v29 = vld [vmem:[%s16880_s17] ss:$0 sm:$0xff] }
 0xab5   : > { %v8645_v19 = vmax.f32 %v8644_v21, 0.0 }
 0xab6   : > { %12029 = vmatpush3.bf16.msra.mxu0 %v12952_v51 }
 0xab7   : > { %v8652_v53 = vmul.f32 %v8650_v11, %v8645_v19 }
 0xab9   : > { %8654 = vst.msk [vmem:[#allocation10 + $0x5] sm:$0x3f] %vm8653_vm12, %v8652_v53 }
 0xac0   : > { %v8665_v14 = vld [vmem:[#allocation10 + $0x1] sm:$0x3f]  ;;  %v9126_v28 = vld [vmem:[#allocation10 + $0x8] sm:$0x3f] }
 0xac1   : > { %v8666_v43 = vpack.c.bf16 %v8665_v14, %v8665_v14  ;;  %v8655_v34 = vld [vmem:[#allocation10] sm:$0x3f]  ;;  %v9047_v26 = vld [vmem:[#allocation10 + $0x6] sm:$0x3f]  ;;  %v9127_v44 = vpack.c.bf16 %v9126_v28, %v9126_v28  ;;  %v9384_v14 = vpop.permute.xlu1 %9383 }
 0xac2   : > { %v8656_v31 = vpack.c.bf16 %v8655_v34, %v8655_v34  ;;  %v8810_v18 = vld [vmem:[#allocation10 + $0x2] sm:$0x3f]  ;;  %v9048_v45 = vpack.c.bf16 %v9047_v26, %v9047_v26  ;;  %v9205_v3 = vld [vmem:[#allocation10 + $0x9] sm:$0x3f] }
 0xac3   : > { %11923 = vmatmul.mubr.msk.bf16.vlgmr.msra.gmra.mrb[16].mxu1 %vm1497_vm2, %v8666_v43  ;;  %v8811_v59 = vpack.c.bf16 %v8810_v18, %v8810_v18  ;;  %v8889_v38 = vld [vmem:[#allocation10 + $0x4] sm:$0x3f]  ;;  %v9206_v2 = vpack.c.bf16 %v9205_v3, %v9205_v3  ;;  %v9284_v56 = vld [vmem:[#allocation10 + $0xa] sm:$0x3f] }
 0xac4   : > { %11927 = vmatpush3.bf16.msra.mxu1 %v12917_v32  ;;  %11934 = vmatprep.mubr.msk.bf16.mxu1 %vm13049_vm10, %v13041_v0  ;;  %v8890_v63 = vpack.c.bf16 %v8889_v38, %v8889_v38  ;;  %v8968_v37 = vld [vmem:[#allocation10 + $0x5] sm:$0x3f]  ;;  %v9285_v41 = vpack.c.bf16 %v9284_v56, %v9284_v56 }
 0xac5   : > { %11928 = vmatprep.subr.bf16.mxu1 %v13041_v0  ;;  %v8969_v15 = vpack.c.bf16 %v8968_v37, %v8968_v37 }
 0xac8   : > { %11929 = vmatpush3.bf16.msra.mxu1 %v12918_v12 }
 0xac9   : > { %11930 = vmatprep.subr.bf16.mxu1 %v13041_v0 }
 0xacc   : > { %11931 = vmatpush3.bf16.msra.mxu1 %v12919_v52 }
 0xacd   : > { %11932 = vmatprep.subr.bf16.mxu1 %v13041_v0 }
 0xad0   : > { %11933 = vmatpush3.bf16.msra.mxu1 %v12920_v60 }
 0xad1   : > { %11938 = vmatprep.subr.bf16.mxu1 %v13041_v0 }
 0xad3   : > { %11935 = vmatmul.mubr.msk.bf16.vlgmr.msra.gmra.mrb[16].mxu1 %vm1497_vm2, %v8656_v31 }
 0xad4   : > { %11939 = vmatpush3.bf16.msra.mxu1 %v12921_v35  ;;  %11946 = vmatprep.mubr.msk.bf16.mxu1 %vm13049_vm10, %v13041_v0 }
 0xad5   : > { %11940 = vmatprep.subr.bf16.mxu1 %v13041_v0 }
 0xad8   : > { %11941 = vmatpush3.bf16.msra.mxu1 %v12922_v40  ;;  %v9476_v40 = vld [vmem:[%s16883_s20] sm:$0x1] }
 0xad9   : > { %11942 = vmatprep.subr.bf16.mxu1 %v13041_v0 }
 0xadc   : > { %11943 = vmatpush3.bf16.msra.mxu1 %v12923_v42 }
 0xadd   : > { %11944 = vmatprep.subr.bf16.mxu1 %v13041_v0 }
 0xae0   : > { %11945 = vmatpush3.bf16.msra.mxu1 %v12924_v47  ;;  %v9478_v47 = vld [vmem:[%s16884_s21] sm:$0x1] }
 0xae1   : > { %11950 = vmatprep.subr.bf16.mxu1 %v13041_v0 }
 0xae3   : > { %11947 = vmatmul.mubr.msk.bf16.vlgmr.msra.gmra.mrb[16].mxu1 %vm1497_vm2, %v8811_v59 }
 0xae4   : > { %11951 = vmatpush3.bf16.msra.mxu1 %v12925_v13  ;;  %11958 = vmatprep.mubr.msk.bf16.mxu1 %vm13049_vm10, %v13041_v0 }
 0xae5   : > { %11952 = vmatprep.subr.bf16.mxu1 %v13041_v0 }
 0xae8   : > { %11953 = vmatpush3.bf16.msra.mxu1 %v12926_v50 }
 0xae9   : > { %11954 = vmatprep.subr.bf16.mxu1 %v13041_v0 }
 0xaec   : > { %11955 = vmatpush3.bf16.msra.mxu1 %v12927_v36 }
 0xaed   : > { %11956 = vmatprep.subr.bf16.mxu1 %v13041_v0 }
 0xaf0   : > { %11957 = vmatpush3.bf16.msra.mxu1 %v12928_v22 }
 0xaf1   : > { %11962 = vmatprep.subr.bf16.mxu1 %v13041_v0 }
 0xaf3   : > { %11959 = vmatmul.mubr.msk.bf16.vlgmr.msra.gmra.mrb[16].mxu1 %vm1497_vm2, %v8890_v63 }
 0xaf4   : > { %11963 = vmatpush3.bf16.msra.mxu1 %v12929_v4  ;;  %11970 = vmatprep.mubr.msk.bf16.mxu1 %vm13049_vm10, %v13041_v0 }
 0xaf5   : > { %11964 = vmatprep.subr.bf16.mxu1 %v13041_v0 }
 0xaf8   : > { %11965 = vmatpush3.bf16.msra.mxu1 %v12930_v62 }
 0xaf9   : > { %11966 = vmatprep.subr.bf16.mxu1 %v13041_v0 }
 0xafc   : > { %11967 = vmatpush3.bf16.msra.mxu1 %v12931_v8 }
 0xafd   : > { %11968 = vmatprep.subr.bf16.mxu1 %v13041_v0 }
 0xb00   : > { %11969 = vmatpush3.bf16.msra.mxu1 %v12932_v39 }
 0xb01   : > { %11974 = vmatprep.subr.bf16.mxu1 %v13041_v0 }
 0xb03   : > { %11971 = vmatmul.mubr.msk.bf16.vlgmr.msra.gmra.mrb[16].mxu1 %vm1497_vm2, %v8969_v15 }
 0xb04   : > { %11975 = vmatpush3.bf16.msra.mxu1 %v12933_v54  ;;  %11982 = vmatprep.mubr.msk.bf16.mxu1 %vm13049_vm10, %v13041_v0 }
 0xb05   : > { %11976 = vmatprep.subr.bf16.mxu1 %v13041_v0 }
 0xb08   : > { %11977 = vmatpush3.bf16.msra.mxu1 %v12934_v16 }
 0xb09   : > { %11978 = vmatprep.subr.bf16.mxu1 %v13041_v0 }
 0xb0c   : > { %11979 = vmatpush3.bf16.msra.mxu1 %v12935_v17 }
 0xb0d   : > { %11980 = vmatprep.subr.bf16.mxu1 %v13041_v0 }
 0xb10   : > { %11981 = vmatpush3.bf16.msra.mxu1 %v12936_v5 }
 0xb11   : > { %11986 = vmatprep.subr.bf16.mxu1 %v13041_v0 }
 0xb13   : > { %11983 = vmatmul.mubr.msk.bf16.vlgmr.msra.gmra.mrb[16].mxu1 %vm1497_vm2, %v9048_v45 }
 0xb14   : > { %11987 = vmatpush3.bf16.msra.mxu1 %v12937_v6  ;;  %11994 = vmatprep.mubr.msk.bf16.mxu1 %vm13049_vm10, %v13041_v0 }
 0xb15   : > { %11988 = vmatprep.subr.bf16.mxu1 %v13041_v0 }
 0xb18   : > { %11989 = vmatpush3.bf16.msra.mxu1 %v12938_v49 }
 0xb19   : > { %11990 = vmatprep.subr.bf16.mxu1 %v13041_v0 }
 0xb1c   : > { %11991 = vmatpush3.bf16.msra.mxu1 %v12939_v27 }
 0xb1d   : > { %11992 = vmatprep.subr.bf16.mxu1 %v13041_v0 }
 0xb20   : > { %11993 = vmatpush3.bf16.msra.mxu1 %v12940_v1 }
 0xb21   : > { %11998 = vmatprep.subr.bf16.mxu1 %v13041_v0 }
 0xb23   : > { %11995 = vmatmul.mubr.msk.bf16.vlgmr.msra.gmra.mrb[16].mxu1 %vm1497_vm2, %v9127_v44 }
 0xb24   : > { %11999 = vmatpush3.bf16.msra.mxu1 %v12941_v55  ;;  %12006 = vmatprep.mubr.msk.bf16.mxu1 %vm13049_vm10, %v13041_v0 }
 0xb25   : > { %12000 = vmatprep.subr.bf16.mxu1 %v13041_v0 }
 0xb28   : > { %12001 = vmatpush3.bf16.msra.mxu1 %v12942_v7 }
 0xb29   : > { %12002 = vmatprep.subr.bf16.mxu1 %v13041_v0 }
 0xb2c   : > { %12003 = vmatpush3.bf16.msra.mxu1 %v12943_v24 }
 0xb2d   : > { %12004 = vmatprep.subr.bf16.mxu1 %v13041_v0 }
 0xb30   : > { %12005 = vmatpush3.bf16.msra.mxu1 %v12944_v25 }
 0xb31   : > { %12010 = vmatprep.subr.bf16.mxu1 %v13041_v0 }
 0xb33   : > { %12007 = vmatmul.mubr.msk.bf16.vlgmr.msra.gmra.mrb[16].mxu1 %vm1497_vm2, %v9206_v2 }
 0xb34   : > { %12011 = vmatpush3.bf16.msra.mxu1 %v12945_v58  ;;  %12018 = vmatprep.mubr.msk.bf16.mxu1 %vm13049_vm10, %v13041_v0 }
 0xb35   : > { %12012 = vmatprep.subr.bf16.mxu1 %v13041_v0 }
 0xb38   : > { %12013 = vmatpush3.bf16.msra.mxu1 %v12946_v9 }
 0xb39   : > { %12014 = vmatprep.subr.bf16.mxu1 %v13041_v0 }
 0xb3c   : > { %12015 = vmatpush3.bf16.msra.mxu1 %v12947_v10 }
 0xb3d   : > { %12016 = vmatprep.subr.bf16.mxu1 %v13041_v0 }
 0xb40   : > { %12017 = vmatpush3.bf16.msra.mxu1 %v12948_v30 }
 0xb43   : > { %12019 = vmatmul.mubr.msk.bf16.vlgmr.msra.gmra.mrb[16].mxu1 %vm1497_vm2, %v9285_v41 }
 0xc16   : > { %v9356_v20 = vpop.f32.mrb[16].mxu1 }
 0xc17   : > { %v9370_v33 = vmul.f32 %v10543_v29, %v9356_v20  ;;  %v12020_v21 = vpop.f32.mrb[17].mxu1 }
 0xc18   : > { %v9359_v23 = vpop.f32.mrb[18].mxu1 }
 0xc19   : > { %v9378_v19 = vadd.f32 %v10544_v61, %v9370_v33  ;;  %v12021_v11 = vpop.f32.mrb[19].mxu1 }
 0xc1b   : > { %v9379_v53 = vmax.f32 %v9378_v19, 0.0 }
 0xc1d   : > { %v9386_v32 = vmul.f32 %v9384_v14, %v9379_v53 }
 0xc1f   : > { %9387 = vst.msk [vmem:[#allocation11 + $0x5] sm:$0x3f] %vm8653_vm12, %v9386_v32 }
 0xc26   : > { %v9388_v0 = vld [vmem:[#allocation11 + $0x5] sm:$0x3]  ;;  %v9389_v43 = vld [vmem:[#allocation11 + $0x9] sm:$0x3] }
 0xc27   : > { %v9390_v12 = vmax.f32 %v9388_v0, %v9389_v43 }
 0xc29   : > { %9392 = vst.msk [vmem:[#allocation12] sm:$0x3] %vm9391_vm13, %v9390_v12 }
 0xc30   : > { %v9393_v52 = vld [vmem:[#allocation12] ss:$2 sm:$0x1]  ;;  %v9395_v60 = vld [vmem:[#allocation12 + $0x1] ss:$2 sm:$0x1] }
 0xc31   : > { %v9396_v34 = vmax.f32 %v9393_v52, %v9395_v60 }
 0xc33   : > { %9398 = vst.msk [vmem:[#allocation13] sm:$0x1] %vm9397_vm14, %v9396_v34 }
 0xc3a   : > { %v9399_v35 = vld [vmem:[#allocation13] sm:$0x1] }
 0xc3b   : > { %v9400_v31 = vpack.c.bf16 %v9399_v35, %v9399_v35 }
 0xc3d   : > { %12031 = vmatmul.mubr.msk.bf16.vlgmr.msra.gmra.mrb[32].mxu0 %vm1497_vm2, %v9400_v31 }
 0xd10   : > { %v9470_v42 = vpop.f32.mrb[32].mxu0 }
 0xd11   : > { %v9477_v18 = vmul.f32 %v9476_v40, %v9470_v42  ;;  %v12032_v13 = vpop.f32.mrb[33].mxu0 }
 0xd12   : > { %v9473_v59 = vpop.f32.mrb[34].mxu0 }
 0xd13   : > { %v9479_v50 = vadd.f32 %v9478_v47, %v9477_v18  ;;  %v12033_v36 = vpop.f32.mrb[35].mxu0 }
 0xd15   : > { %v9480_v22 = vmax.f32 %v9479_v50, 0.0 }
 0xd17   : > { %9482 = vst.msk [vmem:[%s14709_s6] sm:$0x1] %vm9481_vm15, %v9480_v22 }
 0xd18   : > { %12966 = shalt.err (!%p12963_p8)
}
 0xd19   : > { %s12967_s6 = scalar_lea.hbm %s16818_s28, 16  ;;  %s12971_s27 = scalar_lea.hbm %s16937_s3, 32 }
 0xd1a   : > { %p12968_p9 = scmp.ne.s32.totalorder %s16818_s28, %s12967_s6  ;;  %p12972_p12 = scmp.lt.u32.totalorder %s16818_s28, %s16937_s3 }
 0xd1b   : > { %p12973_p13 = scmp.lt.u32.totalorder %s12971_s27, %s12967_s6  ;;  %p12975_p1 = scmp.lt.u32.totalorder %s12967_s6, %s16818_s28 }
 0xd1c   : > { %p12969_p10 = pnand %p12968_p9, %p13219_p5 }
 0xd1d   : > { %p12974_p0 = por %p12973_p13, %p12972_p12 }
 0xd1e   : > { %p12970_p11 = pneg %p12969_p10 }
 0xd1f   : > { %p12976_p2 = por %p12975_p1, %p12974_p0 }
 0xd21   : > { %p12977_p3 = pnand %p12976_p2, %p12970_p11 }
 0xd23   : > { %12980 = shalt.err (!%p12977_p3)
}
 0xd24   : > { %12781 = dma.vmem_to_hbm [thread:$0]  (%p13219_p5), %s16820_s9, 16, %s16818_s28, %s9484_s29  }
 0xd25 PF: > { %s16939_s8 = sld [smem:[#allocation17_spill]]  ;;  %p12787_p4 = scmp.ge.s32.totalorder %s13027_s30, 2 }
 0xd27   : > { %p12784_p7 = pnand %p12787_p4, %p13223_p6 }
 0xd2b   : > { %s9508_s7 = sand.u32 1, %s16939_s8  }
 0xd2c   : > { %s9509_s25 = scalar_lea.sflag [#allocation15], %s9508_s7 }
 0xd2d   : > { %13010 = dma.done.wait (!%p12784_p7), %s9509_s25, 16  }
 0xd2e   : > { %13012 = vsyncadd (!%p12784_p7), %s9509_s25, 4294967280  ;;  %s16941_s30 = sld [smem:[#allocation19_spill]]  ;;  %s16942_s6 = sld [smem:[#allocation18_spill]] }
 0xd2f   : > { %s16943_s0 = sld [smem:[#allocation20_spill]]  ;;  %s16944_s29 = smov %s13019_s2 }
 0xd34   : > { %p35_p8 = scmp.ge.s32.totalorder %s16941_s30, 4   ;;  %s16945_s2 = smov %s16942_s6 }
 0xd35   : > { %s16946_s6 = smov %s16943_s0 }
 0xd36   :  { %37 = sbr.rel (!%p35_p8) target bundleno = 15 (0xf), region = 297 }
 0xd3d   :  { %9513 = vsyncpa [#allocation15], 1 }
 0xd3e   :  { %9515 = vsyncpa [#allocation15 + $0x1], 1 }

</bundles_post_ra>
